<compile_context>
chip_gen: v6e
topology: v6e:2x2x1
jax: 0.10.0
libtpu: 0.0.40
codegen_flags: <defaults>
</compile_context>

<pallas_src>
import jax
import jax.numpy as jnp
from jax.experimental import pallas as pl
from jax.experimental.pallas import tpu as pltpu


# ----------------------------------------------------------------------------
# Conv-stack geometry (hard-coded by the module: 84x84 input -> 20 -> 9 -> 7).
# ----------------------------------------------------------------------------
_PHASE_ROWS = 112          # 10*10 valid conv2 rows per (batch, phase) + 12 zero pad
_N_PHASE = 4               # 2x2 phase split of conv2's 20x20 output (conv3 stride 2)
_ROWS2 = _N_PHASE * _PHASE_ROWS   # 448 conv2 rows per batch element
_ROWS3 = 96                # conv3 rows computed per batch (10-pitch grid, 9x9 valid)
_ROWS4 = 72                # conv4 rows computed per batch (10-pitch grid, 7x7 valid)


# ----------------------------------------------------------------------------
# Pallas kernels
# ----------------------------------------------------------------------------
def _conv_stack_kernel(a2_ref, w2_ref, b2_ref, w3_ref, b3_ref, w4_ref, b4_ref,
                       o_ref, y2_ref, y3_ref, p3_ref, p4_ref):
    """Fused conv2(+folded 1x1)+ReLU, conv3+ReLU, conv4+ReLU for one image."""
    # --- conv2: phase-split im2col rows (built XLA-side from the raw input).
    w2 = w2_ref[...]
    b2 = b2_ref[...]
    for ph in range(_N_PHASE):
        r0 = ph * _PHASE_ROWS
        acc = jnp.dot(a2_ref[r0:r0 + _PHASE_ROWS, :], w2,
                      preferred_element_type=jnp.float32)
        y2_ref[r0:r0 + _PHASE_ROWS, :] = jnp.maximum(acc + b2, 0.0)

    # --- conv3 (k=4, s=2): in-VMEM im2col.  Tap (i, j) with i = 2*q1 + r1,
    # j = 2*q2 + r2 reads phase (r1, r2) of y2 shifted by q1*10 + q2 rows
    # (contiguous row slice thanks to the phase split -> no strided gather).
    for r1 in range(2):
        for r2 in range(2):
            base = (r1 * 2 + r2) * _PHASE_ROWS
            for q1 in range(2):
                for q2 in range(2):
                    tap = (2 * q1 + r1) * 4 + (2 * q2 + r2)
                    src = base + q1 * 10 + q2
                    p3_ref[:, tap * 64:(tap + 1) * 64] = (
                        y2_ref[src:src + _ROWS3, :].astype(jnp.bfloat16))
    acc = jnp.dot(p3_ref[...], w3_ref[...], preferred_element_type=jnp.float32)
    y3_ref[...] = jnp.maximum(acc + b3_ref[...], 0.0)

    # --- conv4 (k=3, s=1): in-VMEM im2col over the 10-pitch conv3 grid.
    for i in range(3):
        for j in range(3):
            tap = i * 3 + j
            src = i * 10 + j
            p4_ref[:, tap * 64:(tap + 1) * 64] = (
                y3_ref[src:src + _ROWS4, :].astype(jnp.bfloat16))
    acc = jnp.dot(p4_ref[...], w4_ref[...], preferred_element_type=jnp.float32)
    acc = jnp.maximum(acc + b4_ref[...], 0.0)

    # --- keep only the valid 7x7 rows (grid row oh*10+ow with oh, ow < 7).
    for oh in range(7):
        o_ref[0, oh * 7:(oh + 1) * 7, :] = (
            acc[oh * 10:oh * 10 + 7, :].astype(o_ref.dtype))


def _head_kernel(x_ref, w1_ref, b1_ref, w2_ref, b2_ref, o_ref):
    # Fused: Linear(3136->512) + ReLU + Linear(512->A) + Softmax.
    h = jnp.dot(x_ref[...], w1_ref[...], preferred_element_type=jnp.float32)
    h = jnp.maximum(h + b1_ref[...], 0.0)
    logits = jnp.dot(h.astype(jnp.bfloat16), w2_ref[...],
                     preferred_element_type=jnp.float32)
    logits = logits + b2_ref[...]
    m = jnp.max(logits, axis=-1, keepdims=True)
    e = jnp.exp(logits - m)
    # Exact division (A is tiny): rows sum to 1 at f32 precision.
    o_ref[...] = (e / jnp.sum(e, axis=-1, keepdims=True)).astype(o_ref.dtype)


# ----------------------------------------------------------------------------
# Pallas wrappers
# ----------------------------------------------------------------------------
def conv_stack(a2, w2m, b2, w3m, b3, w4m, b4):
    """a2: (B*448, 64*Cin) phase-split conv2 patches -> (B, 49, 64) features."""
    rows, k2 = a2.shape
    batch = rows // _ROWS2
    cost = pl.CostEstimate(
        flops=2 * batch * (_ROWS2 * k2 * 64 + _ROWS3 * 1024 * 64
                           + _ROWS4 * 576 * 64),
        transcendentals=0,
        bytes_accessed=(rows * k2 + (k2 + 1024 + 576) * 64) * 2
                       + 3 * 64 * 4 + batch * 49 * 64 * 2,
    )
    return pl.pallas_call(
        _conv_stack_kernel,
        out_shape=jax.ShapeDtypeStruct((batch, 49, 64), jnp.bfloat16),
        grid_spec=pltpu.PrefetchScalarGridSpec(
            num_scalar_prefetch=0,
            grid=(batch,),
            in_specs=[
                pl.BlockSpec((_ROWS2, k2), lambda i: (i, 0)),
                pl.BlockSpec((k2, 64), lambda i: (0, 0)),
                pl.BlockSpec((1, 64), lambda i: (0, 0)),
                pl.BlockSpec((1024, 64), lambda i: (0, 0)),
                pl.BlockSpec((1, 64), lambda i: (0, 0)),
                pl.BlockSpec((576, 64), lambda i: (0, 0)),
                pl.BlockSpec((1, 64), lambda i: (0, 0)),
            ],
            out_specs=pl.BlockSpec((1, 49, 64), lambda i: (i, 0, 0)),
            scratch_shapes=[
                pltpu.VMEM((_ROWS2, 64), jnp.float32),      # conv2 out (phase-split)
                pltpu.VMEM((_ROWS3, 64), jnp.float32),      # conv3 out (10-pitch grid)
                pltpu.VMEM((_ROWS3, 1024), jnp.bfloat16),   # conv3 im2col patches
                pltpu.VMEM((_ROWS4, 576), jnp.bfloat16),    # conv4 im2col patches
            ],
        ),
        compiler_params=pltpu.CompilerParams(
            dimension_semantics=("parallel",)),
        cost_estimate=cost,
    )(a2, w2m, b2.reshape(1, 64).astype(jnp.float32),
      w3m, b3.reshape(1, 64).astype(jnp.float32),
      w4m, b4.reshape(1, 64).astype(jnp.float32))


def linear_head(x, w1, b1, w2, b2):
    """Fused Linear+ReLU+Linear+Softmax. x: (B, K1); w1: (K1, H); w2: (H, A)."""
    B, K1 = x.shape
    H = w1.shape[1]
    A = w2.shape[1]
    cost = pl.CostEstimate(
        flops=2 * B * K1 * H + 2 * B * H * A,
        transcendentals=B * A,
        bytes_accessed=(B * K1 + K1 * H + H * A) * 2 + (H + A + B * A) * 4,
    )
    return pl.pallas_call(
        _head_kernel,
        out_shape=jax.ShapeDtypeStruct((B, A), jnp.float32),
        cost_estimate=cost,
    )(x.astype(jnp.bfloat16), w1.astype(jnp.bfloat16),
      b1.reshape(1, H).astype(jnp.float32),
      w2.astype(jnp.bfloat16), b2.reshape(1, A).astype(jnp.float32))


# ----------------------------------------------------------------------------
# DQN parameters, preprocessing + forward
# ----------------------------------------------------------------------------
def conv2d_size_out(size, kernels_size, strides, paddings, dilations):
    for kernel_size, stride, padding, dilation in zip(kernels_size, strides, paddings, dilations):
        size = (size + 2 * padding - dilation * (kernel_size - 1) - 1) // stride + 1
    return size


def init_dqn_params(key, action_space, n_channel):
    outp_size = conv2d_size_out(84, [8, 4, 3], [4, 2, 1], [0, 0, 0], [1, 1, 1])
    flat = 64 * outp_size ** 2                     # 3136

    def uniform(key, shape, fan_in):
        bound = 1.0 / jnp.sqrt(jnp.float32(fan_in))
        return jax.random.uniform(key, shape, jnp.float32, -bound, bound)

    keys = jax.random.split(key, 12)
    return {
        # conv weights in PyTorch (Cout, Cin, kh, kw) layout
        "w1": uniform(keys[0], (32, n_channel, 1, 1), n_channel),
        "b1": uniform(keys[1], (32,), n_channel),
        "w2": uniform(keys[2], (64, 32, 8, 8), 32 * 8 * 8),
        "b2": uniform(keys[3], (64,), 32 * 8 * 8),
        "w3": uniform(keys[4], (64, 64, 4, 4), 64 * 4 * 4),
        "b3": uniform(keys[5], (64,), 64 * 4 * 4),
        "w4": uniform(keys[6], (64, 64, 3, 3), 64 * 3 * 3),
        "b4": uniform(keys[7], (64,), 64 * 3 * 3),
        # linear weights in PyTorch (out_features, in_features) layout
        "wl1": uniform(keys[8], (512, flat), flat),
        "bl1": uniform(keys[9], (512,), flat),
        "wl2": uniform(keys[10], (action_space, 512), 512),
        "bl2": uniform(keys[11], (action_space,), 512),
    }


def _conv_weight_to_mat(w_oihw):
    # (Cout, Cin, kh, kw) -> (kh*kw*Cin, Cout), matching im2col patch order.
    Cout = w_oihw.shape[0]
    return jnp.transpose(w_oihw, (2, 3, 1, 0)).reshape(-1, Cout)


def prepare_fast_params(params):
    """One-time preprocessing (outside jit):
       * fold the 1x1 conv (no activation -> pure linear composition) into conv2,
       * reshape conv weights to im2col-matmul layout,
       * pre-transpose linear weights to (in, out) and permute wl1's rows from
         PyTorch's (c, h, w) flatten order to the kernel's (h, w, c) order,
       * cast matmul weights to bf16 (biases stay f32)."""
    w1 = params["w1"][:, :, 0, 0]                        # (32, Cin)
    b1 = params["b1"]                                    # (32,)
    w2 = params["w2"]                                    # (64, 32, 8, 8)
    w2_folded = jnp.einsum("ochw,ci->oihw", w2, w1)      # (64, Cin, 8, 8)
    b2_folded = params["b2"] + jnp.einsum("ochw,c->o", w2, b1)
    bf16 = jnp.bfloat16
    # wl1: (512, 3136) with column index c*49 + h*7 + w  ->  (3136, 512) with
    # row index (h*7 + w)*64 + c, matching the conv kernel's flatten order.
    wl1_hwc = jnp.transpose(params["wl1"].reshape(512, 64, 7, 7),
                            (2, 3, 1, 0)).reshape(49 * 64, 512)
    return {
        "w2m": _conv_weight_to_mat(w2_folded).astype(bf16),
        "b2": b2_folded.astype(jnp.float32),
        "w3m": _conv_weight_to_mat(params["w3"]).astype(bf16),
        "b3": params["b3"].astype(jnp.float32),
        "w4m": _conv_weight_to_mat(params["w4"]).astype(bf16),
        "b4": params["b4"].astype(jnp.float32),
        "wl1": wl1_hwc.astype(bf16),                     # (3136, 512)
        "bl1": params["bl1"].astype(jnp.float32),
        "wl2": params["wl2"].T.astype(bf16),             # (512, A)
        "bl2": params["bl2"].astype(jnp.float32),
    }


def dqn_forward(fast, x_nchw):
    B, C = x_nchw.shape[0], x_nchw.shape[1]
    k2 = 64 * C
    # NCHW -> NHWC, bf16 (channels-last, MXU-native operand dtype).
    x = jnp.transpose(x_nchw, (0, 2, 3, 1)).astype(jnp.bfloat16)

    # conv2 im2col on the raw input (XLA, ~450 KB), rows ordered
    # (b, phase1, phase2, m, n) so the fused kernel sees a phase-split layout.
    taps = []
    for i in range(8):
        for j in range(8):
            taps.append(x[:, i:i + 80:4, j:j + 80:4, :])       # (B, 20, 20, C)
    p = jnp.stack(taps, axis=3).reshape(B, 20, 20, k2)
    p = jnp.transpose(p.reshape(B, 10, 2, 10, 2, k2), (0, 2, 4, 1, 3, 5))
    p = p.reshape(B * _N_PHASE, 100, k2)
    p = jnp.pad(p, ((0, 0), (0, _PHASE_ROWS - 100), (0, 0)))
    a2 = p.reshape(B * _ROWS2, k2)

    # Fused conv stack (single pallas_call, gridded over batch).
    feat = conv_stack(a2, fast["w2m"], fast["b2"], fast["w3m"], fast["b3"],
                      fast["w4m"], fast["b4"])                 # (B, 49, 64) bf16
    feat = feat.reshape(B, 49 * 64)                            # free reshape

    # Fused linear head: Linear(3136,512)+ReLU, Linear(512,A)+Softmax.
    return linear_head(feat, fast["wl1"], fast["bl1"], fast["wl2"], fast["bl2"])


# ----------------------------------------------------------------------------
# Pure-JAX reference (f32, mirrors the PyTorch module) for validation only
# ----------------------------------------------------------------------------
def reference_forward(params, x_nchw):
    def conv(x, w, b, stride):
        y = jax.lax.conv_general_dilated(
            x, w, window_strides=(stride, stride), padding="VALID",
            dimension_numbers=("NCHW", "OIHW", "NCHW"))
        return y + b.reshape(1, -1, 1, 1)

    x = x_nchw.astype(jnp.float32)
    x = conv(x, params["w1"], params["b1"], 1)
    x = jax.nn.relu(conv(x, params["w2"], params["b2"], 4))
    x = jax.nn.relu(conv(x, params["w3"], params["b3"], 2))
    x = jax.nn.relu(conv(x, params["w4"], params["b4"], 1))
    x = x.reshape(x.shape[0], -1)
    x = jax.nn.relu(x @ params["wl1"].T + params["bl1"])
    logits = x @ params["wl2"].T + params["bl2"]
    return jax.nn.softmax(logits, axis=-1)


if __name__ == "__main__":
    action_space = 6
    n_channel = 4
    batch = 2

    key = jax.random.PRNGKey(0)
    pkey, xkey = jax.random.split(key)
    params = init_dqn_params(pkey, action_space, n_channel)
    fast = prepare_fast_params(params)

    # The module hard-codes an 84x84 spatial input (3136 = 64*7*7 flatten).
    x = jax.random.normal(xkey, (batch, n_channel, 84, 84), dtype=jnp.float32)

    out = jax.jit(dqn_forward)(fast, x)
    out = jax.block_until_ready(out)

    assert out.shape == (batch, action_space), out.shape
    row_sums = jnp.sum(out, axis=-1)
    assert bool(jnp.all(jnp.abs(row_sums - 1.0) < 1e-3)), row_sums

    ref = reference_forward(params, x)
    max_err = float(jnp.max(jnp.abs(out - ref.astype(jnp.float32))))
    assert max_err < 2e-2, max_err
    print("KERNEL_OK")
</pallas_src>

<mosaic_0001>
module attributes {stable_mosaic.version = 11 : i64} {
  func.func @_conv_stack_kernel(%arg0: i32, %arg1: memref<448x256xbf16, #tpu.memory_space<vmem>>, %arg2: memref<256x64xbf16, #tpu.memory_space<vmem>>, %arg3: memref<1x64xf32, #tpu.memory_space<vmem>>, %arg4: memref<1024x64xbf16, #tpu.memory_space<vmem>>, %arg5: memref<1x64xf32, #tpu.memory_space<vmem>>, %arg6: memref<576x64xbf16, #tpu.memory_space<vmem>>, %arg7: memref<1x64xf32, #tpu.memory_space<vmem>>, %arg8: memref<1x49x64xbf16, #tpu.memory_space<vmem>>, %arg9: memref<448x64xf32, #tpu.memory_space<vmem>>, %arg10: memref<96x64xf32, #tpu.memory_space<vmem>>, %arg11: memref<96x1024xbf16, #tpu.memory_space<vmem>>, %arg12: memref<72x576xbf16, #tpu.memory_space<vmem>>) attributes {dimension_semantics = [#tpu.dimension_semantics<parallel>], iteration_bounds = array<i64: 2>, scalar_prefetch = 0 : i64, scratch_operands = 4 : i64, tpu.core_type = #tpu.core_type<tc>, window_params = [{transform_indices = @transform_0, window_bounds = array<i64: 448, 256>}, {pipeline_mode = #tpu.pipeline_mode<synchronous>, transform_indices = @transform_1, window_bounds = array<i64: 256, 64>}, {pipeline_mode = #tpu.pipeline_mode<synchronous>, transform_indices = @transform_2, window_bounds = array<i64: 1, 64>}, {pipeline_mode = #tpu.pipeline_mode<synchronous>, transform_indices = @transform_3, window_bounds = array<i64: 1024, 64>}, {pipeline_mode = #tpu.pipeline_mode<synchronous>, transform_indices = @transform_4, window_bounds = array<i64: 1, 64>}, {pipeline_mode = #tpu.pipeline_mode<synchronous>, transform_indices = @transform_5, window_bounds = array<i64: 576, 64>}, {pipeline_mode = #tpu.pipeline_mode<synchronous>, transform_indices = @transform_6, window_bounds = array<i64: 1, 64>}, {transform_indices = @transform_7, window_bounds = array<i64: 1, 49, 64>}]} {
    %c0 = arith.constant 0 : index
    %c0_0 = arith.constant 0 : index
    %0 = vector.load %arg2[%c0, %c0_0] : memref<256x64xbf16, #tpu.memory_space<vmem>>, vector<256x64xbf16>
    %c0_1 = arith.constant 0 : index
    %c0_2 = arith.constant 0 : index
    %1 = vector.load %arg3[%c0_1, %c0_2] : memref<1x64xf32, #tpu.memory_space<vmem>>, vector<1x64xf32>
    %c0_3 = arith.constant 0 : index
    %c0_4 = arith.constant 0 : index
    %2 = vector.load %arg1[%c0_3, %c0_4] : memref<448x256xbf16, #tpu.memory_space<vmem>>, vector<112x256xbf16>
    %cst = arith.constant dense<0.000000e+00> : vector<112x64xf32>
    %3 = tpu.matmul %2, %0, %cst {dimension_numbers = #tpu.dot_dimension_numbers<[1], [0], [0], [1], [0, 0, 1, 1], [], []>} : vector<112x256xbf16>, vector<256x64xbf16>, vector<112x64xf32> -> vector<112x64xf32>
    %4 = vector.broadcast %1 : vector<1x64xf32> to vector<112x64xf32>
    %5 = arith.addf %3, %4 : vector<112x64xf32>
    %cst_5 = arith.constant 0.000000e+00 : f32
    %6 = vector.broadcast %cst_5 : f32 to vector<112x64xf32>
    %7 = arith.maximumf %5, %6 : vector<112x64xf32>
    %c0_6 = arith.constant 0 : index
    %c0_7 = arith.constant 0 : index
    %8 = vector.load %arg9[%c0_6, %c0_7] : memref<448x64xf32, #tpu.memory_space<vmem>>, vector<112x64xf32>
    tpu.vector_store %arg9[%c0_6, %c0_7], %7 {strides = array<i32>} : memref<448x64xf32, #tpu.memory_space<vmem>>, vector<112x64xf32>,
    %c112 = arith.constant 112 : index
    %c0_8 = arith.constant 0 : index
    %9 = vector.load %arg1[%c112, %c0_8] : memref<448x256xbf16, #tpu.memory_space<vmem>>, vector<112x256xbf16>
    %cst_9 = arith.constant dense<0.000000e+00> : vector<112x64xf32>
    %10 = tpu.matmul %9, %0, %cst_9 {dimension_numbers = #tpu.dot_dimension_numbers<[1], [0], [0], [1], [0, 0, 1, 1], [], []>} : vector<112x256xbf16>, vector<256x64xbf16>, vector<112x64xf32> -> vector<112x64xf32>
    %11 = vector.broadcast %1 : vector<1x64xf32> to vector<112x64xf32>
    %12 = arith.addf %10, %11 : vector<112x64xf32>
    %cst_10 = arith.constant 0.000000e+00 : f32
    %13 = vector.broadcast %cst_10 : f32 to vector<112x64xf32>
    %14 = arith.maximumf %12, %13 : vector<112x64xf32>
    %c112_11 = arith.constant 112 : index
    %c0_12 = arith.constant 0 : index
    %15 = vector.load %arg9[%c112_11, %c0_12] : memref<448x64xf32, #tpu.memory_space<vmem>>, vector<112x64xf32>
    tpu.vector_store %arg9[%c112_11, %c0_12], %14 {strides = array<i32>} : memref<448x64xf32, #tpu.memory_space<vmem>>, vector<112x64xf32>,
    %c224 = arith.constant 224 : index
    %c0_13 = arith.constant 0 : index
    %16 = vector.load %arg1[%c224, %c0_13] : memref<448x256xbf16, #tpu.memory_space<vmem>>, vector<112x256xbf16>
    %cst_14 = arith.constant dense<0.000000e+00> : vector<112x64xf32>
    %17 = tpu.matmul %16, %0, %cst_14 {dimension_numbers = #tpu.dot_dimension_numbers<[1], [0], [0], [1], [0, 0, 1, 1], [], []>} : vector<112x256xbf16>, vector<256x64xbf16>, vector<112x64xf32> -> vector<112x64xf32>
    %18 = vector.broadcast %1 : vector<1x64xf32> to vector<112x64xf32>
    %19 = arith.addf %17, %18 : vector<112x64xf32>
    %cst_15 = arith.constant 0.000000e+00 : f32
    %20 = vector.broadcast %cst_15 : f32 to vector<112x64xf32>
    %21 = arith.maximumf %19, %20 : vector<112x64xf32>
    %c224_16 = arith.constant 224 : index
    %c0_17 = arith.constant 0 : index
    %22 = vector.load %arg9[%c224_16, %c0_17] : memref<448x64xf32, #tpu.memory_space<vmem>>, vector<112x64xf32>
    tpu.vector_store %arg9[%c224_16, %c0_17], %21 {strides = array<i32>} : memref<448x64xf32, #tpu.memory_space<vmem>>, vector<112x64xf32>,
    %c336 = arith.constant 336 : index
    %c0_18 = arith.constant 0 : index
    %23 = vector.load %arg1[%c336, %c0_18] : memref<448x256xbf16, #tpu.memory_space<vmem>>, vector<112x256xbf16>
    %cst_19 = arith.constant dense<0.000000e+00> : vector<112x64xf32>
    %24 = tpu.matmul %23, %0, %cst_19 {dimension_numbers = #tpu.dot_dimension_numbers<[1], [0], [0], [1], [0, 0, 1, 1], [], []>} : vector<112x256xbf16>, vector<256x64xbf16>, vector<112x64xf32> -> vector<112x64xf32>
    %25 = vector.broadcast %1 : vector<1x64xf32> to vector<112x64xf32>
    %26 = arith.addf %24, %25 : vector<112x64xf32>
    %cst_20 = arith.constant 0.000000e+00 : f32
    %27 = vector.broadcast %cst_20 : f32 to vector<112x64xf32>
    %28 = arith.maximumf %26, %27 : vector<112x64xf32>
    %c336_21 = arith.constant 336 : index
    %c0_22 = arith.constant 0 : index
    %29 = vector.load %arg9[%c336_21, %c0_22] : memref<448x64xf32, #tpu.memory_space<vmem>>, vector<112x64xf32>
    tpu.vector_store %arg9[%c336_21, %c0_22], %28 {strides = array<i32>} : memref<448x64xf32, #tpu.memory_space<vmem>>, vector<112x64xf32>,
    %c0_23 = arith.constant 0 : index
    %c0_24 = arith.constant 0 : index
    %30 = vector.load %arg9[%c0_23, %c0_24] : memref<448x64xf32, #tpu.memory_space<vmem>>, vector<96x64xf32>
    %31 = arith.truncf %30 : vector<96x64xf32> to vector<96x64xbf16>
    %c0_25 = arith.constant 0 : index
    %c0_26 = arith.constant 0 : index
    %32 = vector.load %arg11[%c0_25, %c0_26] : memref<96x1024xbf16, #tpu.memory_space<vmem>>, vector<96x64xbf16>
    tpu.vector_store %arg11[%c0_25, %c0_26], %31 {strides = array<i32>} : memref<96x1024xbf16, #tpu.memory_space<vmem>>, vector<96x64xbf16>,
    %c1 = arith.constant 1 : index
    %c0_27 = arith.constant 0 : index
    %33 = vector.load %arg9[%c1, %c0_27] : memref<448x64xf32, #tpu.memory_space<vmem>>, vector<96x64xf32>
    %34 = arith.truncf %33 : vector<96x64xf32> to vector<96x64xbf16>
    %c0_28 = arith.constant 0 : index
    %c128 = arith.constant 128 : index
    %35 = vector.load %arg11[%c0_28, %c128] : memref<96x1024xbf16, #tpu.memory_space<vmem>>, vector<96x64xbf16>
    tpu.vector_store %arg11[%c0_28, %c128], %34 {strides = array<i32>} : memref<96x1024xbf16, #tpu.memory_space<vmem>>, vector<96x64xbf16>,
    %c10 = arith.constant 10 : index
    %c0_29 = arith.constant 0 : index
    %36 = vector.load %arg9[%c10, %c0_29] : memref<448x64xf32, #tpu.memory_space<vmem>>, vector<96x64xf32>
    %37 = arith.truncf %36 : vector<96x64xf32> to vector<96x64xbf16>
    %c0_30 = arith.constant 0 : index
    %c512 = arith.constant 512 : index
    %38 = vector.load %arg11[%c0_30, %c512] : memref<96x1024xbf16, #tpu.memory_space<vmem>>, vector<96x64xbf16>
    tpu.vector_store %arg11[%c0_30, %c512], %37 {strides = array<i32>} : memref<96x1024xbf16, #tpu.memory_space<vmem>>, vector<96x64xbf16>,
    %c11 = arith.constant 11 : index
    %c0_31 = arith.constant 0 : index
    %39 = vector.load %arg9[%c11, %c0_31] : memref<448x64xf32, #tpu.memory_space<vmem>>, vector<96x64xf32>
    %40 = arith.truncf %39 : vector<96x64xf32> to vector<96x64xbf16>
    %c0_32 = arith.constant 0 : index
    %c640 = arith.constant 640 : index
    %41 = vector.load %arg11[%c0_32, %c640] : memref<96x1024xbf16, #tpu.memory_space<vmem>>, vector<96x64xbf16>
    tpu.vector_store %arg11[%c0_32, %c640], %40 {strides = array<i32>} : memref<96x1024xbf16, #tpu.memory_space<vmem>>, vector<96x64xbf16>,
    %c112_33 = arith.constant 112 : index
    %c0_34 = arith.constant 0 : index
    %42 = vector.load %arg9[%c112_33, %c0_34] : memref<448x64xf32, #tpu.memory_space<vmem>>, vector<96x64xf32>
    %43 = arith.truncf %42 : vector<96x64xf32> to vector<96x64xbf16>
    %c0_35 = arith.constant 0 : index
    %c64 = arith.constant 64 : index
    %44 = vector.load %arg11[%c0_35, %c64] : memref<96x1024xbf16, #tpu.memory_space<vmem>>, vector<96x64xbf16>
    tpu.vector_store %arg11[%c0_35, %c64], %43 {strides = array<i32>} : memref<96x1024xbf16, #tpu.memory_space<vmem>>, vector<96x64xbf16>,
    %c113 = arith.constant 113 : index
    %c0_36 = arith.constant 0 : index
    %45 = vector.load %arg9[%c113, %c0_36] : memref<448x64xf32, #tpu.memory_space<vmem>>, vector<96x64xf32>
    %46 = arith.truncf %45 : vector<96x64xf32> to vector<96x64xbf16>
    %c0_37 = arith.constant 0 : index
    %c192 = arith.constant 192 : index
    %47 = vector.load %arg11[%c0_37, %c192] : memref<96x1024xbf16, #tpu.memory_space<vmem>>, vector<96x64xbf16>
    tpu.vector_store %arg11[%c0_37, %c192], %46 {strides = array<i32>} : memref<96x1024xbf16, #tpu.memory_space<vmem>>, vector<96x64xbf16>,
    %c122 = arith.constant 122 : index
    %c0_38 = arith.constant 0 : index
    %48 = vector.load %arg9[%c122, %c0_38] : memref<448x64xf32, #tpu.memory_space<vmem>>, vector<96x64xf32>
    %49 = arith.truncf %48 : vector<96x64xf32> to vector<96x64xbf16>
    %c0_39 = arith.constant 0 : index
    %c576 = arith.constant 576 : index
    %50 = vector.load %arg11[%c0_39, %c576] : memref<96x1024xbf16, #tpu.memory_space<vmem>>, vector<96x64xbf16>
    tpu.vector_store %arg11[%c0_39, %c576], %49 {strides = array<i32>} : memref<96x1024xbf16, #tpu.memory_space<vmem>>, vector<96x64xbf16>,
    %c123 = arith.constant 123 : index
    %c0_40 = arith.constant 0 : index
    %51 = vector.load %arg9[%c123, %c0_40] : memref<448x64xf32, #tpu.memory_space<vmem>>, vector<96x64xf32>
    %52 = arith.truncf %51 : vector<96x64xf32> to vector<96x64xbf16>
    %c0_41 = arith.constant 0 : index
    %c704 = arith.constant 704 : index
    %53 = vector.load %arg11[%c0_41, %c704] : memref<96x1024xbf16, #tpu.memory_space<vmem>>, vector<96x64xbf16>
    tpu.vector_store %arg11[%c0_41, %c704], %52 {strides = array<i32>} : memref<96x1024xbf16, #tpu.memory_space<vmem>>, vector<96x64xbf16>,
    %c224_42 = arith.constant 224 : index
    %c0_43 = arith.constant 0 : index
    %54 = vector.load %arg9[%c224_42, %c0_43] : memref<448x64xf32, #tpu.memory_space<vmem>>, vector<96x64xf32>
    %55 = arith.truncf %54 : vector<96x64xf32> to vector<96x64xbf16>
    %c0_44 = arith.constant 0 : index
    %c256 = arith.constant 256 : index
    %56 = vector.load %arg11[%c0_44, %c256] : memref<96x1024xbf16, #tpu.memory_space<vmem>>, vector<96x64xbf16>
    tpu.vector_store %arg11[%c0_44, %c256], %55 {strides = array<i32>} : memref<96x1024xbf16, #tpu.memory_space<vmem>>, vector<96x64xbf16>,
    %c225 = arith.constant 225 : index
    %c0_45 = arith.constant 0 : index
    %57 = vector.load %arg9[%c225, %c0_45] : memref<448x64xf32, #tpu.memory_space<vmem>>, vector<96x64xf32>
    %58 = arith.truncf %57 : vector<96x64xf32> to vector<96x64xbf16>
    %c0_46 = arith.constant 0 : index
    %c384 = arith.constant 384 : index
    %59 = vector.load %arg11[%c0_46, %c384] : memref<96x1024xbf16, #tpu.memory_space<vmem>>, vector<96x64xbf16>
    tpu.vector_store %arg11[%c0_46, %c384], %58 {strides = array<i32>} : memref<96x1024xbf16, #tpu.memory_space<vmem>>, vector<96x64xbf16>,
    %c234 = arith.constant 234 : index
    %c0_47 = arith.constant 0 : index
    %60 = vector.load %arg9[%c234, %c0_47] : memref<448x64xf32, #tpu.memory_space<vmem>>, vector<96x64xf32>
    %61 = arith.truncf %60 : vector<96x64xf32> to vector<96x64xbf16>
    %c0_48 = arith.constant 0 : index
    %c768 = arith.constant 768 : index
    %62 = vector.load %arg11[%c0_48, %c768] : memref<96x1024xbf16, #tpu.memory_space<vmem>>, vector<96x64xbf16>
    tpu.vector_store %arg11[%c0_48, %c768], %61 {strides = array<i32>} : memref<96x1024xbf16, #tpu.memory_space<vmem>>, vector<96x64xbf16>,
    %c235 = arith.constant 235 : index
    %c0_49 = arith.constant 0 : index
    %63 = vector.load %arg9[%c235, %c0_49] : memref<448x64xf32, #tpu.memory_space<vmem>>, vector<96x64xf32>
    %64 = arith.truncf %63 : vector<96x64xf32> to vector<96x64xbf16>
    %c0_50 = arith.constant 0 : index
    %c896 = arith.constant 896 : index
    %65 = vector.load %arg11[%c0_50, %c896] : memref<96x1024xbf16, #tpu.memory_space<vmem>>, vector<96x64xbf16>
    tpu.vector_store %arg11[%c0_50, %c896], %64 {strides = array<i32>} : memref<96x1024xbf16, #tpu.memory_space<vmem>>, vector<96x64xbf16>,
    %c336_51 = arith.constant 336 : index
    %c0_52 = arith.constant 0 : index
    %66 = vector.load %arg9[%c336_51, %c0_52] : memref<448x64xf32, #tpu.memory_space<vmem>>, vector<96x64xf32>
    %67 = arith.truncf %66 : vector<96x64xf32> to vector<96x64xbf16>
    %c0_53 = arith.constant 0 : index
    %c320 = arith.constant 320 : index
    %68 = vector.load %arg11[%c0_53, %c320] : memref<96x1024xbf16, #tpu.memory_space<vmem>>, vector<96x64xbf16>
    tpu.vector_store %arg11[%c0_53, %c320], %67 {strides = array<i32>} : memref<96x1024xbf16, #tpu.memory_space<vmem>>, vector<96x64xbf16>,
    %c337 = arith.constant 337 : index
    %c0_54 = arith.constant 0 : index
    %69 = vector.load %arg9[%c337, %c0_54] : memref<448x64xf32, #tpu.memory_space<vmem>>, vector<96x64xf32>
    %70 = arith.truncf %69 : vector<96x64xf32> to vector<96x64xbf16>
    %c0_55 = arith.constant 0 : index
    %c448 = arith.constant 448 : index
    %71 = vector.load %arg11[%c0_55, %c448] : memref<96x1024xbf16, #tpu.memory_space<vmem>>, vector<96x64xbf16>
    tpu.vector_store %arg11[%c0_55, %c448], %70 {strides = array<i32>} : memref<96x1024xbf16, #tpu.memory_space<vmem>>, vector<96x64xbf16>,
    %c346 = arith.constant 346 : index
    %c0_56 = arith.constant 0 : index
    %72 = vector.load %arg9[%c346, %c0_56] : memref<448x64xf32, #tpu.memory_space<vmem>>, vector<96x64xf32>
    %73 = arith.truncf %72 : vector<96x64xf32> to vector<96x64xbf16>
    %c0_57 = arith.constant 0 : index
    %c832 = arith.constant 832 : index
    %74 = vector.load %arg11[%c0_57, %c832] : memref<96x1024xbf16, #tpu.memory_space<vmem>>, vector<96x64xbf16>
    tpu.vector_store %arg11[%c0_57, %c832], %73 {strides = array<i32>} : memref<96x1024xbf16, #tpu.memory_space<vmem>>, vector<96x64xbf16>,
    %c347 = arith.constant 347 : index
    %c0_58 = arith.constant 0 : index
    %75 = vector.load %arg9[%c347, %c0_58] : memref<448x64xf32, #tpu.memory_space<vmem>>, vector<96x64xf32>
    %76 = arith.truncf %75 : vector<96x64xf32> to vector<96x64xbf16>
    %c0_59 = arith.constant 0 : index
    %c960 = arith.constant 960 : index
    %77 = vector.load %arg11[%c0_59, %c960] : memref<96x1024xbf16, #tpu.memory_space<vmem>>, vector<96x64xbf16>
    tpu.vector_store %arg11[%c0_59, %c960], %76 {strides = array<i32>} : memref<96x1024xbf16, #tpu.memory_space<vmem>>, vector<96x64xbf16>,
    %c0_60 = arith.constant 0 : index
    %c0_61 = arith.constant 0 : index
    %78 = vector.load %arg11[%c0_60, %c0_61] : memref<96x1024xbf16, #tpu.memory_space<vmem>>, vector<96x1024xbf16>
    %c0_62 = arith.constant 0 : index
    %c0_63 = arith.constant 0 : index
    %79 = vector.load %arg4[%c0_62, %c0_63] : memref<1024x64xbf16, #tpu.memory_space<vmem>>, vector<1024x64xbf16>
    %cst_64 = arith.constant dense<0.000000e+00> : vector<96x64xf32>
    %80 = tpu.matmul %78, %79, %cst_64 {dimension_numbers = #tpu.dot_dimension_numbers<[1], [0], [0], [1], [0, 0, 1, 1], [], []>} : vector<96x1024xbf16>, vector<1024x64xbf16>, vector<96x64xf32> -> vector<96x64xf32>
    %c0_65 = arith.constant 0 : index
    %c0_66 = arith.constant 0 : index
    %81 = vector.load %arg5[%c0_65, %c0_66] : memref<1x64xf32, #tpu.memory_space<vmem>>, vector<1x64xf32>
    %82 = vector.broadcast %81 : vector<1x64xf32> to vector<96x64xf32>
    %83 = arith.addf %80, %82 : vector<96x64xf32>
    %cst_67 = arith.constant 0.000000e+00 : f32
    %84 = vector.broadcast %cst_67 : f32 to vector<96x64xf32>
    %85 = arith.maximumf %83, %84 : vector<96x64xf32>
    %c0_68 = arith.constant 0 : index
    %c0_69 = arith.constant 0 : index
    %86 = vector.load %arg10[%c0_68, %c0_69] : memref<96x64xf32, #tpu.memory_space<vmem>>, vector<96x64xf32>
    tpu.vector_store %arg10[%c0_68, %c0_69], %85 {strides = array<i32>} : memref<96x64xf32, #tpu.memory_space<vmem>>, vector<96x64xf32>,
    %c0_70 = arith.constant 0 : index
    %c0_71 = arith.constant 0 : index
    %87 = vector.load %arg10[%c0_70, %c0_71] : memref<96x64xf32, #tpu.memory_space<vmem>>, vector<72x64xf32>
    %88 = arith.truncf %87 : vector<72x64xf32> to vector<72x64xbf16>
    %c0_72 = arith.constant 0 : index
    %c0_73 = arith.constant 0 : index
    %89 = vector.load %arg12[%c0_72, %c0_73] : memref<72x576xbf16, #tpu.memory_space<vmem>>, vector<72x64xbf16>
    tpu.vector_store %arg12[%c0_72, %c0_73], %88 {strides = array<i32>} : memref<72x576xbf16, #tpu.memory_space<vmem>>, vector<72x64xbf16>,
    %c1_74 = arith.constant 1 : index
    %c0_75 = arith.constant 0 : index
    %90 = vector.load %arg10[%c1_74, %c0_75] : memref<96x64xf32, #tpu.memory_space<vmem>>, vector<72x64xf32>
    %91 = arith.truncf %90 : vector<72x64xf32> to vector<72x64xbf16>
    %c0_76 = arith.constant 0 : index
    %c64_77 = arith.constant 64 : index
    %92 = vector.load %arg12[%c0_76, %c64_77] : memref<72x576xbf16, #tpu.memory_space<vmem>>, vector<72x64xbf16>
    tpu.vector_store %arg12[%c0_76, %c64_77], %91 {strides = array<i32>} : memref<72x576xbf16, #tpu.memory_space<vmem>>, vector<72x64xbf16>,
    %c2 = arith.constant 2 : index
    %c0_78 = arith.constant 0 : index
    %93 = vector.load %arg10[%c2, %c0_78] : memref<96x64xf32, #tpu.memory_space<vmem>>, vector<72x64xf32>
    %94 = arith.truncf %93 : vector<72x64xf32> to vector<72x64xbf16>
    %c0_79 = arith.constant 0 : index
    %c128_80 = arith.constant 128 : index
    %95 = vector.load %arg12[%c0_79, %c128_80] : memref<72x576xbf16, #tpu.memory_space<vmem>>, vector<72x64xbf16>
    tpu.vector_store %arg12[%c0_79, %c128_80], %94 {strides = array<i32>} : memref<72x576xbf16, #tpu.memory_space<vmem>>, vector<72x64xbf16>,
    %c10_81 = arith.constant 10 : index
    %c0_82 = arith.constant 0 : index
    %96 = vector.load %arg10[%c10_81, %c0_82] : memref<96x64xf32, #tpu.memory_space<vmem>>, vector<72x64xf32>
    %97 = arith.truncf %96 : vector<72x64xf32> to vector<72x64xbf16>
    %c0_83 = arith.constant 0 : index
    %c192_84 = arith.constant 192 : index
    %98 = vector.load %arg12[%c0_83, %c192_84] : memref<72x576xbf16, #tpu.memory_space<vmem>>, vector<72x64xbf16>
    tpu.vector_store %arg12[%c0_83, %c192_84], %97 {strides = array<i32>} : memref<72x576xbf16, #tpu.memory_space<vmem>>, vector<72x64xbf16>,
    %c11_85 = arith.constant 11 : index
    %c0_86 = arith.constant 0 : index
    %99 = vector.load %arg10[%c11_85, %c0_86] : memref<96x64xf32, #tpu.memory_space<vmem>>, vector<72x64xf32>
    %100 = arith.truncf %99 : vector<72x64xf32> to vector<72x64xbf16>
    %c0_87 = arith.constant 0 : index
    %c256_88 = arith.constant 256 : index
    %101 = vector.load %arg12[%c0_87, %c256_88] : memref<72x576xbf16, #tpu.memory_space<vmem>>, vector<72x64xbf16>
    tpu.vector_store %arg12[%c0_87, %c256_88], %100 {strides = array<i32>} : memref<72x576xbf16, #tpu.memory_space<vmem>>, vector<72x64xbf16>,
    %c12 = arith.constant 12 : index
    %c0_89 = arith.constant 0 : index
    %102 = vector.load %arg10[%c12, %c0_89] : memref<96x64xf32, #tpu.memory_space<vmem>>, vector<72x64xf32>
    %103 = arith.truncf %102 : vector<72x64xf32> to vector<72x64xbf16>
    %c0_90 = arith.constant 0 : index
    %c320_91 = arith.constant 320 : index
    %104 = vector.load %arg12[%c0_90, %c320_91] : memref<72x576xbf16, #tpu.memory_space<vmem>>, vector<72x64xbf16>
    tpu.vector_store %arg12[%c0_90, %c320_91], %103 {strides = array<i32>} : memref<72x576xbf16, #tpu.memory_space<vmem>>, vector<72x64xbf16>,
    %c20 = arith.constant 20 : index
    %c0_92 = arith.constant 0 : index
    %105 = vector.load %arg10[%c20, %c0_92] : memref<96x64xf32, #tpu.memory_space<vmem>>, vector<72x64xf32>
    %106 = arith.truncf %105 : vector<72x64xf32> to vector<72x64xbf16>
    %c0_93 = arith.constant 0 : index
    %c384_94 = arith.constant 384 : index
    %107 = vector.load %arg12[%c0_93, %c384_94] : memref<72x576xbf16, #tpu.memory_space<vmem>>, vector<72x64xbf16>
    tpu.vector_store %arg12[%c0_93, %c384_94], %106 {strides = array<i32>} : memref<72x576xbf16, #tpu.memory_space<vmem>>, vector<72x64xbf16>,
    %c21 = arith.constant 21 : index
    %c0_95 = arith.constant 0 : index
    %108 = vector.load %arg10[%c21, %c0_95] : memref<96x64xf32, #tpu.memory_space<vmem>>, vector<72x64xf32>
    %109 = arith.truncf %108 : vector<72x64xf32> to vector<72x64xbf16>
    %c0_96 = arith.constant 0 : index
    %c448_97 = arith.constant 448 : index
    %110 = vector.load %arg12[%c0_96, %c448_97] : memref<72x576xbf16, #tpu.memory_space<vmem>>, vector<72x64xbf16>
    tpu.vector_store %arg12[%c0_96, %c448_97], %109 {strides = array<i32>} : memref<72x576xbf16, #tpu.memory_space<vmem>>, vector<72x64xbf16>,
    %c22 = arith.constant 22 : index
    %c0_98 = arith.constant 0 : index
    %111 = vector.load %arg10[%c22, %c0_98] : memref<96x64xf32, #tpu.memory_space<vmem>>, vector<72x64xf32>
    %112 = arith.truncf %111 : vector<72x64xf32> to vector<72x64xbf16>
    %c0_99 = arith.constant 0 : index
    %c512_100 = arith.constant 512 : index
    %113 = vector.load %arg12[%c0_99, %c512_100] : memref<72x576xbf16, #tpu.memory_space<vmem>>, vector<72x64xbf16>
    tpu.vector_store %arg12[%c0_99, %c512_100], %112 {strides = array<i32>} : memref<72x576xbf16, #tpu.memory_space<vmem>>, vector<72x64xbf16>,
    %c0_101 = arith.constant 0 : index
    %c0_102 = arith.constant 0 : index
    %114 = vector.load %arg12[%c0_101, %c0_102] : memref<72x576xbf16, #tpu.memory_space<vmem>>, vector<72x576xbf16>
    %c0_103 = arith.constant 0 : index
    %c0_104 = arith.constant 0 : index
    %115 = vector.load %arg6[%c0_103, %c0_104] : memref<576x64xbf16, #tpu.memory_space<vmem>>, vector<576x64xbf16>
    %cst_105 = arith.constant dense<0.000000e+00> : vector<72x64xf32>
    %116 = tpu.matmul %114, %115, %cst_105 {dimension_numbers = #tpu.dot_dimension_numbers<[1], [0], [0], [1], [0, 0, 1, 1], [], []>} : vector<72x576xbf16>, vector<576x64xbf16>, vector<72x64xf32> -> vector<72x64xf32>
    %c0_106 = arith.constant 0 : index
    %c0_107 = arith.constant 0 : index
    %117 = vector.load %arg7[%c0_106, %c0_107] : memref<1x64xf32, #tpu.memory_space<vmem>>, vector<1x64xf32>
    %118 = vector.broadcast %117 : vector<1x64xf32> to vector<72x64xf32>
    %119 = arith.addf %116, %118 : vector<72x64xf32>
    %cst_108 = arith.constant 0.000000e+00 : f32
    %120 = vector.broadcast %cst_108 : f32 to vector<72x64xf32>
    %121 = arith.maximumf %119, %120 : vector<72x64xf32>
    %122 = vector.extract_strided_slice %121 {offsets = [0, 0], sizes = [7, 64], strides = [1, 1]} : vector<72x64xf32> to vector<7x64xf32>
    %123 = arith.truncf %122 : vector<7x64xf32> to vector<7x64xbf16>
    %c0_109 = arith.constant 0 : index
    %c0_110 = arith.constant 0 : index
    %c0_111 = arith.constant 0 : index
    %124 = vector.load %arg8[%c0_109, %c0_110, %c0_111] : memref<1x49x64xbf16, #tpu.memory_space<vmem>>, vector<1x7x64xbf16>
    %125 = vector.shape_cast %124 : vector<1x7x64xbf16> to vector<7x64xbf16>
    %126 = vector.shape_cast %123 : vector<7x64xbf16> to vector<1x7x64xbf16>
    tpu.vector_store %arg8[%c0_109, %c0_110, %c0_111], %126 {strides = array<i32>} : memref<1x49x64xbf16, #tpu.memory_space<vmem>>, vector<1x7x64xbf16>,
    %127 = vector.extract_strided_slice %121 {offsets = [10, 0], sizes = [7, 64], strides = [1, 1]} : vector<72x64xf32> to vector<7x64xf32>
    %128 = arith.truncf %127 : vector<7x64xf32> to vector<7x64xbf16>
    %c0_112 = arith.constant 0 : index
    %c7 = arith.constant 7 : index
    %c0_113 = arith.constant 0 : index
    %129 = vector.load %arg8[%c0_112, %c7, %c0_113] : memref<1x49x64xbf16, #tpu.memory_space<vmem>>, vector<1x7x64xbf16>
    %130 = vector.shape_cast %129 : vector<1x7x64xbf16> to vector<7x64xbf16>
    %131 = vector.shape_cast %128 : vector<7x64xbf16> to vector<1x7x64xbf16>
    tpu.vector_store %arg8[%c0_112, %c7, %c0_113], %131 {strides = array<i32>} : memref<1x49x64xbf16, #tpu.memory_space<vmem>>, vector<1x7x64xbf16>,
    %132 = vector.extract_strided_slice %121 {offsets = [20, 0], sizes = [7, 64], strides = [1, 1]} : vector<72x64xf32> to vector<7x64xf32>
    %133 = arith.truncf %132 : vector<7x64xf32> to vector<7x64xbf16>
    %c0_114 = arith.constant 0 : index
    %c14 = arith.constant 14 : index
    %c0_115 = arith.constant 0 : index
    %134 = vector.load %arg8[%c0_114, %c14, %c0_115] : memref<1x49x64xbf16, #tpu.memory_space<vmem>>, vector<1x7x64xbf16>
    %135 = vector.shape_cast %134 : vector<1x7x64xbf16> to vector<7x64xbf16>
    %136 = vector.shape_cast %133 : vector<7x64xbf16> to vector<1x7x64xbf16>
    tpu.vector_store %arg8[%c0_114, %c14, %c0_115], %136 {strides = array<i32>} : memref<1x49x64xbf16, #tpu.memory_space<vmem>>, vector<1x7x64xbf16>,
    %137 = vector.extract_strided_slice %121 {offsets = [30, 0], sizes = [7, 64], strides = [1, 1]} : vector<72x64xf32> to vector<7x64xf32>
    %138 = arith.truncf %137 : vector<7x64xf32> to vector<7x64xbf16>
    %c0_116 = arith.constant 0 : index
    %c21_117 = arith.constant 21 : index
    %c0_118 = arith.constant 0 : index
    %139 = vector.load %arg8[%c0_116, %c21_117, %c0_118] : memref<1x49x64xbf16, #tpu.memory_space<vmem>>, vector<1x7x64xbf16>
    %140 = vector.shape_cast %139 : vector<1x7x64xbf16> to vector<7x64xbf16>
    %141 = vector.shape_cast %138 : vector<7x64xbf16> to vector<1x7x64xbf16>
    tpu.vector_store %arg8[%c0_116, %c21_117, %c0_118], %141 {strides = array<i32>} : memref<1x49x64xbf16, #tpu.memory_space<vmem>>, vector<1x7x64xbf16>,
    %142 = vector.extract_strided_slice %121 {offsets = [40, 0], sizes = [7, 64], strides = [1, 1]} : vector<72x64xf32> to vector<7x64xf32>
    %143 = arith.truncf %142 : vector<7x64xf32> to vector<7x64xbf16>
    %c0_119 = arith.constant 0 : index
    %c28 = arith.constant 28 : index
    %c0_120 = arith.constant 0 : index
    %144 = vector.load %arg8[%c0_119, %c28, %c0_120] : memref<1x49x64xbf16, #tpu.memory_space<vmem>>, vector<1x7x64xbf16>
    %145 = vector.shape_cast %144 : vector<1x7x64xbf16> to vector<7x64xbf16>
    %146 = vector.shape_cast %143 : vector<7x64xbf16> to vector<1x7x64xbf16>
    tpu.vector_store %arg8[%c0_119, %c28, %c0_120], %146 {strides = array<i32>} : memref<1x49x64xbf16, #tpu.memory_space<vmem>>, vector<1x7x64xbf16>,
    %147 = vector.extract_strided_slice %121 {offsets = [50, 0], sizes = [7, 64], strides = [1, 1]} : vector<72x64xf32> to vector<7x64xf32>
    %148 = arith.truncf %147 : vector<7x64xf32> to vector<7x64xbf16>
    %c0_121 = arith.constant 0 : index
    %c35 = arith.constant 35 : index
    %c0_122 = arith.constant 0 : index
    %149 = vector.load %arg8[%c0_121, %c35, %c0_122] : memref<1x49x64xbf16, #tpu.memory_space<vmem>>, vector<1x7x64xbf16>
    %150 = vector.shape_cast %149 : vector<1x7x64xbf16> to vector<7x64xbf16>
    %151 = vector.shape_cast %148 : vector<7x64xbf16> to vector<1x7x64xbf16>
    tpu.vector_store %arg8[%c0_121, %c35, %c0_122], %151 {strides = array<i32>} : memref<1x49x64xbf16, #tpu.memory_space<vmem>>, vector<1x7x64xbf16>,
    %152 = vector.extract_strided_slice %121 {offsets = [60, 0], sizes = [7, 64], strides = [1, 1]} : vector<72x64xf32> to vector<7x64xf32>
    %153 = arith.truncf %152 : vector<7x64xf32> to vector<7x64xbf16>
    %c0_123 = arith.constant 0 : index
    %c42 = arith.constant 42 : index
    %c0_124 = arith.constant 0 : index
    %154 = vector.load %arg8[%c0_123, %c42, %c0_124] : memref<1x49x64xbf16, #tpu.memory_space<vmem>>, vector<1x7x64xbf16>
    %155 = vector.shape_cast %154 : vector<1x7x64xbf16> to vector<7x64xbf16>
    %156 = vector.shape_cast %153 : vector<7x64xbf16> to vector<1x7x64xbf16>
    tpu.vector_store %arg8[%c0_123, %c42, %c0_124], %156 {strides = array<i32>} : memref<1x49x64xbf16, #tpu.memory_space<vmem>>, vector<1x7x64xbf16>,
    return
  }
  func.func @transform_0(%arg0: i32) -> (i32, i32) {
    %c0_i32 = arith.constant 0 : i32
    %c0_i32_0 = arith.constant 0 : i32
    return %arg0, %c0_i32 : i32, i32
  }
  func.func @transform_1(%arg0: i32) -> (i32, i32) {
    %c0_i32 = arith.constant 0 : i32
    %c0_i32_0 = arith.constant 0 : i32
    %c0_i32_1 = arith.constant 0 : i32
    return %c0_i32, %c0_i32_0 : i32, i32
  }
  func.func @transform_2(%arg0: i32) -> (i32, i32) {
    %c0_i32 = arith.constant 0 : i32
    %c0_i32_0 = arith.constant 0 : i32
    %c0_i32_1 = arith.constant 0 : i32
    return %c0_i32, %c0_i32_0 : i32, i32
  }
  func.func @transform_3(%arg0: i32) -> (i32, i32) {
    %c0_i32 = arith.constant 0 : i32
    %c0_i32_0 = arith.constant 0 : i32
    %c0_i32_1 = arith.constant 0 : i32
    return %c0_i32, %c0_i32_0 : i32, i32
  }
  func.func @transform_4(%arg0: i32) -> (i32, i32) {
    %c0_i32 = arith.constant 0 : i32
    %c0_i32_0 = arith.constant 0 : i32
    %c0_i32_1 = arith.constant 0 : i32
    return %c0_i32, %c0_i32_0 : i32, i32
  }
  func.func @transform_5(%arg0: i32) -> (i32, i32) {
    %c0_i32 = arith.constant 0 : i32
    %c0_i32_0 = arith.constant 0 : i32
    %c0_i32_1 = arith.constant 0 : i32
    return %c0_i32, %c0_i32_0 : i32, i32
  }
  func.func @transform_6(%arg0: i32) -> (i32, i32) {
    %c0_i32 = arith.constant 0 : i32
    %c0_i32_0 = arith.constant 0 : i32
    %c0_i32_1 = arith.constant 0 : i32
    return %c0_i32, %c0_i32_0 : i32, i32
  }
  func.func @transform_7(%arg0: i32) -> (i32, i32, i32) {
    %c0_i32 = arith.constant 0 : i32
    %c0_i32_0 = arith.constant 0 : i32
    %c0_i32_1 = arith.constant 0 : i32
    return %arg0, %c0_i32, %c0_i32_0 : i32, i32, i32
  }
}

module attributes {stable_mosaic.version = 11 : i64} {
  func.func @_head_kernel(%arg0: memref<2x3136xbf16, #tpu.memory_space<vmem>>, %arg1: memref<3136x512xbf16, #tpu.memory_space<vmem>>, %arg2: memref<1x512xf32, #tpu.memory_space<vmem>>, %arg3: memref<512x6xbf16, #tpu.memory_space<vmem>>, %arg4: memref<1x6xf32, #tpu.memory_space<vmem>>, %arg5: memref<2x6xf32, #tpu.memory_space<vmem>>) attributes {dimension_semantics = [], scalar_prefetch = 0 : i64, scratch_operands = 0 : i64, tpu.core_type = #tpu.core_type<tc>} {
    %c0 = arith.constant 0 : index
    %c0_0 = arith.constant 0 : index
    %0 = vector.load %arg0[%c0, %c0_0] : memref<2x3136xbf16, #tpu.memory_space<vmem>>, vector<2x3136xbf16>
    %c0_1 = arith.constant 0 : index
    %c0_2 = arith.constant 0 : index
    %1 = vector.load %arg1[%c0_1, %c0_2] : memref<3136x512xbf16, #tpu.memory_space<vmem>>, vector<3136x512xbf16>
    %cst = arith.constant dense<0.000000e+00> : vector<2x512xf32>
    %2 = tpu.matmul %0, %1, %cst {dimension_numbers = #tpu.dot_dimension_numbers<[1], [0], [0], [1], [0, 0, 1, 1], [], []>} : vector<2x3136xbf16>, vector<3136x512xbf16>, vector<2x512xf32> -> vector<2x512xf32>
    %c0_3 = arith.constant 0 : index
    %c0_4 = arith.constant 0 : index
    %3 = vector.load %arg2[%c0_3, %c0_4] : memref<1x512xf32, #tpu.memory_space<vmem>>, vector<1x512xf32>
    %4 = vector.broadcast %3 : vector<1x512xf32> to vector<2x512xf32>
    %5 = arith.addf %2, %4 : vector<2x512xf32>
    %cst_5 = arith.constant 0.000000e+00 : f32
    %6 = vector.broadcast %cst_5 : f32 to vector<2x512xf32>
    %7 = arith.maximumf %5, %6 : vector<2x512xf32>
    %8 = arith.truncf %7 : vector<2x512xf32> to vector<2x512xbf16>
    %c0_6 = arith.constant 0 : index
    %c0_7 = arith.constant 0 : index
    %9 = vector.load %arg3[%c0_6, %c0_7] : memref<512x6xbf16, #tpu.memory_space<vmem>>, vector<512x6xbf16>
    %cst_8 = arith.constant dense<0.000000e+00> : vector<2x6xf32>
    %10 = tpu.matmul %8, %9, %cst_8 {dimension_numbers = #tpu.dot_dimension_numbers<[1], [0], [0], [1], [0, 0, 1, 1], [], []>} : vector<2x512xbf16>, vector<512x6xbf16>, vector<2x6xf32> -> vector<2x6xf32>
    %c0_9 = arith.constant 0 : index
    %c0_10 = arith.constant 0 : index
    %11 = vector.load %arg4[%c0_9, %c0_10] : memref<1x6xf32, #tpu.memory_space<vmem>>, vector<1x6xf32>
    %12 = vector.broadcast %11 : vector<1x6xf32> to vector<2x6xf32>
    %13 = arith.addf %10, %12 : vector<2x6xf32>
    %cst_11 = arith.constant dense<0xFF800000> : vector<2xf32>
    %14 = vector.multi_reduction <maximumf>, %13, %cst_11 [1] : vector<2x6xf32> to vector<2xf32>
    %15 = vector.shape_cast %14 : vector<2xf32> to vector<2x1xf32>
    %16 = vector.broadcast %15 : vector<2x1xf32> to vector<2x6xf32>
    %17 = arith.subf %13, %16 : vector<2x6xf32>
    %18 = math.exp %17 : vector<2x6xf32>
    %cst_12 = arith.constant dense<0.000000e+00> : vector<2xf32>
    %19 = vector.multi_reduction <add>, %18, %cst_12 [1] : vector<2x6xf32> to vector<2xf32>
    %20 = vector.shape_cast %19 : vector<2xf32> to vector<2x1xf32>
    %21 = vector.broadcast %20 : vector<2x1xf32> to vector<2x6xf32>
    %22 = arith.divf %18, %21 : vector<2x6xf32>
    %c0_13 = arith.constant 0 : index
    %c0_14 = arith.constant 0 : index
    %23 = vector.load %arg5[%c0_13, %c0_14] : memref<2x6xf32, #tpu.memory_space<vmem>>, vector<2x6xf32>
    tpu.vector_store %arg5[%c0_13, %c0_14], %22 {strides = array<i32>} : memref<2x6xf32, #tpu.memory_space<vmem>>, vector<2x6xf32>,
    return
  }
}

</mosaic_0001>

<bundles_post_ra>
// kernel: dqn_forward.2
= control target key start
LH: loop header
LB: loop body
LE: loop exit
PB: predicated region body
PF: predicated region fallthrough
CT: control target
= control target key end

     0   :  { %s6896_s24 = smov 0   ;;  %s8317_s0 = inlined_call_operand.vmem [shape: bf16[896,256], index: 0, kind: input, shape index: {}]   ;;  %s8318_s1 = inlined_call_operand.vmem [shape: bf16[256,64], index: 1, kind: input, shape index: {}]   ;;  %s8319_s2 = inlined_call_operand.vmem [shape: f32[1,64], index: 2, kind: input, shape index: {}]   ;;  %s8320_s3 = inlined_call_operand.vmem [shape: bf16[1024,64], index: 3, kind: input, shape index: {}]   ;;  %s8321_s4 = inlined_call_operand.vmem [shape: f32[1,64], index: 4, kind: input, shape index: {}]   ;;  %s8322_s5 = inlined_call_operand.vmem [shape: bf16[576,64], index: 5, kind: input, shape index: {}]   ;;  %s8323_s6 = inlined_call_operand.vmem [shape: f32[1,64], index: 6, kind: input, shape index: {}]   ;;  %s8324_s7 = inlined_call_operand.vmem [shape: bf16[2,49,64], index: 7, kind: output, shape index: {}]  }
   0x1 LB: > { %s6902_s25 = sadd.s32 4294967295, %s6851_s24   ;;  %p5200_p0 = scmp.ge.s32.totalorder %s6851_s24, 1  ;;  %s6851_s24 = sphi %s6896_s24, %s17_s24  }
   0x2   : > { %p239_p1 = scmp.lt.s32.totalorder %s6851_s24, 3 }
   0x4   : > { %p240_p2 = pnand %p5200_p0, %p239_p1 }
   0x6   : > { %243 = sbr.rel (%p240_p2) target bundleno = 1168 (0x490), region = 48 }
   0xb   : > { %v6618_v0 = vld [vmem:[%s8318_s1 + $0x78] sm:$0xff]   ;;  %s272_s28 = smul.u32 56, %s6902_s25  ;;  %v6918_v2 = vld [vmem:[%s8318_s1 + $0x70] sm:$0xff]   ;;  %v6931_v4 = vld [vmem:[%s8318_s1 + $0x68] sm:$0xff]   ;;  %vm607_vm0 = vcmask 523264   ;;  %s6853_s30 = smov 64  }
   0xc   : > { %v6913_v1 = vld [vmem:[%s8318_s1 + $0x38] sm:$0xff]   ;;  %6087 = vmatprep.subr.bf16.mxu1 %v6618_v0  ;;  %6029 = vmatprep.subr.bf16.mxu0 %v6618_v0  ;;  %v6924_v3 = vld [vmem:[%s8318_s1 + $0x30] sm:$0xff]   ;;  %v6938_v5 = vld [vmem:[%s8318_s1 + $0x28] sm:$0xff]   ;;  %vm1285_vm1 = vcmask 519168   ;;  %vm1598_vm2 = vcmask 1043968   ;;  %vm6855_vm3 = vmmov 0  }
   0xd   : > { %6088 = vmatpush3.bf16.msra.mxu1 %v6913_v1  ;;  %p273_p3 = scmp.lt.s32.totalorder %s272_s28, 111  ;;  %6030 = vmatpush3.bf16.msra.mxu0 %v6913_v1  ;;  %v6945_v6 = vld [vmem:[%s8318_s1 + $0x60] sm:$0xff]   ;;  %v6959_v8 = vld [vmem:[%s8318_s1 + $0x58] sm:$0xff]   ;;  %v6978_v10 = vld [vmem:[%s8318_s1 + $0x50] sm:$0xff]   ;;  %p279_p4 = scmp.lt.s32.totalorder %s6902_s25, 1  ;;  %vm5004_vm6 = vcmask 519171  }
   0xe   : > { %6089 = vmatprep.subr.bf16.mxu1 %v6918_v2  ;;  %6031 = vmatprep.subr.bf16.mxu0 %v6918_v2  ;;  %v6952_v7 = vld [vmem:[%s8318_s1 + $0x20] sm:$0xff]   ;;  %v6971_v9 = vld [vmem:[%s8318_s1 + $0x18] sm:$0xff]   ;;  %v6986_v12 = vld [vmem:[%s8318_s1 + $0x10] sm:$0xff]   ;;  %vm4974_vm4 = vsmask.f32 3328  ;;  %vm5010_vm10 = vcmask 518144  }
   0xf   : > { %s8352_s28 = smov (!%p273_p3, %s272_s28), 111  ;;  %v6992_v13 = vld [vmem:[%s8318_s1 + $0x48] sm:$0xff]   ;;  %v7006_v15 = vld [vmem:[%s8318_s1 + $0x40] sm:$0xff]   ;;  %s8354_s25 = smov (!%p279_p4, %s6902_s25), 1  ;;  %vm4975_vm5 = vmand %vm1285_vm1, %vm4974_vm4  ;;  %vm5005_vm7 = vsmask.f32 7950 }
  0x10   : > { %s5744_s20 = sshll.u32 %s8352_s28, 3  ;;  %v7000_v14 = vld [vmem:[%s8318_s1 + $0x8] sm:$0xff]   ;;  %v7014_v16 = vld [vmem:[%s8318_s1] sm:$0xff]   ;;  %s6606_s28 = smul.u32 28, %s8354_s25  ;;  %vm4985_vm8 = vsmask.f32 2304  ;;  %vm8222_vm11 = vmand %vm5004_vm6, %vm5005_vm7 }
  0x11   : > { %6090 = vmatpush3.bf16.msra.mxu1 %v6924_v3  ;;  %6032 = vmatpush3.bf16.msra.mxu0 %v6924_v3  ;;  %s6965_s27 = scalar_lea.vmem %s8317_s0, %s5744_s20  ;;  %vm4986_vm9 = vsmask.f32 6416  ;;  %vm5018_vm12 = vcmask 1040384   ;;  %vm5019_vm13 = vcmask 1044484   ;;  %vm5040_vm14 = vsmask.f32 7440 }
  0x12   : > { %6091 = vmatprep.subr.bf16.mxu1 %v6931_v4  ;;  %6033 = vmatprep.subr.bf16.mxu0 %v6931_v4  ;;  %v6636_v11 = vld [vmem:[%s6965_s27 + $0x74] ss:$8 sps:$4 sm:$0xff]   ;;  %v6634_v17 = vld [vmem:[%s6965_s27 + $0x70] ss:$8 sps:$4 sm:$0xff]   ;;  %v6637_v18 = vld [vmem:[%s6965_s27 + $0x84] ss:$8 sps:$4 sm:$0xff]   ;;  %s8210_s8 = scalar_lea.vmem %s8324_s7, %s6606_s28 }
  0x13   : > { %738 = vmatprep.mubr.bf16.mxu1 %v6636_v11  ;;  %v6670_v19 = vld [vmem:[%s6965_s27] ss:$8 sps:$4 sm:$0xff]   ;;  %v6672_v20 = vld [vmem:[%s6965_s27 + $0x4] ss:$8 sps:$4 sm:$0xff]   ;;  %v6673_v21 = vld [vmem:[%s6965_s27 + $0x14] ss:$8 sps:$4 sm:$0xff]  }
  0x14   : > { %536 = vmatprep.mubr.bf16.mxu0 %v6672_v20  ;;  %v6639_v22 = vld [vmem:[%s6965_s27 + $0x80] ss:$8 sps:$4 sm:$0xff]   ;;  %v6640_v23 = vld [vmem:[%s6965_s27 + $0x94] ss:$8 sps:$4 sm:$0xff]   ;;  %v6677_v24 = vld [vmem:[%s6965_s27 + $0x10] ss:$8 sps:$4 sm:$0xff]  }
  0x15   : > { %6092 = vmatpush3.bf16.msra.mxu1 %v6938_v5  ;;  %6034 = vmatpush3.bf16.msra.mxu0 %v6938_v5  ;;  %v6682_v25 = vld [vmem:[%s6965_s27 + $0x24] ss:$8 sps:$4 sm:$0xff]   ;;  %v6642_v26 = vld [vmem:[%s6965_s27 + $0x90] ss:$8 sps:$4 sm:$0xff]   ;;  %v6684_v28 = vld [vmem:[%s6965_s27 + $0x20] ss:$8 sps:$4 sm:$0xff]  }
  0x16   : > { %6093 = vmatprep.subr.bf16.mxu1 %v6945_v6  ;;  %6035 = vmatprep.subr.bf16.mxu0 %v6945_v6  ;;  %v6643_v27 = vld [vmem:[%s6965_s27 + $0xa4] ss:$8 sps:$4 sm:$0xff]   ;;  %v6685_v29 = vld [vmem:[%s6965_s27 + $0x34] ss:$8 sps:$4 sm:$0xff]   ;;  %v6645_v30 = vld [vmem:[%s6965_s27 + $0xa0] ss:$8 sps:$4 sm:$0xff]  }
  0x17   : > { %v6646_v31 = vld [vmem:[%s6965_s27 + $0xb4] ss:$8 sps:$4 sm:$0xff]   ;;  %v6687_v32 = vld [vmem:[%s6965_s27 + $0x30] ss:$8 sps:$4 sm:$0xff]   ;;  %v6688_v33 = vld [vmem:[%s6965_s27 + $0x44] ss:$8 sps:$4 sm:$0xff]  }
  0x18   : > { %v6648_v34 = vld [vmem:[%s6965_s27 + $0xb0] ss:$8 sps:$4 sm:$0xff]   ;;  %v6649_v35 = vld [vmem:[%s6965_s27 + $0xc4] ss:$8 sps:$4 sm:$0xff]   ;;  %v6690_v36 = vld [vmem:[%s6965_s27 + $0x40] ss:$8 sps:$4 sm:$0xff]  }
  0x19   : > { %6094 = vmatpush3.bf16.msra.mxu1 %v6952_v7  ;;  %6036 = vmatpush3.bf16.msra.mxu0 %v6952_v7  ;;  %v6691_v37 = vld [vmem:[%s6965_s27 + $0x54] ss:$8 sps:$4 sm:$0xff]   ;;  %v6651_v38 = vld [vmem:[%s6965_s27 + $0xc0] ss:$8 sps:$4 sm:$0xff]   ;;  %v6693_v40 = vld [vmem:[%s6965_s27 + $0x50] ss:$8 sps:$4 sm:$0xff]  }
  0x1a   : > { %6095 = vmatprep.subr.bf16.mxu1 %v6959_v8  ;;  %6037 = vmatprep.subr.bf16.mxu0 %v6959_v8  ;;  %v6652_v39 = vld [vmem:[%s6965_s27 + $0xd4] ss:$8 sps:$4 sm:$0xff]   ;;  %v6694_v41 = vld [vmem:[%s6965_s27 + $0x64] ss:$8 sps:$4 sm:$0xff]   ;;  %v6654_v42 = vld [vmem:[%s6965_s27 + $0xd0] ss:$8 sps:$4 sm:$0xff]  }
  0x1b   : > { %v6657_v43 = vld [vmem:[%s6965_s27 + $0x154] ss:$8 sps:$4 sm:$0xff]   ;;  %v6696_v44 = vld [vmem:[%s6965_s27 + $0x60] ss:$8 sps:$4 sm:$0xff]   ;;  %v6699_v45 = vld [vmem:[%s6965_s27 + $0xe4] ss:$8 sps:$4 sm:$0xff]  }
  0x1c   : > { %v6655_v46 = vld [vmem:[%s6965_s27 + $0x150] ss:$8 sps:$4 sm:$0xff]   ;;  %v6658_v47 = vld [vmem:[%s6965_s27 + $0x164] ss:$8 sps:$4 sm:$0xff]   ;;  %v6697_v48 = vld [vmem:[%s6965_s27 + $0xe0] ss:$8 sps:$4 sm:$0xff]  }
  0x1d   : > { %6096 = vmatpush3.bf16.msra.mxu1 %v6971_v9  ;;  %6038 = vmatpush3.bf16.msra.mxu0 %v6971_v9  ;;  %v6660_v49 = vld [vmem:[%s6965_s27 + $0x160] ss:$8 sps:$4 sm:$0xff]   ;;  %v6661_v50 = vld [vmem:[%s6965_s27 + $0x174] ss:$8 sps:$4 sm:$0xff]   ;;  %v6663_v55 = vld [vmem:[%s6965_s27 + $0x170] ss:$8 sps:$4 sm:$0xff]  }
  0x1e   : > { %6097 = vmatprep.subr.bf16.mxu1 %v6978_v10  ;;  %6039 = vmatprep.subr.bf16.mxu0 %v6978_v10  ;;  %v825_v51 = vld [vmem:[%s6965_s27 + $0xf0] sm:$0xff]  ;;  %v826_v52 = vld [vmem:[%s6965_s27 + $0xf8] sm:$0xff]  ;;  %v6664_v56 = vld [vmem:[%s6965_s27 + $0x184] ss:$8 sps:$4 sm:$0xff]  }
  0x1f   : > { %v6700_v53 = vld [vmem:[%s6965_s27 + $0xf4] ss:$8 sps:$4 sm:$0xff]   ;;  %v5251_v54 = vcombine.low %v825_v51, %v826_v52  ;;  %v6666_v57 = vld [vmem:[%s6965_s27 + $0x180] ss:$8 sps:$4 sm:$0xff]   ;;  %v6702_v61 = vld [vmem:[%s6965_s27 + $0x104] ss:$8 sps:$4 sm:$0xff]  }
  0x20   : > { %v6667_v58 = vld [vmem:[%s6965_s27 + $0x194] ss:$8 sps:$4 sm:$0xff]   ;;  %v827_v59 = vld [vmem:[%s6965_s27 + $0x100] sm:$0xff]  ;;  %v828_v60 = vld [vmem:[%s6965_s27 + $0x108] sm:$0xff] }
  0x21   : > { %6098 = vmatpush3.bf16.msra.mxu1 %v6986_v12  ;;  %6040 = vmatpush3.bf16.msra.mxu0 %v6986_v12  ;;  %v5253_v62 = vcombine.low %v827_v59, %v828_v60  ;;  %v6669_v63 = vld [vmem:[%s6965_s27 + $0x190] ss:$8 sps:$4 sm:$0xff]   ;;  %vm8235_vm15 = vmor %vm4985_vm8, %vm4986_vm9  ;;  %vm5093_vm9 = vsmask.f32 256 }
  0x22   : > { %6099 = vmatprep.subr.bf16.mxu1 %v6992_v13  ;;  %6041 = vmatprep.subr.bf16.mxu0 %v6992_v13  ;;  %v834_v11 = vld [vmem:[%s6965_s27 + $0x138] sm:$0xff]  ;;  %v6715_v20 = vld [vmem:[%s8320_s3 + $0x70] sm:$0xff]   ;;  %vm8272_vm7 = vmor %vm4974_vm4, %vm5040_vm14  ;;  %vm5116_vm14 = vcmask 516096  }
  0x25   : > { %6100 = vmatpush3.bf16.msra.mxu1 %v7000_v14  ;;  %6042 = vmatpush3.bf16.msra.mxu0 %v7000_v14 }
  0x26   : > { %6101 = vmatprep.subr.bf16.mxu1 %v7006_v15  ;;  %6043 = vmatprep.subr.bf16.mxu0 %v7006_v15 }
  0x29   : > { %6102 = vmatpush3.bf16.msra.mxu1 %v7014_v16  ;;  %6044 = vmatpush3.bf16.msra.mxu0 %v7014_v16 }
  0x2a   : > { %6203 = vmatprep.subr.bf16.mxu1 %v6618_v0  ;;  %6145 = vmatprep.subr.bf16.mxu0 %v6618_v0  ;;  %v6675_v0 = vld [vmem:[%s6965_s27 + $0x1a4] ss:$8 sps:$4 sm:$0xff]  }
  0x2c   : > { %739 = vmatmul.mubr.bf16.vlgmr.msra.gmra.mxu1 %v6634_v17  ;;  %537 = vmatmul.mubr.bf16.vlgmr.msra.gmra.mxu0 %v6670_v19  ;;  %v6714_v19 = vld [vmem:[%s8320_s3 + $0x38] sm:$0xff]  }
  0x2d   : > { %746 = vmatprep.mubr.bf16.mxu1 %v6637_v18  ;;  %6204 = vmatpush3.bf16.msra.mxu1 %v6913_v1  ;;  %v6713_v18 = vld [vmem:[%s8320_s3 + $0x78] sm:$0xff]  }
  0x2e   : > { %6205 = vmatprep.subr.bf16.mxu1 %v6918_v2  ;;  %544 = vmatprep.mubr.bf16.mxu0 %v6673_v21  ;;  %v6716_v21 = vld [vmem:[%s8320_s3 + $0x30] sm:$0xff]  }
  0x2f   : > { %6146 = vmatpush3.bf16.msra.mxu0 %v6913_v1  ;;  %v6704_v1 = vld [vmem:[%s6965_s27 + $0x114] ss:$8 sps:$4 sm:$0xff]  }
  0x30   : > { %6147 = vmatprep.subr.bf16.mxu0 %v6918_v2  ;;  %v6706_v2 = vld [vmem:[%s6965_s27 + $0x110] ss:$8 sps:$4 sm:$0xff]  }
  0x31   : > { %6206 = vmatpush3.bf16.msra.mxu1 %v6924_v3 }
  0x32   : > { %6207 = vmatprep.subr.bf16.mxu1 %v6931_v4 }
  0x33   : > { %6148 = vmatpush3.bf16.msra.mxu0 %v6924_v3  ;;  %v6678_v3 = vld [vmem:[%s6965_s27 + $0x1a0] ss:$8 sps:$4 sm:$0xff]  }
  0x34   : > { %747 = vmatmul.mubr.bf16.gmra.mxu1 %v6639_v22  ;;  %6149 = vmatprep.subr.bf16.mxu0 %v6931_v4  ;;  %v6679_v4 = vld [vmem:[%s6965_s27 + $0x1b4] ss:$8 sps:$4 sm:$0xff]   ;;  %v6717_v22 = vld [vmem:[%s8320_s3 + $0x68] sm:$0xff]  }
  0x35   : > { %754 = vmatprep.mubr.bf16.mxu1 %v6640_v23  ;;  %6208 = vmatpush3.bf16.msra.mxu1 %v6938_v5  ;;  %v6718_v23 = vld [vmem:[%s8320_s3 + $0x28] sm:$0xff]  }
  0x36   : > { %6209 = vmatprep.subr.bf16.mxu1 %v6945_v6  ;;  %545 = vmatmul.mubr.bf16.gmra.mxu0 %v6677_v24 }
  0x37   : > { %552 = vmatprep.mubr.bf16.mxu0 %v6682_v25  ;;  %6150 = vmatpush3.bf16.msra.mxu0 %v6938_v5  ;;  %v831_v5 = vld [vmem:[%s6965_s27 + $0x120] sm:$0xff] }
  0x38   : > { %6151 = vmatprep.subr.bf16.mxu0 %v6945_v6  ;;  %v832_v6 = vld [vmem:[%s6965_s27 + $0x128] sm:$0xff]  ;;  %v7132_v25 = vld [vmem:[%s8319_s2] ss:$0 sm:$0xff] }
  0x39   : > { %6210 = vmatpush3.bf16.msra.mxu1 %v6952_v7 }
  0x3a   : > { %6211 = vmatprep.subr.bf16.mxu1 %v6959_v8 }
  0x3b   : > { %6152 = vmatpush3.bf16.msra.mxu0 %v6952_v7  ;;  %v6707_v7 = vld [vmem:[%s6965_s27 + $0x124] ss:$8 sps:$4 sm:$0xff]  }
  0x3c   : > { %755 = vmatmul.mubr.bf16.gmra.mxu1 %v6642_v26  ;;  %6153 = vmatprep.subr.bf16.mxu0 %v6959_v8  ;;  %v5257_v8 = vcombine.low %v831_v5, %v832_v6  ;;  %v6726_v6 = vld [vmem:[%s8320_s3 + $0x8] sm:$0xff]  }
  0x3d   : > { %762 = vmatprep.mubr.bf16.mxu1 %v6643_v27  ;;  %6212 = vmatpush3.bf16.msra.mxu1 %v6971_v9 }
  0x3e   : > { %6213 = vmatprep.subr.bf16.mxu1 %v6978_v10  ;;  %553 = vmatmul.mubr.bf16.gmra.mxu0 %v6684_v28 }
  0x3f   : > { %560 = vmatprep.mubr.bf16.mxu0 %v6685_v29  ;;  %6154 = vmatpush3.bf16.msra.mxu0 %v6971_v9  ;;  %v6681_v9 = vld [vmem:[%s6965_s27 + $0x1b0] ss:$8 sps:$4 sm:$0xff]  }
  0x40   : > { %6155 = vmatprep.subr.bf16.mxu0 %v6978_v10  ;;  %v833_v10 = vld [vmem:[%s6965_s27 + $0x130] sm:$0xff] }
  0x41   : > { %6214 = vmatpush3.bf16.msra.mxu1 %v6986_v12 }
  0x42   : > { %6215 = vmatprep.subr.bf16.mxu1 %v6992_v13 }
  0x43   : > { %6156 = vmatpush3.bf16.msra.mxu0 %v6986_v12  ;;  %v6709_v12 = vld [vmem:[%s6965_s27 + $0x134] ss:$8 sps:$4 sm:$0xff]  }
  0x44   : > { %763 = vmatmul.mubr.bf16.gmra.mxu1 %v6645_v30  ;;  %6157 = vmatprep.subr.bf16.mxu0 %v6992_v13  ;;  %v5259_v13 = vcombine.low %v833_v10, %v834_v11  ;;  %v6719_v30 = vld [vmem:[%s8320_s3 + $0x60] sm:$0xff]  }
  0x45   : > { %770 = vmatprep.mubr.bf16.mxu1 %v6646_v31  ;;  %6216 = vmatpush3.bf16.msra.mxu1 %v7000_v14 }
  0x46   : > { %6217 = vmatprep.subr.bf16.mxu1 %v7006_v15  ;;  %561 = vmatmul.mubr.bf16.gmra.mxu0 %v6687_v32 }
  0x47   : > { %568 = vmatprep.mubr.bf16.mxu0 %v6688_v33  ;;  %6158 = vmatpush3.bf16.msra.mxu0 %v7000_v14  ;;  %v835_v14 = vld [vmem:[%s6965_s27 + $0x140] sm:$0xff] }
  0x48   : > { %6159 = vmatprep.subr.bf16.mxu0 %v7006_v15  ;;  %v836_v15 = vld [vmem:[%s6965_s27 + $0x148] sm:$0xff]  ;;  %v6720_v33 = vld [vmem:[%s8320_s3 + $0x20] sm:$0xff]  }
  0x49   : > { %6218 = vmatpush3.bf16.msra.mxu1 %v7014_v16  ;;  %v5261_v17 = vcombine.low %v835_v14, %v836_v15 }
  0x4b   : > { %6160 = vmatpush3.bf16.msra.mxu0 %v7014_v16  ;;  %v6711_v16 = vld [vmem:[%s6965_s27 + $0x144] ss:$8 sps:$4 sm:$0xff]  }
  0x4c   : > { %771 = vmatmul.mubr.bf16.gmra.mxu1 %v6648_v34  ;;  %6261 = vmatprep.subr.bf16.mxu0 %v6713_v18 }
  0x4d   : > { %778 = vmatprep.mubr.bf16.mxu1 %v6649_v35 }
  0x4e   : > { %569 = vmatmul.mubr.bf16.gmra.mxu0 %v6690_v36 }
  0x4f   : > { %576 = vmatprep.mubr.bf16.mxu0 %v6691_v37 }
  0x54   : > { %779 = vmatmul.mubr.bf16.gmra.mxu1 %v6651_v38 }
  0x55   : > { %786 = vmatprep.mubr.bf16.mxu1 %v6652_v39 }
  0x56   : > { %577 = vmatmul.mubr.bf16.gmra.mxu0 %v6693_v40 }
  0x57   : > { %584 = vmatprep.mubr.bf16.mxu0 %v6694_v41  ;;  %v6721_v41 = vld [vmem:[%s8320_s3 + $0x58] sm:$0xff]  }
  0x5c   : > { %787 = vmatmul.mubr.bf16.gmra.mxu1 %v6654_v42 }
  0x5d   : > { %1140 = vmatprep.mubr.bf16.mxu1 %v6657_v43 }
  0x5e   : > { %585 = vmatmul.mubr.bf16.gmra.mxu0 %v6696_v44  ;;  %v6722_v44 = vld [vmem:[%s8320_s3 + $0x18] sm:$0xff]  }
  0x5f   : > { %939 = vmatprep.mubr.bf16.mxu0 %v6699_v45 }
  0x64   : > { %1141 = vmatmul.mubr.bf16.vlgmr.msra.gmra.mxu1 %v6655_v46 }
  0x65   : > { %1148 = vmatprep.mubr.bf16.mxu1 %v6658_v47 }
  0x66   : > { %940 = vmatmul.mubr.bf16.vlgmr.msra.gmra.mxu0 %v6697_v48 }
  0x67   : > { %947 = vmatprep.mubr.bf16.mxu0 %v6700_v53  ;;  %6262 = vmatpush3.bf16.msra.mxu0 %v6714_v19  ;;  %v6723_v53 = vld [vmem:[%s8320_s3 + $0x50] sm:$0xff]   ;;  %v6727_v19 = vld [vmem:[%s8320_s3 + $0x40] sm:$0xff]  }
  0x68   : > { %6263 = vmatprep.subr.bf16.mxu0 %v6715_v20 }
  0x6b   : > { %6264 = vmatpush3.bf16.msra.mxu0 %v6716_v21 }
  0x6c   : > { %1149 = vmatmul.mubr.bf16.gmra.mxu1 %v6660_v49  ;;  %6265 = vmatprep.subr.bf16.mxu0 %v6717_v22 }
  0x6d   : > { %1156 = vmatprep.mubr.bf16.mxu1 %v6661_v50 }
  0x6e   : > { %948 = vmatmul.mubr.bf16.gmra.mxu0 %v5251_v54 }
  0x6f   : > { %955 = vmatprep.mubr.bf16.mxu0 %v6702_v61  ;;  %6266 = vmatpush3.bf16.msra.mxu0 %v6718_v23 }
  0x70   : > { %6267 = vmatprep.subr.bf16.mxu0 %v6719_v30 }
  0x73   : > { %6268 = vmatpush3.bf16.msra.mxu0 %v6720_v33 }
  0x74   : > { %1157 = vmatmul.mubr.bf16.gmra.mxu1 %v6663_v55  ;;  %6269 = vmatprep.subr.bf16.mxu0 %v6721_v41 }
  0x75   : > { %1164 = vmatprep.mubr.bf16.mxu1 %v6664_v56  ;;  %v6724_v56 = vld [vmem:[%s8320_s3 + $0x10] sm:$0xff]  }
  0x76   : > { %956 = vmatmul.mubr.bf16.gmra.mxu0 %v5253_v62 }
  0x77   : > { %963 = vmatprep.mubr.bf16.mxu0 %v6704_v1  ;;  %6270 = vmatpush3.bf16.msra.mxu0 %v6722_v44 }
  0x78   : > { %6271 = vmatprep.subr.bf16.mxu0 %v6723_v53 }
  0x7b   : > { %6272 = vmatpush3.bf16.msra.mxu0 %v6724_v56 }
  0x7c   : > { %1165 = vmatmul.mubr.bf16.gmra.mxu1 %v6666_v57 }
  0x7d   : > { %1172 = vmatprep.mubr.bf16.mxu1 %v6667_v58 }
  0x7e   : > { %964 = vmatmul.mubr.bf16.gmra.mxu0 %v6706_v2  ;;  %v6725_v2 = vld [vmem:[%s8320_s3 + $0x48] sm:$0xff]  }
  0x7f   : > { %971 = vmatprep.mubr.bf16.mxu0 %v6707_v7  ;;  %6273 = vmatprep.subr.bf16.mxu0 %v6725_v2 }
  0x80   : > { %6274 = vmatpush3.bf16.msra.mxu0 %v6726_v6 }
  0x81   : > { %6275 = vmatprep.subr.bf16.mxu0 %v6727_v19 }
  0x84   : > { %1173 = vmatmul.mubr.bf16.gmra.mxu1 %v6669_v63 }
  0x85   : > { %1180 = vmatprep.mubr.bf16.mxu1 %v6675_v0 }
  0x86   : > { %972 = vmatmul.mubr.bf16.gmra.mxu0 %v5257_v8 }
  0x87   : > { %979 = vmatprep.mubr.bf16.mxu0 %v6709_v12 }
  0x8c   : > { %1181 = vmatmul.mubr.bf16.gmra.mxu1 %v6678_v3 }
  0x8d   : > { %1188 = vmatprep.mubr.bf16.mxu1 %v6679_v4 }
  0x8e   : > { %980 = vmatmul.mubr.bf16.gmra.mxu0 %v5259_v13 }
  0x8f   : > { %987 = vmatprep.mubr.bf16.mxu0 %v6711_v16 }
  0x94   : > { %1189 = vmatmul.mubr.bf16.gmra.mxu1 %v6681_v9 }
  0x96   : > { %988 = vmatmul.mubr.bf16.gmra.mxu0 %v5261_v17 }
  0xec   : > { %v6103_v24 = vpop.f32.mrf.mxu1  ;;  %v6045_v28 = vpop.f32.mrf.mxu0 }
  0xee   : > { %v6104_v26 = vpop.f32.mrf.mxu1  ;;  %v6046_v32 = vpop.f32.mrf.mxu0 }
  0xef   : > { %v6105_v27 = vadd.f32 %v6104_v26, %v6103_v24  ;;  %v6047_v35 = vadd.f32 %v6046_v32, %v6045_v28  ;;  %v6728_v24 = vld [vmem:[%s8320_s3] sm:$0xff]  }
  0xf0   : > { %v6106_v29 = vpop.f32.mrf.mxu1  ;;  %v6048_v38 = vpop.f32.mrf.mxu0  ;;  %6276 = vmatpush3.bf16.msra.mxu0 %v6728_v24 }
  0xf1   : > { %v741_v31 = vadd.f32 %v6105_v27, %v7132_v25  ;;  %v539_v40 = vadd.f32 %v6047_v35, %v7132_v25 }
  0xf2   : > { %v6107_v34 = vpop.f32.mrf.mxu1  ;;  %v6049_v43 = vpop.f32.mrf.mxu0 }
  0xf3   : > { %v795_v36 = vmax.f32 %v741_v31, 0.0  ;;  %v6108_v37 = vadd.f32 %v6107_v34, %v6106_v29  ;;  %v593_v46 = vmax.f32 %v539_v40, 0.0  ;;  %v6050_v47 = vadd.f32 %v6049_v43, %v6048_v38 }
  0xf4   : > { %v6109_v39 = vpop.f32.mrf.mxu1 }
  0xf5   : > { %809 = vst.msk [vmem:[#allocation2 + $0x70] sm:$0xff] %vm607_vm0, %v795_v36  ;;  %v744_v42 = vadd.f32 %v6108_v37, %v7132_v25  ;;  %608 = vst.msk [vmem:[#allocation2] sm:$0xff] %vm607_vm0, %v593_v46  ;;  %v542_v52 = vadd.f32 %v6050_v47, %v7132_v25 }
  0xf6   : > { %v6110_v45 = vpop.f32.mrf.mxu1  ;;  %v6051_v50 = vpop.f32.mrf.mxu0 }
  0xf7   : > { %v796_v48 = vmax.f32 %v744_v42, 0.0  ;;  %v6111_v49 = vadd.f32 %v6110_v45, %v6109_v39  ;;  %v594_v58 = vmax.f32 %v542_v52, 0.0 }
  0xf8   : > { %v6112_v51 = vpop.f32.mrf.mxu1  ;;  %v6052_v55 = vpop.f32.mrf.mxu0 }
  0xf9   : > { %810 = vst.msk [vmem:[#allocation2 + $0x78] sm:$0xff] %vm607_vm0, %v796_v48  ;;  %v749_v54 = vadd.f32 %v6111_v49, %v7132_v25  ;;  %v6053_v59 = vadd.f32 %v6052_v55, %v6051_v50  ;;  %609 = vst.msk [vmem:[#allocation2 + $0x8] sm:$0xff] %vm607_vm0, %v594_v58 }
  0xfa   : > { %v6113_v57 = vpop.f32.mrf.mxu1  ;;  %v6054_v62 = vpop.f32.mrf.mxu0 }
  0xfb   : > { %v797_v60 = vmax.f32 %v749_v54, 0.0  ;;  %v6114_v61 = vadd.f32 %v6113_v57, %v6112_v51  ;;  %v547_v1 = vadd.f32 %v6053_v59, %v7132_v25 }
  0xfc   : > { %v6115_v63 = vpop.f32.mrf.mxu1  ;;  %v1514_v0 = vld [vmem:[#allocation2 + $0x70] sm:$0xff]  ;;  %v6055_v5 = vpop.f32.mrf.mxu0  ;;  %v1225_v12 = vld [vmem:[#allocation2] sm:$0xff] }
  0xfd   : > { %811 = vst.msk [vmem:[#allocation2 + $0x80] sm:$0xff] %vm607_vm0, %v797_v60  ;;  %v752_v3 = vadd.f32 %v6114_v61, %v7132_v25  ;;  %v5793_v4 = vpack.c.bf16 %v1514_v0, %v1514_v0  ;;  %v595_v8 = vmax.f32 %v547_v1, 0.0  ;;  %v6056_v9 = vadd.f32 %v6055_v5, %v6054_v62 }
  0xfe   : > { %v6116_v7 = vpop.f32.mrf.mxu1  ;;  %v6057_v13 = vpop.f32.mrf.mxu0  ;;  %v5745_v18 = vpack.c.bf16 %v1225_v12, %v1225_v12 }
  0xff   : > { %v798_v10 = vmax.f32 %v752_v3, 0.0  ;;  %v6117_v11 = vadd.f32 %v6116_v7, %v6115_v63  ;;  %1562 = vrot.lane.b32.xlu0 %v5793_v4, %s6853_s30  ;;  %610 = vst.msk [vmem:[#allocation2 + $0x10] sm:$0xff] %vm607_vm0, %v595_v8  ;;  %v550_v17 = vadd.f32 %v6056_v9, %v7132_v25 }
 0x100   : > { %v6118_v14 = vpop.f32.mrf.mxu1  ;;  %v1611_v15 = vld [vmem:[#allocation2 + $0x71] sm:$0xff]  ;;  %v6058_v23 = vpop.f32.mrf.mxu0  ;;  %1286 = vst.msk [vmem:[#allocation4] sm:$0xf] %vm1285_vm1, %v5745_v18  ;;  %v1298_v31 = vld [vmem:[#allocation2 + $0x1] sm:$0xff] }
 0x101   : > { %v1515_v16 = vld [vmem:[#allocation2 + $0x78] sm:$0xff]  ;;  %812 = vst.msk [vmem:[#allocation2 + $0x88] sm:$0xff] %vm607_vm0, %v798_v10  ;;  %v757_v20 = vadd.f32 %v6117_v11, %v7132_v25  ;;  %v5805_v21 = vpack.c.bf16 %v1611_v15, %v1611_v15  ;;  %v596_v27 = vmax.f32 %v550_v17, 0.0  ;;  %v6059_v28 = vadd.f32 %v6058_v23, %v6057_v13  ;;  %v1226_v32 = vld [vmem:[#allocation2 + $0x8] sm:$0xff] }
 0x102   : > { %v5794_v22 = vpack.c.bf16 %v1515_v16, %v1515_v16  ;;  %v6119_v26 = vpop.f32.mrf.mxu1  ;;  %v6060_v33 = vpop.f32.mrf.mxu0  ;;  %v5757_v37 = vpack.c.bf16 %v1298_v31, %v1298_v31  ;;  %v5746_v38 = vpack.c.bf16 %v1226_v32, %v1226_v32 }
 0x103   : > { %v799_v29 = vmax.f32 %v757_v20, 0.0  ;;  %v6120_v30 = vadd.f32 %v6119_v26, %v6118_v14  ;;  %1659 = vrot.lane.b32.xlu1 %v5805_v21, %s6853_s30  ;;  %611 = vst.msk [vmem:[#allocation2 + $0x18] sm:$0xff] %vm607_vm0, %v596_v27  ;;  %v555_v39 = vadd.f32 %v6059_v28, %v7132_v25 }
 0x104   : > { %1564 = vrot.lane.b32.xlu0 %v5794_v22, %s6853_s30  ;;  %v6121_v34 = vpop.f32.mrf.mxu1  ;;  %v1612_v35 = vld [vmem:[#allocation2 + $0x79] sm:$0xff]  ;;  %v6061_v43 = vpop.f32.mrf.mxu0  ;;  %1358 = vst.msk [vmem:[#allocation4 + $0x4] sm:$0xf] %vm1285_vm1, %v5757_v37  ;;  %1287 = vst.msk [vmem:[#allocation4 + $0x20] sm:$0xf] %vm1285_vm1, %v5746_v38 }
 0x105   : > { %v1516_v36 = vld [vmem:[#allocation2 + $0x80] sm:$0xff]  ;;  %813 = vst.msk [vmem:[#allocation2 + $0x90] sm:$0xff] %vm607_vm0, %v799_v29  ;;  %v760_v40 = vadd.f32 %v6120_v30, %v7132_v25  ;;  %v5806_v41 = vpack.c.bf16 %v1612_v35, %v1612_v35  ;;  %v597_v46 = vmax.f32 %v555_v39, 0.0  ;;  %v6062_v47 = vadd.f32 %v6061_v43, %v6060_v33 }
 0x106   : > { %v5795_v42 = vpack.c.bf16 %v1516_v36, %v1516_v36  ;;  %v6122_v44 = vpop.f32.mrf.mxu1  ;;  %v1707_v45 = vld [vmem:[#allocation2 + $0x7a] sm:$0xff]  ;;  %v1299_v50 = vld [vmem:[#allocation2 + $0x9] sm:$0xff]  ;;  %v6063_v53 = vpop.f32.mrf.mxu0 }
 0x107   : > { %v800_v48 = vmax.f32 %v760_v40, 0.0  ;;  %v6123_v49 = vadd.f32 %v6122_v44, %v6121_v34  ;;  %1661 = vrot.lane.b32.xlu1 %v5806_v41, %s6853_s30  ;;  %v1227_v51 = vld [vmem:[#allocation2 + $0x10] sm:$0xff]  ;;  %612 = vst.msk [vmem:[#allocation2 + $0x20] sm:$0xff] %vm607_vm0, %v597_v46  ;;  %v5758_v56 = vpack.c.bf16 %v1299_v50, %v1299_v50  ;;  %v558_v58 = vadd.f32 %v6062_v47, %v7132_v25  ;;  %v1803_v2 = vld [vmem:[#allocation2 + $0x7b] sm:$0xff] }
 0x108   : > { %1566 = vrot.lane.b32.xlu0 %v5795_v42, %s6853_s30  ;;  %v1370_v52 = vld [vmem:[#allocation2 + $0xa] sm:$0xff]  ;;  %v6124_v55 = vpop.f32.mrf.mxu1  ;;  %v5747_v57 = vpack.c.bf16 %v1227_v51, %v1227_v51  ;;  %v5817_v62 = vpack.c.bf16 %v1707_v45, %v1707_v45  ;;  %v6064_v0 = vpop.f32.mrf.mxu0  ;;  %v1708_v1 = vld [vmem:[#allocation2 + $0x82] sm:$0xff]  ;;  %v5829_v19 = vpack.c.bf16 %v1803_v2, %v1803_v2 }
 0x109   : > { %v1517_v54 = vld [vmem:[#allocation2 + $0x88] sm:$0xff]  ;;  %v5769_v59 = vpack.c.bf16 %v1370_v52, %v1370_v52  ;;  %814 = vst.msk [vmem:[#allocation2 + $0x98] sm:$0xff] %vm607_vm0, %v800_v48  ;;  %v765_v60 = vadd.f32 %v6123_v49, %v7132_v25  ;;  %v598_v4 = vmax.f32 %v558_v58, 0.0  ;;  %v6065_v6 = vadd.f32 %v6064_v0, %v6063_v53 }
 0x10a   : > { %v5796_v61 = vpack.c.bf16 %v1517_v54, %v1517_v54  ;;  %v1442_v63 = vld [vmem:[#allocation2 + $0xb] sm:$0xff]  ;;  %v6125_v3 = vpop.f32.mrf.mxu1  ;;  %1359 = vst.msk [vmem:[#allocation4 + $0x24] sm:$0xf] %vm1285_vm1, %v5758_v56  ;;  %1288 = vst.msk [vmem:[#allocation4 + $0x40] sm:$0xf] %vm1285_vm1, %v5747_v57  ;;  %v1228_v9 = vld [vmem:[#allocation2 + $0x18] sm:$0xff]  ;;  %v6066_v12 = vpop.f32.mrf.mxu0  ;;  %v5818_v18 = vpack.c.bf16 %v1708_v1, %v1708_v1 }
 0x10b   : > { %1430 = vst.msk [vmem:[#allocation4 + $0x10] sm:$0xf] %vm1285_vm1, %v5769_v59  ;;  %v5781_v5 = vpack.c.bf16 %v1442_v63, %v1442_v63  ;;  %v801_v7 = vmax.f32 %v765_v60, 0.0  ;;  %v6126_v8 = vadd.f32 %v6125_v3, %v6124_v55  ;;  %v1371_v10 = vld [vmem:[#allocation2 + $0x12] sm:$0xff]  ;;  %v5748_v14 = vpack.c.bf16 %v1228_v9, %v1228_v9  ;;  %v1804_v23 = vld [vmem:[#allocation2 + $0x83] sm:$0xff] }
 0x10c   : > { %1568 = vrot.lane.b32.xlu1 %v5796_v61, %s6853_s30  ;;  %1755 = vrot.lane.b32.xlu0 %v5817_v62, %s6853_s30  ;;  %v1443_v11 = vld [vmem:[#allocation2 + $0x13] sm:$0xff]  ;;  %v6127_v13 = vpop.f32.mrf.mxu1  ;;  %613 = vst.msk [vmem:[#allocation2 + $0x28] sm:$0xff] %vm607_vm0, %v598_v4  ;;  %v5770_v15 = vpack.c.bf16 %v1371_v10, %v1371_v10  ;;  %v563_v17 = vadd.f32 %v6065_v6, %v7132_v25  ;;  %v6067_v22 = vpop.f32.mrf.mxu0  ;;  %v1613_v24 = vld [vmem:[#allocation2 + $0x81] sm:$0xff]  ;;  %v1614_v46 = vld [vmem:[#allocation2 + $0x89] sm:$0xff] }
 0x10d   : > { %1502 = vst.msk [vmem:[#allocation4 + $0x14] sm:$0xf] %vm1285_vm1, %v5781_v5  ;;  %v5782_v16 = vpack.c.bf16 %v1443_v11, %v1443_v11  ;;  %v768_v20 = vadd.f32 %v6126_v8, %v7132_v25  ;;  %v1300_v21 = vld [vmem:[#allocation2 + $0x11] sm:$0xff]  ;;  %1289 = vst.msk [vmem:[#allocation4 + $0x60] sm:$0xf] %vm1285_vm1, %v5748_v14  ;;  %v6068_v29 = vadd.f32 %v6067_v22, %v6066_v12 }
 0x10e   : > { %815 = vst.msk [vmem:[#allocation2 + $0xa0] sm:$0xff] %vm607_vm0, %v801_v7  ;;  %v6128_v26 = vpop.f32.mrf.mxu1  ;;  %v5759_v27 = vpack.c.bf16 %v1300_v21, %v1300_v21  ;;  %v599_v28 = vmax.f32 %v563_v17, 0.0  ;;  %v1301_v32 = vld [vmem:[#allocation2 + $0x19] sm:$0xff]  ;;  %v6069_v35 = vpop.f32.mrf.mxu0  ;;  %v5830_v41 = vpack.c.bf16 %v1804_v23, %v1804_v23  ;;  %v5807_v42 = vpack.c.bf16 %v1613_v24, %v1613_v24  ;;  %v1518_v47 = vld [vmem:[#allocation2 + $0x90] sm:$0xff] }
 0x10f   : > { %1431 = vst.msk [vmem:[#allocation4 + $0x30] sm:$0xf] %vm1285_vm1, %v5770_v15  ;;  %1503 = vst.msk [vmem:[#allocation4 + $0x34] sm:$0xf] %vm1285_vm1, %v5782_v16  ;;  %v802_v30 = vmax.f32 %v768_v20, 0.0  ;;  %v6129_v31 = vadd.f32 %v6128_v26, %v6127_v13  ;;  %v1229_v33 = vld [vmem:[#allocation2 + $0x20] sm:$0xff]  ;;  %v5760_v37 = vpack.c.bf16 %v1301_v32, %v1301_v32  ;;  %v566_v39 = vadd.f32 %v6068_v29, %v7132_v25 }
 0x110   : > { %1757 = vrot.lane.b32.xlu1 %v5818_v18, %s6853_s30  ;;  %1851 = vrot.lane.b32.xlu0 %v5829_v19, %s6853_s30  ;;  %v1372_v34 = vld [vmem:[#allocation2 + $0x1a] sm:$0xff]  ;;  %v6130_v36 = vpop.f32.mrf.mxu1  ;;  %1360 = vst.msk [vmem:[#allocation4 + $0x44] sm:$0xf] %vm1285_vm1, %v5759_v27  ;;  %v5749_v38 = vpack.c.bf16 %v1229_v33, %v1229_v33  ;;  %v6070_v44 = vpop.f32.mrf.mxu0  ;;  %v5808_v63 = vpack.c.bf16 %v1614_v46, %v1614_v46  ;;  %v1709_v5 = vld [vmem:[#allocation2 + $0x8a] sm:$0xff]  ;;  %v1710_v23 = vld [vmem:[#allocation2 + $0x92] sm:$0xff] }
 0x111   : > { %614 = vst.msk [vmem:[#allocation2 + $0x30] sm:$0xff] %vm607_vm0, %v599_v28  ;;  %v5771_v40 = vpack.c.bf16 %v1372_v34, %v1372_v34  ;;  %816 = vst.msk [vmem:[#allocation2 + $0xa8] sm:$0xff] %vm607_vm0, %v802_v30  ;;  %v773_v43 = vadd.f32 %v6129_v31, %v7132_v25  ;;  %v1444_v45 = vld [vmem:[#allocation2 + $0x1b] sm:$0xff]  ;;  %v600_v49 = vmax.f32 %v566_v39, 0.0  ;;  %v6071_v50 = vadd.f32 %v6070_v44, %v6069_v35  ;;  %v1805_v24 = vld [vmem:[#allocation2 + $0x8b] sm:$0xff] }
 0x112   : > { %v6131_v48 = vpop.f32.mrf.mxu1  ;;  %1361 = vst.msk [vmem:[#allocation4 + $0x64] sm:$0xf] %vm1285_vm1, %v5760_v37  ;;  %1290 = vst.msk [vmem:[#allocation4 + $0x80] sm:$0xf] %vm1285_vm1, %v5749_v38  ;;  %v5783_v51 = vpack.c.bf16 %v1444_v45, %v1444_v45  ;;  %v6072_v56 = vpop.f32.mrf.mxu0  ;;  %v5797_v0 = vpack.c.bf16 %v1518_v47, %v1518_v47  ;;  %v1519_v4 = vld [vmem:[#allocation2 + $0x98] sm:$0xff]  ;;  %v5819_v20 = vpack.c.bf16 %v1709_v5, %v1709_v5 }
 0x113   : > { %1432 = vst.msk [vmem:[#allocation4 + $0x50] sm:$0xf] %vm1285_vm1, %v5771_v40  ;;  %v803_v52 = vmax.f32 %v773_v43, 0.0  ;;  %v6132_v53 = vadd.f32 %v6131_v48, %v6130_v36  ;;  %v1230_v54 = vld [vmem:[#allocation2 + $0x28] sm:$0xff]  ;;  %v571_v60 = vadd.f32 %v6071_v50, %v7132_v25  ;;  %v5798_v19 = vpack.c.bf16 %v1519_v4, %v1519_v4  ;;  %v1615_v43 = vld [vmem:[#allocation2 + $0x91] sm:$0xff] }
 0x114   : > { %1853 = vrot.lane.b32.xlu1 %v5830_v41, %s6853_s30  ;;  %1663 = vrot.lane.b32.xlu0 %v5807_v42, %s6853_s30  ;;  %v1373_v55 = vld [vmem:[#allocation2 + $0x22] sm:$0xff]  ;;  %v6133_v58 = vpop.f32.mrf.mxu1  ;;  %615 = vst.msk [vmem:[#allocation2 + $0x38] sm:$0xff] %vm607_vm0, %v600_v49  ;;  %v5750_v59 = vpack.c.bf16 %v1230_v54, %v1230_v54  ;;  %v6073_v2 = vpop.f32.mrf.mxu0  ;;  %v5820_v38 = vpack.c.bf16 %v1710_v23, %v1710_v23  ;;  %v1806_v42 = vld [vmem:[#allocation2 + $0x93] sm:$0xff] }
 0x115   : > { %v1445_v57 = vld [vmem:[#allocation2 + $0x23] sm:$0xff]  ;;  %v5772_v61 = vpack.c.bf16 %v1373_v55, %v1373_v55  ;;  %1504 = vst.msk [vmem:[#allocation4 + $0x54] sm:$0xf] %vm1285_vm1, %v5783_v51  ;;  %v776_v1 = vadd.f32 %v6132_v53, %v7132_v25  ;;  %v601_v7 = vmax.f32 %v571_v60, 0.0  ;;  %v6074_v8 = vadd.f32 %v6073_v2, %v6072_v56  ;;  %v1616_v60 = vld [vmem:[#allocation2 + $0x99] sm:$0xff] }
 0x116   : > { %v5784_v62 = vpack.c.bf16 %v1445_v57, %v1445_v57  ;;  %817 = vst.msk [vmem:[#allocation2 + $0xb0] sm:$0xff] %vm607_vm0, %v803_v52  ;;  %v1302_v3 = vld [vmem:[#allocation2 + $0x21] sm:$0xff]  ;;  %v6134_v6 = vpop.f32.mrf.mxu1  ;;  %v6075_v12 = vpop.f32.mrf.mxu0  ;;  %v5831_v39 = vpack.c.bf16 %v1805_v24, %v1805_v24  ;;  %v5832_v56 = vpack.c.bf16 %v1806_v42, %v1806_v42  ;;  %v5809_v57 = vpack.c.bf16 %v1615_v43, %v1615_v43  ;;  %v6730_v23 = vld [vmem:[%s8320_s3 + $0xb8] sm:$0xff]  }
 0x117   : > { %1291 = vst.msk [vmem:[#allocation4 + $0xa0] sm:$0xf] %vm1285_vm1, %v5750_v59  ;;  %1433 = vst.msk [vmem:[#allocation4 + $0x70] sm:$0xf] %vm1285_vm1, %v5772_v61  ;;  %v5761_v9 = vpack.c.bf16 %v1302_v3, %v1302_v3  ;;  %v804_v10 = vmax.f32 %v776_v1, 0.0  ;;  %v6135_v11 = vadd.f32 %v6134_v6, %v6133_v58  ;;  %v574_v16 = vadd.f32 %v6074_v8, %v7132_v25  ;;  %v1520_v61 = vld [vmem:[#allocation2 + $0xa0] sm:$0xff] }
 0x118   : > { %1505 = vst.msk [vmem:[#allocation4 + $0x74] sm:$0xf] %vm1285_vm1, %v5784_v62  ;;  %1665 = vrot.lane.b32.xlu1 %v5808_v63, %s6853_s30  ;;  %1570 = vrot.lane.b32.xlu0 %v5797_v0, %s6853_s30  ;;  %v1303_v13 = vld [vmem:[#allocation2 + $0x29] sm:$0xff]  ;;  %v6136_v15 = vpop.f32.mrf.mxu1  ;;  %v6076_v22 = vpop.f32.mrf.mxu0 }
 0x119   : > { %v1231_v14 = vld [vmem:[#allocation2 + $0x30] sm:$0xff]  ;;  %616 = vst.msk [vmem:[#allocation2 + $0x40] sm:$0xff] %vm607_vm0, %v601_v7  ;;  %v5762_v17 = vpack.c.bf16 %v1303_v13, %v1303_v13  ;;  %818 = vst.msk [vmem:[#allocation2 + $0xb8] sm:$0xff] %vm607_vm0, %v804_v10  ;;  %v781_v21 = vadd.f32 %v6135_v11, %v7132_v25  ;;  %v602_v27 = vmax.f32 %v574_v16, 0.0  ;;  %v6077_v28 = vadd.f32 %v6076_v22, %v6075_v12  ;;  %v6729_v22 = vld [vmem:[%s8320_s3 + $0xf8] sm:$0xff]  }
 0x11a   : > { %1362 = vst.msk [vmem:[#allocation4 + $0x84] sm:$0xf] %vm1285_vm1, %v5761_v9  ;;  %v5751_v18 = vpack.c.bf16 %v1231_v14, %v1231_v14  ;;  %v6137_v26 = vpop.f32.mrf.mxu1  ;;  %v6078_v31 = vpop.f32.mrf.mxu0  ;;  %v1374_v33 = vld [vmem:[#allocation2 + $0x2a] sm:$0xff]  ;;  %v5810_v10 = vpack.c.bf16 %v1616_v60, %v1616_v60  ;;  %v5799_v11 = vpack.c.bf16 %v1520_v61, %v1520_v61  ;;  %6313 = vmatprep.subr.bf16.mxu1 %v6729_v22 }
 0x11b   : > { %1363 = vst.msk [vmem:[#allocation4 + $0xa4] sm:$0xf] %vm1285_vm1, %v5762_v17  ;;  %v805_v29 = vmax.f32 %v781_v21, 0.0  ;;  %v6138_v30 = vadd.f32 %v6137_v26, %v6136_v15  ;;  %v1232_v32 = vld [vmem:[#allocation2 + $0x38] sm:$0xff]  ;;  %v579_v35 = vadd.f32 %v6077_v28, %v7132_v25  ;;  %v5773_v37 = vpack.c.bf16 %v1374_v33, %v1374_v33  ;;  %v1446_v51 = vld [vmem:[#allocation2 + $0x2b] sm:$0xff]  ;;  %6314 = vmatpush3.bf16.msra.mxu1 %v6730_v23 }
 0x11c   : > { %1292 = vst.msk [vmem:[#allocation4 + $0xc0] sm:$0xf] %vm1285_vm1, %v5751_v18  ;;  %1572 = vrot.lane.b32.xlu1 %v5798_v19, %s6853_s30  ;;  %1759 = vrot.lane.b32.xlu0 %v5819_v20, %s6853_s30  ;;  %v6139_v34 = vpop.f32.mrf.mxu1  ;;  %v5752_v36 = vpack.c.bf16 %v1232_v32, %v1232_v32  ;;  %v6079_v41 = vpop.f32.mrf.mxu0  ;;  %v1375_v50 = vld [vmem:[#allocation2 + $0x32] sm:$0xff]  ;;  %v5785_v55 = vpack.c.bf16 %v1446_v51, %v1446_v51  ;;  %v1521_v14 = vld [vmem:[#allocation2 + $0xa8] sm:$0xff]  ;;  %v1711_v15 = vld [vmem:[#allocation2 + $0x9a] sm:$0xff] }
 0x11d   : > { %617 = vst.msk [vmem:[#allocation2 + $0x48] sm:$0xff] %vm607_vm0, %v602_v27  ;;  %819 = vst.msk [vmem:[#allocation2 + $0xc0] sm:$0xff] %vm607_vm0, %v805_v29  ;;  %v784_v40 = vadd.f32 %v6138_v30, %v7132_v25  ;;  %v603_v45 = vmax.f32 %v579_v35, 0.0  ;;  %v6080_v46 = vadd.f32 %v6079_v41, %v6078_v31  ;;  %v5774_v54 = vpack.c.bf16 %v1375_v50, %v1375_v50  ;;  %v1447_v4 = vld [vmem:[#allocation2 + $0x33] sm:$0xff]  ;;  %v1712_v35 = vld [vmem:[#allocation2 + $0xa2] sm:$0xff] }
 0x11e   : > { %v6140_v44 = vpop.f32.mrf.mxu1  ;;  %1293 = vst.msk [vmem:[#allocation4 + $0xe0] sm:$0xf] %vm1285_vm1, %v5752_v36  ;;  %1434 = vst.msk [vmem:[#allocation4 + $0x90] sm:$0xf] %vm1285_vm1, %v5773_v37  ;;  %v6081_v49 = vpop.f32.mrf.mxu0  ;;  %v1304_v5 = vld [vmem:[#allocation2 + $0x31] sm:$0xff]  ;;  %v5786_v8 = vpack.c.bf16 %v1447_v4, %v1447_v4  ;;  %v5800_v29 = vpack.c.bf16 %v1521_v14, %v1521_v14  ;;  %v5821_v30 = vpack.c.bf16 %v1711_v15, %v1711_v15  ;;  %v1807_v36 = vld [vmem:[#allocation2 + $0x9b] sm:$0xff] }
 0x11f   : > { %v806_v47 = vmax.f32 %v784_v40, 0.0  ;;  %v6141_v48 = vadd.f32 %v6140_v44, %v6139_v34  ;;  %618 = vst.msk [vmem:[#allocation2 + $0x50] sm:$0xff] %vm607_vm0, %v603_v45  ;;  %v582_v53 = vadd.f32 %v6080_v46, %v7132_v25  ;;  %v5763_v9 = vpack.c.bf16 %v1304_v5, %v1304_v5 }
 0x120   : > { %1761 = vrot.lane.b32.xlu1 %v5820_v38, %s6853_s30  ;;  %1855 = vrot.lane.b32.xlu0 %v5831_v39, %s6853_s30  ;;  %v6142_v52 = vpop.f32.mrf.mxu1  ;;  %v6082_v59 = vpop.f32.mrf.mxu0  ;;  %1435 = vst.msk [vmem:[#allocation4 + $0xb0] sm:$0xf] %vm1285_vm1, %v5774_v54  ;;  %1506 = vst.msk [vmem:[#allocation4 + $0x94] sm:$0xf] %vm1285_vm1, %v5785_v55  ;;  %v1305_v24 = vld [vmem:[#allocation2 + $0x39] sm:$0xff]  ;;  %v5822_v54 = vpack.c.bf16 %v1712_v35, %v1712_v35  ;;  %v5833_v55 = vpack.c.bf16 %v1807_v36, %v1807_v36  ;;  %v6737_v35 = vld [vmem:[%s8320_s3 + $0xe8] sm:$0xff]  }
 0x121   : > { %820 = vst.msk [vmem:[#allocation2 + $0xc8] sm:$0xff] %vm607_vm0, %v806_v47  ;;  %v789_v58 = vadd.f32 %v6141_v48, %v7132_v25  ;;  %v604_v63 = vmax.f32 %v582_v53, 0.0  ;;  %v6083_v0 = vadd.f32 %v6082_v59, %v6081_v49  ;;  %v5764_v28 = vpack.c.bf16 %v1305_v24, %v1305_v24  ;;  %v1233_v33 = vld [vmem:[#allocation2 + $0x40] sm:$0xff]  ;;  %v6731_v53 = vld [vmem:[%s8320_s3 + $0x178] sm:$0xff]  }
 0x122   : > { %v6143_v62 = vpop.f32.mrf.mxu1  ;;  %v6084_v3 = vpop.f32.mrf.mxu0  ;;  %1507 = vst.msk [vmem:[#allocation4 + $0xb4] sm:$0xf] %vm1285_vm1, %v5786_v8  ;;  %1364 = vst.msk [vmem:[#allocation4 + $0xc4] sm:$0xf] %vm1285_vm1, %v5763_v9  ;;  %v1376_v34 = vld [vmem:[#allocation2 + $0x3a] sm:$0xff]  ;;  %v5753_v40 = vpack.c.bf16 %v1233_v33, %v1233_v33  ;;  %6365 = vmatprep.subr.bf16.mxu0 %v6731_v53 }
 0x123   : > { %v807_v1 = vmax.f32 %v789_v58, 0.0  ;;  %v6144_v2 = vadd.f32 %v6143_v62, %v6142_v52  ;;  %619 = vst.msk [vmem:[#allocation2 + $0x58] sm:$0xff] %vm607_vm0, %v604_v63  ;;  %v587_v7 = vadd.f32 %v6083_v0, %v7132_v25  ;;  %v1448_v41 = vld [vmem:[#allocation2 + $0x3b] sm:$0xff]  ;;  %v5775_v47 = vpack.c.bf16 %v1376_v34, %v1376_v34  ;;  %v1808_v58 = vld [vmem:[#allocation2 + $0xa3] sm:$0xff]  ;;  %v6733_v63 = vld [vmem:[%s8320_s3 + $0xf0] sm:$0xff]  }
 0x124   : > { %1857 = vrot.lane.b32.xlu1 %v5832_v56, %s6853_s30  ;;  %1667 = vrot.lane.b32.xlu0 %v5809_v57, %s6853_s30  ;;  %v6219_v6 = vpop.f32.mrf.mxu1  ;;  %v6085_v13 = vpop.f32.mrf.mxu0  ;;  %1365 = vst.msk [vmem:[#allocation4 + $0xe4] sm:$0xf] %vm1285_vm1, %v5764_v28  ;;  %v1234_v45 = vld [vmem:[#allocation2 + $0x48] sm:$0xff]  ;;  %v5787_v48 = vpack.c.bf16 %v1448_v41, %v1448_v41  ;;  %1294 = vst.msk [vmem:[#allocation4 + $0x100] sm:$0xf] %vm1285_vm1, %v5753_v40  ;;  %v1620_v53 = vld [vmem:[#allocation2 + $0xb9] sm:$0xff] }
 0x125   : > { %821 = vst.msk [vmem:[#allocation2 + $0xd0] sm:$0xff] %vm607_vm0, %v807_v1  ;;  %v792_v12 = vadd.f32 %v6144_v2, %v7132_v25  ;;  %v605_v17 = vmax.f32 %v587_v7, 0.0  ;;  %v6086_v18 = vadd.f32 %v6085_v13, %v6084_v3  ;;  %v1306_v46 = vld [vmem:[#allocation2 + $0x41] sm:$0xff]  ;;  %v5754_v51 = vpack.c.bf16 %v1234_v45, %v1234_v45  ;;  %v6734_v3 = vld [vmem:[%s8320_s3 + $0xb0] sm:$0xff]   ;;  %6315 = vmatprep.subr.bf16.mxu1 %v6733_v63 }
 0x126   : > { %v6220_v16 = vpop.f32.mrf.mxu1  ;;  %v6161_v21 = vpop.f32.mrf.mxu0  ;;  %v5765_v52 = vpack.c.bf16 %v1306_v46, %v1306_v46  ;;  %1436 = vst.msk [vmem:[#allocation4 + $0xd0] sm:$0xf] %vm1285_vm1, %v5775_v47  ;;  %1508 = vst.msk [vmem:[#allocation4 + $0xd4] sm:$0xf] %vm1285_vm1, %v5787_v48  ;;  %v1617_v59 = vld [vmem:[#allocation2 + $0xa1] sm:$0xff]  ;;  %v1307_v4 = vld [vmem:[#allocation2 + $0x49] sm:$0xff]  ;;  %6316 = vmatpush3.bf16.msra.mxu1 %v6734_v3 }
 0x127   : > { %v808_v19 = vmax.f32 %v792_v12, 0.0  ;;  %v6221_v20 = vadd.f32 %v6220_v16, %v6219_v6  ;;  %620 = vst.msk [vmem:[#allocation2 + $0x60] sm:$0xff] %vm607_vm0, %v605_v17  ;;  %v590_v27 = vadd.f32 %v6086_v18, %v7132_v25  ;;  %v1235_v5 = vld [vmem:[#allocation2 + $0x50] sm:$0xff]  ;;  %v5766_v8 = vpack.c.bf16 %v1307_v4, %v1307_v4  ;;  %v1377_v15 = vld [vmem:[#allocation2 + $0x42] sm:$0xff]  ;;  %6317 = vmatprep.subr.bf16.mxu1 %v6737_v35 }
 0x128   : > { %1669 = vrot.lane.b32.xlu1 %v5810_v10, %s6853_s30  ;;  %1574 = vrot.lane.b32.xlu0 %v5799_v11, %s6853_s30  ;;  %v6222_v26 = vpop.f32.mrf.mxu1  ;;  %v6162_v32 = vpop.f32.mrf.mxu0  ;;  %1295 = vst.msk [vmem:[#allocation4 + $0x120] sm:$0xf] %vm1285_vm1, %v5754_v51  ;;  %1366 = vst.msk [vmem:[#allocation4 + $0x104] sm:$0xf] %vm1285_vm1, %v5765_v52  ;;  %v5755_v9 = vpack.c.bf16 %v1235_v5, %v1235_v5  ;;  %v5834_v10 = vpack.c.bf16 %v1808_v58, %v1808_v58  ;;  %v1618_v13 = vld [vmem:[#allocation2 + $0xa9] sm:$0xff] }
 0x129   : > { %822 = vst.msk [vmem:[#allocation2 + $0xd8] sm:$0xff] %vm607_vm0, %v808_v19  ;;  %v1143_v31 = vadd.f32 %v6221_v20, %v7132_v25  ;;  %v606_v38 = vmax.f32 %v590_v27, 0.0  ;;  %v6163_v39 = vadd.f32 %v6162_v32, %v6161_v21  ;;  %v5811_v11 = vpack.c.bf16 %v1617_v59, %v1617_v59  ;;  %v1449_v16 = vld [vmem:[#allocation2 + $0x43] sm:$0xff]  ;;  %v1522_v17 = vld [vmem:[#allocation2 + $0xb0] sm:$0xff] }
 0x12a   : > { %v6223_v37 = vpop.f32.mrf.mxu1  ;;  %v6164_v44 = vpop.f32.mrf.mxu0  ;;  %1367 = vst.msk [vmem:[#allocation4 + $0x124] sm:$0xf] %vm1285_vm1, %v5766_v8  ;;  %1296 = vst.msk [vmem:[#allocation4 + $0x140] sm:$0xf] %vm1285_vm1, %v5755_v9  ;;  %v5776_v21 = vpack.c.bf16 %v1377_v15, %v1377_v15  ;;  %v5788_v22 = vpack.c.bf16 %v1449_v16, %v1449_v16  ;;  %v1378_v23 = vld [vmem:[#allocation2 + $0x4a] sm:$0xff]  ;;  %v1379_v63 = vld [vmem:[#allocation2 + $0x52] sm:$0xff]  ;;  %v5814_v16 = vpack.c.bf16 %v1620_v53, %v1620_v53 }
 0x12b   : > { %v1197_v42 = vmax.f32 %v1143_v31, 0.0  ;;  %v6224_v43 = vadd.f32 %v6223_v37, %v6222_v26  ;;  %621 = vst.msk [vmem:[#allocation2 + $0x68] sm:$0xff] %vm607_vm0, %v606_v38  ;;  %v942_v50 = vadd.f32 %v6163_v39, %v7132_v25  ;;  %v1450_v24 = vld [vmem:[#allocation2 + $0x4b] sm:$0xff]  ;;  %v5777_v31 = vpack.c.bf16 %v1378_v23, %v1378_v23  ;;  %v1451_v3 = vld [vmem:[#allocation2 + $0x53] sm:$0xff] }
 0x12c   : > { %1576 = vrot.lane.b32.xlu1 %v5800_v29, %s6853_s30  ;;  %1763 = vrot.lane.b32.xlu0 %v5821_v30, %s6853_s30  ;;  %v6225_v49 = vpop.f32.mrf.mxu1  ;;  %v6165_v57 = vpop.f32.mrf.mxu0  ;;  %v1236_v29 = vld [vmem:[#allocation2 + $0x58] sm:$0xff]  ;;  %v5789_v32 = vpack.c.bf16 %v1450_v24, %v1450_v24  ;;  %1437 = vst.msk [vmem:[#allocation4 + $0xf0] sm:$0xf] %vm1285_vm1, %v5776_v21  ;;  %1509 = vst.msk [vmem:[#allocation4 + $0xf4] sm:$0xf] %vm1285_vm1, %v5788_v22  ;;  %v5812_v38 = vpack.c.bf16 %v1618_v13, %v1618_v13  ;;  %v1621_v21 = vld [vmem:[#allocation2 + $0xc1] sm:$0xff] }
 0x12d   : > { %1211 = vst.msk [vmem:[#allocation2 + $0x150] sm:$0xff] %vm607_vm0, %v1197_v42  ;;  %v1146_v56 = vadd.f32 %v6224_v43, %v7132_v25  ;;  %v996_v61 = vmax.f32 %v942_v50, 0.0  ;;  %v6166_v62 = vadd.f32 %v6165_v57, %v6164_v44  ;;  %v1308_v30 = vld [vmem:[#allocation2 + $0x51] sm:$0xff]  ;;  %v5756_v36 = vpack.c.bf16 %v1236_v29, %v1236_v29  ;;  %v6739_v42 = vld [vmem:[%s8320_s3 + $0xa8] sm:$0xff]   ;;  %v6741_v50 = vld [vmem:[%s8320_s3 + $0xe0] sm:$0xff]  }
 0x12e   : > { %v6226_v60 = vpop.f32.mrf.mxu1  ;;  %v6167_v2 = vpop.f32.mrf.mxu0  ;;  %v5767_v37 = vpack.c.bf16 %v1308_v30, %v1308_v30  ;;  %v5801_v39 = vpack.c.bf16 %v1522_v17, %v1522_v17  ;;  %1438 = vst.msk [vmem:[#allocation4 + $0x110] sm:$0xf] %vm1285_vm1, %v5777_v31  ;;  %1510 = vst.msk [vmem:[#allocation4 + $0x114] sm:$0xf] %vm1285_vm1, %v5789_v32  ;;  %v1523_v43 = vld [vmem:[#allocation2 + $0xb8] sm:$0xff]  ;;  %6318 = vmatpush3.bf16.msra.mxu1 %v6739_v42  ;;  %v5815_v35 = vpack.c.bf16 %v1621_v21, %v1621_v21 }
 0x12f   : > { %v1198_v0 = vmax.f32 %v1146_v56, 0.0  ;;  %v6227_v1 = vadd.f32 %v6226_v60, %v6225_v49  ;;  %1010 = vst.msk [vmem:[#allocation2 + $0xe0] sm:$0xff] %vm607_vm0, %v996_v61  ;;  %v945_v7 = vadd.f32 %v6166_v62, %v7132_v25  ;;  %v1619_v44 = vld [vmem:[#allocation2 + $0xb1] sm:$0xff]  ;;  %v1309_v51 = vld [vmem:[#allocation2 + $0x59] sm:$0xff]  ;;  %v5802_v58 = vpack.c.bf16 %v1523_v43, %v1523_v43  ;;  %6319 = vmatprep.subr.bf16.mxu1 %v6741_v50 }
 0x130   : > { %1765 = vrot.lane.b32.xlu1 %v5822_v54, %s6853_s30  ;;  %1859 = vrot.lane.b32.xlu0 %v5833_v55, %s6853_s30  ;;  %v6228_v6 = vpop.f32.mrf.mxu1  ;;  %v6168_v14 = vpop.f32.mrf.mxu0  ;;  %1297 = vst.msk [vmem:[#allocation4 + $0x160] sm:$0xf] %vm1285_vm1, %v5756_v36  ;;  %1368 = vst.msk [vmem:[#allocation4 + $0x144] sm:$0xf] %vm1285_vm1, %v5767_v37  ;;  %v5768_v56 = vpack.c.bf16 %v1309_v51, %v1309_v51  ;;  %v5813_v59 = vpack.c.bf16 %v1619_v44, %v1619_v44  ;;  %v1524_v61 = vld [vmem:[#allocation2 + $0xc0] sm:$0xff]  ;;  %v1622_v36 = vld [vmem:[#allocation2 + $0xc9] sm:$0xff] }
 0x131   : > { %1212 = vst.msk [vmem:[#allocation2 + $0x158] sm:$0xff] %vm607_vm0, %v1198_v0  ;;  %v1151_v12 = vadd.f32 %v6227_v1, %v7132_v25  ;;  %v997_v19 = vmax.f32 %v945_v7, 0.0  ;;  %v6169_v20 = vadd.f32 %v6168_v14, %v6167_v2  ;;  %v6743_v62 = vld [vmem:[%s8320_s3 + $0xa0] sm:$0xff]   ;;  %v5778_v2 = vpack.c.bf16 %v1379_v63, %v1379_v63 }
 0x132   : > { %v6229_v18 = vpop.f32.mrf.mxu1  ;;  %v6170_v28 = vpop.f32.mrf.mxu0  ;;  %1369 = vst.msk [vmem:[#allocation4 + $0x164] sm:$0xf] %vm1285_vm1, %v5768_v56  ;;  %v1380_v4 = vld [vmem:[#allocation2 + $0x5a] sm:$0xff]  ;;  %6320 = vmatpush3.bf16.msra.mxu1 %v6743_v62  ;;  %v5803_v17 = vpack.c.bf16 %v1524_v61, %v1524_v61  ;;  %v1381_v44 = vld [vmem:[#allocation2 + $0x62] sm:$0xff] }
 0x133   : > { %v1199_v26 = vmax.f32 %v1151_v12, 0.0  ;;  %v6230_v27 = vadd.f32 %v6229_v18, %v6228_v6  ;;  %1011 = vst.msk [vmem:[#allocation2 + $0xe8] sm:$0xff] %vm607_vm0, %v997_v19  ;;  %v950_v34 = vadd.f32 %v6169_v20, %v7132_v25  ;;  %v1452_v5 = vld [vmem:[#allocation2 + $0x5b] sm:$0xff]  ;;  %v1525_v20 = vld [vmem:[#allocation2 + $0xc8] sm:$0xff]  ;;  %v5780_v50 = vpack.c.bf16 %v1381_v44, %v1381_v44 }
 0x134   : > { %1861 = vrot.lane.b32.xlu1 %v5834_v10, %s6853_s30  ;;  %1671 = vrot.lane.b32.xlu0 %v5811_v11, %s6853_s30  ;;  %v6231_v33 = vpop.f32.mrf.mxu1  ;;  %v6171_v41 = vpop.f32.mrf.mxu0  ;;  %v5790_v10 = vpack.c.bf16 %v1451_v3, %v1451_v3  ;;  %v5779_v11 = vpack.c.bf16 %v1380_v4, %v1380_v4  ;;  %1439 = vst.msk [vmem:[#allocation4 + $0x130] sm:$0xf] %vm1285_vm1, %v5778_v2  ;;  %v6745_v19 = vld [vmem:[%s8320_s3 + $0xd8] sm:$0xff]   ;;  %v7361_v37 = vld [vmem:[%s8319_s2] ss:$0 sm:$0xff] }
 0x135   : > { %1213 = vst.msk [vmem:[#allocation2 + $0x160] sm:$0xff] %vm607_vm0, %v1199_v26  ;;  %v1154_v40 = vadd.f32 %v6230_v27, %v7132_v25  ;;  %v998_v46 = vmax.f32 %v950_v34, 0.0  ;;  %v6172_v47 = vadd.f32 %v6171_v41, %v6170_v28  ;;  %v5791_v15 = vpack.c.bf16 %v1452_v5, %v1452_v5  ;;  %v6749_v27 = vld [vmem:[%s8320_s3 + $0xd0] sm:$0xff]   ;;  %6321 = vmatprep.subr.bf16.mxu1 %v6745_v19  ;;  %v6753_v61 = vld [vmem:[%s8320_s3 + $0xc8] sm:$0xff]   ;;  %v6757_v3 = vld [vmem:[%s8320_s3 + $0xc0] sm:$0xff]  }
 0x136   : > { %v6232_v45 = vpop.f32.mrf.mxu1  ;;  %v1899_v52 = vld [vmem:[#allocation2 + $0xe0] sm:$0xff]  ;;  %1511 = vst.msk [vmem:[#allocation4 + $0x134] sm:$0xf] %vm1285_vm1, %v5790_v10  ;;  %1440 = vst.msk [vmem:[#allocation4 + $0x150] sm:$0xf] %vm1285_vm1, %v5779_v11  ;;  %v6173_v23 = vpop.f32.mrf.mxu0  ;;  %v5804_v34 = vpack.c.bf16 %v1525_v20, %v1525_v20  ;;  %v6755_v2 = vld [vmem:[%s8320_s3 + $0x88] sm:$0xff]  }
 0x137   : > { %v1200_v48 = vmax.f32 %v1154_v40, 0.0  ;;  %v6233_v49 = vadd.f32 %v6232_v45, %v6231_v33  ;;  %1012 = vst.msk [vmem:[#allocation2 + $0xf0] sm:$0xff] %vm607_vm0, %v998_v46  ;;  %v953_v55 = vadd.f32 %v6172_v47, %v7132_v25  ;;  %v5841_v57 = vpack.c.bf16 %v1899_v52, %v1899_v52  ;;  %v2187_v40 = vld [vmem:[#allocation2 + $0x150] sm:$0xff]  ;;  %v1453_v45 = vld [vmem:[#allocation2 + $0x63] sm:$0xff] }
 0x138   : > { %1673 = vrot.lane.b32.xlu1 %v5812_v38, %s6853_s30  ;;  %1578 = vrot.lane.b32.xlu0 %v5801_v39, %s6853_s30  ;;  %v6234_v54 = vpop.f32.mrf.mxu1  ;;  %1512 = vst.msk [vmem:[#allocation4 + $0x154] sm:$0xf] %vm1285_vm1, %v5791_v15  ;;  %v6174_v31 = vpop.f32.mrf.mxu0  ;;  %v6751_v39 = vld [vmem:[%s8320_s3 + $0x90] sm:$0xff]   ;;  %v5792_v51 = vpack.c.bf16 %v1453_v45, %v1453_v45  ;;  %1441 = vst.msk [vmem:[#allocation4 + $0x170] sm:$0xf] %vm1285_vm1, %v5780_v50 }
 0x139   : > { %1214 = vst.msk [vmem:[#allocation2 + $0x168] sm:$0xff] %vm607_vm0, %v1200_v48  ;;  %v1159_v60 = vadd.f32 %v6233_v49, %v7132_v25  ;;  %v999_v1 = vmax.f32 %v953_v55, 0.0  ;;  %v6175_v42 = vadd.f32 %v6174_v31, %v6173_v23  ;;  %v2283_v62 = vld [vmem:[#allocation2 + $0x151] sm:$0xff] }
 0x13a   : > { %v6235_v0 = vpop.f32.mrf.mxu1  ;;  %1959 = vst.msk [vmem:[#allocation4 + $0x8] sm:$0xf] %vm1285_vm1, %v5841_v57  ;;  %v1900_v8 = vld [vmem:[#allocation2 + $0xe8] sm:$0xff]  ;;  %v6176_v43 = vpop.f32.mrf.mxu0  ;;  %v5816_v57 = vpack.c.bf16 %v1622_v36, %v1622_v36  ;;  %1513 = vst.msk [vmem:[#allocation4 + $0x174] sm:$0xf] %vm1285_vm1, %v5792_v51 }
 0x13b   : > { %v1201_v6 = vmax.f32 %v1159_v60, 0.0  ;;  %v6236_v7 = vadd.f32 %v6235_v0, %v6234_v54  ;;  %v1971_v9 = vld [vmem:[#allocation2 + $0xe1] sm:$0xff]  ;;  %1013 = vst.msk [vmem:[#allocation2 + $0xf8] sm:$0xff] %vm607_vm0, %v999_v1  ;;  %v5842_v13 = vpack.c.bf16 %v1900_v8, %v1900_v8  ;;  %v958_v53 = vadd.f32 %v7361_v37, %v6175_v42 }
 0x13c   : > { %1580 = vrot.lane.b32.xlu1 %v5802_v58, %s6853_s30  ;;  %1675 = vrot.lane.b32.xlu0 %v5813_v59, %s6853_s30  ;;  %v6237_v12 = vpop.f32.mrf.mxu1  ;;  %v5853_v14 = vpack.c.bf16 %v1971_v9, %v1971_v9  ;;  %v6177_v54 = vpop.f32.mrf.mxu0  ;;  %v5889_v58 = vpack.c.bf16 %v2187_v40, %v2187_v40  ;;  %v2188_v59 = vld [vmem:[#allocation2 + $0x158] sm:$0xff] }
 0x13d   : > { %1215 = vst.msk [vmem:[#allocation2 + $0x170] sm:$0xff] %vm607_vm0, %v1201_v6  ;;  %v1162_v18 = vadd.f32 %v6236_v7, %v7132_v25  ;;  %v6747_v25 = vld [vmem:[%s8320_s3 + $0x98] sm:$0xff]   ;;  %v1000_v0 = vmax.f32 %v958_v53, 0.0  ;;  %v6178_v1 = vadd.f32 %v6177_v54, %v6176_v43 }
 0x13e   : > { %v6238_v22 = vpop.f32.mrf.mxu1  ;;  %1960 = vst.msk [vmem:[#allocation4 + $0x28] sm:$0xf] %vm1285_vm1, %v5842_v13  ;;  %2031 = vst.msk [vmem:[#allocation4 + $0xc] sm:$0xf] %vm1285_vm1, %v5853_v14  ;;  %v1972_v28 = vld [vmem:[#allocation2 + $0xe9] sm:$0xff]  ;;  %6322 = vmatpush3.bf16.msra.mxu1 %v6747_v25  ;;  %v6179_v10 = vpop.f32.mrf.mxu0  ;;  %v5890_v13 = vpack.c.bf16 %v2188_v59, %v2188_v59  ;;  %v5901_v14 = vpack.c.bf16 %v2283_v62, %v2283_v62 }
 0x13f   : > { %v1202_v24 = vmax.f32 %v1162_v18, 0.0  ;;  %v6239_v26 = vadd.f32 %v6238_v22, %v6237_v12  ;;  %v1901_v29 = vld [vmem:[#allocation2 + $0xf0] sm:$0xff]  ;;  %v5854_v32 = vpack.c.bf16 %v1972_v28, %v1972_v28  ;;  %6323 = vmatprep.subr.bf16.mxu1 %v6749_v27  ;;  %1014 = vst.msk [vmem:[#allocation2 + $0x100] sm:$0xff] %vm607_vm0, %v1000_v0  ;;  %v961_v9 = vadd.f32 %v7361_v37, %v6178_v1  ;;  %v2189_v18 = vld [vmem:[#allocation2 + $0x160] sm:$0xff] }
 0x140   : > { %1677 = vrot.lane.b32.xlu1 %v5814_v16, %s6853_s30  ;;  %1582 = vrot.lane.b32.xlu0 %v5803_v17, %s6853_s30  ;;  %v6240_v30 = vpop.f32.mrf.mxu1  ;;  %v5843_v33 = vpack.c.bf16 %v1901_v29, %v1901_v29  ;;  %v2043_v49 = vld [vmem:[#allocation2 + $0xea] sm:$0xff]  ;;  %v6759_v16 = vld [vmem:[%s8320_s3 + $0x80] sm:$0xff]   ;;  %v6180_v21 = vpop.f32.mrf.mxu0 }
 0x141   : > { %1216 = vst.msk [vmem:[#allocation2 + $0x178] sm:$0xff] %vm607_vm0, %v1202_v24  ;;  %v1167_v38 = vadd.f32 %v7361_v37, %v6239_v26  ;;  %v5865_v56 = vpack.c.bf16 %v2043_v49, %v2043_v49  ;;  %v2115_v7 = vld [vmem:[#allocation2 + $0xeb] sm:$0xff]  ;;  %v2284_v17 = vld [vmem:[#allocation2 + $0x159] sm:$0xff]  ;;  %v1001_v20 = vmax.f32 %v961_v9, 0.0  ;;  %v6181_v25 = vadd.f32 %v6180_v21, %v6179_v10  ;;  %v2476_v9 = vld [vmem:[#allocation2 + $0x163] sm:$0xff] }
 0x142   : > { %v6241_v41 = vpop.f32.mrf.mxu1  ;;  %2032 = vst.msk [vmem:[#allocation4 + $0x2c] sm:$0xf] %vm1285_vm1, %v5854_v32  ;;  %1961 = vst.msk [vmem:[#allocation4 + $0x48] sm:$0xf] %vm1285_vm1, %v5843_v33  ;;  %v1902_v48 = vld [vmem:[#allocation2 + $0xf8] sm:$0xff]  ;;  %6324 = vmatpush3.bf16.msra.mxu1 %v6751_v39  ;;  %v5877_v12 = vpack.c.bf16 %v2115_v7, %v2115_v7  ;;  %v6182_v28 = vpop.f32.mrf.mxu0  ;;  %v5902_v31 = vpack.c.bf16 %v2284_v17, %v2284_v17  ;;  %v5891_v32 = vpack.c.bf16 %v2189_v18, %v2189_v18  ;;  %v2285_v10 = vld [vmem:[#allocation2 + $0x161] sm:$0xff] }
 0x143   : > { %v1203_v46 = vmax.f32 %v1167_v38, 0.0  ;;  %v6242_v47 = vadd.f32 %v6241_v41, %v6240_v30  ;;  %v5844_v55 = vpack.c.bf16 %v1902_v48, %v1902_v48  ;;  %2103 = vst.msk [vmem:[#allocation4 + $0x18] sm:$0xf] %vm1285_vm1, %v5865_v56  ;;  %v2044_v6 = vld [vmem:[#allocation2 + $0xf2] sm:$0xff]  ;;  %6325 = vmatprep.subr.bf16.mxu1 %v6753_v61  ;;  %v966_v38 = vadd.f32 %v7361_v37, %v6181_v25  ;;  %v2475_v56 = vld [vmem:[#allocation2 + $0x15b] sm:$0xff] }
 0x144   : > { %1584 = vrot.lane.b32.xlu1 %v5804_v34, %s6853_s30  ;;  %1679 = vrot.lane.b32.xlu0 %v5815_v35, %s6853_s30  ;;  %v6243_v52 = vpop.f32.mrf.mxu1  ;;  %v5866_v11 = vpack.c.bf16 %v2044_v6, %v2044_v6  ;;  %2175 = vst.msk [vmem:[#allocation4 + $0x1c] sm:$0xf] %vm1285_vm1, %v5877_v12  ;;  %v2116_v24 = vld [vmem:[#allocation2 + $0xf3] sm:$0xff]  ;;  %v2190_v34 = vld [vmem:[#allocation2 + $0x168] sm:$0xff]  ;;  %v6183_v39 = vpop.f32.mrf.mxu0  ;;  %v5925_v6 = vpack.c.bf16 %v2475_v56, %v2475_v56 }
 0x145   : > { %1217 = vst.msk [vmem:[#allocation2 + $0x180] sm:$0xff] %vm607_vm0, %v1203_v46  ;;  %v1170_v60 = vadd.f32 %v7361_v37, %v6242_v47  ;;  %v1973_v26 = vld [vmem:[#allocation2 + $0xf1] sm:$0xff]  ;;  %1015 = vst.msk [vmem:[#allocation2 + $0x108] sm:$0xff] %vm607_vm0, %v1001_v20  ;;  %v5878_v29 = vpack.c.bf16 %v2116_v24, %v2116_v24  ;;  %v2379_v35 = vld [vmem:[#allocation2 + $0x15a] sm:$0xff]  ;;  %v6184_v42 = vadd.f32 %v6183_v39, %v6182_v28  ;;  %v1002_v46 = vmax.f32 %v966_v38, 0.0 }
 0x146   : > { %v6244_v63 = vpop.f32.mrf.mxu1  ;;  %1962 = vst.msk [vmem:[#allocation4 + $0x68] sm:$0xf] %vm1285_vm1, %v5844_v55  ;;  %6326 = vmatpush3.bf16.msra.mxu1 %v6755_v2  ;;  %2104 = vst.msk [vmem:[#allocation4 + $0x38] sm:$0xf] %vm1285_vm1, %v5866_v11  ;;  %v5855_v30 = vpack.c.bf16 %v1973_v26, %v1973_v26  ;;  %v1974_v43 = vld [vmem:[#allocation2 + $0xf9] sm:$0xff]  ;;  %v5892_v49 = vpack.c.bf16 %v2190_v34, %v2190_v34  ;;  %v5913_v50 = vpack.c.bf16 %v2379_v35, %v2379_v35  ;;  %v2380_v55 = vld [vmem:[#allocation2 + $0x162] sm:$0xff] }
 0x147   : > { %v1204_v4 = vmax.f32 %v1170_v60, 0.0  ;;  %v6245_v5 = vadd.f32 %v6244_v63, %v6243_v52  ;;  %6327 = vmatprep.subr.bf16.mxu1 %v6757_v3  ;;  %2176 = vst.msk [vmem:[#allocation4 + $0x3c] sm:$0xf] %vm1285_vm1, %v5878_v29  ;;  %v1903_v44 = vld [vmem:[#allocation2 + $0x100] sm:$0xff]  ;;  %v5856_v47 = vpack.c.bf16 %v1974_v43, %v1974_v43  ;;  %v6185_v52 = vpop.f32.mrf.mxu0  ;;  %v2286_v17 = vld [vmem:[#allocation2 + $0x169] sm:$0xff] }
 0x148   : > { %1681 = vrot.lane.b32.xlu1 %v5816_v57, %s6853_s30  ;;  %2235 = vrot.lane.b32.xlu0 %v5889_v58, %s6853_s30  ;;  %v6246_v8 = vpop.f32.mrf.mxu1  ;;  %2033 = vst.msk [vmem:[#allocation4 + $0x4c] sm:$0xf] %vm1285_vm1, %v5855_v30  ;;  %v5845_v48 = vpack.c.bf16 %v1903_v44, %v1903_v44  ;;  %v2045_v53 = vld [vmem:[#allocation2 + $0xfa] sm:$0xff]  ;;  %v969_v58 = vadd.f32 %v7361_v37, %v6184_v42  ;;  %v2191_v25 = vld [vmem:[#allocation2 + $0x170] sm:$0xff] }
 0x149   : > { %1218 = vst.msk [vmem:[#allocation2 + $0x188] sm:$0xff] %vm607_vm0, %v1204_v4  ;;  %v1175_v15 = vadd.f32 %v7361_v37, %v6245_v5  ;;  %v2117_v54 = vld [vmem:[#allocation2 + $0xfb] sm:$0xff]  ;;  %1016 = vst.msk [vmem:[#allocation2 + $0x110] sm:$0xff] %vm607_vm0, %v1002_v46  ;;  %v5867_v59 = vpack.c.bf16 %v2045_v53, %v2045_v53  ;;  %v6186_v63 = vpop.f32.mrf.mxu0  ;;  %v5914_v5 = vpack.c.bf16 %v2380_v55, %v2380_v55 }
 0x14a   : > { %v6247_v19 = vpop.f32.mrf.mxu1  ;;  %6328 = vmatpush3.bf16.msra.mxu1 %v6759_v16  ;;  %2034 = vst.msk [vmem:[#allocation4 + $0x6c] sm:$0xf] %vm1285_vm1, %v5856_v47  ;;  %1963 = vst.msk [vmem:[#allocation4 + $0x88] sm:$0xf] %vm1285_vm1, %v5845_v48  ;;  %v5879_v60 = vpack.c.bf16 %v2117_v54, %v2117_v54  ;;  %v1003_v2 = vmax.f32 %v969_v58, 0.0  ;;  %v6187_v3 = vadd.f32 %v6186_v63, %v6185_v52  ;;  %v6761_v52 = vld [vmem:[%s8320_s3 + $0x1f8] sm:$0xff]  }
 0x14b   : > { %v1205_v22 = vmax.f32 %v1175_v15, 0.0  ;;  %v6248_v23 = vadd.f32 %v6247_v19, %v6246_v8  ;;  %2105 = vst.msk [vmem:[#allocation4 + $0x58] sm:$0xf] %vm1285_vm1, %v5867_v59  ;;  %v6188_v8 = vpop.f32.mrf.mxu0  ;;  %v5893_v46 = vpack.c.bf16 %v2191_v25, %v2191_v25  ;;  %6417 = vmatprep.subr.bf16.mxu1 %v6761_v52 }
 0x14c   : > { %2237 = vrot.lane.b32.xlu1 %v5890_v13, %s6853_s30  ;;  %2331 = vrot.lane.b32.xlu0 %v5901_v14, %s6853_s30  ;;  %v6249_v27 = vpop.f32.mrf.mxu1  ;;  %v1904_v0 = vld [vmem:[#allocation2 + $0x108] sm:$0xff]  ;;  %2177 = vst.msk [vmem:[#allocation4 + $0x5c] sm:$0xf] %vm1285_vm1, %v5879_v60  ;;  %v974_v12 = vadd.f32 %v7361_v37, %v6187_v3  ;;  %v2288_v25 = vld [vmem:[#allocation2 + $0x179] sm:$0xff] }
 0x14d   : > { %1219 = vst.msk [vmem:[#allocation2 + $0x190] sm:$0xff] %vm607_vm0, %v1205_v22  ;;  %v1178_v33 = vadd.f32 %v7361_v37, %v6248_v23  ;;  %v5846_v4 = vpack.c.bf16 %v1904_v0, %v1904_v0  ;;  %1017 = vst.msk [vmem:[#allocation2 + $0x118] sm:$0xff] %vm607_vm0, %v1003_v2  ;;  %v6189_v15 = vpop.f32.mrf.mxu0  ;;  %v2046_v16 = vld [vmem:[#allocation2 + $0x102] sm:$0xff]  ;;  %v5926_v22 = vpack.c.bf16 %v2476_v9, %v2476_v9  ;;  %v2383_v52 = vld [vmem:[#allocation2 + $0x17a] sm:$0xff] }
 0x14e   : > { %v6250_v36 = vpop.f32.mrf.mxu1  ;;  %v1004_v19 = vmax.f32 %v974_v12, 0.0  ;;  %v6190_v20 = vadd.f32 %v6189_v15, %v6188_v8  ;;  %v5868_v21 = vpack.c.bf16 %v2046_v16, %v2046_v16  ;;  %v5903_v23 = vpack.c.bf16 %v2285_v10, %v2285_v10  ;;  %v1975_v28 = vld [vmem:[#allocation2 + $0x101] sm:$0xff] }
 0x14f   : > { %v1206_v40 = vmax.f32 %v1178_v33, 0.0  ;;  %v6251_v41 = vadd.f32 %v6250_v36, %v6249_v27  ;;  %1964 = vst.msk [vmem:[#allocation4 + $0xa8] sm:$0xf] %vm1285_vm1, %v5846_v4  ;;  %v6191_v26 = vpop.f32.mrf.mxu0  ;;  %v2118_v27 = vld [vmem:[#allocation2 + $0x103] sm:$0xff] }
 0x150   : > { %2333 = vrot.lane.b32.xlu1 %v5902_v31, %s6853_s30  ;;  %2239 = vrot.lane.b32.xlu0 %v5891_v32, %s6853_s30  ;;  %v6252_v45 = vpop.f32.mrf.mxu1  ;;  %1018 = vst.msk [vmem:[#allocation2 + $0x120] sm:$0xff] %vm607_vm0, %v1004_v19  ;;  %v977_v30 = vadd.f32 %v7361_v37, %v6190_v20  ;;  %v5880_v31 = vpack.c.bf16 %v2118_v27, %v2118_v27  ;;  %v1976_v33 = vld [vmem:[#allocation2 + $0x109] sm:$0xff]  ;;  %v2478_v20 = vld [vmem:[#allocation2 + $0x173] sm:$0xff] }
 0x151   : > { %1220 = vst.msk [vmem:[#allocation2 + $0x198] sm:$0xff] %vm607_vm0, %v1206_v40  ;;  %v1183_v51 = vadd.f32 %v7361_v37, %v6251_v41  ;;  %v5857_v32 = vpack.c.bf16 %v1975_v28, %v1975_v28  ;;  %v2047_v34 = vld [vmem:[#allocation2 + $0x10a] sm:$0xff]  ;;  %v6192_v39 = vpop.f32.mrf.mxu0  ;;  %v5858_v40 = vpack.c.bf16 %v1976_v33, %v1976_v33  ;;  %v5928_v27 = vpack.c.bf16 %v2478_v20, %v2478_v20 }
 0x152   : > { %v6253_v57 = vpop.f32.mrf.mxu1  ;;  %2106 = vst.msk [vmem:[#allocation4 + $0x78] sm:$0xf] %vm1285_vm1, %v5868_v21  ;;  %v2119_v35 = vld [vmem:[#allocation2 + $0x10b] sm:$0xff]  ;;  %v5869_v41 = vpack.c.bf16 %v2047_v34, %v2047_v34  ;;  %v1005_v42 = vmax.f32 %v977_v30, 0.0  ;;  %v6193_v43 = vadd.f32 %v6192_v39, %v6191_v26  ;;  %2178 = vst.msk [vmem:[#allocation4 + $0x7c] sm:$0xf] %vm1285_vm1, %v5880_v31 }
 0x153   : > { %v1207_v61 = vmax.f32 %v1183_v51, 0.0  ;;  %v6254_v62 = vadd.f32 %v6253_v57, %v6252_v45  ;;  %2035 = vst.msk [vmem:[#allocation4 + $0x8c] sm:$0xf] %vm1285_vm1, %v5857_v32  ;;  %v5881_v44 = vpack.c.bf16 %v2119_v35, %v2119_v35  ;;  %v5904_v45 = vpack.c.bf16 %v2286_v17, %v2286_v17  ;;  %v6194_v48 = vpop.f32.mrf.mxu0  ;;  %2036 = vst.msk [vmem:[#allocation4 + $0xac] sm:$0xf] %vm1285_vm1, %v5858_v40  ;;  %v1905_v55 = vld [vmem:[#allocation2 + $0x110] sm:$0xff] }
 0x154   : > { %2241 = vrot.lane.b32.xlu1 %v5892_v49, %s6853_s30  ;;  %2427 = vrot.lane.b32.xlu0 %v5913_v50, %s6853_s30  ;;  %v6255_v1 = vpop.f32.mrf.mxu1  ;;  %2107 = vst.msk [vmem:[#allocation4 + $0x98] sm:$0xf] %vm1285_vm1, %v5869_v41  ;;  %v2192_v49 = vld [vmem:[#allocation2 + $0x178] sm:$0xff]  ;;  %v2381_v50 = vld [vmem:[#allocation2 + $0x16a] sm:$0xff]  ;;  %v982_v51 = vadd.f32 %v7361_v37, %v6193_v43  ;;  %v5847_v58 = vpack.c.bf16 %v1905_v55, %v1905_v55 }
 0x155   : > { %1221 = vst.msk [vmem:[#allocation2 + $0x1a0] sm:$0xff] %vm607_vm0, %v1207_v61  ;;  %v1186_v7 = vadd.f32 %v7361_v37, %v6254_v62  ;;  %1019 = vst.msk [vmem:[#allocation2 + $0x128] sm:$0xff] %vm607_vm0, %v1005_v42  ;;  %v6195_v54 = vpop.f32.mrf.mxu0  ;;  %v5894_v59 = vpack.c.bf16 %v2192_v49, %v2192_v49  ;;  %v5915_v60 = vpack.c.bf16 %v2381_v50, %v2381_v50  ;;  %v2477_v61 = vld [vmem:[#allocation2 + $0x16b] sm:$0xff]  ;;  %v1906_v63 = vld [vmem:[#allocation2 + $0x118] sm:$0xff] }
 0x156   : > { %v6256_v11 = vpop.f32.mrf.mxu1  ;;  %2179 = vst.msk [vmem:[#allocation4 + $0x9c] sm:$0xf] %vm1285_vm1, %v5881_v44  ;;  %v1006_v56 = vmax.f32 %v982_v51, 0.0  ;;  %v6196_v57 = vadd.f32 %v6195_v54, %v6194_v48  ;;  %v2048_v0 = vld [vmem:[#allocation2 + $0x112] sm:$0xff]  ;;  %1965 = vst.msk [vmem:[#allocation4 + $0xc8] sm:$0xf] %vm1285_vm1, %v5847_v58  ;;  %v5848_v3 = vpack.c.bf16 %v1906_v63, %v1906_v63  ;;  %v5906_v48 = vpack.c.bf16 %v2288_v25, %v2288_v25 }
 0x157   : > { %v1208_v13 = vmax.f32 %v1186_v7, 0.0  ;;  %v6257_v14 = vadd.f32 %v6256_v11, %v6255_v1  ;;  %v6197_v62 = vpop.f32.mrf.mxu0  ;;  %v2382_v1 = vld [vmem:[#allocation2 + $0x172] sm:$0xff]  ;;  %v5870_v4 = vpack.c.bf16 %v2048_v0, %v2048_v0  ;;  %v2049_v11 = vld [vmem:[#allocation2 + $0x11a] sm:$0xff]  ;;  %v2194_v51 = vld [vmem:[#allocation2 + $0x188] sm:$0xff]  ;;  %v5917_v55 = vpack.c.bf16 %v2383_v52, %v2383_v52 }
 0x158   : > { %2429 = vrot.lane.b32.xlu1 %v5914_v5, %s6853_s30  ;;  %2523 = vrot.lane.b32.xlu0 %v5925_v6, %s6853_s30  ;;  %v6258_v18 = vpop.f32.mrf.mxu1  ;;  %1020 = vst.msk [vmem:[#allocation2 + $0x130] sm:$0xff] %vm607_vm0, %v1006_v56  ;;  %v985_v2 = vadd.f32 %v7361_v37, %v6196_v57  ;;  %v1977_v5 = vld [vmem:[#allocation2 + $0x111] sm:$0xff]  ;;  %v1978_v6 = vld [vmem:[#allocation2 + $0x119] sm:$0xff]  ;;  %v5871_v16 = vpack.c.bf16 %v2049_v11, %v2049_v11  ;;  %v6738_v52 = vld [vmem:[%s8320_s3 + $0x168] sm:$0xff]  }
 0x159   : > { %1222 = vst.msk [vmem:[#allocation2 + $0x1a8] sm:$0xff] %vm607_vm0, %v1208_v13  ;;  %v1191_v24 = vadd.f32 %v7361_v37, %v6257_v14  ;;  %v6198_v7 = vpop.f32.mrf.mxu0  ;;  %v5859_v8 = vpack.c.bf16 %v1977_v5, %v1977_v5  ;;  %v5860_v9 = vpack.c.bf16 %v1978_v6, %v1978_v6  ;;  %v2120_v10 = vld [vmem:[#allocation2 + $0x113] sm:$0xff]  ;;  %v2121_v12 = vld [vmem:[#allocation2 + $0x11b] sm:$0xff]  ;;  %v5916_v17 = vpack.c.bf16 %v2382_v1, %v2382_v1 }
 0x15a   : > { %v6259_v29 = vpop.f32.mrf.mxu1  ;;  %v1007_v13 = vmax.f32 %v985_v2, 0.0  ;;  %v6199_v14 = vadd.f32 %v6198_v7, %v6197_v62  ;;  %1966 = vst.msk [vmem:[#allocation4 + $0xe8] sm:$0xf] %vm1285_vm1, %v5848_v3  ;;  %2108 = vst.msk [vmem:[#allocation4 + $0xb8] sm:$0xf] %vm1285_vm1, %v5870_v4  ;;  %v5882_v15 = vpack.c.bf16 %v2120_v10, %v2120_v10  ;;  %v5883_v19 = vpack.c.bf16 %v2121_v12, %v2121_v12  ;;  %v2287_v21 = vld [vmem:[#allocation2 + $0x171] sm:$0xff] }
 0x15b   : > { %v1209_v36 = vmax.f32 %v1191_v24, 0.0  ;;  %v6260_v38 = vadd.f32 %v6259_v29, %v6258_v18  ;;  %v5927_v18 = vpack.c.bf16 %v2477_v61, %v2477_v61  ;;  %2037 = vst.msk [vmem:[#allocation4 + $0xcc] sm:$0xf] %vm1285_vm1, %v5859_v8  ;;  %2038 = vst.msk [vmem:[#allocation4 + $0xec] sm:$0xf] %vm1285_vm1, %v5860_v9  ;;  %v2193_v24 = vld [vmem:[#allocation2 + $0x180] sm:$0xff]  ;;  %v5905_v28 = vpack.c.bf16 %v2287_v21, %v2287_v21 }
 0x15c   : > { %2525 = vrot.lane.b32.xlu1 %v5926_v22, %s6853_s30  ;;  %2335 = vrot.lane.b32.xlu0 %v5903_v23, %s6853_s30  ;;  %1021 = vst.msk [vmem:[#allocation2 + $0x138] sm:$0xff] %vm607_vm0, %v1007_v13  ;;  %v990_v22 = vadd.f32 %v7361_v37, %v6199_v14  ;;  %v6200_v23 = vpop.f32.mrf.mxu0  ;;  %v1907_v29 = vld [vmem:[#allocation2 + $0x120] sm:$0xff]  ;;  %v1908_v30 = vld [vmem:[#allocation2 + $0x128] sm:$0xff]  ;;  %v5895_v49 = vpack.c.bf16 %v2193_v24, %v2193_v24 }
 0x15d   : > { %1223 = vst.msk [vmem:[#allocation2 + $0x1b0] sm:$0xff] %vm607_vm0, %v1209_v36  ;;  %v1194_v47 = vadd.f32 %v7361_v37, %v6260_v38  ;;  %v1979_v31 = vld [vmem:[#allocation2 + $0x121] sm:$0xff]  ;;  %v5849_v33 = vpack.c.bf16 %v1907_v29, %v1907_v29  ;;  %v5850_v34 = vpack.c.bf16 %v1908_v30, %v1908_v30  ;;  %v2290_v14 = vld [vmem:[#allocation2 + $0x189] sm:$0xff]  ;;  %v2292_v30 = vld [vmem:[#allocation2 + $0x199] sm:$0xff] }
 0x15e   : > { %2180 = vst.msk [vmem:[#allocation4 + $0xbc] sm:$0xf] %vm1285_vm1, %v5882_v15  ;;  %2109 = vst.msk [vmem:[#allocation4 + $0xd8] sm:$0xf] %vm1285_vm1, %v5871_v16  ;;  %v1008_v26 = vmax.f32 %v990_v22, 0.0  ;;  %v6201_v32 = vpop.f32.mrf.mxu0  ;;  %v5861_v35 = vpack.c.bf16 %v1979_v31, %v1979_v31  ;;  %v2050_v38 = vld [vmem:[#allocation2 + $0x122] sm:$0xff] }
 0x15f   : > { %v1210_v53 = vmax.f32 %v1194_v47, 0.0  ;;  %2181 = vst.msk [vmem:[#allocation4 + $0xdc] sm:$0xf] %vm1285_vm1, %v5883_v19  ;;  %v1980_v36 = vld [vmem:[#allocation2 + $0x129] sm:$0xff]  ;;  %v6202_v40 = vadd.f32 %v6201_v32, %v6200_v23  ;;  %v5872_v42 = vpack.c.bf16 %v2050_v38, %v2050_v38  ;;  %1967 = vst.msk [vmem:[#allocation4 + $0x108] sm:$0xf] %vm1285_vm1, %v5849_v33 }
 0x160   : > { %2337 = vrot.lane.b32.xlu1 %v5904_v45, %s6853_s30  ;;  %2243 = vrot.lane.b32.xlu0 %v5893_v46, %s6853_s30  ;;  %1022 = vst.msk [vmem:[#allocation2 + $0x140] sm:$0xff] %vm607_vm0, %v1008_v26  ;;  %v2122_v39 = vld [vmem:[#allocation2 + $0x123] sm:$0xff]  ;;  %v5862_v41 = vpack.c.bf16 %v1980_v36, %v1980_v36  ;;  %v2123_v44 = vld [vmem:[#allocation2 + $0x12b] sm:$0xff]  ;;  %v2196_v22 = vld [vmem:[#allocation2 + $0x198] sm:$0xff] }
 0x161   : > { %1224 = vst.msk [vmem:[#allocation2 + $0x1b8] sm:$0xff] %vm607_vm0, %v1210_v53  ;;  %v2051_v43 = vld [vmem:[#allocation2 + $0x12a] sm:$0xff]  ;;  %v5884_v45 = vpack.c.bf16 %v2122_v39, %v2122_v39  ;;  %v5885_v47 = vpack.c.bf16 %v2123_v44, %v2123_v44  ;;  %v993_v50 = vadd.f32 %v7361_v37, %v6202_v40  ;;  %v5896_v37 = vpack.c.bf16 %v2194_v51, %v2194_v51  ;;  %v2197_v31 = vld [vmem:[#allocation2 + $0x1a0] sm:$0xff] }
 0x162   : > { %1968 = vst.msk [vmem:[#allocation4 + $0x128] sm:$0xf] %vm1285_vm1, %v5850_v34  ;;  %2039 = vst.msk [vmem:[#allocation4 + $0x10c] sm:$0xf] %vm1285_vm1, %v5861_v35  ;;  %v5873_v46 = vpack.c.bf16 %v2051_v43, %v2051_v43  ;;  %v1909_v56 = vld [vmem:[#allocation2 + $0x130] sm:$0xff]  ;;  %v5910_v34 = vpack.c.bf16 %v2292_v30, %v2292_v30  ;;  %v5899_v35 = vpack.c.bf16 %v2197_v31, %v2197_v31  ;;  %v6732_v43 = vld [vmem:[%s8320_s3 + $0x138] sm:$0xff]  }
 0x163   : > { %2040 = vst.msk [vmem:[#allocation4 + $0x12c] sm:$0xf] %vm1285_vm1, %v5862_v41  ;;  %2110 = vst.msk [vmem:[#allocation4 + $0xf8] sm:$0xf] %vm1285_vm1, %v5872_v42  ;;  %v1009_v53 = vmax.f32 %v993_v50, 0.0  ;;  %v1910_v57 = vld [vmem:[#allocation2 + $0x138] sm:$0xff]  ;;  %v5851_v61 = vpack.c.bf16 %v1909_v56, %v1909_v56 }
 0x164   : > { %2245 = vrot.lane.b32.xlu1 %v5894_v59, %s6853_s30  ;;  %2431 = vrot.lane.b32.xlu0 %v5915_v60, %s6853_s30  ;;  %2182 = vst.msk [vmem:[#allocation4 + $0xfc] sm:$0xf] %vm1285_vm1, %v5884_v45  ;;  %2111 = vst.msk [vmem:[#allocation4 + $0x118] sm:$0xf] %vm1285_vm1, %v5873_v46  ;;  %v1981_v58 = vld [vmem:[#allocation2 + $0x131] sm:$0xff]  ;;  %v2384_v59 = vld [vmem:[#allocation2 + $0x182] sm:$0xff]  ;;  %v5852_v62 = vpack.c.bf16 %v1910_v57, %v1910_v57 }
 0x165   : > { %2183 = vst.msk [vmem:[#allocation4 + $0x11c] sm:$0xf] %vm1285_vm1, %v5885_v47  ;;  %v2289_v60 = vld [vmem:[#allocation2 + $0x181] sm:$0xff]  ;;  %v5863_v63 = vpack.c.bf16 %v1981_v58, %v1981_v58  ;;  %v2052_v2 = vld [vmem:[#allocation2 + $0x132] sm:$0xff]  ;;  %1969 = vst.msk [vmem:[#allocation4 + $0x148] sm:$0xf] %vm1285_vm1, %v5851_v61  ;;  %v5918_v11 = vpack.c.bf16 %v2384_v59, %v2384_v59 }
 0x166   : > { %1023 = vst.msk [vmem:[#allocation2 + $0x148] sm:$0xff] %vm607_vm0, %v1009_v53  ;;  %v2124_v3 = vld [vmem:[#allocation2 + $0x133] sm:$0xff]  ;;  %v5874_v5 = vpack.c.bf16 %v2052_v2, %v2052_v2  ;;  %v5907_v12 = vpack.c.bf16 %v2289_v60, %v2289_v60  ;;  %v2198_v41 = vld [vmem:[#allocation2 + $0x1a8] sm:$0xff]  ;;  %v2479_v50 = vld [vmem:[#allocation2 + $0x17b] sm:$0xff] }
 0x167   : > { %v1982_v0 = vld [vmem:[#allocation2 + $0x139] sm:$0xff]  ;;  %1970 = vst.msk [vmem:[#allocation4 + $0x168] sm:$0xf] %vm1285_vm1, %v5852_v62  ;;  %2041 = vst.msk [vmem:[#allocation4 + $0x14c] sm:$0xf] %vm1285_vm1, %v5863_v63  ;;  %v5886_v6 = vpack.c.bf16 %v2124_v3, %v2124_v3  ;;  %v2195_v15 = vld [vmem:[#allocation2 + $0x190] sm:$0xff]  ;;  %v5900_v47 = vpack.c.bf16 %v2198_v41, %v2198_v41 }
 0x168   : > { %2433 = vrot.lane.b32.xlu1 %v5916_v17, %s6853_s30  ;;  %2527 = vrot.lane.b32.xlu0 %v5927_v18, %s6853_s30  ;;  %v5864_v1 = vpack.c.bf16 %v1982_v0, %v1982_v0  ;;  %v2053_v4 = vld [vmem:[#allocation2 + $0x13a] sm:$0xff]  ;;  %2112 = vst.msk [vmem:[#allocation4 + $0x138] sm:$0xf] %vm1285_vm1, %v5874_v5  ;;  %v5908_v18 = vpack.c.bf16 %v2290_v14, %v2290_v14  ;;  %v2291_v23 = vld [vmem:[#allocation2 + $0x191] sm:$0xff]  ;;  %v2480_v56 = vld [vmem:[#allocation2 + $0x183] sm:$0xff] }
 0x169   : > { %v5875_v7 = vpack.c.bf16 %v2053_v4, %v2053_v4  ;;  %v2125_v8 = vld [vmem:[#allocation2 + $0x13b] sm:$0xff]  ;;  %2184 = vst.msk [vmem:[#allocation4 + $0x13c] sm:$0xf] %vm1285_vm1, %v5886_v6  ;;  %v5897_v19 = vpack.c.bf16 %v2195_v15, %v2195_v15  ;;  %v5909_v29 = vpack.c.bf16 %v2291_v23, %v2291_v23  ;;  %v6735_v44 = vld [vmem:[%s8320_s3 + $0x170] sm:$0xff]   ;;  %v6740_v58 = vld [vmem:[%s8320_s3 + $0x128] sm:$0xff]   ;;  %v5930_v62 = vpack.c.bf16 %v2480_v56, %v2480_v56 }
 0x16a   : > { %2042 = vst.msk [vmem:[#allocation4 + $0x16c] sm:$0xf] %vm1285_vm1, %v5864_v1  ;;  %v5887_v13 = vpack.c.bf16 %v2125_v8, %v2125_v8  ;;  %v2293_v42 = vld [vmem:[#allocation2 + $0x1a1] sm:$0xff]  ;;  %v6736_v51 = vld [vmem:[%s8320_s3 + $0x130] sm:$0xff]   ;;  %v6746_v3 = vld [vmem:[%s8320_s3 + $0x158] sm:$0xff]  }
 0x16b   : > { %2113 = vst.msk [vmem:[#allocation4 + $0x158] sm:$0xf] %vm1285_vm1, %v5875_v7  ;;  %v1713_v57 = vld [vmem:[#allocation2 + $0xaa] sm:$0xff]  ;;  %v6742_v59 = vld [vmem:[%s8320_s3 + $0x160] sm:$0xff]   ;;  %v1714_v0 = vld [vmem:[#allocation2 + $0xb2] sm:$0xff] }
 0x16c   : > { %2529 = vrot.lane.b32.xlu1 %v5928_v27, %s6853_s30  ;;  %2339 = vrot.lane.b32.xlu0 %v5905_v28, %s6853_s30  ;;  %2185 = vst.msk [vmem:[#allocation4 + $0x15c] sm:$0xf] %vm1285_vm1, %v5887_v13  ;;  %v5898_v28 = vpack.c.bf16 %v2196_v22, %v2196_v22  ;;  %v5823_v63 = vpack.c.bf16 %v1713_v57, %v1713_v57  ;;  %v1809_v1 = vld [vmem:[#allocation2 + $0xab] sm:$0xff]  ;;  %v6744_v2 = vld [vmem:[%s8320_s3 + $0x120] sm:$0xff]   ;;  %v6748_v14 = vld [vmem:[%s8320_s3 + $0x118] sm:$0xff]  }
 0x16d   : > { %v2054_v20 = vld [vmem:[#allocation2 + $0x142] sm:$0xff]  ;;  %v5824_v6 = vpack.c.bf16 %v1714_v0, %v1714_v0  ;;  %v5835_v7 = vpack.c.bf16 %v1809_v1, %v1809_v1  ;;  %v2385_v13 = vld [vmem:[#allocation2 + $0x18a] sm:$0xff]  ;;  %v1718_v1 = vld [vmem:[#allocation2 + $0xd2] sm:$0xff] }
 0x16e   : > { %v2126_v21 = vld [vmem:[#allocation2 + $0x143] sm:$0xff]  ;;  %v5876_v25 = vpack.c.bf16 %v2054_v20, %v2054_v20  ;;  %v6750_v15 = vld [vmem:[%s8320_s3 + $0x150] sm:$0xff]  }
 0x16f   : > { %v5888_v24 = vpack.c.bf16 %v2126_v21, %v2126_v21  ;;  %v2386_v20 = vld [vmem:[#allocation2 + $0x192] sm:$0xff]  ;;  %v6754_v23 = vld [vmem:[%s8320_s3 + $0x148] sm:$0xff]   ;;  %v6758_v31 = vld [vmem:[%s8320_s3 + $0x140] sm:$0xff]  }
 0x170   : > { %2341 = vrot.lane.b32.xlu1 %v5906_v48, %s6853_s30  ;;  %2247 = vrot.lane.b32.xlu0 %v5895_v49, %s6853_s30  ;;  %2114 = vst.msk [vmem:[#allocation4 + $0x178] sm:$0xf] %vm1285_vm1, %v5876_v25  ;;  %v5911_v48 = vpack.c.bf16 %v2293_v42, %v2293_v42  ;;  %v2294_v49 = vld [vmem:[#allocation2 + $0x1a9] sm:$0xff] }
 0x171   : > { %v1563_v54 = vpop.permute.xlu0 %1562  ;;  %2186 = vst.msk [vmem:[#allocation4 + $0x17c] sm:$0xf] %vm1285_vm1, %v5888_v24  ;;  %v2481_v21 = vld [vmem:[#allocation2 + $0x18b] sm:$0xff] }
 0x172   : > { %1599 = vst.msk [vmem:[#allocation4] sm:$0xf] %vm1598_vm2, %v1563_v54  ;;  %v6752_v22 = vld [vmem:[%s8320_s3 + $0x110] sm:$0xff]   ;;  %v6756_v30 = vld [vmem:[%s8320_s3 + $0x108] sm:$0xff]  }
 0x174   : > { %2249 = vrot.lane.b32.xlu1 %v5896_v37, %s6853_s30  ;;  %2435 = vrot.lane.b32.xlu0 %v5917_v55, %s6853_s30  ;;  %v5912_v37 = vpack.c.bf16 %v2294_v49, %v2294_v49  ;;  %v5929_v55 = vpack.c.bf16 %v2479_v50, %v2479_v50  ;;  %v2387_v49 = vld [vmem:[#allocation2 + $0x19a] sm:$0xff] }
 0x175   : > { %v1660_v9 = vpop.permute.xlu1 %1659 }
 0x176   : > { %v1565_v10 = vpop.permute.xlu0 %1564  ;;  %1695 = vst.msk [vmem:[#allocation4 + $0x4] sm:$0xf] %vm1598_vm2, %v1660_v9 }
 0x177   : > { %1600 = vst.msk [vmem:[#allocation4 + $0x20] sm:$0xf] %vm1598_vm2, %v1565_v10 }
 0x178   : > { %2437 = vrot.lane.b32.xlu1 %v5918_v11, %s6853_s30  ;;  %2343 = vrot.lane.b32.xlu0 %v5907_v12, %s6853_s30  ;;  %v1810_v12 = vld [vmem:[#allocation2 + $0xb3] sm:$0xff] }
 0x179   : > { %v1662_v16 = vpop.permute.xlu1 %1661 }
 0x17a   : > { %v1567_v17 = vpop.permute.xlu0 %1566  ;;  %1696 = vst.msk [vmem:[#allocation4 + $0x24] sm:$0xf] %vm1598_vm2, %v1662_v16 }
 0x17b   : > { %1601 = vst.msk [vmem:[#allocation4 + $0x40] sm:$0xf] %vm1598_vm2, %v1567_v17 }
 0x17c   : > { %2345 = vrot.lane.b32.xlu1 %v5908_v18, %s6853_s30  ;;  %2251 = vrot.lane.b32.xlu0 %v5897_v19, %s6853_s30  ;;  %v5836_v18 = vpack.c.bf16 %v1810_v12, %v1810_v12  ;;  %v5919_v19 = vpack.c.bf16 %v2385_v13, %v2385_v13  ;;  %v2389_v12 = vld [vmem:[#allocation2 + $0x1aa] sm:$0xff] }
 0x17d   : > { %v2571_v36 = vld [vmem:[#allocation4] sm:$0xff] }
 0x17e   : > { %v1569_v26 = vpop.permute.xlu1 %1568  ;;  %v1756_v27 = vpop.permute.xlu0 %1755 }
 0x17f   : > { %1602 = vst.msk [vmem:[#allocation4 + $0x60] sm:$0xf] %vm1598_vm2, %v1569_v26  ;;  %1791 = vst.msk [vmem:[#allocation4 + $0x10] sm:$0xf] %vm1598_vm2, %v1756_v27  ;;  %v5920_v26 = vpack.c.bf16 %v2386_v20, %v2386_v20  ;;  %v5931_v27 = vpack.c.bf16 %v2481_v21, %v2481_v21 }
 0x180   : > { %2253 = vrot.lane.b32.xlu1 %v5898_v28, %s6853_s30  ;;  %2347 = vrot.lane.b32.xlu0 %v5909_v29, %s6853_s30  ;;  %v2482_v28 = vld [vmem:[#allocation2 + $0x193] sm:$0xff] }
 0x181   : > { %v2575_v38 = vld [vmem:[#allocation4 + $0x20] sm:$0xff] }
 0x182   : > { %v1758_v32 = vpop.permute.xlu1 %1757  ;;  %v1852_v33 = vpop.permute.xlu0 %1851  ;;  %v5470_v39 = vcombine.low %v2571_v36, %v2575_v38  ;;  %v5471_v40 = vcombine.high %v2571_v36, %v2575_v38  ;;  %v1715_v29 = vld [vmem:[#allocation2 + $0xba] sm:$0xff]  ;;  %v1716_v36 = vld [vmem:[#allocation2 + $0xc2] sm:$0xff] }
 0x183   : > { %1792 = vst.msk [vmem:[#allocation4 + $0x30] sm:$0xf] %vm1598_vm2, %v1758_v32  ;;  %1887 = vst.msk [vmem:[#allocation4 + $0x14] sm:$0xf] %vm1598_vm2, %v1852_v33  ;;  %v1811_v38 = vld [vmem:[#allocation2 + $0xbb] sm:$0xff]  ;;  %v5826_v42 = vpack.c.bf16 %v1716_v36, %v1716_v36 }
 0x184   : > { %2349 = vrot.lane.b32.xlu1 %v5910_v34, %s6853_s30  ;;  %2255 = vrot.lane.b32.xlu0 %v5899_v35, %s6853_s30  ;;  %v5932_v34 = vpack.c.bf16 %v2482_v28, %v2482_v28  ;;  %v5825_v35 = vpack.c.bf16 %v1715_v29, %v1715_v29 }
 0x185   : > { %3410 = vmatprep.mubr.bf16.mxu0 %v5471_v40 }
 0x186   : > { %v1854_v45 = vpop.permute.xlu1 %1853  ;;  %v1664_v46 = vpop.permute.xlu0 %1663  ;;  %3411 = vmatmul.mubr.bf16.vlgmr.msra.gmra.mxu0 %v5470_v39  ;;  %v6760_v39 = vld [vmem:[%s8320_s3 + $0x100] sm:$0xff]  }
 0x187   : > { %1888 = vst.msk [vmem:[#allocation4 + $0x34] sm:$0xf] %vm1598_vm2, %v1854_v45  ;;  %1697 = vst.msk [vmem:[#allocation4 + $0x44] sm:$0xf] %vm1598_vm2, %v1664_v46  ;;  %6366 = vmatpush3.bf16.msra.mxu0 %v6732_v43  ;;  %v5837_v43 = vpack.c.bf16 %v1811_v38, %v1811_v38 }
 0x188   : > { %2257 = vrot.lane.b32.xlu1 %v5900_v47, %s6853_s30  ;;  %2351 = vrot.lane.b32.xlu0 %v5911_v48, %s6853_s30  ;;  %v1812_v48 = vld [vmem:[#allocation2 + $0xc3] sm:$0xff] }
 0x189   : > { %6367 = vmatprep.subr.bf16.mxu0 %v6735_v44 }
 0x18a   : > { %v1666_v53 = vpop.permute.xlu1 %1665  ;;  %v1571_v54 = vpop.permute.xlu0 %1570 }
 0x18b   : > { %1698 = vst.msk [vmem:[#allocation4 + $0x64] sm:$0xf] %vm1598_vm2, %v1666_v53  ;;  %1603 = vst.msk [vmem:[#allocation4 + $0x80] sm:$0xf] %vm1598_vm2, %v1571_v54  ;;  %6368 = vmatpush3.bf16.msra.mxu0 %v6736_v51  ;;  %v5921_v53 = vpack.c.bf16 %v2387_v49, %v2387_v49  ;;  %v2388_v54 = vld [vmem:[#allocation2 + $0x1a2] sm:$0xff] }
 0x18c   : > { %2353 = vrot.lane.b32.xlu1 %v5912_v37, %s6853_s30  ;;  %2531 = vrot.lane.b32.xlu0 %v5929_v55, %s6853_s30  ;;  %v2483_v37 = vld [vmem:[#allocation2 + $0x19b] sm:$0xff]  ;;  %v5922_v57 = vpack.c.bf16 %v2388_v54, %v2388_v54 }
 0x18d   : > { %6369 = vmatprep.subr.bf16.mxu0 %v6738_v52  ;;  %v5838_v52 = vpack.c.bf16 %v1812_v48, %v1812_v48 }
 0x18e   : > { %v1573_v60 = vpop.permute.xlu1 %1572  ;;  %v1760_v61 = vpop.permute.xlu0 %1759  ;;  %v2579_v8 = vld [vmem:[#allocation4 + $0x40] sm:$0xff] }
 0x18f   : > { %1604 = vst.msk [vmem:[#allocation4 + $0xa0] sm:$0xf] %vm1598_vm2, %v1573_v60  ;;  %1793 = vst.msk [vmem:[#allocation4 + $0x50] sm:$0xf] %vm1598_vm2, %v1760_v61  ;;  %6370 = vmatpush3.bf16.msra.mxu0 %v6740_v58  ;;  %v5933_v58 = vpack.c.bf16 %v2483_v37, %v2483_v37  ;;  %v1717_v60 = vld [vmem:[#allocation2 + $0xca] sm:$0xff] }
 0x190   : > { %2533 = vrot.lane.b32.xlu1 %v5930_v62, %s6853_s30  ;;  %1767 = vrot.lane.b32.xlu0 %v5823_v63, %s6853_s30  ;;  %v5827_v0 = vpack.c.bf16 %v1717_v60, %v1717_v60 }
 0x191   : > { %6371 = vmatprep.subr.bf16.mxu0 %v6742_v59  ;;  %v2484_v59 = vld [vmem:[#allocation2 + $0x1a3] sm:$0xff] }
 0x192   : > { %v1762_v4 = vpop.permute.xlu1 %1761  ;;  %v1856_v5 = vpop.permute.xlu0 %1855  ;;  %v2583_v9 = vld [vmem:[#allocation4 + $0x60] sm:$0xff]  ;;  %v5934_v63 = vpack.c.bf16 %v2484_v59, %v2484_v59 }
 0x193   : > { %1794 = vst.msk [vmem:[#allocation4 + $0x70] sm:$0xf] %vm1598_vm2, %v1762_v4  ;;  %1889 = vst.msk [vmem:[#allocation4 + $0x54] sm:$0xf] %vm1598_vm2, %v1856_v5  ;;  %v5479_v10 = vcombine.high %v2579_v8, %v2583_v9  ;;  %v5478_v11 = vcombine.low %v2579_v8, %v2583_v9  ;;  %6372 = vmatpush3.bf16.msra.mxu0 %v6744_v2  ;;  %v1813_v2 = vld [vmem:[#allocation2 + $0xcb] sm:$0xff]  ;;  %v5828_v5 = vpack.c.bf16 %v1718_v1, %v1718_v1 }
 0x194   : > { %1769 = vrot.lane.b32.xlu1 %v5824_v6, %s6853_s30  ;;  %1863 = vrot.lane.b32.xlu0 %v5835_v7, %s6853_s30  ;;  %v5839_v6 = vpack.c.bf16 %v1813_v2, %v1813_v2 }
 0x195   : > { %3418 = vmatprep.mubr.bf16.mxu0 %v5479_v10  ;;  %6373 = vmatprep.subr.bf16.mxu0 %v6746_v3 }
 0x196   : > { %v1858_v16 = vpop.permute.xlu1 %1857  ;;  %v1668_v17 = vpop.permute.xlu0 %1667  ;;  %3419 = vmatmul.mubr.bf16.gmra.mxu0 %v5478_v11  ;;  %v1814_v11 = vld [vmem:[#allocation2 + $0xd3] sm:$0xff] }
 0x197   : > { %1890 = vst.msk [vmem:[#allocation4 + $0x74] sm:$0xf] %vm1598_vm2, %v1858_v16  ;;  %1699 = vst.msk [vmem:[#allocation4 + $0x84] sm:$0xf] %vm1598_vm2, %v1668_v17  ;;  %6374 = vmatpush3.bf16.msra.mxu0 %v6748_v14  ;;  %v5923_v16 = vpack.c.bf16 %v2389_v12, %v2389_v12  ;;  %v2390_v17 = vld [vmem:[#allocation2 + $0x1b2] sm:$0xff] }
 0x198   : > { %1865 = vrot.lane.b32.xlu1 %v5836_v18, %s6853_s30  ;;  %2439 = vrot.lane.b32.xlu0 %v5919_v19, %s6853_s30  ;;  %v2485_v18 = vld [vmem:[#allocation2 + $0x1ab] sm:$0xff]  ;;  %v5924_v21 = vpack.c.bf16 %v2390_v17, %v2390_v17  ;;  %v6770_v12 = vld [vmem:[%s8320_s3 + $0x198] sm:$0xff]  }
 0x199   : > { %6375 = vmatprep.subr.bf16.mxu0 %v6750_v15  ;;  %v5840_v15 = vpack.c.bf16 %v1814_v11, %v1814_v11  ;;  %v6772_v17 = vld [vmem:[%s8320_s3 + $0x190] sm:$0xff]  }
 0x19a   : > { %v1670_v25 = vpop.permute.xlu1 %1669  ;;  %v1575_v24 = vpop.permute.xlu0 %1574 }
 0x19b   : > { %1700 = vst.msk [vmem:[#allocation4 + $0xa4] sm:$0xf] %vm1598_vm2, %v1670_v25  ;;  %1605 = vst.msk [vmem:[#allocation4 + $0xc0] sm:$0xf] %vm1598_vm2, %v1575_v24  ;;  %6376 = vmatpush3.bf16.msra.mxu0 %v6752_v22  ;;  %v5935_v22 = vpack.c.bf16 %v2485_v18, %v2485_v18  ;;  %v6773_v18 = vld [vmem:[%s8320_s3 + $0x1c8] sm:$0xff]  }
 0x19c   : > { %2441 = vrot.lane.b32.xlu1 %v5920_v26, %s6853_s30  ;;  %2535 = vrot.lane.b32.xlu0 %v5931_v27, %s6853_s30  ;;  %v2486_v27 = vld [vmem:[#allocation2 + $0x1b3] sm:$0xff] }
 0x19d   : > { %6377 = vmatprep.subr.bf16.mxu0 %v6754_v23 }
 0x19e   : > { %v1577_v32 = vpop.permute.xlu1 %1576  ;;  %v1764_v33 = vpop.permute.xlu0 %1763  ;;  %v2587_v44 = vld [vmem:[#allocation4 + $0x80] sm:$0xff] }
 0x19f   : > { %1606 = vst.msk [vmem:[#allocation4 + $0xe0] sm:$0xf] %vm1598_vm2, %v1577_v32  ;;  %1795 = vst.msk [vmem:[#allocation4 + $0x90] sm:$0xf] %vm1598_vm2, %v1764_v33  ;;  %6378 = vmatpush3.bf16.msra.mxu0 %v6756_v30  ;;  %v5936_v30 = vpack.c.bf16 %v2486_v27, %v2486_v27 }
 0x1a0   : > { %2537 = vrot.lane.b32.xlu1 %v5932_v34, %s6853_s30  ;;  %1771 = vrot.lane.b32.xlu0 %v5825_v35, %s6853_s30  ;;  %v2577_v35 = vld [vmem:[#allocation4 + $0x30] sm:$0xff] }
 0x1a1   : > { %6379 = vmatprep.subr.bf16.mxu0 %v6758_v31 }
 0x1a2   : > { %v1766_v40 = vpop.permute.xlu1 %1765  ;;  %v1860_v41 = vpop.permute.xlu0 %1859  ;;  %v2591_v45 = vld [vmem:[#allocation4 + $0xa0] sm:$0xff] }
 0x1a3   : > { %1796 = vst.msk [vmem:[#allocation4 + $0xb0] sm:$0xf] %vm1598_vm2, %v1766_v40  ;;  %1891 = vst.msk [vmem:[#allocation4 + $0x94] sm:$0xf] %vm1598_vm2, %v1860_v41  ;;  %v5487_v46 = vcombine.high %v2587_v44, %v2591_v45  ;;  %v5486_v47 = vcombine.low %v2587_v44, %v2591_v45  ;;  %6380 = vmatpush3.bf16.msra.mxu0 %v6760_v39  ;;  %v2573_v39 = vld [vmem:[#allocation4 + $0x10] sm:$0xff] }
 0x1a4   : > { %1773 = vrot.lane.b32.xlu1 %v5826_v42, %s6853_s30  ;;  %1867 = vrot.lane.b32.xlu0 %v5837_v43, %s6853_s30  ;;  %v5475_v40 = vcombine.high %v2573_v39, %v2577_v35 }
 0x1a5   : > { %3426 = vmatprep.mubr.bf16.mxu0 %v5487_v46 }
 0x1a6   : > { %v1862_v50 = vpop.permute.xlu1 %1861  ;;  %v1672_v51 = vpop.permute.xlu0 %1671  ;;  %3427 = vmatmul.mubr.bf16.gmra.mxu0 %v5486_v47  ;;  %v2585_v47 = vld [vmem:[#allocation4 + $0x70] sm:$0xff] }
 0x1a7   : > { %1892 = vst.msk [vmem:[#allocation4 + $0xb4] sm:$0xf] %vm1598_vm2, %v1862_v50  ;;  %1701 = vst.msk [vmem:[#allocation4 + $0xc4] sm:$0xf] %vm1598_vm2, %v1672_v51  ;;  %v6762_v50 = vld [vmem:[%s8320_s3 + $0x1b8] sm:$0xff]   ;;  %v5474_v51 = vcombine.low %v2573_v39, %v2577_v35 }
 0x1a8   : > { %1869 = vrot.lane.b32.xlu1 %v5838_v52, %s6853_s30  ;;  %2443 = vrot.lane.b32.xlu0 %v5921_v53, %s6853_s30  ;;  %v2581_v52 = vld [vmem:[#allocation4 + $0x50] sm:$0xff] }
 0x1a9   : > { %v6763_v53 = vld [vmem:[%s8320_s3 + $0x1f0] sm:$0xff]   ;;  %v5483_v54 = vcombine.high %v2581_v52, %v2585_v47 }
 0x1aa   : > { %v1674_v55 = vpop.permute.xlu1 %1673  ;;  %v1579_v56 = vpop.permute.xlu0 %1578 }
 0x1ab   : > { %1702 = vst.msk [vmem:[#allocation4 + $0xe4] sm:$0xf] %vm1598_vm2, %v1674_v55  ;;  %1607 = vst.msk [vmem:[#allocation4 + $0x100] sm:$0xf] %vm1598_vm2, %v1579_v56  ;;  %v6764_v56 = vld [vmem:[%s8320_s3 + $0x1b0] sm:$0xff]  }
 0x1ac   : > { %2445 = vrot.lane.b32.xlu1 %v5922_v57, %s6853_s30  ;;  %2539 = vrot.lane.b32.xlu0 %v5933_v58, %s6853_s30  ;;  %v6765_v57 = vld [vmem:[%s8320_s3 + $0x1e8] sm:$0xff]  }
 0x1ae   : > { %v1581_v61 = vpop.permute.xlu1 %1580  ;;  %v1676_v62 = vpop.permute.xlu0 %1675  ;;  %v2595_v7 = vld [vmem:[#allocation4 + $0xc0] sm:$0xff]  ;;  %v2593_v60 = vld [vmem:[#allocation4 + $0xb0] sm:$0xff] }
 0x1af   : > { %1608 = vst.msk [vmem:[#allocation4 + $0x120] sm:$0xf] %vm1598_vm2, %v1581_v61  ;;  %1703 = vst.msk [vmem:[#allocation4 + $0x104] sm:$0xf] %vm1598_vm2, %v1676_v62  ;;  %v6766_v61 = vld [vmem:[%s8320_s3 + $0x1a8] sm:$0xff]   ;;  %v5482_v62 = vcombine.low %v2581_v52, %v2585_v47 }
 0x1b0   : > { %2541 = vrot.lane.b32.xlu1 %v5934_v63, %s6853_s30  ;;  %1775 = vrot.lane.b32.xlu0 %v5827_v0, %s6853_s30  ;;  %v2589_v63 = vld [vmem:[#allocation4 + $0x90] sm:$0xff]  ;;  %v6767_v0 = vld [vmem:[%s8320_s3 + $0x1e0] sm:$0xff]  }
 0x1b1   : > { %v5491_v1 = vcombine.high %v2589_v63, %v2593_v60 }
 0x1b2   : > { %v1678_v3 = vpop.permute.xlu1 %1677  ;;  %v1583_v4 = vpop.permute.xlu0 %1582  ;;  %v2599_v8 = vld [vmem:[#allocation4 + $0xe0] sm:$0xff] }
 0x1b3   : > { %1704 = vst.msk [vmem:[#allocation4 + $0x124] sm:$0xf] %vm1598_vm2, %v1678_v3  ;;  %1609 = vst.msk [vmem:[#allocation4 + $0x140] sm:$0xf] %vm1598_vm2, %v1583_v4  ;;  %v5495_v9 = vcombine.high %v2595_v7, %v2599_v8  ;;  %v5494_v10 = vcombine.low %v2595_v7, %v2599_v8  ;;  %v6768_v4 = vld [vmem:[%s8320_s3 + $0x1a0] sm:$0xff]  }
 0x1b4   : > { %1777 = vrot.lane.b32.xlu1 %v5828_v5, %s6853_s30  ;;  %1871 = vrot.lane.b32.xlu0 %v5839_v6, %s6853_s30  ;;  %v6769_v5 = vld [vmem:[%s8320_s3 + $0x1d8] sm:$0xff]  }
 0x1b5   : > { %3434 = vmatprep.mubr.bf16.mxu0 %v5495_v9 }
 0x1b6   : > { %v1585_v13 = vpop.permute.xlu1 %1584  ;;  %v1680_v14 = vpop.permute.xlu0 %1679  ;;  %3435 = vmatmul.mubr.bf16.gmra.mxu0 %v5494_v10  ;;  %v2603_v23 = vld [vmem:[#allocation4 + $0x100] sm:$0xff] }
 0x1b7   : > { %1610 = vst.msk [vmem:[#allocation4 + $0x160] sm:$0xf] %vm1598_vm2, %v1585_v13  ;;  %1705 = vst.msk [vmem:[#allocation4 + $0x144] sm:$0xf] %vm1598_vm2, %v1680_v14  ;;  %v5490_v13 = vcombine.low %v2589_v63, %v2593_v60  ;;  %v6771_v14 = vld [vmem:[%s8320_s3 + $0x1d0] sm:$0xff]  }
 0x1b8   : > { %1873 = vrot.lane.b32.xlu1 %v5840_v15, %s6853_s30  ;;  %2447 = vrot.lane.b32.xlu0 %v5923_v16, %s6853_s30 }
 0x1ba   : > { %v1682_v19 = vpop.permute.xlu1 %1681  ;;  %v2236_v20 = vpop.permute.xlu0 %2235  ;;  %v2607_v25 = vld [vmem:[#allocation4 + $0x120] sm:$0xff] }
 0x1bb   : > { %1706 = vst.msk [vmem:[#allocation4 + $0x164] sm:$0xf] %vm1598_vm2, %v1682_v19  ;;  %2271 = vst.msk [vmem:[#allocation4 + $0x8] sm:$0xf] %vm1598_vm2, %v2236_v20  ;;  %v5503_v24 = vcombine.high %v2603_v23, %v2607_v25  ;;  %v5502_v26 = vcombine.low %v2603_v23, %v2607_v25 }
 0x1bc   : > { %2449 = vrot.lane.b32.xlu1 %v5924_v21, %s6853_s30  ;;  %2543 = vrot.lane.b32.xlu0 %v5935_v22, %s6853_s30  ;;  %v6774_v21 = vld [vmem:[%s8320_s3 + $0x188] sm:$0xff]   ;;  %v6775_v22 = vld [vmem:[%s8320_s3 + $0x1c0] sm:$0xff]  }
 0x1bd   : > { %3442 = vmatprep.mubr.bf16.mxu0 %v5503_v24  ;;  %v6776_v24 = vld [vmem:[%s8320_s3 + $0x180] sm:$0xff]  }
 0x1be   : > { %v2238_v28 = vpop.permute.xlu1 %2237  ;;  %v2332_v29 = vpop.permute.xlu0 %2331  ;;  %3443 = vmatmul.mubr.bf16.gmra.mxu0 %v5502_v26  ;;  %v2611_v33 = vld [vmem:[#allocation4 + $0x140] sm:$0xff] }
 0x1bf   : > { %2272 = vst.msk [vmem:[#allocation4 + $0x28] sm:$0xf] %vm1598_vm2, %v2238_v28  ;;  %2367 = vst.msk [vmem:[#allocation4 + $0xc] sm:$0xf] %vm1598_vm2, %v2332_v29 }
 0x1c0   : > { %2545 = vrot.lane.b32.xlu1 %v5936_v30, %s6853_s30 }
 0x1c2   : > { %v2334_v31 = vpop.permute.xlu1 %2333  ;;  %v2240_v32 = vpop.permute.xlu0 %2239  ;;  %v2615_v34 = vld [vmem:[#allocation4 + $0x160] sm:$0xff] }
 0x1c3   : > { %2368 = vst.msk [vmem:[#allocation4 + $0x2c] sm:$0xf] %vm1598_vm2, %v2334_v31  ;;  %2273 = vst.msk [vmem:[#allocation4 + $0x48] sm:$0xf] %vm1598_vm2, %v2240_v32  ;;  %v5511_v36 = vcombine.high %v2611_v33, %v2615_v34  ;;  %v5510_v38 = vcombine.low %v2611_v33, %v2615_v34 }
 0x1c5   : > { %3450 = vmatprep.mubr.bf16.mxu0 %v5511_v36 }
 0x1c6   : > { %v2242_v41 = vpop.permute.xlu1 %2241  ;;  %v2428_v42 = vpop.permute.xlu0 %2427  ;;  %3451 = vmatmul.mubr.bf16.gmra.mxu0 %v5510_v38  ;;  %v2572_v45 = vld [vmem:[#allocation4 + $0x8] sm:$0xff] }
 0x1c7   : > { %2274 = vst.msk [vmem:[#allocation4 + $0x68] sm:$0xf] %vm1598_vm2, %v2242_v41  ;;  %2463 = vst.msk [vmem:[#allocation4 + $0x18] sm:$0xf] %vm1598_vm2, %v2428_v42  ;;  %3572 = vmatprep.mubr.bf16.mxu0 %v5475_v40 }
 0x1ca   : > { %v2430_v43 = vpop.permute.xlu1 %2429  ;;  %v2524_v44 = vpop.permute.xlu0 %2523  ;;  %v2576_v46 = vld [vmem:[#allocation4 + $0x28] sm:$0xff] }
 0x1cb   : > { %2464 = vst.msk [vmem:[#allocation4 + $0x38] sm:$0xf] %vm1598_vm2, %v2430_v43  ;;  %2559 = vst.msk [vmem:[#allocation4 + $0x1c] sm:$0xf] %vm1598_vm2, %v2524_v44  ;;  %v5472_v48 = vcombine.low %v2572_v45, %v2576_v46  ;;  %v5473_v49 = vcombine.high %v2572_v45, %v2576_v46 }
 0x1cd   : > { %3491 = vmatprep.mubr.bf16.mxu1 %v5473_v49 }
 0x1ce   : > { %v2526_v37 = vpop.permute.xlu1 %2525  ;;  %v2336_v55 = vpop.permute.xlu0 %2335  ;;  %3492 = vmatmul.mubr.bf16.vlgmr.msra.gmra.mxu1 %v5472_v48  ;;  %3573 = vmatmul.mubr.bf16.vlgmr.msra.gmra.mxu0 %v5474_v51 }
 0x1cf   : > { %2560 = vst.msk [vmem:[#allocation4 + $0x3c] sm:$0xf] %vm1598_vm2, %v2526_v37  ;;  %2369 = vst.msk [vmem:[#allocation4 + $0x4c] sm:$0xf] %vm1598_vm2, %v2336_v55  ;;  %3580 = vmatprep.mubr.bf16.mxu0 %v5483_v54  ;;  %6418 = vmatpush3.bf16.msra.mxu1 %v6762_v50 }
 0x1d0   : > { %6419 = vmatprep.subr.bf16.mxu1 %v6763_v53 }
 0x1d2   : > { %v2338_v58 = vpop.permute.xlu1 %2337  ;;  %v2244_v59 = vpop.permute.xlu0 %2243 }
 0x1d3   : > { %2370 = vst.msk [vmem:[#allocation4 + $0x6c] sm:$0xf] %vm1598_vm2, %v2338_v58  ;;  %2275 = vst.msk [vmem:[#allocation4 + $0x88] sm:$0xf] %vm1598_vm2, %v2244_v59  ;;  %6420 = vmatpush3.bf16.msra.mxu1 %v6764_v56  ;;  %v2574_v59 = vld [vmem:[#allocation4 + $0x18] sm:$0xff] }
 0x1d4   : > { %6421 = vmatprep.subr.bf16.mxu1 %v6765_v57 }
 0x1d6   : > { %v2246_v2 = vpop.permute.xlu1 %2245  ;;  %v2432_v3 = vpop.permute.xlu0 %2431  ;;  %3581 = vmatmul.mubr.bf16.gmra.mxu0 %v5482_v62  ;;  %v2580_v8 = vld [vmem:[#allocation4 + $0x48] sm:$0xff]  ;;  %v2578_v56 = vld [vmem:[#allocation4 + $0x38] sm:$0xff] }
 0x1d7   : > { %2276 = vst.msk [vmem:[#allocation4 + $0xa8] sm:$0xf] %vm1598_vm2, %v2246_v2  ;;  %2465 = vst.msk [vmem:[#allocation4 + $0x58] sm:$0xf] %vm1598_vm2, %v2432_v3  ;;  %3588 = vmatprep.mubr.bf16.mxu0 %v5491_v1  ;;  %6422 = vmatpush3.bf16.msra.mxu1 %v6766_v61  ;;  %v5477_v60 = vcombine.high %v2574_v59, %v2578_v56  ;;  %v5476_v2 = vcombine.low %v2574_v59, %v2578_v56 }
 0x1d8   : > { %6423 = vmatprep.subr.bf16.mxu1 %v6767_v0 }
 0x1da   : > { %v2434_v6 = vpop.permute.xlu1 %2433  ;;  %v2528_v7 = vpop.permute.xlu0 %2527  ;;  %v2584_v9 = vld [vmem:[#allocation4 + $0x68] sm:$0xff] }
 0x1db   : > { %2466 = vst.msk [vmem:[#allocation4 + $0x78] sm:$0xf] %vm1598_vm2, %v2434_v6  ;;  %2561 = vst.msk [vmem:[#allocation4 + $0x5c] sm:$0xf] %vm1598_vm2, %v2528_v7  ;;  %v5481_v10 = vcombine.high %v2580_v8, %v2584_v9  ;;  %v5480_v11 = vcombine.low %v2580_v8, %v2584_v9  ;;  %6424 = vmatpush3.bf16.msra.mxu1 %v6768_v4 }
 0x1dc   : > { %6425 = vmatprep.subr.bf16.mxu1 %v6769_v5 }
 0x1dd   : > { %3499 = vmatprep.mubr.bf16.mxu1 %v5481_v10 }
 0x1de   : > { %v2530_v15 = vpop.permute.xlu1 %2529  ;;  %v2340_v16 = vpop.permute.xlu0 %2339  ;;  %3500 = vmatmul.mubr.bf16.gmra.mxu1 %v5480_v11  ;;  %3589 = vmatmul.mubr.bf16.gmra.mxu0 %v5490_v13 }
 0x1df   : > { %2562 = vst.msk [vmem:[#allocation4 + $0x7c] sm:$0xf] %vm1598_vm2, %v2530_v15  ;;  %2371 = vst.msk [vmem:[#allocation4 + $0x8c] sm:$0xf] %vm1598_vm2, %v2340_v16  ;;  %6426 = vmatpush3.bf16.msra.mxu1 %v6770_v12 }
 0x1e0   : > { %6427 = vmatprep.subr.bf16.mxu1 %v6771_v14 }
 0x1e2   : > { %v2342_v19 = vpop.permute.xlu1 %2341  ;;  %v2248_v20 = vpop.permute.xlu0 %2247  ;;  %v2582_v3 = vld [vmem:[#allocation4 + $0x58] sm:$0xff] }
 0x1e3   : > { %2372 = vst.msk [vmem:[#allocation4 + $0xac] sm:$0xf] %vm1598_vm2, %v2342_v19  ;;  %2277 = vst.msk [vmem:[#allocation4 + $0xc8] sm:$0xf] %vm1598_vm2, %v2248_v20  ;;  %6428 = vmatpush3.bf16.msra.mxu1 %v6772_v17 }
 0x1e4   : > { %6429 = vmatprep.subr.bf16.mxu1 %v6773_v18 }
 0x1e6   : > { %v2250_v23 = vpop.permute.xlu1 %2249  ;;  %v2436_v25 = vpop.permute.xlu0 %2435  ;;  %v2588_v28 = vld [vmem:[#allocation4 + $0x88] sm:$0xff]  ;;  %v2586_v1 = vld [vmem:[#allocation4 + $0x78] sm:$0xff] }
 0x1e7   : > { %2278 = vst.msk [vmem:[#allocation4 + $0xe8] sm:$0xf] %vm1598_vm2, %v2250_v23  ;;  %2467 = vst.msk [vmem:[#allocation4 + $0x98] sm:$0xf] %vm1598_vm2, %v2436_v25  ;;  %6430 = vmatpush3.bf16.msra.mxu1 %v6774_v21  ;;  %v5485_v4 = vcombine.high %v2582_v3, %v2586_v1  ;;  %v5484_v14 = vcombine.low %v2582_v3, %v2586_v1 }
 0x1e8   : > { %6431 = vmatprep.subr.bf16.mxu1 %v6775_v22 }
 0x1ea   : > { %v2438_v26 = vpop.permute.xlu1 %2437  ;;  %v2344_v27 = vpop.permute.xlu0 %2343  ;;  %v2592_v29 = vld [vmem:[#allocation4 + $0xa8] sm:$0xff] }
 0x1eb   : > { %2468 = vst.msk [vmem:[#allocation4 + $0xb8] sm:$0xf] %vm1598_vm2, %v2438_v26  ;;  %2373 = vst.msk [vmem:[#allocation4 + $0xcc] sm:$0xf] %vm1598_vm2, %v2344_v27  ;;  %v5489_v30 = vcombine.high %v2588_v28, %v2592_v29  ;;  %v5488_v31 = vcombine.low %v2588_v28, %v2592_v29  ;;  %6432 = vmatpush3.bf16.msra.mxu1 %v6776_v24 }
 0x1ed   : > { %3507 = vmatprep.mubr.bf16.mxu1 %v5489_v30 }
 0x1ee   : > { %v2346_v32 = vpop.permute.xlu1 %2345  ;;  %v2252_v33 = vpop.permute.xlu0 %2251  ;;  %3508 = vmatmul.mubr.bf16.gmra.mxu1 %v5488_v31 }
 0x1ef   : > { %2374 = vst.msk [vmem:[#allocation4 + $0xec] sm:$0xf] %vm1598_vm2, %v2346_v32  ;;  %2279 = vst.msk [vmem:[#allocation4 + $0x108] sm:$0xf] %vm1598_vm2, %v2252_v33 }
 0x1f2   : > { %v2254_v34 = vpop.permute.xlu1 %2253  ;;  %v2348_v35 = vpop.permute.xlu0 %2347  ;;  %v2596_v39 = vld [vmem:[#allocation4 + $0xc8] sm:$0xff] }
 0x1f3   : > { %2280 = vst.msk [vmem:[#allocation4 + $0x128] sm:$0xf] %vm1598_vm2, %v2254_v34  ;;  %2375 = vst.msk [vmem:[#allocation4 + $0x10c] sm:$0xf] %vm1598_vm2, %v2348_v35 }
 0x1f6   : > { %v2350_v36 = vpop.permute.xlu1 %2349  ;;  %v2256_v38 = vpop.permute.xlu0 %2255  ;;  %v2600_v40 = vld [vmem:[#allocation4 + $0xe8] sm:$0xff] }
 0x1f7   : > { %2376 = vst.msk [vmem:[#allocation4 + $0x12c] sm:$0xf] %vm1598_vm2, %v2350_v36  ;;  %2281 = vst.msk [vmem:[#allocation4 + $0x148] sm:$0xf] %vm1598_vm2, %v2256_v38  ;;  %v5497_v41 = vcombine.high %v2596_v39, %v2600_v40  ;;  %v5496_v42 = vcombine.low %v2596_v39, %v2600_v40 }
 0x1f9   : > { %3515 = vmatprep.mubr.bf16.mxu1 %v5497_v41 }
 0x1fa   : > { %v2258_v43 = vpop.permute.xlu1 %2257  ;;  %v2352_v44 = vpop.permute.xlu0 %2351  ;;  %3516 = vmatmul.mubr.bf16.gmra.mxu1 %v5496_v42  ;;  %v2604_v47 = vld [vmem:[#allocation4 + $0x108] sm:$0xff] }
 0x1fb   : > { %2282 = vst.msk [vmem:[#allocation4 + $0x168] sm:$0xf] %vm1598_vm2, %v2258_v43  ;;  %2377 = vst.msk [vmem:[#allocation4 + $0x14c] sm:$0xf] %vm1598_vm2, %v2352_v44 }
 0x1fe   : > { %v2354_v45 = vpop.permute.xlu1 %2353  ;;  %v2532_v46 = vpop.permute.xlu0 %2531  ;;  %v2608_v48 = vld [vmem:[#allocation4 + $0x128] sm:$0xff] }
 0x1ff   : > { %2378 = vst.msk [vmem:[#allocation4 + $0x16c] sm:$0xf] %vm1598_vm2, %v2354_v45  ;;  %2563 = vst.msk [vmem:[#allocation4 + $0x9c] sm:$0xf] %vm1598_vm2, %v2532_v46  ;;  %v5505_v49 = vcombine.high %v2604_v47, %v2608_v48  ;;  %v5504_v50 = vcombine.low %v2604_v47, %v2608_v48 }
 0x201   : > { %3523 = vmatprep.mubr.bf16.mxu1 %v5505_v49 }
 0x202   : > { %v2534_v51 = vpop.permute.xlu1 %2533  ;;  %v1768_v52 = vpop.permute.xlu0 %1767  ;;  %3524 = vmatmul.mubr.bf16.gmra.mxu1 %v5504_v50  ;;  %v2612_v37 = vld [vmem:[#allocation4 + $0x148] sm:$0xff] }
 0x203   : > { %2564 = vst.msk [vmem:[#allocation4 + $0xbc] sm:$0xf] %vm1598_vm2, %v2534_v51  ;;  %1797 = vst.msk [vmem:[#allocation4 + $0xd0] sm:$0xf] %vm1598_vm2, %v1768_v52 }
 0x206   : > { %v1770_v53 = vpop.permute.xlu1 %1769  ;;  %v1864_v54 = vpop.permute.xlu0 %1863  ;;  %v2616_v55 = vld [vmem:[#allocation4 + $0x168] sm:$0xff]  ;;  %v2590_v15 = vld [vmem:[#allocation4 + $0x98] sm:$0xff] }
 0x207   : > { %1798 = vst.msk [vmem:[#allocation4 + $0xf0] sm:$0xf] %vm1598_vm2, %v1770_v53  ;;  %1893 = vst.msk [vmem:[#allocation4 + $0xd4] sm:$0xf] %vm1598_vm2, %v1864_v54  ;;  %v5513_v57 = vcombine.high %v2612_v37, %v2616_v55  ;;  %v5512_v58 = vcombine.low %v2612_v37, %v2616_v55 }
 0x209   : > { %3531 = vmatprep.mubr.bf16.mxu1 %v5513_v57 }
 0x20a   : > { %v1866_v61 = vpop.permute.xlu1 %1865  ;;  %v2440_v62 = vpop.permute.xlu0 %2439  ;;  %3532 = vmatmul.mubr.bf16.gmra.mxu1 %v5512_v58  ;;  %v2594_v13 = vld [vmem:[#allocation4 + $0xb8] sm:$0xff] }
 0x20b   : > { %1894 = vst.msk [vmem:[#allocation4 + $0xf4] sm:$0xf] %vm1598_vm2, %v1866_v61  ;;  %2469 = vst.msk [vmem:[#allocation4 + $0xd8] sm:$0xf] %vm1598_vm2, %v2440_v62  ;;  %3653 = vmatprep.mubr.bf16.mxu1 %v5477_v60  ;;  %v5493_v16 = vcombine.high %v2590_v15, %v2594_v13  ;;  %v5492_v22 = vcombine.low %v2590_v15, %v2594_v13 }
 0x20e   : > { %v2442_v63 = vpop.permute.xlu1 %2441  ;;  %v2536_v0 = vpop.permute.xlu0 %2535  ;;  %v2597_v7 = vld [vmem:[#allocation4 + $0xd0] sm:$0xff] }
 0x20f   : > { %2470 = vst.msk [vmem:[#allocation4 + $0xf8] sm:$0xf] %vm1598_vm2, %v2442_v63  ;;  %2565 = vst.msk [vmem:[#allocation4 + $0xdc] sm:$0xf] %vm1598_vm2, %v2536_v0 }
 0x212   : > { %v2538_v5 = vpop.permute.xlu1 %2537  ;;  %v1772_v6 = vpop.permute.xlu0 %1771  ;;  %3654 = vmatmul.mubr.bf16.vlgmr.msra.gmra.mxu1 %v5476_v2  ;;  %v2601_v8 = vld [vmem:[#allocation4 + $0xf0] sm:$0xff] }
 0x213   : > { %2566 = vst.msk [vmem:[#allocation4 + $0xfc] sm:$0xf] %vm1598_vm2, %v2538_v5  ;;  %1799 = vst.msk [vmem:[#allocation4 + $0x110] sm:$0xf] %vm1598_vm2, %v1772_v6  ;;  %3661 = vmatprep.mubr.bf16.mxu1 %v5485_v4  ;;  %v5499_v9 = vcombine.high %v2597_v7, %v2601_v8  ;;  %v5498_v10 = vcombine.low %v2597_v7, %v2601_v8 }
 0x215   : > { %3596 = vmatprep.mubr.bf16.mxu0 %v5499_v9 }
 0x216   : > { %v1774_v11 = vpop.permute.xlu1 %1773  ;;  %v1868_v12 = vpop.permute.xlu0 %1867  ;;  %3597 = vmatmul.mubr.bf16.gmra.mxu0 %v5498_v10  ;;  %v2598_v23 = vld [vmem:[#allocation4 + $0xd8] sm:$0xff] }
 0x217   : > { %1800 = vst.msk [vmem:[#allocation4 + $0x130] sm:$0xf] %vm1598_vm2, %v1774_v11  ;;  %1895 = vst.msk [vmem:[#allocation4 + $0x114] sm:$0xf] %vm1598_vm2, %v1868_v12 }
 0x21a   : > { %v1870_v17 = vpop.permute.xlu1 %1869  ;;  %v2444_v18 = vpop.permute.xlu0 %2443  ;;  %3662 = vmatmul.mubr.bf16.gmra.mxu1 %v5484_v14  ;;  %v2602_v21 = vld [vmem:[#allocation4 + $0xf8] sm:$0xff] }
 0x21b   : > { %1896 = vst.msk [vmem:[#allocation4 + $0x134] sm:$0xf] %vm1598_vm2, %v1870_v17  ;;  %2471 = vst.msk [vmem:[#allocation4 + $0x118] sm:$0xf] %vm1598_vm2, %v2444_v18  ;;  %3669 = vmatprep.mubr.bf16.mxu1 %v5493_v16  ;;  %v5501_v25 = vcombine.high %v2598_v23, %v2602_v21  ;;  %v5500_v33 = vcombine.low %v2598_v23, %v2602_v21  ;;  %v6777_v23 = vld [vmem:[%s8322_s5 + $0x78] sm:$0xff]  }
 0x21c   : > { %6469 = vmatprep.subr.bf16.mxu0 %v6777_v23 }
 0x21e   : > { %v2446_v19 = vpop.permute.xlu1 %2445  ;;  %v2540_v20 = vpop.permute.xlu0 %2539  ;;  %v2605_v27 = vld [vmem:[#allocation4 + $0x110] sm:$0xff] }
 0x21f   : > { %2472 = vst.msk [vmem:[#allocation4 + $0x138] sm:$0xf] %vm1598_vm2, %v2446_v19  ;;  %2567 = vst.msk [vmem:[#allocation4 + $0x11c] sm:$0xf] %vm1598_vm2, %v2540_v20 }
 0x222   : > { %v2542_v24 = vpop.permute.xlu1 %2541  ;;  %v1776_v26 = vpop.permute.xlu0 %1775  ;;  %3670 = vmatmul.mubr.bf16.gmra.mxu1 %v5492_v22  ;;  %v2609_v28 = vld [vmem:[#allocation4 + $0x130] sm:$0xff] }
 0x223   : > { %2568 = vst.msk [vmem:[#allocation4 + $0x13c] sm:$0xf] %vm1598_vm2, %v2542_v24  ;;  %1801 = vst.msk [vmem:[#allocation4 + $0x150] sm:$0xf] %vm1598_vm2, %v1776_v26  ;;  %3677 = vmatprep.mubr.bf16.mxu1 %v5501_v25  ;;  %v5507_v29 = vcombine.high %v2605_v27, %v2609_v28  ;;  %v5506_v30 = vcombine.low %v2605_v27, %v2609_v28  ;;  %v6778_v25 = vld [vmem:[%s8322_s5 + $0x38] sm:$0xff]   ;;  %v6779_v24 = vld [vmem:[%s8322_s5 + $0x70] sm:$0xff]  }
 0x224   : > { %v6784_v27 = vld [vmem:[%s8322_s5 + $0xf8] sm:$0xff]   ;;  %6470 = vmatpush3.bf16.msra.mxu0 %v6778_v25 }
 0x225   : > { %3604 = vmatprep.mubr.bf16.mxu0 %v5507_v29  ;;  %v6780_v29 = vld [vmem:[%s8322_s5 + $0x30] sm:$0xff]   ;;  %6471 = vmatprep.subr.bf16.mxu0 %v6779_v24 }
 0x226   : > { %v1778_v31 = vpop.permute.xlu1 %1777  ;;  %v1872_v32 = vpop.permute.xlu0 %1871  ;;  %3605 = vmatmul.mubr.bf16.gmra.mxu0 %v5506_v30  ;;  %v2606_v36 = vld [vmem:[#allocation4 + $0x118] sm:$0xff]  ;;  %v6781_v30 = vld [vmem:[%s8322_s5 + $0x68] sm:$0xff]   ;;  %6515 = vmatprep.subr.bf16.mxu1 %v6784_v27 }
 0x227   : > { %1802 = vst.msk [vmem:[#allocation4 + $0x170] sm:$0xf] %vm1598_vm2, %v1778_v31  ;;  %1897 = vst.msk [vmem:[#allocation4 + $0x154] sm:$0xf] %vm1598_vm2, %v1872_v32 }
 0x228   : > { %6472 = vmatpush3.bf16.msra.mxu0 %v6780_v29 }
 0x229   : > { %6473 = vmatprep.subr.bf16.mxu0 %v6781_v30 }
 0x22a   : > { %v1874_v34 = vpop.permute.xlu1 %1873  ;;  %v2448_v35 = vpop.permute.xlu0 %2447  ;;  %3678 = vmatmul.mubr.bf16.gmra.mxu1 %v5500_v33  ;;  %v2610_v38 = vld [vmem:[#allocation4 + $0x138] sm:$0xff]  ;;  %v6782_v33 = vld [vmem:[%s8322_s5 + $0x28] sm:$0xff]  }
 0x22b   : > { %1898 = vst.msk [vmem:[#allocation4 + $0x174] sm:$0xf] %vm1598_vm2, %v1874_v34  ;;  %2473 = vst.msk [vmem:[#allocation4 + $0x158] sm:$0xf] %vm1598_vm2, %v2448_v35  ;;  %v5509_v39 = vcombine.high %v2606_v36, %v2610_v38  ;;  %v5508_v42 = vcombine.low %v2606_v36, %v2610_v38  ;;  %v6783_v34 = vld [vmem:[%s8322_s5 + $0x60] sm:$0xff]  }
 0x22c   : > { %6474 = vmatpush3.bf16.msra.mxu0 %v6782_v33 }
 0x22d   : > { %3685 = vmatprep.mubr.bf16.mxu1 %v5509_v39  ;;  %6475 = vmatprep.subr.bf16.mxu0 %v6783_v34 }
 0x22e   : > { %v2450_v40 = vpop.permute.xlu1 %2449  ;;  %v2544_v41 = vpop.permute.xlu0 %2543  ;;  %v2613_v44 = vld [vmem:[#allocation4 + $0x150] sm:$0xff] }
 0x22f   : > { %2474 = vst.msk [vmem:[#allocation4 + $0x178] sm:$0xf] %vm1598_vm2, %v2450_v40  ;;  %2569 = vst.msk [vmem:[#allocation4 + $0x15c] sm:$0xf] %vm1598_vm2, %v2544_v41 }
 0x232   : > { %v2546_v43 = vpop.permute.xlu1 %2545  ;;  %3686 = vmatmul.mubr.bf16.gmra.mxu1 %v5508_v42  ;;  %v2617_v45 = vld [vmem:[#allocation4 + $0x170] sm:$0xff] }
 0x233   : > { %2570 = vst.msk [vmem:[#allocation4 + $0x17c] sm:$0xf] %vm1598_vm2, %v2546_v43  ;;  %v5515_v46 = vcombine.high %v2613_v44, %v2617_v45  ;;  %v5514_v47 = vcombine.low %v2613_v44, %v2617_v45 }
 0x235   : > { %3612 = vmatprep.mubr.bf16.mxu0 %v5515_v46 }
 0x236   : > { %3613 = vmatmul.mubr.bf16.gmra.mxu0 %v5514_v47  ;;  %v2614_v48 = vld [vmem:[#allocation4 + $0x158] sm:$0xff] }
 0x23a   : > { %v2618_v49 = vld [vmem:[#allocation4 + $0x178] sm:$0xff] }
 0x23b   : > { %v5517_v50 = vcombine.high %v2614_v48, %v2618_v49  ;;  %v5516_v51 = vcombine.low %v2614_v48, %v2618_v49 }
 0x23d   : > { %3693 = vmatprep.mubr.bf16.mxu1 %v5517_v50 }
 0x23e   : > { %3694 = vmatmul.mubr.bf16.gmra.mxu1 %v5516_v51  ;;  %v7824_v51 = vld [vmem:[%s8321_s4] ss:$0 sm:$0xff] }
 0x246   : > { %v7713_v52 = vpop.f32.mrf.mxu0 }
 0x248   : > { %v7715_v53 = vpop.f32.mrf.mxu0 }
 0x249   : > { %v6279_v50 = vadd.f32 %v7715_v53, %v7713_v52 }
 0x24a   : > { %v7717_v54 = vpop.f32.mrf.mxu0 }
 0x24b   : > { %v3413_v29 = vadd.f32 %v6279_v50, %v7824_v51 }
 0x24c   : > { %v7719_v37 = vpop.f32.mrf.mxu0 }
 0x24d   : > { %v6282_v30 = vadd.f32 %v7719_v37, %v7717_v54 }
 0x256   : > { %v7721_v55 = vpop.f32.mrf.mxu0 }
 0x258   : > { %v7723_v56 = vpop.f32.mrf.mxu0 }
 0x25a   : > { %v7725_v57 = vpop.f32.mrf.mxu0 }
 0x25c   : > { %v7727_v58 = vpop.f32.mrf.mxu0 }
 0x25d   : > { %v6288_v54 = vadd.f32 %v7727_v58, %v7725_v57  ;;  %v6785_v58 = vld [vmem:[%s8322_s5 + $0x20] sm:$0xff]  }
 0x25e   : > { %6476 = vmatpush3.bf16.msra.mxu0 %v6785_v58 }
 0x266   : > { %v7729_v59 = vpop.f32.mrf.mxu0 }
 0x268   : > { %v7731_v60 = vpop.f32.mrf.mxu0 }
 0x26a   : > { %v7733_v61 = vpop.f32.mrf.mxu0 }
 0x26c   : > { %v7735_v62 = vpop.f32.mrf.mxu0 }
 0x276   : > { %v7737_v63 = vpop.f32.mrf.mxu0 }
 0x278   : > { %v7739_v0 = vpop.f32.mrf.mxu0 }
 0x27a   : > { %v7741_v1 = vpop.f32.mrf.mxu0 }
 0x27c   : > { %v7743_v2 = vpop.f32.mrf.mxu0 }
 0x27e   : > { %v7745_v3 = vpop.f32.mrf.mxu0 }
 0x280   : > { %v7747_v4 = vpop.f32.mrf.mxu0 }
 0x282   : > { %v7749_v5 = vpop.f32.mrf.mxu0 }
 0x284   : > { %v7751_v7 = vpop.f32.mrf.mxu0 }
 0x286   : > { %v7753_v9 = vpop.f32.mrf.mxu0 }
 0x288   : > { %v7755_v11 = vpop.f32.mrf.mxu0 }
 0x289   : > { %8325 = vst [vmem:[#allocation6_spill] sm:$0xff] %v7755_v11 }
 0x28a   : > { %v7759_v14 = vpop.f32.mrf.mxu0 }
 0x28b   : > { %8326 = vst [vmem:[#allocation7_spill] sm:$0xff] %v7759_v14  ;;  %v3416_v14 = vadd.f32 %v6282_v30, %v7824_v51  ;;  %v6788_v30 = vld [vmem:[%s8322_s5 + $0xf0] sm:$0xff]  }
 0x28c   : > { %v7761_v16 = vpop.f32.mrf.mxu0 }
 0x28d   : > { %8327 = vst [vmem:[#allocation8_spill] sm:$0xff] %v7761_v16 }
 0x28e   : > { %v6329_v6 = vpop.f32.mrf.mxu1  ;;  %v6381_v18 = vpop.f32.mrf.mxu0 }
 0x290   : > { %v6330_v8 = vpop.f32.mrf.mxu1  ;;  %v6382_v20 = vpop.f32.mrf.mxu0 }
 0x291   : > { %v6331_v25 = vadd.f32 %v6330_v8, %v6329_v6  ;;  %v6285_v6 = vadd.f32 %v7723_v56, %v7721_v55  ;;  %v6383_v8 = vadd.f32 %v6382_v20, %v6381_v18 }
 0x292   : > { %v6332_v10 = vpop.f32.mrf.mxu1  ;;  %v6384_v26 = vpop.f32.mrf.mxu0 }
 0x293   : > { %v3494_v52 = vadd.f32 %v6331_v25, %v3413_v29 }
 0x294   : > { %v6333_v12 = vpop.f32.mrf.mxu1  ;;  %v6385_v31 = vpop.f32.mrf.mxu0 }
 0x295   : > { %v6334_v53 = vadd.f32 %v6333_v12, %v6332_v10  ;;  %v3421_v12 = vadd.f32 %v6285_v6, %v7824_v51  ;;  %v6386_v25 = vadd.f32 %v6385_v31, %v6384_v26  ;;  %v6789_v6 = vld [vmem:[%s8322_s5 + $0x18] sm:$0xff]  }
 0x296   : > { %v6387_v35 = vpop.f32.mrf.mxu0 }
 0x298   : > { %v6388_v39 = vpop.f32.mrf.mxu0 }
 0x29a   : > { %v6390_v42 = vpop.f32.mrf.mxu0 }
 0x29c   : > { %v6391_v45 = vpop.f32.mrf.mxu0 }
 0x29e   : > { %v7757_v13 = vpop.f32.mrf.mxu1  ;;  %v7815_v48 = vpop.f32.mrf.mxu0 }
 0x2a0   : > { %v6336_v15 = vpop.f32.mrf.mxu1  ;;  %v7828_v24 = vpop.f32.mrf.mxu0 }
 0x2a1   : > { %v6337_v50 = vadd.f32 %v6336_v15, %v7757_v13 }
 0x2a2   : > { %v7763_v17 = vpop.f32.mrf.mxu1  ;;  %v7837_v34 = vpop.f32.mrf.mxu0 }
 0x2a3   : > { %v3502_v20 = vadd.f32 %v6337_v50, %v3421_v12  ;;  %v6792_v12 = vld [vmem:[%s8322_s5 + $0xe8] sm:$0xff]  }
 0x2a4   : > { %v7765_v19 = vpop.f32.mrf.mxu1  ;;  %v7845_v37 = vpop.f32.mrf.mxu0 }
 0x2a5   : > { %v6340_v55 = vadd.f32 %v7765_v19, %v7763_v17  ;;  %v6291_v17 = vadd.f32 %v7731_v60, %v7729_v59  ;;  %v6389_v19 = vadd.f32 %v6388_v39, %v6387_v35 }
 0x2a7   : > { %v3583_v35 = vadd.f32 %v6389_v19, %v3502_v20  ;;  %v3429_v50 = vadd.f32 %v6291_v17, %v7824_v51  ;;  %v6794_v20 = vld [vmem:[%s8322_s5 + $0xa8] sm:$0xff]  }
 0x2ae   : > { %v7767_v21 = vpop.f32.mrf.mxu1 }
 0x2b0   : > { %v7769_v22 = vpop.f32.mrf.mxu1 }
 0x2b1   : > { %v6343_v59 = vadd.f32 %v7769_v22, %v7767_v21  ;;  %v6294_v21 = vadd.f32 %v7735_v62, %v7733_v61 }
 0x2b2   : > { %v7783_v28 = vpop.f32.mrf.mxu1 }
 0x2b4   : > { %v7791_v32 = vpop.f32.mrf.mxu1 }
 0x2b5   : > { %v6346_v61 = vadd.f32 %v7791_v32, %v7783_v28 }
 0x2ba   : > { %v7799_v36 = vpop.f32.mrf.mxu1 }
 0x2bc   : > { %v7801_v38 = vpop.f32.mrf.mxu1 }
 0x2be   : > { %v7803_v40 = vpop.f32.mrf.mxu1 }
 0x2c0   : > { %v7805_v41 = vpop.f32.mrf.mxu1 }
 0x2c2   : > { %v7807_v43 = vpop.f32.mrf.mxu1 }
 0x2c4   : > { %v7809_v44 = vpop.f32.mrf.mxu1 }
 0x2c6   : > { %v7811_v46 = vpop.f32.mrf.mxu1 }
 0x2c8   : > { %v7813_v47 = vpop.f32.mrf.mxu1 }
 0x2ca   : > { %v7817_v49 = vpop.f32.mrf.mxu1 }
 0x2cb   : > { %8328 = vst [vmem:[#allocation9_spill] sm:$0xff] %v7817_v49  ;;  %v3497_v49 = vadd.f32 %v6334_v53, %v3416_v14 }
 0x2cc   : > { %v7826_v23 = vpop.f32.mrf.mxu1 }
 0x2cd   : > { %8329 = vst [vmem:[#allocation10_spill] sm:$0xff] %v7826_v23  ;;  %v3578_v14 = vadd.f32 %v6386_v25, %v3497_v49  ;;  %v3510_v25 = vadd.f32 %v6343_v59, %v3429_v50 }
 0x2ce   : > { %v7830_v27 = vpop.f32.mrf.mxu1 }
 0x2cf   : > { %8330 = vst [vmem:[#allocation11_spill] sm:$0xff] %v7830_v27  ;;  %v3575_v27 = vadd.f32 %v6383_v8, %v3494_v52  ;;  %v6392_v52 = vadd.f32 %v6391_v45, %v6390_v42  ;;  %v6790_v8 = vld [vmem:[%s8322_s5 + $0xb0] sm:$0xff]  }
 0x2d0   : > { %v7835_v33 = vpop.f32.mrf.mxu1 }
 0x2d2   : > { %v6433_v16 = vpop.f32.mrf.mxu1 }
 0x2d4   : > { %v6434_v23 = vpop.f32.mrf.mxu1 }
 0x2d5   : > { %v6435_v11 = vadd.f32 %v6434_v23, %v6433_v16  ;;  %v3424_v16 = vadd.f32 %v6288_v54, %v7824_v51 }
 0x2d6   : > { %v6436_v10 = vpop.f32.mrf.mxu1  ;;  %v7850_v56 = vpop.f32.mrf.mxu0 }
 0x2d7   : > { %v3656_v29 = vadd.f32 %v6435_v11, %v3575_v27  ;;  %v6786_v11 = vld [vmem:[%s8322_s5 + $0xb8] sm:$0xff]   ;;  %v3505_v31 = vadd.f32 %v6340_v55, %v3424_v16  ;;  %v6297_v16 = vadd.f32 %v7739_v0, %v7737_v63  ;;  %v6398_v63 = vadd.f32 %v7845_v37, %v7837_v34  ;;  %v6797_v34 = vld [vmem:[%s8322_s5 + $0x8] sm:$0xff]  }
 0x2d8   : > { %v6437_v18 = vpop.f32.mrf.mxu1  ;;  %v7862_v49 = vpop.f32.mrf.mxu0  ;;  %6516 = vmatpush3.bf16.msra.mxu1 %v6786_v11  ;;  %v6787_v27 = vld [vmem:[%s8322_s5 + $0x58] sm:$0xff]   ;;  %v6795_v11 = vld [vmem:[%s8322_s5 + $0x48] sm:$0xff]   ;;  %v6349_v0 = vadd.f32 %v7801_v38, %v7799_v36  ;;  %v6798_v36 = vld [vmem:[%s8322_s5 + $0xa0] sm:$0xff]   ;;  %v6300_v37 = vadd.f32 %v7743_v2, %v7741_v1  ;;  %v6352_v1 = vadd.f32 %v7805_v41, %v7803_v40  ;;  %v6303_v41 = vadd.f32 %v7747_v4, %v7745_v3 }
 0x2d9   : > { %v3702_v13 = vmax.f32 %v3656_v29, 0.0  ;;  %v6438_v15 = vadd.f32 %v6437_v18, %v6436_v10  ;;  %6477 = vmatprep.subr.bf16.mxu0 %v6787_v27  ;;  %6517 = vmatprep.subr.bf16.mxu1 %v6788_v30  ;;  %v3586_v45 = vadd.f32 %v6392_v52, %v3505_v31  ;;  %v6791_v10 = vld [vmem:[%s8322_s5 + $0x50] sm:$0xff]   ;;  %v3437_v38 = vadd.f32 %v6297_v16, %v7824_v51 }
 0x2da   : > { %v6439_v57 = vpop.f32.mrf.mxu1  ;;  %v7882_v42 = vpop.f32.mrf.mxu0  ;;  %6478 = vmatpush3.bf16.msra.mxu0 %v6789_v6  ;;  %v6799_v6 = vld [vmem:[%s8322_s5 + $0x40] sm:$0xff]   ;;  %v6401_v50 = vadd.f32 %v7862_v49, %v7850_v56  ;;  %v3440_v40 = vadd.f32 %v6300_v37, %v7824_v51  ;;  %v6806_v3 = vld [vmem:[%s8322_s5 + $0xd0] sm:$0xff]   ;;  %v6306_v4 = vadd.f32 %v7751_v7, %v7749_v5  ;;  %v6358_v37 = vadd.f32 %v7813_v47, %v7811_v46 }
 0x2db   : > { %3714 = vst.msk [vmem:[#allocation3] sm:$0xff] %vm607_vm0, %v3702_v13  ;;  %v3659_v26 = vadd.f32 %v6438_v15, %v3578_v14  ;;  %6479 = vmatprep.subr.bf16.mxu0 %v6791_v10  ;;  %v6793_v14 = vld [vmem:[%s8322_s5 + $0x10] sm:$0xff]   ;;  %v3432_v13 = vadd.f32 %v6294_v21, %v7824_v51  ;;  %v6395_v15 = vadd.f32 %v7828_v24, %v7815_v48  ;;  %v6796_v48 = vld [vmem:[%s8322_s5 + $0xe0] sm:$0xff]  }
 0x2dc   : > { %v6440_v23 = vpop.f32.mrf.mxu1  ;;  %6518 = vmatpush3.bf16.msra.mxu1 %v6790_v8  ;;  %v6800_v8 = vld [vmem:[%s8322_s5 + $0xd8] sm:$0xff]   ;;  %v3518_v56 = vadd.f32 %v6349_v0, %v3437_v38 }
 0x2dd   : > { %v3703_v60 = vmax.f32 %v3659_v26, 0.0  ;;  %v6441_v39 = vadd.f32 %v6440_v23, %v6439_v57  ;;  %6519 = vmatprep.subr.bf16.mxu1 %v6792_v12  ;;  %v7904_v57 = vpop.f32.mrf.mxu0  ;;  %v3513_v24 = vadd.f32 %v6346_v61, %v3432_v13  ;;  %v3591_v19 = vadd.f32 %v6395_v15, %v3510_v25  ;;  %v6802_v15 = vld [vmem:[%s8322_s5 + $0x98] sm:$0xff]  }
 0x2de   : > { %v6442_v53 = vpop.f32.mrf.mxu1  ;;  %6480 = vmatpush3.bf16.msra.mxu0 %v6793_v14 }
 0x2df   : > { %3715 = vst.msk [vmem:[#allocation3 + $0x8] sm:$0xff] %vm607_vm0, %v3703_v60  ;;  %v3664_v22 = vadd.f32 %v6441_v39, %v3583_v35  ;;  %6481 = vmatprep.subr.bf16.mxu0 %v6795_v11  ;;  %v3521_v11 = vadd.f32 %v6352_v1, %v3440_v40 }
 0x2e0   : > { %v6443_v54 = vpop.f32.mrf.mxu1  ;;  %6520 = vmatpush3.bf16.msra.mxu1 %v6794_v20 }
 0x2e1   : > { %v3704_v62 = vmax.f32 %v3664_v22, 0.0  ;;  %v6444_v29 = vadd.f32 %v6443_v54, %v6442_v53  ;;  %6521 = vmatprep.subr.bf16.mxu1 %v6796_v48  ;;  %v3594_v22 = vadd.f32 %v6398_v63, %v3513_v24  ;;  %v6355_v48 = vadd.f32 %v7809_v44, %v7807_v43 }
 0x2e2   : > { %v6445_v55 = vpop.f32.mrf.mxu1  ;;  %v3726_v18 = vld [vmem:[#allocation3] sm:$0xff]  ;;  %6482 = vmatpush3.bf16.msra.mxu0 %v6797_v34  ;;  %v3445_v43 = vadd.f32 %v6303_v41, %v7824_v51 }
 0x2e3   : > { %3716 = vst.msk [vmem:[#allocation3 + $0x10] sm:$0xff] %vm607_vm0, %v3704_v62  ;;  %v3667_v28 = vadd.f32 %v6444_v29, %v3586_v45  ;;  %v5937_v32 = vpack.c.bf16 %v3726_v18, %v3726_v18  ;;  %6483 = vmatprep.subr.bf16.mxu0 %v6799_v6 }
 0x2e4   : > { %v6446_v58 = vpop.f32.mrf.mxu1  ;;  %6522 = vmatpush3.bf16.msra.mxu1 %v6798_v36  ;;  %v3526_v38 = vadd.f32 %v6355_v48, %v3445_v43 }
 0x2e5   : > { %v3705_v17 = vmax.f32 %v3667_v28, 0.0  ;;  %v6447_v26 = vadd.f32 %v6446_v58, %v6445_v55  ;;  %3772 = vst.msk [vmem:[#allocation5] sm:$0xf] %vm1285_vm1, %v5937_v32  ;;  %6523 = vmatprep.subr.bf16.mxu1 %v6800_v8  ;;  %v6801_v55 = vld [vmem:[%s8322_s5] sm:$0xff]   ;;  %v3599_v28 = vadd.f32 %v6401_v50, %v3518_v56  ;;  %v6404_v32 = vadd.f32 %v7904_v57, %v7882_v42 }
 0x2e6   : > { %v7917_v31 = vpop.f32.mrf.mxu0  ;;  %v6448_v23 = vpop.f32.mrf.mxu1  ;;  %v3781_v27 = vld [vmem:[#allocation3 + $0x1] sm:$0xff]  ;;  %6484 = vmatpush3.bf16.msra.mxu0 %v6801_v55 }
 0x2e7   : > { %v3727_v30 = vld [vmem:[#allocation3 + $0x8] sm:$0xff]  ;;  %3717 = vst.msk [vmem:[#allocation3 + $0x18] sm:$0xff] %vm607_vm0, %v3705_v17  ;;  %v3672_v60 = vadd.f32 %v6447_v26, %v3591_v19  ;;  %v5946_v35 = vpack.c.bf16 %v3781_v27, %v3781_v27 }
 0x2e8   : > { %v3854_v59 = vld [vmem:[#allocation3 + $0x2] sm:$0xff]  ;;  %v5938_v39 = vpack.c.bf16 %v3727_v30, %v3727_v30  ;;  %v6449_v53 = vpop.f32.mrf.mxu1  ;;  %v6406_v2 = vpop.f32.mrf.mxu0  ;;  %6524 = vmatpush3.bf16.msra.mxu1 %v6802_v15 }
 0x2e9   : > { %v5955_v52 = vpack.c.bf16 %v3854_v59, %v3854_v59  ;;  %v3706_v21 = vmax.f32 %v3672_v60, 0.0  ;;  %v6450_v45 = vadd.f32 %v6449_v53, %v6448_v23  ;;  %3818 = vrot.lane.b32.xlu0 %v5946_v35, %s6853_s30  ;;  %6525 = vmatprep.subr.bf16.mxu1 %v6806_v3  ;;  %v6407_v44 = vadd.f32 %v6406_v2, %v7917_v31  ;;  %v6807_v35 = vld [vmem:[%s8322_s5 + $0x90] sm:$0xff]  }
 0x2ea   : > { %3773 = vst.msk [vmem:[#allocation5 + $0x14] sm:$0xf] %vm1285_vm1, %v5938_v39  ;;  %v6451_v54 = vpop.f32.mrf.mxu1  ;;  %v3782_v10 = vld [vmem:[#allocation3 + $0x9] sm:$0xff]  ;;  %v6408_v57 = vpop.f32.mrf.mxu0 }
 0x2eb   : > { %3900 = vst.msk [vmem:[#allocation5 + $0x4] sm:$0xf] %vm1285_vm1, %v5955_v52  ;;  %v3909_v12 = vld [vmem:[#allocation3 + $0xa] sm:$0xff]  ;;  %v3675_v49 = vadd.f32 %v6450_v45, %v3594_v22  ;;  %v5947_v25 = vpack.c.bf16 %v3782_v10, %v3782_v10  ;;  %v3602_v52 = vadd.f32 %v6404_v32, %v3521_v11  ;;  %v3448_v22 = vadd.f32 %v6306_v4, %v7824_v51 }
 0x2ec   : > { %3718 = vst.msk [vmem:[#allocation3 + $0x20] sm:$0xff] %vm607_vm0, %v3706_v21  ;;  %v5964_v61 = vpack.c.bf16 %v3909_v12, %v3909_v12  ;;  %v3982_v62 = vld [vmem:[#allocation3 + $0xb] sm:$0xff]  ;;  %v6452_v18 = vpop.f32.mrf.mxu1  ;;  %v6409_v6 = vpop.f32.mrf.mxu0  ;;  %6526 = vmatpush3.bf16.msra.mxu1 %v6807_v35  ;;  %v3607_v47 = vadd.f32 %v6407_v44, %v3526_v38 }
 0x2ed   : > { %v3728_v29 = vld [vmem:[#allocation3 + $0x10] sm:$0xff]  ;;  %v5973_v20 = vpack.c.bf16 %v3982_v62, %v3982_v62  ;;  %v3707_v16 = vmax.f32 %v3675_v49, 0.0  ;;  %v6453_v58 = vadd.f32 %v6452_v18, %v6451_v54  ;;  %3820 = vrot.lane.b32.xlu1 %v5947_v25, %s6853_s30  ;;  %v6808_v39 = vld [vmem:[%s8322_s5 + $0xc8] sm:$0xff]   ;;  %v6810_v62 = vld [vmem:[%s8322_s5 + $0xc0] sm:$0xff]   ;;  %v6410_v55 = vadd.f32 %v6409_v6, %v6408_v57 }
 0x2ee   : > { %v4037_v14 = vld [vmem:[#allocation3 + $0xc] sm:$0xff]  ;;  %v5939_v13 = vpack.c.bf16 %v3728_v29, %v3728_v29  ;;  %3946 = vrot.lane.b32.xlu0 %v5964_v61, %s6853_s30  ;;  %3901 = vst.msk [vmem:[#allocation5 + $0x18] sm:$0xf] %vm1285_vm1, %v5964_v61  ;;  %v4238_v42 = vld [vmem:[#allocation3 + $0x16] sm:$0xff]  ;;  %v6454_v24 = vpop.f32.mrf.mxu1  ;;  %6527 = vmatprep.subr.bf16.mxu1 %v6808_v39 }
 0x2ef   : > { %v3910_v17 = vld [vmem:[#allocation3 + $0x12] sm:$0xff]  ;;  %4028 = vst.msk [vmem:[#allocation5 + $0x8] sm:$0xf] %vm1285_vm1, %v5973_v20  ;;  %v6009_v26 = vpack.c.bf16 %v4238_v42, %v4238_v42  ;;  %v3680_v63 = vadd.f32 %v6453_v58, %v3599_v28  ;;  %v5982_v7 = vpack.c.bf16 %v4037_v14, %v4037_v14  ;;  %v6809_v61 = vld [vmem:[%s8322_s5 + $0x88] sm:$0xff]  }
 0x2f0   : > { %v4038_v19 = vld [vmem:[#allocation3 + $0x14] sm:$0xff]  ;;  %3774 = vst.msk [vmem:[#allocation5 + $0x28] sm:$0xf] %vm1285_vm1, %v5939_v13  ;;  %v5965_v5 = vpack.c.bf16 %v3910_v17, %v3910_v17  ;;  %v6455_v27 = vpop.f32.mrf.mxu1  ;;  %v3529_v13 = vadd.f32 %v6358_v37, %v3448_v22  ;;  %6528 = vmatpush3.bf16.msra.mxu1 %v6809_v61 }
 0x2f1   : > { %3719 = vst.msk [vmem:[#allocation3 + $0x28] sm:$0xff] %vm607_vm0, %v3707_v16  ;;  %v3783_v0 = vld [vmem:[#allocation3 + $0x11] sm:$0xff]  ;;  %v5983_v30 = vpack.c.bf16 %v4038_v19, %v4038_v19  ;;  %v3708_v34 = vmax.f32 %v3680_v63, 0.0  ;;  %v6456_v36 = vadd.f32 %v6455_v27, %v6454_v24  ;;  %6529 = vmatprep.subr.bf16.mxu1 %v6810_v62  ;;  %v6811_v63 = vld [vmem:[%s8322_s5 + $0x80] sm:$0xff]   ;;  %v6854_v62 = vmov 0.0  }
 0x2f2   : > { %v3983_v23 = vld [vmem:[#allocation3 + $0x13] sm:$0xff]  ;;  %4284 = vst.msk [vmem:[#allocation5 + $0x10] sm:$0xf] %vm1285_vm1, %v6009_v26  ;;  %3948 = vrot.lane.b32.xlu1 %v5965_v5, %s6853_s30  ;;  %4074 = vrot.lane.b32.xlu0 %v5982_v7, %s6853_s30  ;;  %3902 = vst.msk [vmem:[#allocation5 + $0x2c] sm:$0xf] %vm1285_vm1, %v5965_v5  ;;  %v6457_v8 = vpop.f32.mrf.mxu1  ;;  %v5948_v2 = vpack.c.bf16 %v3783_v0, %v3783_v0  ;;  %v3610_v7 = vadd.f32 %v6410_v55, %v3529_v13 }
 0x2f3   : > { %v5974_v59 = vpack.c.bf16 %v3983_v23, %v3983_v23  ;;  %v3729_v60 = vld [vmem:[#allocation3 + $0x18] sm:$0xff]  ;;  %4156 = vst.msk [vmem:[#allocation5 + $0xc] sm:$0xf] %vm1285_vm1, %v5983_v30  ;;  %v3683_v1 = vadd.f32 %v6456_v36, %v3602_v52  ;;  %v3730_v29 = vld [vmem:[#allocation3 + $0x20] sm:$0xff]  ;;  %v8332_v27 = vld [vmem:[#allocation9_spill] sm:$0xff]  ;;  %6570 = vmatprep.subr.bf16.mxu0 %v6854_v62 }
 0x2f4   : > { %v5940_v31 = vpack.c.bf16 %v3729_v60, %v3729_v60  ;;  %v4239_v53 = vld [vmem:[#allocation3 + $0x1e] sm:$0xff]  ;;  %v4165_v21 = vld [vmem:[#allocation3 + $0x15] sm:$0xff]  ;;  %3720 = vst.msk [vmem:[#allocation3 + $0x30] sm:$0xff] %vm607_vm0, %v3708_v34  ;;  %v6458_v12 = vpop.f32.mrf.mxu1  ;;  %v5941_v18 = vpack.c.bf16 %v3730_v29, %v3730_v29  ;;  %6530 = vmatpush3.bf16.msra.mxu1 %v6811_v63 }
 0x2f5   : > { %v3784_v50 = vld [vmem:[#allocation3 + $0x19] sm:$0xff]  ;;  %4029 = vst.msk [vmem:[#allocation5 + $0x1c] sm:$0xf] %vm1285_vm1, %v5974_v59  ;;  %v6010_v45 = vpack.c.bf16 %v4239_v53, %v4239_v53  ;;  %v3709_v40 = vmax.f32 %v3683_v1, 0.0  ;;  %v6459_v41 = vadd.f32 %v6458_v12, %v6457_v8  ;;  %v6000_v58 = vpack.c.bf16 %v4165_v21, %v4165_v21  ;;  %v8335_v34 = vld [vmem:[#allocation8_spill] sm:$0xff]  ;;  %6598 = vmatprep.subr.bf16.mxu1 %v6854_v62 }
 0x2f6   : > { %v3911_v54 = vld [vmem:[#allocation3 + $0x1a] sm:$0xff]  ;;  %3775 = vst.msk [vmem:[#allocation5 + $0x3c] sm:$0xf] %vm1285_vm1, %v5940_v31  ;;  %4076 = vrot.lane.b32.xlu1 %v5983_v30, %s6853_s30  ;;  %3822 = vrot.lane.b32.xlu0 %v5948_v2, %s6853_s30  ;;  %v6411_v28 = vpop.f32.mrf.mxu0  ;;  %v6460_v32 = vpop.f32.mrf.mxu1  ;;  %v5949_v16 = vpack.c.bf16 %v3784_v50, %v3784_v50  ;;  %3776 = vst.msk [vmem:[#allocation5 + $0x50] sm:$0xf] %vm1285_vm1, %v5941_v18 }
 0x2f7   : > { %v4039_v10 = vld [vmem:[#allocation3 + $0x1c] sm:$0xff]  ;;  %v7986_v56 = vpack.c.bf16 %v3911_v54, %v3911_v54  ;;  %4285 = vst.msk [vmem:[#allocation5 + $0x24] sm:$0xf] %vm1285_vm1, %v6010_v45  ;;  %v8331_v14 = vld [vmem:[#allocation6_spill] sm:$0xff] }
 0x2f8   : > { %v3984_v46 = vld [vmem:[#allocation3 + $0x1b] sm:$0xff]  ;;  %v7988_v49 = vpack.c.bf16 %v4039_v10, %v4039_v10  ;;  %v6309_v20 = vadd.f32 %v8331_v14, %v7753_v9  ;;  %v4240_v15 = vld [vmem:[#allocation3 + $0x26] sm:$0xff]  ;;  %3721 = vst.msk [vmem:[#allocation3 + $0x38] sm:$0xff] %vm607_vm0, %v3709_v40  ;;  %v3688_v9 = vadd.f32 %v6459_v41, %v3607_v47  ;;  %v6412_v17 = vpop.f32.mrf.mxu0  ;;  %v6461_v19 = vpop.f32.mrf.mxu1 }
 0x2f9   : > { %v5975_v25 = vpack.c.bf16 %v3984_v46, %v3984_v46  ;;  %v3912_v3 = vld [vmem:[#allocation3 + $0x22] sm:$0xff]  ;;  %3903 = vst.msk [vmem:[#allocation5 + $0x40] sm:$0xf] %vm1285_vm1, %v7986_v56  ;;  %v6011_v11 = vpack.c.bf16 %v4240_v15, %v4240_v15  ;;  %v6462_v23 = vadd.f32 %v6461_v19, %v6460_v32  ;;  %v8333_v30 = vld [vmem:[#allocation10_spill] sm:$0xff]  ;;  %v6413_v8 = vadd.f32 %v6412_v17, %v6411_v28 }
 0x2fa   : > { %v4040_v4 = vld [vmem:[#allocation3 + $0x24] sm:$0xff]  ;;  %4157 = vst.msk [vmem:[#allocation5 + $0x20] sm:$0xf] %vm1285_vm1, %v7988_v49  ;;  %v8007_v42 = vpack.c.bf16 %v3912_v3, %v3912_v3  ;;  %v3710_v0 = vmax.f32 %v3688_v9, 0.0  ;;  %3824 = vrot.lane.b32.xlu1 %v5949_v16, %s6853_s30  ;;  %4202 = vrot.lane.b32.xlu0 %v6000_v58, %s6853_s30  ;;  %v3453_v44 = vadd.f32 %v6309_v20, %v7824_v51  ;;  %v6414_v35 = vpop.f32.mrf.mxu0  ;;  %v8334_v52 = vld [vmem:[#allocation7_spill] sm:$0xff] }
 0x2fb   : > { %4030 = vst.msk [vmem:[#allocation5 + $0x30] sm:$0xf] %vm1285_vm1, %v5975_v25  ;;  %v4166_v48 = vld [vmem:[#allocation3 + $0x1d] sm:$0xff]  ;;  %v8009_v57 = vpack.c.bf16 %v4040_v4, %v4040_v4  ;;  %v3731_v5 = vld [vmem:[#allocation3 + $0x28] sm:$0xff]  ;;  %4286 = vst.msk [vmem:[#allocation5 + $0x38] sm:$0xf] %vm1285_vm1, %v6011_v11  ;;  %v6361_v59 = vadd.f32 %v8333_v30, %v8332_v27  ;;  %v6312_v36 = vadd.f32 %v8335_v34, %v8334_v52 }
 0x2fc   : > { %v3985_v24 = vld [vmem:[#allocation3 + $0x23] sm:$0xff]  ;;  %v5942_v43 = vpack.c.bf16 %v3731_v5, %v3731_v5  ;;  %3904 = vst.msk [vmem:[#allocation5 + $0x54] sm:$0xf] %vm1285_vm1, %v8007_v42  ;;  %v4241_v60 = vld [vmem:[#allocation3 + $0x2e] sm:$0xff]  ;;  %v3691_v38 = vadd.f32 %v6462_v23, %v3610_v7  ;;  %v6001_v37 = vpack.c.bf16 %v4166_v48, %v4166_v48  ;;  %v6415_v12 = vpop.f32.mrf.mxu0 }
 0x2fd   : > { %v5976_v26 = vpack.c.bf16 %v3985_v24, %v3985_v24  ;;  %4158 = vst.msk [vmem:[#allocation5 + $0x34] sm:$0xf] %vm1285_vm1, %v8009_v57  ;;  %v3913_v39 = vld [vmem:[#allocation3 + $0x2a] sm:$0xff]  ;;  %v6012_v31 = vpack.c.bf16 %v4241_v60, %v4241_v60  ;;  %v3534_v54 = vadd.f32 %v6361_v59, %v3453_v44  ;;  %v8336_v10 = vld [vmem:[#allocation11_spill] sm:$0xff]  ;;  %v3456_v40 = vadd.f32 %v6312_v36, %v7824_v51 }
 0x2fe   : > { %3722 = vst.msk [vmem:[#allocation3 + $0x40] sm:$0xff] %vm607_vm0, %v3710_v0  ;;  %v4041_v53 = vld [vmem:[#allocation3 + $0x2c] sm:$0xff]  ;;  %v8030_v50 = vpack.c.bf16 %v3913_v39, %v3913_v39  ;;  %v3711_v45 = vmax.f32 %v3691_v38, 0.0  ;;  %4204 = vrot.lane.b32.xlu1 %v6001_v37, %s6853_s30  ;;  %3950 = vrot.lane.b32.xlu0 %v7986_v56, %s6853_s30  ;;  %v6364_v46 = vadd.f32 %v7835_v33, %v8336_v10  ;;  %v6463_v25 = vpop.f32.mrf.mxu1  ;;  %v3785_v14 = vld [vmem:[#allocation3 + $0x21] sm:$0xff] }
 0x2ff   : > { %4031 = vst.msk [vmem:[#allocation5 + $0x44] sm:$0xf] %vm1285_vm1, %v5976_v26  ;;  %3777 = vst.msk [vmem:[#allocation5 + $0x64] sm:$0xf] %vm1285_vm1, %v5942_v43  ;;  %v3732_v6 = vld [vmem:[#allocation3 + $0x30] sm:$0xff]  ;;  %v8032_v21 = vpack.c.bf16 %v4041_v53, %v4041_v53  ;;  %v3733_v55 = vld [vmem:[#allocation3 + $0x38] sm:$0xff]  ;;  %v3615_v41 = vadd.f32 %v6413_v8, %v3534_v54  ;;  %v6416_v28 = vadd.f32 %v6415_v12, %v6414_v35 }
 0x300   : > { %v3986_v22 = vld [vmem:[#allocation3 + $0x2b] sm:$0xff]  ;;  %4287 = vst.msk [vmem:[#allocation5 + $0x4c] sm:$0xf] %vm1285_vm1, %v6012_v31  ;;  %v5943_v1 = vpack.c.bf16 %v3732_v6, %v3732_v6  ;;  %v4242_v47 = vld [vmem:[#allocation3 + $0x36] sm:$0xff]  ;;  %3905 = vst.msk [vmem:[#allocation5 + $0x68] sm:$0xf] %vm1285_vm1, %v8030_v50  ;;  %v6464_v18 = vpop.f32.mrf.mxu1  ;;  %v5944_v13 = vpack.c.bf16 %v3733_v55, %v3733_v55  ;;  %v3537_v16 = vadd.f32 %v6364_v46, %v3456_v40 }
 0x301   : > { %v5977_v2 = vpack.c.bf16 %v3986_v22, %v3986_v22  ;;  %v3914_v61 = vld [vmem:[#allocation3 + $0x32] sm:$0xff]  ;;  %4159 = vst.msk [vmem:[#allocation5 + $0x48] sm:$0xf] %vm1285_vm1, %v8032_v21  ;;  %v6013_v56 = vpack.c.bf16 %v4242_v47, %v4242_v47  ;;  %v6465_v32 = vadd.f32 %v6464_v18, %v6463_v25  ;;  %v5950_v48 = vpack.c.bf16 %v3785_v14, %v3785_v14  ;;  %v3786_v19 = vld [vmem:[#allocation3 + $0x29] sm:$0xff] }
 0x302   : > { %3723 = vst.msk [vmem:[#allocation3 + $0x48] sm:$0xff] %vm607_vm0, %v3711_v45  ;;  %v8047_v29 = vpack.c.bf16 %v3914_v61, %v3914_v61  ;;  %v4042_v33 = vld [vmem:[#allocation3 + $0x34] sm:$0xff]  ;;  %3952 = vrot.lane.b32.xlu1 %v8007_v42, %s6853_s30  ;;  %4078 = vrot.lane.b32.xlu0 %v7988_v49, %s6853_s30  ;;  %v6466_v3 = vpop.f32.mrf.mxu1  ;;  %v3618_v7 = vadd.f32 %v6416_v28, %v3537_v16  ;;  %v4167_v45 = vld [vmem:[#allocation3 + $0x25] sm:$0xff] }
 0x303   : > { %3778 = vst.msk [vmem:[#allocation5 + $0x78] sm:$0xf] %vm1285_vm1, %v5943_v1  ;;  %4032 = vst.msk [vmem:[#allocation5 + $0x58] sm:$0xf] %vm1285_vm1, %v5977_v2  ;;  %v8052_v20 = vpack.c.bf16 %v4042_v33, %v4042_v33  ;;  %v3987_v15 = vld [vmem:[#allocation3 + $0x33] sm:$0xff]  ;;  %v3696_v9 = vadd.f32 %v6465_v32, %v3615_v41  ;;  %v5951_v60 = vpack.c.bf16 %v3786_v19, %v3786_v19 }
 0x304   : > { %4288 = vst.msk [vmem:[#allocation5 + $0x60] sm:$0xf] %vm1285_vm1, %v6013_v56  ;;  %3906 = vst.msk [vmem:[#allocation5 + $0x7c] sm:$0xf] %vm1285_vm1, %v8047_v29  ;;  %v5978_v51 = vpack.c.bf16 %v3987_v15, %v3987_v15  ;;  %v6467_v49 = vpop.f32.mrf.mxu1  ;;  %v3787_v52 = vld [vmem:[#allocation3 + $0x31] sm:$0xff]  ;;  %v6002_v47 = vpack.c.bf16 %v4167_v45, %v4167_v45 }
 0x305   : > { %v4243_v58 = vld [vmem:[#allocation3 + $0x3e] sm:$0xff]  ;;  %3779 = vst.msk [vmem:[#allocation5 + $0x8c] sm:$0xf] %vm1285_vm1, %v5944_v13  ;;  %4160 = vst.msk [vmem:[#allocation5 + $0x5c] sm:$0xf] %vm1285_vm1, %v8052_v20  ;;  %v3712_v0 = vmax.f32 %v3696_v9, 0.0  ;;  %v6468_v23 = vadd.f32 %v6467_v49, %v6466_v3  ;;  %v5952_v38 = vpack.c.bf16 %v3787_v52, %v3787_v52 }
 0x306   : > { %v3915_v4 = vld [vmem:[#allocation3 + $0x3a] sm:$0xff]  ;;  %v6014_v11 = vpack.c.bf16 %v4243_v58, %v4243_v58  ;;  %4033 = vst.msk [vmem:[#allocation5 + $0x6c] sm:$0xf] %vm1285_vm1, %v5978_v51  ;;  %4080 = vrot.lane.b32.xlu1 %v8009_v57, %s6853_s30  ;;  %3826 = vrot.lane.b32.xlu0 %v5950_v48, %s6853_s30  ;;  %v4168_v25 = vld [vmem:[#allocation3 + $0x2d] sm:$0xff] }
 0x307   : > { %v5970_v42 = vpack.c.bf16 %v3915_v4, %v3915_v4  ;;  %v4043_v24 = vld [vmem:[#allocation3 + $0x3c] sm:$0xff]  ;;  %3724 = vst.msk [vmem:[#allocation3 + $0x50] sm:$0xff] %vm607_vm0, %v3712_v0  ;;  %v3699_v59 = vadd.f32 %v6468_v23, %v3618_v7  ;;  %v6003_v56 = vpack.c.bf16 %v4168_v25, %v4168_v25  ;;  %v6825_v0 = vld [vmem:[%s8322_s5 + $0x108] sm:$0xff]  }
 0x308   : > { %v3734_v17 = vld [vmem:[#allocation3 + $0x40] sm:$0xff]  ;;  %v8065_v26 = vpack.c.bf16 %v4043_v24, %v4043_v24  ;;  %4289 = vst.msk [vmem:[#allocation5 + $0x74] sm:$0xf] %vm1285_vm1, %v6014_v11  ;;  %v4169_v40 = vld [vmem:[#allocation3 + $0x35] sm:$0xff] }
 0x309   : > { %v5945_v63 = vpack.c.bf16 %v3734_v17, %v3734_v17  ;;  %v3988_v5 = vld [vmem:[#allocation3 + $0x3b] sm:$0xff]  ;;  %3907 = vst.msk [vmem:[#allocation5 + $0x90] sm:$0xf] %vm1285_vm1, %v5970_v42  ;;  %v4244_v44 = vld [vmem:[#allocation3 + $0x46] sm:$0xff]  ;;  %v3713_v31 = vmax.f32 %v3699_v59, 0.0  ;;  %v6004_v41 = vpack.c.bf16 %v4169_v40, %v4169_v40 }
 0x30a   : > { %v5979_v43 = vpack.c.bf16 %v3988_v5, %v3988_v5  ;;  %v3916_v27 = vld [vmem:[#allocation3 + $0x42] sm:$0xff]  ;;  %4161 = vst.msk [vmem:[#allocation5 + $0x70] sm:$0xf] %vm1285_vm1, %v8065_v26  ;;  %v6015_v30 = vpack.c.bf16 %v4244_v44, %v4244_v44  ;;  %3828 = vrot.lane.b32.xlu1 %v5951_v60, %s6853_s30  ;;  %3954 = vrot.lane.b32.xlu0 %v8030_v50, %s6853_s30  ;;  %v3788_v37 = vld [vmem:[#allocation3 + $0x39] sm:$0xff] }
 0x30b   : > { %3780 = vst.msk [vmem:[#allocation5 + $0xa0] sm:$0xf] %vm1285_vm1, %v5945_v63  ;;  %v5971_v35 = vpack.c.bf16 %v3916_v27, %v3916_v27  ;;  %v4044_v39 = vld [vmem:[#allocation3 + $0x44] sm:$0xff]  ;;  %v5953_v8 = vpack.c.bf16 %v3788_v37, %v3788_v37  ;;  %v6817_v48 = vld [vmem:[%s8322_s5 + $0x118] sm:$0xff]   ;;  %v6818_v63 = vld [vmem:[%s8322_s5 + $0x110] sm:$0xff]  }
 0x30c   : > { %4034 = vst.msk [vmem:[#allocation5 + $0x80] sm:$0xf] %vm1285_vm1, %v5979_v43  ;;  %v3989_v57 = vld [vmem:[#allocation3 + $0x43] sm:$0xff]  ;;  %v5989_v34 = vpack.c.bf16 %v4044_v39, %v4044_v39  ;;  %4290 = vst.msk [vmem:[#allocation5 + $0x88] sm:$0xf] %vm1285_vm1, %v6015_v30 }
 0x30d   : > { %v5980_v36 = vpack.c.bf16 %v3989_v57, %v3989_v57  ;;  %3908 = vst.msk [vmem:[#allocation5 + $0xa4] sm:$0xf] %vm1285_vm1, %v5971_v35  ;;  %v3789_v61 = vld [vmem:[#allocation3 + $0x41] sm:$0xff] }
 0x30e   : > { %4162 = vst.msk [vmem:[#allocation5 + $0x84] sm:$0xf] %vm1285_vm1, %v5989_v34  ;;  %3956 = vrot.lane.b32.xlu1 %v8047_v29, %s6853_s30  ;;  %3830 = vrot.lane.b32.xlu0 %v5952_v38, %s6853_s30  ;;  %v4245_v53 = vld [vmem:[#allocation3 + $0x4e] sm:$0xff]  ;;  %v5954_v29 = vpack.c.bf16 %v3789_v61, %v3789_v61  ;;  %v4170_v18 = vld [vmem:[#allocation3 + $0x3d] sm:$0xff]  ;;  %v4171_v13 = vld [vmem:[#allocation3 + $0x45] sm:$0xff] }
 0x30f   : > { %4035 = vst.msk [vmem:[#allocation5 + $0x94] sm:$0xf] %vm1285_vm1, %v5980_v36  ;;  %v6016_v6 = vpack.c.bf16 %v4245_v53, %v4245_v53  ;;  %v4045_v22 = vld [vmem:[#allocation3 + $0x4c] sm:$0xff]  ;;  %v6005_v14 = vpack.c.bf16 %v4170_v18, %v4170_v18  ;;  %v6006_v15 = vpack.c.bf16 %v4171_v13, %v4171_v13  ;;  %v6830_v23 = vld [vmem:[%s8322_s5 + $0x100] sm:$0xff]  }
 0x310   : > { %3725 = vst.msk [vmem:[#allocation3 + $0x58] sm:$0xff] %vm607_vm0, %v3713_v31  ;;  %v3990_v50 = vld [vmem:[#allocation3 + $0x4b] sm:$0xff]  ;;  %v5990_v1 = vpack.c.bf16 %v4045_v22, %v4045_v22 }
 0x311   : > { %v5981_v2 = vpack.c.bf16 %v3990_v50, %v3990_v50  ;;  %4291 = vst.msk [vmem:[#allocation5 + $0x9c] sm:$0xf] %vm1285_vm1, %v6016_v6  ;;  %v3917_v33 = vld [vmem:[#allocation3 + $0x4a] sm:$0xff] }
 0x312   : > { %3832 = vrot.lane.b32.xlu1 %v5953_v8, %s6853_s30  ;;  %3958 = vrot.lane.b32.xlu0 %v5970_v42, %s6853_s30  ;;  %4163 = vst.msk [vmem:[#allocation5 + $0x98] sm:$0xf] %vm1285_vm1, %v5990_v1  ;;  %v5972_v55 = vpack.c.bf16 %v3917_v33, %v3917_v33  ;;  %v4172_v28 = vld [vmem:[#allocation3 + $0x4d] sm:$0xff] }
 0x313   : > { %4036 = vst.msk [vmem:[#allocation5 + $0xa8] sm:$0xf] %vm1285_vm1, %v5981_v2 }
 0x316   : > { %3960 = vrot.lane.b32.xlu1 %v5971_v35, %s6853_s30  ;;  %4206 = vrot.lane.b32.xlu0 %v6002_v47, %s6853_s30 }
 0x317   : > { %v4246_v54 = vld [vmem:[#allocation3 + $0x56] sm:$0xff] }
 0x318   : > { %v4118_v10 = vld [vmem:[#allocation3 + $0x54] sm:$0xff]  ;;  %v6017_v46 = vpack.c.bf16 %v4246_v54, %v4246_v54 }
 0x319   : > { %v5999_v12 = vpack.c.bf16 %v4118_v10, %v4118_v10  ;;  %v4173_v32 = vld [vmem:[#allocation3 + $0x55] sm:$0xff] }
 0x31a   : > { %4292 = vst.msk [vmem:[#allocation5 + $0xb0] sm:$0xf] %vm1285_vm1, %v6017_v46  ;;  %4208 = vrot.lane.b32.xlu1 %v6003_v56, %s6853_s30  ;;  %3834 = vrot.lane.b32.xlu0 %v5954_v29, %s6853_s30 }
 0x31b   : > { %4164 = vst.msk [vmem:[#allocation5 + $0xac] sm:$0xf] %vm1285_vm1, %v5999_v12  ;;  %vm8254_vm1 = vmand %vm5010_vm10, %vm4985_vm8 }
 0x31e   : > { %3962 = vrot.lane.b32.xlu1 %v5972_v55, %s6853_s30  ;;  %4082 = vrot.lane.b32.xlu0 %v8032_v21, %s6853_s30  ;;  %v6007_v21 = vpack.c.bf16 %v4172_v28, %v4172_v28 }
 0x322   : > { %4084 = vrot.lane.b32.xlu1 %v8052_v20, %s6853_s30  ;;  %4210 = vrot.lane.b32.xlu0 %v6004_v41, %s6853_s30  ;;  %v6008_v20 = vpack.c.bf16 %v4173_v32, %v4173_v32 }
 0x326   : > { %4212 = vrot.lane.b32.xlu1 %v6005_v14, %s6853_s30  ;;  %4086 = vrot.lane.b32.xlu0 %v8065_v26, %s6853_s30 }
 0x32a   : > { %4088 = vrot.lane.b32.xlu1 %v5989_v34, %s6853_s30  ;;  %4214 = vrot.lane.b32.xlu0 %v6006_v15, %s6853_s30 }
 0x32e   : > { %4216 = vrot.lane.b32.xlu1 %v6007_v21, %s6853_s30  ;;  %4090 = vrot.lane.b32.xlu0 %v5990_v1, %s6853_s30  ;;  %v6834_v21 = vld [vmem:[#allocation5 + $0x10] ss:$20 sps:$4 sm:$0xff]  }
 0x332   : > { %4218 = vrot.lane.b32.xlu1 %v6008_v20, %s6853_s30 }
 0x35b   : > { %v3819_v51 = vpop.permute.xlu0 %3818 }
 0x35c   : > { %3845 = vst.msk [vmem:[#allocation5] sm:$0xf] %vm1598_vm2, %v3819_v51 }
 0x35f   : > { %v3821_v16 = vpop.permute.xlu1 %3820 }
 0x360   : > { %v3947_v58 = vpop.permute.xlu0 %3946  ;;  %3846 = vst.msk [vmem:[#allocation5 + $0x14] sm:$0xf] %vm1598_vm2, %v3821_v16  ;;  %v6838_v16 = vld [vmem:[#allocation5 + $0x38] ss:$20 sps:$4 sm:$0xff]  }
 0x361   : > { %3973 = vst.msk [vmem:[#allocation5 + $0x4] sm:$0xf] %vm1598_vm2, %v3947_v58 }
 0x364   : > { %v3949_v3 = vpop.permute.xlu1 %3948  ;;  %v4075_v4 = vpop.permute.xlu0 %4074 }
 0x365   : > { %3974 = vst.msk [vmem:[#allocation5 + $0x18] sm:$0xf] %vm1598_vm2, %v3949_v3  ;;  %4101 = vst.msk [vmem:[#allocation5 + $0x8] sm:$0xf] %vm1598_vm2, %v4075_v4 }
 0x367   : > { %v6803_v17 = vld [vmem:[#allocation5] ss:$20 sps:$4 sm:$0xff]  }
 0x368   : > { %v4077_v11 = vpop.permute.xlu1 %4076  ;;  %v3823_v9 = vpop.permute.xlu0 %3822 }
 0x369   : > { %4102 = vst.msk [vmem:[#allocation5 + $0x1c] sm:$0xf] %vm1598_vm2, %v4077_v11  ;;  %3847 = vst.msk [vmem:[#allocation5 + $0x28] sm:$0xf] %vm1598_vm2, %v3823_v9  ;;  %v6841_v11 = vld [vmem:[#allocation5 + $0x60] ss:$20 sps:$4 sm:$0xff]  }
 0x36a   : > { %v6842_v9 = vld [vmem:[#allocation5 + $0x88] ss:$20 sps:$4 sm:$0xff]  }
 0x36c   : > { %v3825_v42 = vpop.permute.xlu1 %3824  ;;  %v4203_v24 = vpop.permute.xlu0 %4202  ;;  %v6805_v49 = vld [vmem:[#allocation5 + $0x4] ss:$20 sps:$4 sm:$0xff]  }
 0x36d   : > { %3848 = vst.msk [vmem:[#allocation5 + $0x3c] sm:$0xf] %vm1598_vm2, %v3825_v42  ;;  %4229 = vst.msk [vmem:[#allocation5 + $0xc] sm:$0xf] %vm1598_vm2, %v4203_v24  ;;  %4779 = vmatprep.mubr.bf16.mxu0 %v6805_v49 }
 0x36e   : > { %4780 = vmatmul.mubr.bf16.vlgmr.msra.gmra.mxu0 %v6803_v17 }
 0x36f   : > { %6571 = vmatpush3.bf16.msra.mxu0 %v6817_v48 }
 0x370   : > { %v4205_v19 = vpop.permute.xlu1 %4204  ;;  %v3951_v26 = vpop.permute.xlu0 %3950  ;;  %6572 = vmatprep.subr.bf16.mxu0 %v6854_v62  ;;  %v6812_v27 = vld [vmem:[#allocation5 + $0x8] ss:$20 sps:$4 sm:$0xff]  }
 0x371   : > { %4230 = vst.msk [vmem:[#allocation5 + $0x20] sm:$0xf] %vm1598_vm2, %v4205_v19  ;;  %3975 = vst.msk [vmem:[#allocation5 + $0x2c] sm:$0xf] %vm1598_vm2, %v3951_v26 }
 0x373   : > { %6573 = vmatpush3.bf16.msra.mxu0 %v6818_v63 }
 0x374   : > { %v3953_v5 = vpop.permute.xlu1 %3952  ;;  %v4079_v7 = vpop.permute.xlu0 %4078  ;;  %6574 = vmatprep.subr.bf16.mxu0 %v6854_v62 }
 0x375   : > { %3976 = vst.msk [vmem:[#allocation5 + $0x40] sm:$0xf] %vm1598_vm2, %v3953_v5  ;;  %4103 = vst.msk [vmem:[#allocation5 + $0x30] sm:$0xf] %vm1598_vm2, %v4079_v7 }
 0x377   : > { %6575 = vmatpush3.bf16.msra.mxu0 %v6825_v0 }
 0x378   : > { %v4081_v43 = vpop.permute.xlu1 %4080  ;;  %v3827_v44 = vpop.permute.xlu0 %3826  ;;  %v6814_v30 = vld [vmem:[#allocation5 + $0xc] ss:$20 sps:$4 sm:$0xff]   ;;  %6576 = vmatprep.subr.bf16.mxu0 %v6854_v62 }
 0x379   : > { %4104 = vst.msk [vmem:[#allocation5 + $0x44] sm:$0xf] %vm1598_vm2, %v4081_v43  ;;  %3849 = vst.msk [vmem:[#allocation5 + $0x50] sm:$0xf] %vm1598_vm2, %v3827_v44  ;;  %4851 = vmatprep.mubr.bf16.mxu1 %v6814_v30  ;;  %v4299_v35 = vld [vmem:[#allocation5 + $0x28] sm:$0xff] }
 0x37a   : > { %4852 = vmatmul.mubr.bf16.vlgmr.msra.gmra.mxu1 %v6812_v27 }
 0x37b   : > { %6602 = vmatpush3.bf16.msra.mxu1 %v6817_v48  ;;  %6577 = vmatpush3.bf16.msra.mxu0 %v6830_v23  ;;  %v6843_v48 = vld [vmem:[#allocation5 + $0xb0] ss:$0 sps:$4 sm:$0xff]  }
 0x37c   : > { %v3829_v59 = vpop.permute.xlu1 %3828  ;;  %v3955_v60 = vpop.permute.xlu0 %3954  ;;  %v4302_v39 = vld [vmem:[#allocation5 + $0x3c] sm:$0xff]  ;;  %6599 = vmatprep.subr.bf16.mxu1 %v6854_v62 }
 0x37d   : > { %v6815_v57 = vld [vmem:[#allocation5 + $0x2c] ss:$20 sps:$4 sm:$0xff]   ;;  %3850 = vst.msk [vmem:[#allocation5 + $0x64] sm:$0xf] %vm1598_vm2, %v3829_v59  ;;  %3977 = vst.msk [vmem:[#allocation5 + $0x54] sm:$0xf] %vm1598_vm2, %v3955_v60  ;;  %v5669_v52 = vcombine.low %v4299_v35, %v4302_v39 }
 0x37e   : > { %4787 = vmatprep.mubr.bf16.mxu0 %v6815_v57 }
 0x37f   : > { %4788 = vmatmul.mubr.bf16.gmra.mxu0 %v5669_v52  ;;  %6603 = vmatpush3.bf16.msra.mxu1 %v6818_v63 }
 0x380   : > { %v3957_v34 = vpop.permute.xlu1 %3956  ;;  %v3831_v36 = vpop.permute.xlu0 %3830  ;;  %6600 = vmatprep.subr.bf16.mxu1 %v6854_v62 }
 0x381   : > { %3978 = vst.msk [vmem:[#allocation5 + $0x68] sm:$0xf] %vm1598_vm2, %v3957_v34  ;;  %3851 = vst.msk [vmem:[#allocation5 + $0x78] sm:$0xf] %vm1598_vm2, %v3831_v36 }
 0x383   : > { %6604 = vmatpush3.bf16.msra.mxu1 %v6825_v0 }
 0x384   : > { %v3833_v31 = vpop.permute.xlu1 %3832  ;;  %v3959_v38 = vpop.permute.xlu0 %3958  ;;  %6601 = vmatprep.subr.bf16.mxu1 %v6854_v62  ;;  %v6819_v6 = vld [vmem:[#allocation5 + $0x50] ss:$20 sps:$4 sm:$0xff]  }
 0x385   : > { %3852 = vst.msk [vmem:[#allocation5 + $0x8c] sm:$0xf] %vm1598_vm2, %v3833_v31  ;;  %3979 = vst.msk [vmem:[#allocation5 + $0x7c] sm:$0xf] %vm1598_vm2, %v3959_v38  ;;  %v8201_v38 = vld [vmem:[%s8323_s6] ss:$0 sm:$0xff] }
 0x387   : > { %6605 = vmatpush3.bf16.msra.mxu1 %v6830_v23 }
 0x388   : > { %v3961_v37 = vpop.permute.xlu1 %3960  ;;  %v4207_v53 = vpop.permute.xlu0 %4206  ;;  %v6821_v8 = vld [vmem:[#allocation5 + $0x54] ss:$20 sps:$4 sm:$0xff]  }
 0x389   : > { %3980 = vst.msk [vmem:[#allocation5 + $0x90] sm:$0xf] %vm1598_vm2, %v3961_v37  ;;  %4231 = vst.msk [vmem:[#allocation5 + $0x34] sm:$0xf] %vm1598_vm2, %v4207_v53  ;;  %4795 = vmatprep.mubr.bf16.mxu0 %v6821_v8 }
 0x38a   : > { %4796 = vmatmul.mubr.bf16.gmra.mxu0 %v6819_v6 }
 0x38c   : > { %v4209_v22 = vpop.permute.xlu1 %4208  ;;  %v3835_v50 = vpop.permute.xlu0 %3834  ;;  %v6822_v2 = vld [vmem:[#allocation5 + $0x78] ss:$20 sps:$4 sm:$0xff]  }
 0x38d   : > { %4232 = vst.msk [vmem:[#allocation5 + $0x48] sm:$0xf] %vm1598_vm2, %v4209_v22  ;;  %3853 = vst.msk [vmem:[#allocation5 + $0xa0] sm:$0xf] %vm1598_vm2, %v3835_v50 }
 0x390   : > { %v3963_v45 = vpop.permute.xlu1 %3962  ;;  %v4083_v1 = vpop.permute.xlu0 %4082  ;;  %v6824_v54 = vld [vmem:[#allocation5 + $0x7c] ss:$20 sps:$4 sm:$0xff]  }
 0x391   : > { %3981 = vst.msk [vmem:[#allocation5 + $0xa4] sm:$0xf] %vm1598_vm2, %v3963_v45  ;;  %4105 = vst.msk [vmem:[#allocation5 + $0x58] sm:$0xf] %vm1598_vm2, %v4083_v1  ;;  %4803 = vmatprep.mubr.bf16.mxu0 %v6824_v54  ;;  %v4300_v47 = vld [vmem:[#allocation5 + $0x30] sm:$0xff] }
 0x392   : > { %4804 = vmatmul.mubr.bf16.gmra.mxu0 %v6822_v2 }
 0x394   : > { %v4085_v10 = vpop.permute.xlu1 %4084  ;;  %v4211_v46 = vpop.permute.xlu0 %4210  ;;  %v4303_v12 = vld [vmem:[#allocation5 + $0x44] sm:$0xff] }
 0x395   : > { %v6826_v25 = vld [vmem:[#allocation5 + $0x34] ss:$20 sps:$4 sm:$0xff]   ;;  %4106 = vst.msk [vmem:[#allocation5 + $0x6c] sm:$0xf] %vm1598_vm2, %v4085_v10  ;;  %4233 = vst.msk [vmem:[#allocation5 + $0x5c] sm:$0xf] %vm1598_vm2, %v4211_v46  ;;  %v5671_v61 = vcombine.low %v4300_v47, %v4303_v12 }
 0x396   : > { %4859 = vmatprep.mubr.bf16.mxu1 %v6826_v25 }
 0x397   : > { %4860 = vmatmul.mubr.bf16.gmra.mxu1 %v5671_v61 }
 0x398   : > { %v4213_v56 = vpop.permute.xlu1 %4212  ;;  %v4087_v29 = vpop.permute.xlu0 %4086  ;;  %v4317_v33 = vld [vmem:[#allocation5 + $0xa0] sm:$0xff] }
 0x399   : > { %4234 = vst.msk [vmem:[#allocation5 + $0x70] sm:$0xf] %vm1598_vm2, %v4213_v56  ;;  %4107 = vst.msk [vmem:[#allocation5 + $0x80] sm:$0xf] %vm1598_vm2, %v4087_v29  ;;  %v5684_v55 = vcombine.low %v4317_v33, %v4317_v33  ;;  %v5685_v40 = vcombine.high %v4317_v33, %v4317_v33 }
 0x39b   : > { %4811 = vmatprep.mubr.bf16.mxu0 %v5685_v40  ;;  %v4976_v40 = vld [vmem:[%s8210_s8] sm:$0xf] }
 0x39c   : > { %v4089_v41 = vpop.permute.xlu1 %4088  ;;  %v4215_v18 = vpop.permute.xlu0 %4214  ;;  %4812 = vmatmul.mubr.bf16.gmra.mxu0 %v5684_v55  ;;  %v6831_v15 = vld [vmem:[#allocation5 + $0x58] ss:$20 sps:$4 sm:$0xff]  }
 0x39d   : > { %4108 = vst.msk [vmem:[#allocation5 + $0x94] sm:$0xf] %vm1598_vm2, %v4089_v41  ;;  %4235 = vst.msk [vmem:[#allocation5 + $0x84] sm:$0xf] %vm1598_vm2, %v4215_v18  ;;  %6578 = vmatprep.mubr.msk.bf16.mxu0 %vm6855_vm3, %v6854_v62 }
 0x3a0   : > { %v4217_v14 = vpop.permute.xlu1 %4216  ;;  %v4091_v13 = vpop.permute.xlu0 %4090  ;;  %v6833_v28 = vld [vmem:[#allocation5 + $0x5c] ss:$20 sps:$4 sm:$0xff]  }
 0x3a1   : > { %4236 = vst.msk [vmem:[#allocation5 + $0x98] sm:$0xf] %vm1598_vm2, %v4217_v14  ;;  %4109 = vst.msk [vmem:[#allocation5 + $0xa8] sm:$0xf] %vm1598_vm2, %v4091_v13  ;;  %4867 = vmatprep.mubr.bf16.mxu1 %v6833_v28 }
 0x3a2   : > { %4868 = vmatmul.mubr.bf16.gmra.mxu1 %v6831_v15 }
 0x3a4   : > { %v4219_v32 = vpop.permute.xlu1 %4218  ;;  %6579 = vmatmul.mubr.msk.bf16.vlgmr.msra.gmra.mxu0 %vm607_vm0, %v6834_v21  ;;  %v6835_v20 = vld [vmem:[#allocation5 + $0x80] ss:$20 sps:$4 sm:$0xff]  }
 0x3a5   : > { %4237 = vst.msk [vmem:[#allocation5 + $0xac] sm:$0xf] %vm1598_vm2, %v4219_v32  ;;  %6582 = vmatprep.mubr.msk.bf16.mxu0 %vm6855_vm3, %v6854_v62  ;;  %vm5069_vm2 = vcmask 517120  }
 0x3a8   : > { %v6837_v51 = vld [vmem:[#allocation5 + $0x84] ss:$20 sps:$4 sm:$0xff]  }
 0x3a9   : > { %4875 = vmatprep.mubr.bf16.mxu1 %v6837_v51 }
 0x3aa   : > { %4876 = vmatmul.mubr.bf16.gmra.mxu1 %v6835_v20 }
 0x3ac   : > { %6583 = vmatmul.mubr.msk.bf16.gmra.mxu0 %vm607_vm0, %v6838_v16  ;;  %v4318_v58 = vld [vmem:[#allocation5 + $0xa8] sm:$0xff] }
 0x3ad   : > { %v5687_v3 = vcombine.high %v4318_v58, %v4318_v58  ;;  %6586 = vmatprep.mubr.msk.bf16.mxu0 %vm6855_vm3, %v6854_v62  ;;  %v5686_v4 = vcombine.low %v4318_v58, %v4318_v58 }
 0x3af   : > { %4883 = vmatprep.mubr.bf16.mxu1 %v5687_v3 }
 0x3b2   : > { %4884 = vmatmul.mubr.bf16.gmra.mxu1 %v5686_v4 }
 0x3b3   : > { %6590 = vmatprep.mubr.msk.bf16.mxu1 %vm6855_vm3, %v6854_v62 }
 0x3b4   : > { %6587 = vmatmul.mubr.msk.bf16.gmra.mxu0 %vm607_vm0, %v6841_v11 }
 0x3ba   : > { %6591 = vmatmul.mubr.msk.bf16.vlgmr.msra.gmra.mxu1 %vm607_vm0, %v6842_v9 }
 0x3bb   : > { %6594 = vmatprep.mubr.msk.bf16.mxu1 %vm6855_vm3, %v6854_v62  ;;  %vm5063_vm3 = vcmask 519170  }
 0x3c2   : > { %6595 = vmatmul.mubr.msk.bf16.gmra.mxu1 %vm607_vm0, %v6843_v48  ;;  %vm8246_vm0 = vmor %vm5018_vm12, %vm5019_vm13  ;;  %vm5111_vm13 = vsmask.f32 7942 }
 0x42e   : > { %v6485_v42 = vpop.f32.mrf.mxu0 }
 0x430   : > { %v6486_v24 = vpop.f32.mrf.mxu0 }
 0x431   : > { %v6487_v36 = vadd.f32 %v6486_v24, %v6485_v42 }
 0x432   : > { %v6488_v17 = vpop.f32.mrf.mxu0 }
 0x433   : > { %v4782_v8 = vadd.f32 %v6487_v36, %v8201_v38 }
 0x434   : > { %v6489_v49 = vpop.f32.mrf.mxu0 }
 0x435   : > { %v6490_v22 = vadd.f32 %v6489_v49, %v6488_v17 }
 0x437   : > { %v4785_v46 = vadd.f32 %v6490_v22, %v8201_v38 }
 0x43a   : > { %v6531_v5 = vpop.f32.mrf.mxu1 }
 0x43c   : > { %v6532_v23 = vpop.f32.mrf.mxu1 }
 0x43d   : > { %v6533_v53 = vadd.f32 %v6532_v23, %v6531_v5 }
 0x43e   : > { %v6534_v62 = vpop.f32.mrf.mxu1 }
 0x43f   : > { %v6491_v19 = vpop.f32.mrf.mxu0  ;;  %v4854_v54 = vadd.f32 %v6533_v53, %v4782_v8 }
 0x440   : > { %v6535_v59 = vpop.f32.mrf.mxu1 }
 0x441   : > { %v6492_v26 = vpop.f32.mrf.mxu0  ;;  %v6536_v1 = vadd.f32 %v6535_v59, %v6534_v62 }
 0x442   : > { %v6493_v47 = vadd.f32 %v6492_v26, %v6491_v19 }
 0x443   : > { %v6494_v63 = vpop.f32.mrf.mxu0  ;;  %v4857_v55 = vadd.f32 %v6536_v1, %v4785_v46 }
 0x444   : > { %v4790_v18 = vadd.f32 %v6493_v47, %v8201_v38 }
 0x445   : > { %v6495_v7 = vpop.f32.mrf.mxu0 }
 0x446   : > { %v6496_v14 = vadd.f32 %v6495_v7, %v6494_v63 }
 0x448   : > { %v4793_v4 = vadd.f32 %v6496_v14, %v8201_v38 }
 0x44a   : > { %v6497_v0 = vpop.f32.mrf.mxu0 }
 0x44c   : > { %v6498_v43 = vpop.f32.mrf.mxu0 }
 0x44d   : > { %v6499_v42 = vadd.f32 %v6498_v43, %v6497_v0 }
 0x44e   : > { %v8182_v44 = vpop.f32.mrf.mxu0 }
 0x44f   : > { %v4798_v36 = vadd.f32 %v6499_v42, %v8201_v38 }
 0x450   : > { %v8184_v27 = vpop.f32.mrf.mxu0 }
 0x451   : > { %v6502_v5 = vadd.f32 %v8184_v27, %v8182_v44 }
 0x452   : > { %v8186_v30 = vpop.f32.mrf.mxu0 }
 0x454   : > { %v8188_v60 = vpop.f32.mrf.mxu0 }
 0x455   : > { %v6505_v1 = vadd.f32 %v8188_v60, %v8186_v30 }
 0x456   : > { %v8190_v35 = vpop.f32.mrf.mxu0 }
 0x457   : > { %v6537_v39 = vpop.f32.mrf.mxu1 }
 0x458   : > { %v8192_v57 = vpop.f32.mrf.mxu0 }
 0x459   : > { %v6538_v52 = vpop.f32.mrf.mxu1  ;;  %v6508_v47 = vadd.f32 %v8192_v57, %v8190_v35 }
 0x45a   : > { %v6539_v56 = vadd.f32 %v6538_v52, %v6537_v39 }
 0x45b   : > { %v6540_v31 = vpop.f32.mrf.mxu1 }
 0x45c   : > { %v8195_v34 = vpop.f32.mrf.mxu0  ;;  %v4862_v58 = vadd.f32 %v6539_v56, %v4790_v18  ;;  %v5031_v18 = vld [vmem:[%s8210_s8 + $0x8] sm:$0x7] }
 0x45d   : > { %v6541_v50 = vpop.f32.mrf.mxu1 }
 0x45e   : > { %v8203_v37 = vpop.f32.mrf.mxu0  ;;  %v6542_v32 = vadd.f32 %v6541_v50, %v6540_v31 }
 0x460   : > { %v6512_v6 = vpop.f32.mrf.mxu0  ;;  %v4865_v63 = vadd.f32 %v6542_v32, %v4793_v4 }
 0x462   : > { %v6513_v45 = vpop.f32.mrf.mxu0  ;;  %v6543_v2 = vpop.f32.mrf.mxu1 }
 0x463   : > { %v4801_v45 = vadd.f32 %v6502_v5, %v8201_v38 }
 0x464   : > { %v4925_v10 = vpop.f32.mrf.mxu0  ;;  %v6544_v25 = vpop.f32.mrf.mxu1 }
 0x465   : > { %v4926_v12 = vadd.f32 %v4925_v10, %v4854_v54  ;;  %v6545_v7 = vadd.f32 %v6544_v25, %v6543_v2 }
 0x466   : > { %v6580_v61 = vpop.f32.mrf.mxu0  ;;  %v6546_v33 = vpop.f32.mrf.mxu1 }
 0x467   : > { %v4963_v29 = vmax.f32 %v4926_v12, 0.0  ;;  %v4870_v10 = vadd.f32 %v6545_v7, %v4798_v36 }
 0x468   : > { %v4928_v41 = vpop.f32.mrf.mxu0  ;;  %v6547_v28 = vpop.f32.mrf.mxu1 }
 0x469   : > { %v4972_v13 = vpack.c.bf16 %v4963_v29, %v4963_v29  ;;  %v4929_v15 = vadd.f32 %v4928_v41, %v4857_v55  ;;  %v6548_v31 = vadd.f32 %v6547_v28, %v6546_v33  ;;  %v4806_v28 = vadd.f32 %v6505_v1, %v8201_v38 }
 0x46a   : > { %v6581_v21 = vpop.f32.mrf.mxu0  ;;  %v6549_v16 = vpop.f32.mrf.mxu1 }
 0x46b   : > { %v4977_v20 = vsel %vm4975_vm5, %v4972_v13, %v4976_v40  ;;  %v4964_v51 = vmax.f32 %v4929_v15, 0.0  ;;  %v4873_v35 = vadd.f32 %v6548_v31, %v4801_v45  ;;  %vm5064_vm5 = vsmask.f32 7946 }
 0x46c   : > { %4978 = vst [vmem:[%s8210_s8] sm:$0xf] %v4977_v20  ;;  %v4933_v3 = vpop.f32.mrf.mxu0  ;;  %v6550_v48 = vpop.f32.mrf.mxu1  ;;  %vm8278_vm8 = vmand %vm5063_vm3, %vm5064_vm5 }
 0x46d   : > { %v6018_v11 = vpack.c.bf16 %v4964_v51, %v4964_v51  ;;  %v4934_v9 = vadd.f32 %v4933_v3, %v4862_v58  ;;  %v6551_v56 = vadd.f32 %v6550_v48, %v6549_v16 }
 0x46e   : > { %v6584_v24 = vpop.f32.mrf.mxu0  ;;  %v6552_v26 = vpop.f32.mrf.mxu1 }
 0x46f   : > { %v4989_v17 = vshll.u32 %v6018_v11, 16  ;;  %v4992_v49 = vshrl.u32 %v6018_v11, 16  ;;  %v4965_v19 = vmax.f32 %v4934_v9, 0.0  ;;  %v4878_v42 = vadd.f32 %v6551_v56, %v4806_v28 }
 0x470   : > { %v4936_v23 = vpop.f32.mrf.mxu0  ;;  %v6553_v52 = vpop.f32.mrf.mxu1  ;;  %v4809_v24 = vadd.f32 %v6508_v47, %v8201_v38 }
 0x471   : > { %v4991_v62 = vrot.slane %v4989_v17, 6  ;;  %v4994_v59 = vrot.slane %v4992_v49, 5  ;;  %v6019_v43 = vpack.c.bf16 %v4965_v19, %v4965_v19  ;;  %v4937_v39 = vadd.f32 %v4936_v23, %v4865_v63 }
 0x472   : > { %v6585_v44 = vpop.f32.mrf.mxu0  ;;  %v6555_v50 = vpop.f32.mrf.mxu1  ;;  %v6554_v21 = vadd.f32 %v6553_v52, %v6552_v26  ;;  %v6511_v17 = vadd.f32 %v8203_v37, %v8195_v34 }
 0x473   : > { %v4995_v27 = vor.u32 %v4994_v59, %v4991_v62  ;;  %v5007_v53 = vld [vmem:[%s8210_s8] sm:$0x8]  ;;  %v4998_v6 = vshll.u32 %v6019_v43, 16  ;;  %v5021_v8 = vrot.slane %v6019_v43, 7  ;;  %v4966_v22 = vmax.f32 %v4937_v39, 0.0 }
 0x474   : > { %v5008_v2 = vsel %vm8222_vm11, %v4991_v62, %v5007_v53  ;;  %v4941_v46 = vpop.f32.mrf.mxu0  ;;  %v6556_v60 = vpop.f32.mrf.mxu1  ;;  %v4881_v0 = vadd.f32 %v6554_v21, %v4809_v24  ;;  %v4814_v36 = vadd.f32 %v6511_v17, %v8201_v38  ;;  %vm5110_vm11 = vcmask 519169  }
 0x475   : > { %v4996_v12 = vrot.slane %v4995_v27, 4  ;;  %5009 = vst [vmem:[%s8210_s8] sm:$0x8] %v5008_v2  ;;  %v5000_v25 = vrot.slane %v4998_v6, 6  ;;  %5028 = vst.msk [vmem:[%s8210_s8 + $0x4] sm:$0x8] %vm5004_vm6, %v5021_v8  ;;  %v6021_v30 = vpack.c.bf16 %v4966_v22, %v4966_v22  ;;  %v5022_v61 = vrot.slane %v5021_v8, 4 }
 0x476   : > { %v4942_v33 = vadd.f32 %v4941_v46, %v4870_v10  ;;  %v6588_v55 = vpop.f32.mrf.mxu0  ;;  %v6558_v15 = vpop.f32.mrf.mxu1  ;;  %v6557_v23 = vadd.f32 %v6556_v60, %v6555_v50  ;;  %vm5082_vm6 = vsmask.f32 1280  ;;  %v5084_v8 = vld [vmem:[%s8210_s8 + $0x10] sm:$0x3] }
 0x477   : > { %v5001_v57 = vsel %vm8235_vm15, %v4996_v12, %v5000_v25  ;;  %v5023_v41 = vrot.slane %v6021_v30, 7  ;;  %v5043_v14 = vshrl.u32 %v6021_v30, 16  ;;  %v5046_v13 = vshll.u32 %v6021_v30, 16  ;;  %vm8283_vm4 = vmand %vm5069_vm2, %vm5082_vm6 }
 0x478   : > { %5011 = vst.msk [vmem:[%s8210_s8 + $0x4] sm:$0x7] %vm5010_vm10, %v5001_v57  ;;  %v4967_v32 = vmax.f32 %v4942_v33, 0.0  ;;  %v4944_v20 = vpop.f32.mrf.mxu0  ;;  %v6559_v4 = vpop.f32.mrf.mxu1  ;;  %vm5094_vm10 = vsmask.f32 4368  ;;  %v4886_v1 = vadd.f32 %v6557_v23, %v4814_v36  ;;  %vm5124_vm15 = vcmask 1042432  }
 0x479   : > { %v5024_v51 = vsel %vm8246_vm0, %v5022_v61, %v5023_v41  ;;  %v5045_v16 = vrot.slane %v5043_v14, 4  ;;  %v5048_v58 = vrot.slane %v5046_v13, 5  ;;  %v4945_v3 = vadd.f32 %v4944_v20, %v4873_v35  ;;  %vm5095_vm12 = vmor %vm5093_vm9, %vm5094_vm10  ;;  %v5138_v20 = vld [vmem:[%s8210_s8 + $0x18] sm:$0x1] }
 0x47a   : > { %v5032_v11 = vsel %vm8254_vm1, %v5024_v51, %v5031_v18  ;;  %v6023_v9 = vpack.c.bf16 %v4967_v32, %v4967_v32  ;;  %v6589_v48 = vpop.f32.mrf.mxu0  ;;  %v4949_v26 = vpop.f32.mrf.mxu1  ;;  %vm5125_vm0 = vcmask 1046532   ;;  %vm5112_vm1 = vmand %vm5110_vm11, %vm5111_vm13 }
 0x47b   : > { %5033 = vst [vmem:[%s8210_s8 + $0x8] sm:$0x7] %v5032_v11  ;;  %v5049_v49 = vor.u32 %v5048_v58, %v5045_v16  ;;  %v4968_v19 = vmax.f32 %v4945_v3, 0.0  ;;  %v4950_v7 = vadd.f32 %v4949_v26, %v4878_v42 }
 0x47c   : > { %v5052_v63 = vshll.u32 %v6023_v9, 16  ;;  %v5056_v5 = vshrl.u32 %v6023_v9, 16  ;;  %v6592_v59 = vpop.f32.mrf.mxu1 }
 0x47d   : > { %v6024_v62 = vpack.c.bf16 %v4968_v19, %v4968_v19  ;;  %v5050_v34 = vrot.slane %v5049_v49, 4  ;;  %v4969_v52 = vmax.f32 %v4950_v7, 0.0 }
 0x47e   : > { %v5054_v37 = vrot.slane %v5052_v63, 5  ;;  %v5058_v39 = vrot.slane %v5056_v5, 4  ;;  %v4952_v27 = vpop.f32.mrf.mxu1 }
 0x47f   : > { %v5075_v44 = vrot.slane %v6024_v62, 6  ;;  %v6025_v22 = vpack.c.bf16 %v4969_v52, %v4969_v52  ;;  %v4953_v50 = vadd.f32 %v4952_v27, %v4881_v0 }
 0x480   : > { %v5059_v53 = vor.u32 %v5058_v39, %v5054_v37  ;;  %v6593_v45 = vpop.f32.mrf.mxu1  ;;  %v5055_v2 = vsel %vm8272_vm7, %v5050_v34, %v5054_v37 }
 0x481   : > { %v5076_v38 = vrot.slane %v5075_v44, 4  ;;  %5080 = vst.msk [vmem:[%s8210_s8 + $0xc] sm:$0xc] %vm5063_vm3, %v5075_v44  ;;  %v5097_v46 = vshrl.u32 %v6025_v22, 16  ;;  %v4970_v47 = vmax.f32 %v4953_v50, 0.0  ;;  %v5100_v40 = vshll.u32 %v6025_v22, 16  ;;  %vm5137_vm3 = vmand %vm5116_vm14, %vm5093_vm9 }
 0x482   : > { %v5060_v54 = vrot.slane %v5059_v53, 4  ;;  %v5066_v10 = vld [vmem:[%s8210_s8 + $0x8] sm:$0xc]  ;;  %v4957_v30 = vpop.f32.mrf.mxu1 }
 0x483   : > { %v5067_v12 = vsel %vm8278_vm8, %v5055_v2, %v5066_v10  ;;  %v5085_v25 = vsel %vm8283_vm4, %v5076_v38, %v5084_v8  ;;  %v5099_v60 = vrot.slane %v5097_v46, 7  ;;  %v6026_v61 = vpack.c.bf16 %v4970_v47, %v4970_v47 }
 0x484   : > { %5070 = vst.msk [vmem:[%s8210_s8 + $0xc] sm:$0x3] %vm5069_vm2, %v5060_v54  ;;  %5068 = vst [vmem:[%s8210_s8 + $0x8] sm:$0xc] %v5067_v12  ;;  %v4958_v56 = vadd.f32 %v4957_v30, %v4886_v1  ;;  %v6596_v29 = vpop.f32.mrf.mxu1 }
 0x485   : > { %5086 = vst [vmem:[%s8210_s8 + $0x10] sm:$0x3] %v5085_v25  ;;  %v5103_v33 = vrot.slane %v5099_v60, 4  ;;  %v5105_v55 = vshll.u32 %v6026_v61, 16  ;;  %v5102_v13 = vor.u32 %v5100_v40, %v5099_v60  ;;  %vm5126_vm2 = vmor %vm5124_vm15, %vm5125_vm0  ;;  %v5741_v28 = vrot.slane %v6026_v61, 9 }
 0x486   : > { %v4971_v35 = vmax.f32 %v4958_v56, 0.0  ;;  %v4960_v57 = vpop.f32.mrf.mxu1 }
 0x487   : > { %v5107_v41 = vsel %vm5095_vm12, %v5103_v33, %v5105_v55 }
 0x488   : > { %5117 = vst.msk [vmem:[%s8210_s8 + $0x14] sm:$0x1] %vm5116_vm14, %v5107_v41  ;;  %v6028_v18 = vpack.c.bf16 %v4971_v35, %v4971_v35  ;;  %v6597_v14 = vpop.f32.mrf.mxu1 }
 0x48a   : > { %v5129_v21 = vrot.slane %v6028_v18, 5 }
 0x48c   : > { %v5113_v15 = vld [vmem:[%s8210_s8 + $0x10] sm:$0xe]  ;;  %v5130_v51 = vsel %vm5126_vm2, %v5741_v28, %v5129_v21  ;;  %v5131_v16 = vrot.slane %v5129_v21, 4 }
 0x48d   : > { %v5114_v32 = vsel %vm5112_vm1, %v5102_v13, %v5113_v15  ;;  %5135 = vst.msk [vmem:[%s8210_s8 + $0x14] sm:$0xe] %vm5110_vm11, %v5130_v51 }
 0x48e   : > { %5115 = vst [vmem:[%s8210_s8 + $0x10] sm:$0xe] %v5114_v32  ;;  %v5139_v58 = vsel %vm5137_vm3, %v5131_v16, %v5138_v20 }
 0x48f   : > { %5140 = vst [vmem:[%s8210_s8 + $0x18] sm:$0x1] %v5139_v58 }
 0x490 PF: > { %s17_s24 = sadd.s32 1, %s6851_s24  }
 0x491   : > { %p14_p5 = scmp.ge.s32.totalorder %s17_s24, 4  }
 0x493   :  { %16 = sbr.rel (!%p14_p5) target bundleno = 1 (0x1), region = 78 }

// kernel: dqn_forward.3
= control target key start
LH: loop header
LB: loop body
LE: loop exit
PB: predicated region body
PF: predicated region fallthrough
CT: control target
= control target key end

     0   :  { %v812_v36 = vlaneseq  ;;  %v8494_v37 = vmov 1966171168   ;;  %vm4941_vm0 = vcmask 523264   ;;  %s11241_s0 = inlined_call_operand.vmem [shape: bf16[2,3136], index: 0, kind: input, shape index: {}]   ;;  %s11242_s1 = inlined_call_operand.vmem [shape: bf16[3136,512], index: 1, kind: input, shape index: {}]   ;;  %s11243_s2 = inlined_call_operand.vmem [shape: f32[1,512], index: 2, kind: input, shape index: {}]   ;;  %s11244_s3 = inlined_call_operand.vmem [shape: bf16[512,6], index: 3, kind: input, shape index: {}]   ;;  %s11245_s4 = inlined_call_operand.vmem [shape: f32[1,6], index: 4, kind: input, shape index: {}]   ;;  %s11246_s5 = inlined_call_operand.hbm [shape: f32[2,6], index: 5, kind: output, shape index: {}]  }
   0x1   :  { %v7256_v0 = vld [vmem:[%s11242_s1 + $0xe4] ss:$16 sps:$4 sm:$0xff]   ;;  %v7260_v2 = vld [vmem:[%s11242_s1 + $0xe0] ss:$16 sps:$4 sm:$0xff]   ;;  %v838_v38 = vunpack.c.l.s4 %v8494_v37 }
   0x2   :  { %v7258_v1 = vld [vmem:[%s11242_s1 + $0x2e4] ss:$16 sps:$4 sm:$0xff]   ;;  %4945 = vmatprep.subr.bf16.mxu0 %v7256_v0  ;;  %v7261_v3 = vld [vmem:[%s11242_s1 + $0x2e0] ss:$16 sps:$4 sm:$0xff]   ;;  %v8644_v42 = vshrl.u32 %v812_v36, 7 }
   0x3   :  { %4986 = vmatprep.subr.bf16.mxu1 %v7258_v1  ;;  %v7262_v4 = vld [vmem:[%s11242_s1 + $0xc4] ss:$16 sps:$4 sm:$0xff]   ;;  %4946 = vmatpush1.bf16.msra.mxu0 %v7260_v2  ;;  %v7266_v6 = vld [vmem:[%s11242_s1 + $0xc0] ss:$16 sps:$4 sm:$0xff]   ;;  %v839_v43 = vunpack.c.0.s8 %v838_v38 }
   0x4   :  { %4987 = vmatpush1.bf16.msra.mxu1 %v7261_v3  ;;  %v7264_v5 = vld [vmem:[%s11242_s1 + $0x2c4] ss:$16 sps:$4 sm:$0xff]   ;;  %4947 = vmatprep.subr.bf16.mxu0 %v7262_v4  ;;  %v7267_v7 = vld [vmem:[%s11242_s1 + $0x2c0] ss:$16 sps:$4 sm:$0xff]  }
   0x5   :  { %4988 = vmatprep.subr.bf16.mxu1 %v7264_v5  ;;  %v7268_v8 = vld [vmem:[%s11242_s1 + $0xa4] ss:$16 sps:$4 sm:$0xff]   ;;  %v7272_v10 = vld [vmem:[%s11242_s1 + $0xa0] ss:$16 sps:$4 sm:$0xff]   ;;  %v8662_v49 = vsub.s32 %v839_v43, %v8644_v42 }
   0x6   :  { %v7270_v9 = vld [vmem:[%s11242_s1 + $0x2a4] ss:$16 sps:$4 sm:$0xff]   ;;  %v7273_v11 = vld [vmem:[%s11242_s1 + $0x2a0] ss:$16 sps:$4 sm:$0xff]  }
   0x7   :  { %4948 = vmatpush1.bf16.msra.mxu0 %v7266_v6  ;;  %v7274_v12 = vld [vmem:[%s11242_s1 + $0x84] ss:$16 sps:$4 sm:$0xff]   ;;  %v7278_v14 = vld [vmem:[%s11242_s1 + $0x80] ss:$16 sps:$4 sm:$0xff]  }
   0x8   :  { %4989 = vmatpush1.bf16.msra.mxu1 %v7267_v7  ;;  %4949 = vmatprep.subr.bf16.mxu0 %v7268_v8  ;;  %v7276_v13 = vld [vmem:[%s11242_s1 + $0x284] ss:$16 sps:$4 sm:$0xff]   ;;  %v7279_v15 = vld [vmem:[%s11242_s1 + $0x280] ss:$16 sps:$4 sm:$0xff]  }
   0x9   :  { %4990 = vmatprep.subr.bf16.mxu1 %v7270_v9  ;;  %v7280_v16 = vld [vmem:[%s11242_s1 + $0x64] ss:$16 sps:$4 sm:$0xff]   ;;  %v7284_v18 = vld [vmem:[%s11242_s1 + $0x60] ss:$16 sps:$4 sm:$0xff]  }
   0xa   :  { %v7282_v17 = vld [vmem:[%s11242_s1 + $0x264] ss:$16 sps:$4 sm:$0xff]   ;;  %v7285_v19 = vld [vmem:[%s11242_s1 + $0x260] ss:$16 sps:$4 sm:$0xff]  }
   0xb   :  { %4950 = vmatpush1.bf16.msra.mxu0 %v7272_v10  ;;  %v7286_v20 = vld [vmem:[%s11242_s1 + $0x44] ss:$16 sps:$4 sm:$0xff]   ;;  %v7290_v22 = vld [vmem:[%s11242_s1 + $0x40] ss:$16 sps:$4 sm:$0xff]  }
   0xc   :  { %4991 = vmatpush1.bf16.msra.mxu1 %v7273_v11  ;;  %4951 = vmatprep.subr.bf16.mxu0 %v7274_v12  ;;  %v7288_v21 = vld [vmem:[%s11242_s1 + $0x244] ss:$16 sps:$4 sm:$0xff]   ;;  %v7291_v23 = vld [vmem:[%s11242_s1 + $0x240] ss:$16 sps:$4 sm:$0xff]  }
   0xd   :  { %4992 = vmatprep.subr.bf16.mxu1 %v7276_v13  ;;  %v7292_v24 = vld [vmem:[%s11242_s1 + $0x24] ss:$16 sps:$4 sm:$0xff]   ;;  %v7296_v26 = vld [vmem:[%s11242_s1 + $0x20] ss:$16 sps:$4 sm:$0xff]  }
   0xe   :  { %v7294_v25 = vld [vmem:[%s11242_s1 + $0x224] ss:$16 sps:$4 sm:$0xff]   ;;  %v7297_v27 = vld [vmem:[%s11242_s1 + $0x220] ss:$16 sps:$4 sm:$0xff]  }
   0xf   :  { %4952 = vmatpush1.bf16.msra.mxu0 %v7278_v14  ;;  %v7298_v28 = vld [vmem:[%s11242_s1 + $0x4] ss:$16 sps:$4 sm:$0xff]   ;;  %v7302_v30 = vld [vmem:[%s11242_s1] ss:$16 sps:$4 sm:$0xff]  }
  0x10   :  { %4993 = vmatpush1.bf16.msra.mxu1 %v7279_v15  ;;  %4953 = vmatprep.subr.bf16.mxu0 %v7280_v16  ;;  %v7300_v29 = vld [vmem:[%s11242_s1 + $0x204] ss:$16 sps:$4 sm:$0xff]   ;;  %v7303_v31 = vld [vmem:[%s11242_s1 + $0x200] ss:$16 sps:$4 sm:$0xff]  }
  0x11   :  { %4994 = vmatprep.subr.bf16.mxu1 %v7282_v17  ;;  %v7304_v32 = vld [vmem:[%s11242_s1 + $0x1e4] ss:$16 sps:$4 sm:$0xff]   ;;  %v7308_v34 = vld [vmem:[%s11242_s1 + $0x1e0] ss:$16 sps:$4 sm:$0xff]  }
  0x12   :  { %v7306_v33 = vld [vmem:[%s11242_s1 + $0x3e4] ss:$16 sps:$4 sm:$0xff]   ;;  %v7309_v35 = vld [vmem:[%s11242_s1 + $0x3e0] ss:$16 sps:$4 sm:$0xff]  }
  0x13   :  { %4954 = vmatpush1.bf16.msra.mxu0 %v7284_v18  ;;  %v7310_v39 = vld [vmem:[%s11242_s1 + $0x1c4] ss:$16 sps:$4 sm:$0xff]   ;;  %v7314_v41 = vld [vmem:[%s11242_s1 + $0x1c0] ss:$16 sps:$4 sm:$0xff]  }
  0x14   :  { %4995 = vmatpush1.bf16.msra.mxu1 %v7285_v19  ;;  %4955 = vmatprep.subr.bf16.mxu0 %v7286_v20  ;;  %v7312_v40 = vld [vmem:[%s11242_s1 + $0x3c4] ss:$16 sps:$4 sm:$0xff]   ;;  %v7315_v44 = vld [vmem:[%s11242_s1 + $0x3c0] ss:$16 sps:$4 sm:$0xff]  }
  0x15   :  { %4996 = vmatprep.subr.bf16.mxu1 %v7288_v21  ;;  %v7316_v45 = vld [vmem:[%s11242_s1 + $0x1a4] ss:$16 sps:$4 sm:$0xff]   ;;  %v7320_v47 = vld [vmem:[%s11242_s1 + $0x1a0] ss:$16 sps:$4 sm:$0xff]  }
  0x16   :  { %v7318_v46 = vld [vmem:[%s11242_s1 + $0x3a4] ss:$16 sps:$4 sm:$0xff]   ;;  %v7321_v48 = vld [vmem:[%s11242_s1 + $0x3a0] ss:$16 sps:$4 sm:$0xff]  }
  0x17   :  { %4956 = vmatpush1.bf16.msra.mxu0 %v7290_v22  ;;  %v7322_v50 = vld [vmem:[%s11242_s1 + $0x184] ss:$16 sps:$4 sm:$0xff]   ;;  %v7326_v53 = vld [vmem:[%s11242_s1 + $0x180] ss:$16 sps:$4 sm:$0xff]  }
  0x18   :  { %4997 = vmatpush1.bf16.msra.mxu1 %v7291_v23  ;;  %4957 = vmatprep.subr.bf16.mxu0 %v7292_v24  ;;  %v7324_v51 = vld [vmem:[%s11242_s1 + $0x384] ss:$16 sps:$4 sm:$0xff]   ;;  %v7327_v55 = vld [vmem:[%s11242_s1 + $0x380] ss:$16 sps:$4 sm:$0xff]  }
  0x19   :  { %4998 = vmatprep.subr.bf16.mxu1 %v7294_v25  ;;  %v22_v52 = vld [vmem:[%s11241_s0] sm:$0xff] }
  0x1a   :  { %v843_v54 = vrot.slane %v22_v52, %v8662_v49  ;;  %v7328_v56 = vld [vmem:[%s11242_s1 + $0x164] ss:$16 sps:$4 sm:$0xff]   ;;  %v7332_v59 = vld [vmem:[%s11242_s1 + $0x160] ss:$16 sps:$4 sm:$0xff]   ;;  %v836_v1 = vcombine.high %v22_v52, %v22_v52 }
  0x1b   :  { %4958 = vmatpush1.bf16.msra.mxu0 %v7296_v26  ;;  %v7330_v57 = vld [vmem:[%s11242_s1 + $0x364] ss:$16 sps:$4 sm:$0xff]   ;;  %v7333_v61 = vld [vmem:[%s11242_s1 + $0x360] ss:$16 sps:$4 sm:$0xff]  }
  0x1c   :  { %4999 = vmatpush1.bf16.msra.mxu1 %v7297_v27  ;;  %4959 = vmatprep.subr.bf16.mxu0 %v7298_v28  ;;  %v851_v58 = vcombine.high %v843_v54, %v843_v54  ;;  %v7334_v62 = vld [vmem:[%s11242_s1 + $0x144] ss:$16 sps:$4 sm:$0xff]   ;;  %v7338_v2 = vld [vmem:[%s11242_s1 + $0x140] ss:$16 sps:$4 sm:$0xff]   ;;  %v8720_v6 = vrot.slane %v836_v1, %v8662_v49  ;;  %v8740_v13 = vrot.slane %v843_v54, %v8662_v49 }
  0x1d   :  { %5000 = vmatprep.subr.bf16.mxu1 %v7300_v29  ;;  %v7336_v63 = vld [vmem:[%s11242_s1 + $0x344] ss:$16 sps:$4 sm:$0xff]   ;;  %v7339_v3 = vld [vmem:[%s11242_s1 + $0x340] ss:$16 sps:$4 sm:$0xff]  }
  0x1e   :  { %v8690_v60 = vrot.slane %v851_v58, %v8662_v49  ;;  %v7340_v4 = vld [vmem:[%s11242_s1 + $0x124] ss:$16 sps:$4 sm:$0xff]   ;;  %v7344_v7 = vld [vmem:[%s11242_s1 + $0x120] ss:$16 sps:$4 sm:$0xff]   ;;  %v852_v11 = vcombine.high %v8720_v6, %v8720_v6  ;;  %v8756_v18 = vcombine.high %v8740_v13, %v8740_v13 }
  0x1f   :  { %4960 = vmatpush1.bf16.msra.mxu0 %v7302_v30  ;;  %v7342_v5 = vld [vmem:[%s11242_s1 + $0x324] ss:$16 sps:$4 sm:$0xff]   ;;  %v7345_v8 = vld [vmem:[%s11242_s1 + $0x320] ss:$16 sps:$4 sm:$0xff]  }
  0x20   :  { %5001 = vmatpush1.bf16.msra.mxu1 %v7303_v31  ;;  %4961 = vmatprep.subr.bf16.mxu0 %v7304_v32  ;;  %v8703_v0 = vcombine.high %v8690_v60, %v8690_v60  ;;  %v7346_v9 = vld [vmem:[%s11242_s1 + $0x104] ss:$16 sps:$4 sm:$0xff]   ;;  %v7350_v12 = vld [vmem:[%s11242_s1 + $0x100] ss:$16 sps:$4 sm:$0xff]   ;;  %v8752_v17 = vrot.slane %v852_v11, %v8662_v49 }
  0x21   :  { %5002 = vmatprep.subr.bf16.mxu1 %v7306_v33  ;;  %4977 = vmatprep.mubr.bf16.mxu0 %v8690_v60  ;;  %v7348_v10 = vld [vmem:[%s11242_s1 + $0x304] ss:$16 sps:$4 sm:$0xff]   ;;  %v7351_v14 = vld [vmem:[%s11242_s1 + $0x300] ss:$16 sps:$4 sm:$0xff]  }
  0x22   :  { %5018 = vmatprep.mubr.bf16.mxu1 %v8703_v0  ;;  %v7354_v15 = vld [vmem:[%s11242_s1 + $0x4e4] ss:$16 sps:$4 sm:$0xff]   ;;  %v7352_v19 = vld [vmem:[%s11242_s1 + $0x4e0] ss:$16 sps:$4 sm:$0xff]   ;;  %v8772_v23 = vcombine.high %v8752_v17, %v8752_v17 }
  0x23   :  { %4962 = vmatpush2.bf16.msra.mxu0 %v7308_v34  ;;  %v7357_v16 = vld [vmem:[%s11242_s1 + $0x6e4] ss:$16 sps:$4 sm:$0xff]   ;;  %v7355_v20 = vld [vmem:[%s11242_s1 + $0x6e0] ss:$16 sps:$4 sm:$0xff]  }
  0x24   :  { %5003 = vmatpush2.bf16.msra.mxu1 %v7309_v35  ;;  %4963 = vmatprep.subr.bf16.mxu0 %v7310_v39  ;;  %v7360_v21 = vld [vmem:[%s11242_s1 + $0x4c4] ss:$16 sps:$4 sm:$0xff]   ;;  %v7358_v24 = vld [vmem:[%s11242_s1 + $0x4c0] ss:$16 sps:$4 sm:$0xff]  }
  0x25   :  { %5004 = vmatprep.subr.bf16.mxu1 %v7312_v40  ;;  %v7363_v22 = vld [vmem:[%s11242_s1 + $0x6c4] ss:$16 sps:$4 sm:$0xff]   ;;  %v7361_v25 = vld [vmem:[%s11242_s1 + $0x6c0] ss:$16 sps:$4 sm:$0xff]  }
  0x26   :  { %v7366_v26 = vld [vmem:[%s11242_s1 + $0x4a4] ss:$16 sps:$4 sm:$0xff]   ;;  %v7364_v28 = vld [vmem:[%s11242_s1 + $0x4a0] ss:$16 sps:$4 sm:$0xff]  }
  0x27   :  { %4964 = vmatpush2.bf16.msra.mxu0 %v7314_v41  ;;  %v7369_v27 = vld [vmem:[%s11242_s1 + $0x6a4] ss:$16 sps:$4 sm:$0xff]   ;;  %v7367_v29 = vld [vmem:[%s11242_s1 + $0x6a0] ss:$16 sps:$4 sm:$0xff]  }
  0x28   :  { %5005 = vmatpush2.bf16.msra.mxu1 %v7315_v44  ;;  %4965 = vmatprep.subr.bf16.mxu0 %v7316_v45  ;;  %v7372_v30 = vld [vmem:[%s11242_s1 + $0x484] ss:$16 sps:$4 sm:$0xff]   ;;  %v7370_v32 = vld [vmem:[%s11242_s1 + $0x480] ss:$16 sps:$4 sm:$0xff]  }
  0x29   :  { %5006 = vmatprep.subr.bf16.mxu1 %v7318_v46  ;;  %v7375_v31 = vld [vmem:[%s11242_s1 + $0x684] ss:$16 sps:$4 sm:$0xff]   ;;  %v7373_v33 = vld [vmem:[%s11242_s1 + $0x680] ss:$16 sps:$4 sm:$0xff]  }
  0x2a   :  { %v7378_v34 = vld [vmem:[%s11242_s1 + $0x464] ss:$16 sps:$4 sm:$0xff]   ;;  %v7376_v36 = vld [vmem:[%s11242_s1 + $0x460] ss:$16 sps:$4 sm:$0xff]  }
  0x2b   :  { %4966 = vmatpush2.bf16.msra.mxu0 %v7320_v47  ;;  %v7381_v35 = vld [vmem:[%s11242_s1 + $0x664] ss:$16 sps:$4 sm:$0xff]   ;;  %v7379_v37 = vld [vmem:[%s11242_s1 + $0x660] ss:$16 sps:$4 sm:$0xff]  }
  0x2c   :  { %5007 = vmatpush2.bf16.msra.mxu1 %v7321_v48  ;;  %4967 = vmatprep.subr.bf16.mxu0 %v7322_v50  ;;  %v7384_v38 = vld [vmem:[%s11242_s1 + $0x444] ss:$16 sps:$4 sm:$0xff]   ;;  %v7382_v40 = vld [vmem:[%s11242_s1 + $0x440] ss:$16 sps:$4 sm:$0xff]  }
  0x2d   :  { %5008 = vmatprep.subr.bf16.mxu1 %v7324_v51  ;;  %v7387_v39 = vld [vmem:[%s11242_s1 + $0x644] ss:$16 sps:$4 sm:$0xff]   ;;  %v7385_v41 = vld [vmem:[%s11242_s1 + $0x640] ss:$16 sps:$4 sm:$0xff]  }
  0x2e   :  { %v7390_v43 = vld [vmem:[%s11242_s1 + $0x424] ss:$16 sps:$4 sm:$0xff]   ;;  %v7388_v45 = vld [vmem:[%s11242_s1 + $0x420] ss:$16 sps:$4 sm:$0xff]  }
  0x2f   :  { %4968 = vmatpush2.bf16.msra.mxu0 %v7326_v53  ;;  %v7393_v44 = vld [vmem:[%s11242_s1 + $0x624] ss:$16 sps:$4 sm:$0xff]   ;;  %v7391_v46 = vld [vmem:[%s11242_s1 + $0x620] ss:$16 sps:$4 sm:$0xff]  }
  0x30   :  { %5009 = vmatpush2.bf16.msra.mxu1 %v7327_v55  ;;  %4969 = vmatprep.subr.bf16.mxu0 %v7328_v56  ;;  %v7396_v47 = vld [vmem:[%s11242_s1 + $0x404] ss:$16 sps:$4 sm:$0xff]   ;;  %v7394_v50 = vld [vmem:[%s11242_s1 + $0x400] ss:$16 sps:$4 sm:$0xff]  }
  0x31   :  { %5010 = vmatprep.subr.bf16.mxu1 %v7330_v57  ;;  %v7399_v48 = vld [vmem:[%s11242_s1 + $0x604] ss:$16 sps:$4 sm:$0xff]   ;;  %v7397_v51 = vld [vmem:[%s11242_s1 + $0x600] ss:$16 sps:$4 sm:$0xff]  }
  0x32   :  { %v7402_v52 = vld [vmem:[%s11242_s1 + $0x5e4] ss:$16 sps:$4 sm:$0xff]   ;;  %v7400_v54 = vld [vmem:[%s11242_s1 + $0x5e0] ss:$16 sps:$4 sm:$0xff]  }
  0x33   :  { %4970 = vmatpush2.bf16.msra.mxu0 %v7332_v59  ;;  %v7405_v53 = vld [vmem:[%s11242_s1 + $0x7e4] ss:$16 sps:$4 sm:$0xff]   ;;  %v7403_v55 = vld [vmem:[%s11242_s1 + $0x7e0] ss:$16 sps:$4 sm:$0xff]  }
  0x34   :  { %5011 = vmatpush2.bf16.msra.mxu1 %v7333_v61  ;;  %4971 = vmatprep.subr.bf16.mxu0 %v7334_v62  ;;  %v7408_v56 = vld [vmem:[%s11242_s1 + $0x5c4] ss:$16 sps:$4 sm:$0xff]   ;;  %v7406_v58 = vld [vmem:[%s11242_s1 + $0x5c0] ss:$16 sps:$4 sm:$0xff]  }
  0x35   :  { %5012 = vmatprep.subr.bf16.mxu1 %v7336_v63  ;;  %v7411_v57 = vld [vmem:[%s11242_s1 + $0x7c4] ss:$16 sps:$4 sm:$0xff]   ;;  %v7409_v59 = vld [vmem:[%s11242_s1 + $0x7c0] ss:$16 sps:$4 sm:$0xff]  }
  0x36   :  { %v7414_v61 = vld [vmem:[%s11242_s1 + $0x5a4] ss:$16 sps:$4 sm:$0xff]   ;;  %v7412_v63 = vld [vmem:[%s11242_s1 + $0x5a0] ss:$16 sps:$4 sm:$0xff]  }
  0x37   :  { %4972 = vmatpush2.bf16.msra.mxu0 %v7338_v2  ;;  %v7417_v62 = vld [vmem:[%s11242_s1 + $0x7a4] ss:$16 sps:$4 sm:$0xff]   ;;  %v7415_v1 = vld [vmem:[%s11242_s1 + $0x7a0] ss:$16 sps:$4 sm:$0xff]  }
  0x38   :  { %5013 = vmatpush2.bf16.msra.mxu1 %v7339_v3  ;;  %4973 = vmatprep.subr.bf16.mxu0 %v7340_v4  ;;  %v7420_v2 = vld [vmem:[%s11242_s1 + $0x584] ss:$16 sps:$4 sm:$0xff]   ;;  %v7418_v4 = vld [vmem:[%s11242_s1 + $0x580] ss:$16 sps:$4 sm:$0xff]  }
  0x39   :  { %5014 = vmatprep.subr.bf16.mxu1 %v7342_v5  ;;  %v7423_v3 = vld [vmem:[%s11242_s1 + $0x784] ss:$16 sps:$4 sm:$0xff]   ;;  %v7421_v5 = vld [vmem:[%s11242_s1 + $0x780] ss:$16 sps:$4 sm:$0xff]  }
  0x3a   :  { %v7432_v11 = vld [vmem:[%s11242_s1 + $0x544] ss:$16 sps:$4 sm:$0xff]  }
  0x3b   :  { %4974 = vmatpush2.bf16.msra.mxu0 %v7344_v7  ;;  %v7426_v7 = vld [vmem:[%s11242_s1 + $0x564] ss:$16 sps:$4 sm:$0xff]  }
  0x3c   :  { %5015 = vmatpush2.bf16.msra.mxu1 %v7345_v8  ;;  %4975 = vmatprep.subr.bf16.mxu0 %v7346_v9  ;;  %v7429_v8 = vld [vmem:[%s11242_s1 + $0x764] ss:$16 sps:$4 sm:$0xff]   ;;  %v7424_v9 = vld [vmem:[%s11242_s1 + $0x560] ss:$16 sps:$4 sm:$0xff]  }
  0x3d   :  { %5016 = vmatprep.subr.bf16.mxu1 %v7348_v10  ;;  %v7427_v10 = vld [vmem:[%s11242_s1 + $0x760] ss:$16 sps:$4 sm:$0xff]  }
  0x3f   :  { %4976 = vmatpush2.bf16.msra.mxu0 %v7350_v12  ;;  %v7435_v12 = vld [vmem:[%s11242_s1 + $0x744] ss:$16 sps:$4 sm:$0xff]  }
  0x40   :  { %5017 = vmatpush2.bf16.msra.mxu1 %v7351_v14  ;;  %5027 = vmatprep.subr.bf16.mxu0 %v7354_v15  ;;  %v7430_v14 = vld [vmem:[%s11242_s1 + $0x540] ss:$16 sps:$4 sm:$0xff]  }
  0x41   :  { %5068 = vmatprep.subr.bf16.mxu1 %v7357_v16  ;;  %v7433_v15 = vld [vmem:[%s11242_s1 + $0x740] ss:$16 sps:$4 sm:$0xff]   ;;  %v7438_v16 = vld [vmem:[%s11242_s1 + $0x524] ss:$16 sps:$4 sm:$0xff]  }
  0x42   :  { %4978 = vmatmul.mubr.bf16.vlgmr.msra.gmra.mxu0 %v8740_v13 }
  0x43   :  { %5019 = vmatmul.mubr.bf16.vlgmr.msra.gmra.mxu1 %v8756_v18  ;;  %5028 = vmatpush1.bf16.msra.mxu0 %v7352_v19  ;;  %v7441_v19 = vld [vmem:[%s11242_s1 + $0x724] ss:$16 sps:$4 sm:$0xff]  }
  0x44   :  { %5069 = vmatpush1.bf16.msra.mxu1 %v7355_v20  ;;  %5029 = vmatprep.subr.bf16.mxu0 %v7360_v21  ;;  %v7436_v20 = vld [vmem:[%s11242_s1 + $0x520] ss:$16 sps:$4 sm:$0xff]  }
  0x45   :  { %5070 = vmatprep.subr.bf16.mxu1 %v7363_v22  ;;  %5059 = vmatprep.mubr.bf16.mxu0 %v8752_v17  ;;  %v7439_v21 = vld [vmem:[%s11242_s1 + $0x720] ss:$16 sps:$4 sm:$0xff]   ;;  %v7444_v22 = vld [vmem:[%s11242_s1 + $0x504] ss:$16 sps:$4 sm:$0xff]  }
  0x46   :  { %5100 = vmatprep.mubr.bf16.mxu1 %v8772_v23 }
  0x47   :  { %5030 = vmatpush1.bf16.msra.mxu0 %v7358_v24  ;;  %v7447_v24 = vld [vmem:[%s11242_s1 + $0x704] ss:$16 sps:$4 sm:$0xff]  }
  0x48   :  { %5071 = vmatpush1.bf16.msra.mxu1 %v7361_v25  ;;  %5031 = vmatprep.subr.bf16.mxu0 %v7366_v26  ;;  %v7442_v25 = vld [vmem:[%s11242_s1 + $0x500] ss:$16 sps:$4 sm:$0xff]   ;;  %v8951_v26 = vrot.slane %v8720_v6, %v8662_v49 }
  0x49   :  { %5072 = vmatprep.subr.bf16.mxu1 %v7369_v27  ;;  %v7445_v27 = vld [vmem:[%s11242_s1 + $0x700] ss:$16 sps:$4 sm:$0xff]  }
  0x4a   :  { %v8964_v6 = vcombine.high %v8951_v26, %v8951_v26 }
  0x4b   :  { %5032 = vmatpush1.bf16.msra.mxu0 %v7364_v28  ;;  %v7451_v28 = vld [vmem:[%s11242_s1 + $0x8e4] ss:$16 sps:$4 sm:$0xff]  }
  0x4c   :  { %5073 = vmatpush1.bf16.msra.mxu1 %v7367_v29  ;;  %5033 = vmatprep.subr.bf16.mxu0 %v7372_v30  ;;  %v7454_v29 = vld [vmem:[%s11242_s1 + $0xae4] ss:$16 sps:$4 sm:$0xff]   ;;  %v7449_v30 = vld [vmem:[%s11242_s1 + $0x8e0] ss:$16 sps:$4 sm:$0xff]  }
  0x4d   :  { %5074 = vmatprep.subr.bf16.mxu1 %v7375_v31  ;;  %v7452_v31 = vld [vmem:[%s11242_s1 + $0xae0] ss:$16 sps:$4 sm:$0xff]  }
  0x4f   :  { %5034 = vmatpush1.bf16.msra.mxu0 %v7370_v32  ;;  %v8975_v32 = vld [vmem:[%s11241_s0 + $0x8] sm:$0xff] }
  0x50   :  { %5075 = vmatpush1.bf16.msra.mxu1 %v7373_v33  ;;  %5035 = vmatprep.subr.bf16.mxu0 %v7378_v34  ;;  %v7457_v33 = vld [vmem:[%s11242_s1 + $0x8c4] ss:$16 sps:$4 sm:$0xff]  }
  0x51   :  { %5076 = vmatprep.subr.bf16.mxu1 %v7381_v35  ;;  %v7460_v34 = vld [vmem:[%s11242_s1 + $0xac4] ss:$16 sps:$4 sm:$0xff]   ;;  %v8985_v35 = vrot.slane %v8975_v32, %v8662_v49 }
  0x53   :  { %5036 = vmatpush1.bf16.msra.mxu0 %v7376_v36  ;;  %v900_v36 = vcombine.high %v8985_v35, %v8985_v35 }
  0x54   :  { %5077 = vmatpush1.bf16.msra.mxu1 %v7379_v37  ;;  %5037 = vmatprep.subr.bf16.mxu0 %v7384_v38  ;;  %v7455_v37 = vld [vmem:[%s11242_s1 + $0x8c0] ss:$16 sps:$4 sm:$0xff]  }
  0x55   :  { %5078 = vmatprep.subr.bf16.mxu1 %v7387_v39  ;;  %v7458_v38 = vld [vmem:[%s11242_s1 + $0xac0] ss:$16 sps:$4 sm:$0xff]   ;;  %v7463_v39 = vld [vmem:[%s11242_s1 + $0x8a4] ss:$16 sps:$4 sm:$0xff]  }
  0x57   :  { %5038 = vmatpush1.bf16.msra.mxu0 %v7382_v40  ;;  %v7466_v40 = vld [vmem:[%s11242_s1 + $0xaa4] ss:$16 sps:$4 sm:$0xff]  }
  0x58   :  { %5079 = vmatpush1.bf16.msra.mxu1 %v7385_v41  ;;  %5039 = vmatprep.subr.bf16.mxu0 %v7390_v43  ;;  %v9004_v41 = vrot.slane %v900_v36, %v8662_v49  ;;  %v7527_v36 = vld [vmem:[%s11242_s1 + $0x940] ss:$16 sps:$4 sm:$0xff]  }
  0x59   :  { %5080 = vmatprep.subr.bf16.mxu1 %v7393_v44  ;;  %v7461_v44 = vld [vmem:[%s11242_s1 + $0x8a0] ss:$16 sps:$4 sm:$0xff]  }
  0x5a   :  { %v9009_v43 = vcombine.high %v9004_v41, %v9004_v41 }
  0x5b   :  { %5040 = vmatpush1.bf16.msra.mxu0 %v7388_v45  ;;  %v7464_v45 = vld [vmem:[%s11242_s1 + $0xaa0] ss:$16 sps:$4 sm:$0xff]  }
  0x5c   :  { %5081 = vmatpush1.bf16.msra.mxu1 %v7391_v46  ;;  %5041 = vmatprep.subr.bf16.mxu0 %v7396_v47  ;;  %v7469_v46 = vld [vmem:[%s11242_s1 + $0x884] ss:$16 sps:$4 sm:$0xff]  }
  0x5d   :  { %5082 = vmatprep.subr.bf16.mxu1 %v7399_v48  ;;  %v7472_v47 = vld [vmem:[%s11242_s1 + $0xa84] ss:$16 sps:$4 sm:$0xff]   ;;  %v7467_v48 = vld [vmem:[%s11242_s1 + $0x880] ss:$16 sps:$4 sm:$0xff]  }
  0x5f   :  { %5042 = vmatpush1.bf16.msra.mxu0 %v7394_v50  ;;  %v7470_v50 = vld [vmem:[%s11242_s1 + $0xa80] ss:$16 sps:$4 sm:$0xff]  }
  0x60   :  { %5083 = vmatpush1.bf16.msra.mxu1 %v7397_v51  ;;  %5043 = vmatprep.subr.bf16.mxu0 %v7402_v52  ;;  %v7475_v51 = vld [vmem:[%s11242_s1 + $0x864] ss:$16 sps:$4 sm:$0xff]  }
  0x61   :  { %5084 = vmatprep.subr.bf16.mxu1 %v7405_v53  ;;  %v7478_v52 = vld [vmem:[%s11242_s1 + $0xa64] ss:$16 sps:$4 sm:$0xff]   ;;  %v7473_v53 = vld [vmem:[%s11242_s1 + $0x860] ss:$16 sps:$4 sm:$0xff]  }
  0x63   :  { %5044 = vmatpush2.bf16.msra.mxu0 %v7400_v54  ;;  %v7476_v54 = vld [vmem:[%s11242_s1 + $0xa60] ss:$16 sps:$4 sm:$0xff]  }
  0x64   :  { %5085 = vmatpush2.bf16.msra.mxu1 %v7403_v55  ;;  %5045 = vmatprep.subr.bf16.mxu0 %v7408_v56  ;;  %v7481_v55 = vld [vmem:[%s11242_s1 + $0x844] ss:$16 sps:$4 sm:$0xff]  }
  0x65   :  { %5086 = vmatprep.subr.bf16.mxu1 %v7411_v57  ;;  %v7484_v56 = vld [vmem:[%s11242_s1 + $0xa44] ss:$16 sps:$4 sm:$0xff]   ;;  %v7479_v57 = vld [vmem:[%s11242_s1 + $0x840] ss:$16 sps:$4 sm:$0xff]  }
  0x67   :  { %5046 = vmatpush2.bf16.msra.mxu0 %v7406_v58  ;;  %v7482_v58 = vld [vmem:[%s11242_s1 + $0xa40] ss:$16 sps:$4 sm:$0xff]  }
  0x68   :  { %5087 = vmatpush2.bf16.msra.mxu1 %v7409_v59  ;;  %5047 = vmatprep.subr.bf16.mxu0 %v7414_v61  ;;  %v7487_v59 = vld [vmem:[%s11242_s1 + $0x824] ss:$16 sps:$4 sm:$0xff]  }
  0x69   :  { %5088 = vmatprep.subr.bf16.mxu1 %v7417_v62  ;;  %v7490_v61 = vld [vmem:[%s11242_s1 + $0xa24] ss:$16 sps:$4 sm:$0xff]   ;;  %v7485_v62 = vld [vmem:[%s11242_s1 + $0x820] ss:$16 sps:$4 sm:$0xff]  }
  0x6b   :  { %5048 = vmatpush2.bf16.msra.mxu0 %v7412_v63  ;;  %v7488_v63 = vld [vmem:[%s11242_s1 + $0xa20] ss:$16 sps:$4 sm:$0xff]  }
  0x6c   :  { %5089 = vmatpush2.bf16.msra.mxu1 %v7415_v1  ;;  %5049 = vmatprep.subr.bf16.mxu0 %v7420_v2  ;;  %v7493_v1 = vld [vmem:[%s11242_s1 + $0x804] ss:$16 sps:$4 sm:$0xff]  }
  0x6d   :  { %5090 = vmatprep.subr.bf16.mxu1 %v7423_v3  ;;  %v7496_v2 = vld [vmem:[%s11242_s1 + $0xa04] ss:$16 sps:$4 sm:$0xff]   ;;  %v7491_v3 = vld [vmem:[%s11242_s1 + $0x800] ss:$16 sps:$4 sm:$0xff]  }
  0x6f   :  { %5050 = vmatpush2.bf16.msra.mxu0 %v7418_v4  ;;  %v7494_v4 = vld [vmem:[%s11242_s1 + $0xa00] ss:$16 sps:$4 sm:$0xff]  }
  0x70   :  { %5091 = vmatpush2.bf16.msra.mxu1 %v7421_v5  ;;  %5051 = vmatprep.subr.bf16.mxu0 %v7426_v7  ;;  %v7499_v5 = vld [vmem:[%s11242_s1 + $0x9e4] ss:$16 sps:$4 sm:$0xff]  }
  0x71   :  { %5092 = vmatprep.subr.bf16.mxu1 %v7429_v8  ;;  %v7502_v7 = vld [vmem:[%s11242_s1 + $0xbe4] ss:$16 sps:$4 sm:$0xff]   ;;  %v7497_v8 = vld [vmem:[%s11242_s1 + $0x9e0] ss:$16 sps:$4 sm:$0xff]  }
  0x73   :  { %5052 = vmatpush2.bf16.msra.mxu0 %v7424_v9  ;;  %v7500_v9 = vld [vmem:[%s11242_s1 + $0xbe0] ss:$16 sps:$4 sm:$0xff]  }
  0x74   :  { %5093 = vmatpush2.bf16.msra.mxu1 %v7427_v10  ;;  %5053 = vmatprep.subr.bf16.mxu0 %v7432_v11  ;;  %v7505_v10 = vld [vmem:[%s11242_s1 + $0x9c4] ss:$16 sps:$4 sm:$0xff]  }
  0x75   :  { %5094 = vmatprep.subr.bf16.mxu1 %v7435_v12  ;;  %v7508_v11 = vld [vmem:[%s11242_s1 + $0xbc4] ss:$16 sps:$4 sm:$0xff]   ;;  %v7503_v12 = vld [vmem:[%s11242_s1 + $0x9c0] ss:$16 sps:$4 sm:$0xff]  }
  0x77   :  { %5054 = vmatpush2.bf16.msra.mxu0 %v7430_v14  ;;  %v7506_v14 = vld [vmem:[%s11242_s1 + $0xbc0] ss:$16 sps:$4 sm:$0xff]  }
  0x78   :  { %5095 = vmatpush2.bf16.msra.mxu1 %v7433_v15  ;;  %5055 = vmatprep.subr.bf16.mxu0 %v7438_v16  ;;  %v7511_v15 = vld [vmem:[%s11242_s1 + $0x9a4] ss:$16 sps:$4 sm:$0xff]  }
  0x79   :  { %5096 = vmatprep.subr.bf16.mxu1 %v7441_v19  ;;  %v7514_v16 = vld [vmem:[%s11242_s1 + $0xba4] ss:$16 sps:$4 sm:$0xff]   ;;  %v7509_v19 = vld [vmem:[%s11242_s1 + $0x9a0] ss:$16 sps:$4 sm:$0xff]  }
  0x7b   :  { %5056 = vmatpush2.bf16.msra.mxu0 %v7436_v20  ;;  %v7512_v20 = vld [vmem:[%s11242_s1 + $0xba0] ss:$16 sps:$4 sm:$0xff]  }
  0x7c   :  { %5097 = vmatpush2.bf16.msra.mxu1 %v7439_v21  ;;  %5057 = vmatprep.subr.bf16.mxu0 %v7444_v22  ;;  %v7517_v21 = vld [vmem:[%s11242_s1 + $0x984] ss:$16 sps:$4 sm:$0xff]  }
  0x7d   :  { %5098 = vmatprep.subr.bf16.mxu1 %v7447_v24  ;;  %v7520_v22 = vld [vmem:[%s11242_s1 + $0xb84] ss:$16 sps:$4 sm:$0xff]   ;;  %v7515_v24 = vld [vmem:[%s11242_s1 + $0x980] ss:$16 sps:$4 sm:$0xff]  }
  0x7f   :  { %5058 = vmatpush2.bf16.msra.mxu0 %v7442_v25  ;;  %v7518_v25 = vld [vmem:[%s11242_s1 + $0xb80] ss:$16 sps:$4 sm:$0xff]  }
  0x80   :  { %5099 = vmatpush2.bf16.msra.mxu1 %v7445_v27  ;;  %5109 = vmatprep.subr.bf16.mxu0 %v7451_v28  ;;  %v7523_v27 = vld [vmem:[%s11242_s1 + $0x964] ss:$16 sps:$4 sm:$0xff]  }
  0x81   :  { %5150 = vmatprep.subr.bf16.mxu1 %v7454_v29  ;;  %v7526_v28 = vld [vmem:[%s11242_s1 + $0xb64] ss:$16 sps:$4 sm:$0xff]   ;;  %v7521_v29 = vld [vmem:[%s11242_s1 + $0x960] ss:$16 sps:$4 sm:$0xff]  }
  0x82   :  { %5060 = vmatmul.mubr.bf16.vlgmr.msra.gmra.mxu0 %v8951_v26 }
  0x83   :  { %5101 = vmatmul.mubr.bf16.vlgmr.msra.gmra.mxu1 %v8964_v6  ;;  %5110 = vmatpush1.bf16.msra.mxu0 %v7449_v30  ;;  %v7524_v30 = vld [vmem:[%s11242_s1 + $0xb60] ss:$16 sps:$4 sm:$0xff]  }
  0x84   :  { %5151 = vmatpush1.bf16.msra.mxu1 %v7452_v31  ;;  %5111 = vmatprep.subr.bf16.mxu0 %v7457_v33  ;;  %v7529_v31 = vld [vmem:[%s11242_s1 + $0x944] ss:$16 sps:$4 sm:$0xff]  }
  0x85   :  { %5152 = vmatprep.subr.bf16.mxu1 %v7460_v34  ;;  %5141 = vmatprep.mubr.bf16.mxu0 %v9004_v41  ;;  %v7532_v33 = vld [vmem:[%s11242_s1 + $0xb44] ss:$16 sps:$4 sm:$0xff]   ;;  %v885_v34 = vcombine.high %v8975_v32, %v8975_v32 }
  0x86   :  { %5182 = vmatprep.mubr.bf16.mxu1 %v9009_v43  ;;  %v7538_v32 = vld [vmem:[%s11242_s1 + $0xb24] ss:$16 sps:$4 sm:$0xff]  }
  0x87   :  { %5112 = vmatpush1.bf16.msra.mxu0 %v7455_v37  ;;  %v7530_v37 = vld [vmem:[%s11242_s1 + $0xb40] ss:$16 sps:$4 sm:$0xff]  }
  0x88   :  { %5153 = vmatpush1.bf16.msra.mxu1 %v7458_v38  ;;  %5113 = vmatprep.subr.bf16.mxu0 %v7463_v39  ;;  %v7535_v38 = vld [vmem:[%s11242_s1 + $0x924] ss:$16 sps:$4 sm:$0xff]   ;;  %v9159_v39 = vrot.slane %v885_v34, %v8662_v49  ;;  %v7596_v34 = vld [vmem:[%s11242_s1 + $0xfe0] ss:$16 sps:$4 sm:$0xff]  }
  0x89   :  { %5154 = vmatprep.subr.bf16.mxu1 %v7466_v40  ;;  %v7533_v40 = vld [vmem:[%s11242_s1 + $0x920] ss:$16 sps:$4 sm:$0xff]  }
  0x8b   :  { %5114 = vmatpush1.bf16.msra.mxu0 %v7461_v44  ;;  %v7536_v44 = vld [vmem:[%s11242_s1 + $0xb20] ss:$16 sps:$4 sm:$0xff]  }
  0x8c   :  { %5155 = vmatpush1.bf16.msra.mxu1 %v7464_v45  ;;  %5115 = vmatprep.subr.bf16.mxu0 %v7469_v46  ;;  %v7541_v45 = vld [vmem:[%s11242_s1 + $0x904] ss:$16 sps:$4 sm:$0xff]  }
  0x8d   :  { %5156 = vmatprep.subr.bf16.mxu1 %v7472_v47  ;;  %v7544_v46 = vld [vmem:[%s11242_s1 + $0xb04] ss:$16 sps:$4 sm:$0xff]   ;;  %v901_v47 = vcombine.high %v9159_v39, %v9159_v39 }
  0x8f   :  { %5116 = vmatpush1.bf16.msra.mxu0 %v7467_v48  ;;  %v7539_v48 = vld [vmem:[%s11242_s1 + $0x900] ss:$16 sps:$4 sm:$0xff]  }
  0x90   :  { %5157 = vmatpush1.bf16.msra.mxu1 %v7470_v50  ;;  %5117 = vmatprep.subr.bf16.mxu0 %v7475_v51  ;;  %v9180_v50 = vrot.slane %v8985_v35, %v8662_v49  ;;  %v7542_v51 = vld [vmem:[%s11242_s1 + $0xb00] ss:$16 sps:$4 sm:$0xff]  }
  0x91   :  { %5158 = vmatprep.subr.bf16.mxu1 %v7478_v52  ;;  %v7547_v52 = vld [vmem:[%s11242_s1 + $0xce4] ss:$16 sps:$4 sm:$0xff]  }
  0x92   :  { %v9196_v35 = vcombine.high %v9180_v50, %v9180_v50 }
  0x93   :  { %5118 = vmatpush1.bf16.msra.mxu0 %v7473_v53  ;;  %v7550_v53 = vld [vmem:[%s11242_s1 + $0xee4] ss:$16 sps:$4 sm:$0xff]  }
  0x94   :  { %5159 = vmatpush1.bf16.msra.mxu1 %v7476_v54  ;;  %5119 = vmatprep.subr.bf16.mxu0 %v7481_v55  ;;  %v9192_v54 = vrot.slane %v901_v47, %v8662_v49  ;;  %v7545_v55 = vld [vmem:[%s11242_s1 + $0xce0] ss:$16 sps:$4 sm:$0xff]   ;;  %v7613_v47 = vld [vmem:[%s11242_s1 + $0xd84] ss:$16 sps:$4 sm:$0xff]  }
  0x95   :  { %5160 = vmatprep.subr.bf16.mxu1 %v7484_v56  ;;  %v7548_v56 = vld [vmem:[%s11242_s1 + $0xee0] ss:$16 sps:$4 sm:$0xff]  }
  0x97   :  { %5120 = vmatpush1.bf16.msra.mxu0 %v7479_v57  ;;  %v7553_v57 = vld [vmem:[%s11242_s1 + $0xcc4] ss:$16 sps:$4 sm:$0xff]  }
  0x98   :  { %5161 = vmatpush1.bf16.msra.mxu1 %v7482_v58  ;;  %5121 = vmatprep.subr.bf16.mxu0 %v7487_v59  ;;  %v7556_v58 = vld [vmem:[%s11242_s1 + $0xec4] ss:$16 sps:$4 sm:$0xff]   ;;  %v9212_v59 = vcombine.high %v9192_v54, %v9192_v54 }
  0x99   :  { %5162 = vmatprep.subr.bf16.mxu1 %v7490_v61  ;;  %v7551_v61 = vld [vmem:[%s11242_s1 + $0xcc0] ss:$16 sps:$4 sm:$0xff]  }
  0x9b   :  { %5122 = vmatpush1.bf16.msra.mxu0 %v7485_v62  ;;  %v7554_v62 = vld [vmem:[%s11242_s1 + $0xec0] ss:$16 sps:$4 sm:$0xff]  }
  0x9c   :  { %5163 = vmatpush1.bf16.msra.mxu1 %v7488_v63  ;;  %5123 = vmatprep.subr.bf16.mxu0 %v7493_v1  ;;  %v7559_v63 = vld [vmem:[%s11242_s1 + $0xca4] ss:$16 sps:$4 sm:$0xff]  }
  0x9d   :  { %5164 = vmatprep.subr.bf16.mxu1 %v7496_v2  ;;  %v7562_v1 = vld [vmem:[%s11242_s1 + $0xea4] ss:$16 sps:$4 sm:$0xff]   ;;  %v7557_v2 = vld [vmem:[%s11242_s1 + $0xca0] ss:$16 sps:$4 sm:$0xff]  }
  0x9f   :  { %5124 = vmatpush1.bf16.msra.mxu0 %v7491_v3  ;;  %v7560_v3 = vld [vmem:[%s11242_s1 + $0xea0] ss:$16 sps:$4 sm:$0xff]  }
  0xa0   :  { %5165 = vmatpush1.bf16.msra.mxu1 %v7494_v4  ;;  %5125 = vmatprep.subr.bf16.mxu0 %v7499_v5  ;;  %v7565_v4 = vld [vmem:[%s11242_s1 + $0xc84] ss:$16 sps:$4 sm:$0xff]  }
  0xa1   :  { %5166 = vmatprep.subr.bf16.mxu1 %v7502_v7  ;;  %v7568_v5 = vld [vmem:[%s11242_s1 + $0xe84] ss:$16 sps:$4 sm:$0xff]   ;;  %v7563_v7 = vld [vmem:[%s11242_s1 + $0xc80] ss:$16 sps:$4 sm:$0xff]  }
  0xa3   :  { %5126 = vmatpush2.bf16.msra.mxu0 %v7497_v8  ;;  %v7566_v8 = vld [vmem:[%s11242_s1 + $0xe80] ss:$16 sps:$4 sm:$0xff]  }
  0xa4   :  { %5167 = vmatpush2.bf16.msra.mxu1 %v7500_v9  ;;  %5127 = vmatprep.subr.bf16.mxu0 %v7505_v10  ;;  %v7571_v9 = vld [vmem:[%s11242_s1 + $0xc64] ss:$16 sps:$4 sm:$0xff]  }
  0xa5   :  { %5168 = vmatprep.subr.bf16.mxu1 %v7508_v11  ;;  %v7574_v10 = vld [vmem:[%s11242_s1 + $0xe64] ss:$16 sps:$4 sm:$0xff]   ;;  %v7569_v11 = vld [vmem:[%s11242_s1 + $0xc60] ss:$16 sps:$4 sm:$0xff]  }
  0xa7   :  { %5128 = vmatpush2.bf16.msra.mxu0 %v7503_v12  ;;  %v7572_v12 = vld [vmem:[%s11242_s1 + $0xe60] ss:$16 sps:$4 sm:$0xff]  }
  0xa8   :  { %5169 = vmatpush2.bf16.msra.mxu1 %v7506_v14  ;;  %5129 = vmatprep.subr.bf16.mxu0 %v7511_v15  ;;  %v7577_v14 = vld [vmem:[%s11242_s1 + $0xc44] ss:$16 sps:$4 sm:$0xff]  }
  0xa9   :  { %5170 = vmatprep.subr.bf16.mxu1 %v7514_v16  ;;  %v7580_v15 = vld [vmem:[%s11242_s1 + $0xe44] ss:$16 sps:$4 sm:$0xff]   ;;  %v7575_v16 = vld [vmem:[%s11242_s1 + $0xc40] ss:$16 sps:$4 sm:$0xff]  }
  0xab   :  { %5130 = vmatpush2.bf16.msra.mxu0 %v7509_v19  ;;  %v7578_v19 = vld [vmem:[%s11242_s1 + $0xe40] ss:$16 sps:$4 sm:$0xff]  }
  0xac   :  { %5171 = vmatpush2.bf16.msra.mxu1 %v7512_v20  ;;  %5131 = vmatprep.subr.bf16.mxu0 %v7517_v21  ;;  %v7583_v20 = vld [vmem:[%s11242_s1 + $0xc24] ss:$16 sps:$4 sm:$0xff]  }
  0xad   :  { %5172 = vmatprep.subr.bf16.mxu1 %v7520_v22  ;;  %v7586_v21 = vld [vmem:[%s11242_s1 + $0xe24] ss:$16 sps:$4 sm:$0xff]   ;;  %v7581_v22 = vld [vmem:[%s11242_s1 + $0xc20] ss:$16 sps:$4 sm:$0xff]  }
  0xaf   :  { %5132 = vmatpush2.bf16.msra.mxu0 %v7515_v24  ;;  %v7584_v24 = vld [vmem:[%s11242_s1 + $0xe20] ss:$16 sps:$4 sm:$0xff]  }
  0xb0   :  { %5173 = vmatpush2.bf16.msra.mxu1 %v7518_v25  ;;  %5133 = vmatprep.subr.bf16.mxu0 %v7523_v27  ;;  %v7589_v25 = vld [vmem:[%s11242_s1 + $0xc04] ss:$16 sps:$4 sm:$0xff]  }
  0xb1   :  { %5174 = vmatprep.subr.bf16.mxu1 %v7526_v28  ;;  %v7592_v27 = vld [vmem:[%s11242_s1 + $0xe04] ss:$16 sps:$4 sm:$0xff]   ;;  %v7587_v28 = vld [vmem:[%s11242_s1 + $0xc00] ss:$16 sps:$4 sm:$0xff]  }
  0xb3   :  { %5134 = vmatpush2.bf16.msra.mxu0 %v7521_v29  ;;  %v7590_v29 = vld [vmem:[%s11242_s1 + $0xe00] ss:$16 sps:$4 sm:$0xff]  }
  0xb4   :  { %5175 = vmatpush2.bf16.msra.mxu1 %v7524_v30  ;;  %5135 = vmatprep.subr.bf16.mxu0 %v7529_v31  ;;  %v7595_v30 = vld [vmem:[%s11242_s1 + $0xde4] ss:$16 sps:$4 sm:$0xff]  }
  0xb5   :  { %5176 = vmatprep.subr.bf16.mxu1 %v7532_v33  ;;  %v7598_v31 = vld [vmem:[%s11242_s1 + $0xfe4] ss:$16 sps:$4 sm:$0xff]   ;;  %v7593_v33 = vld [vmem:[%s11242_s1 + $0xde0] ss:$16 sps:$4 sm:$0xff]  }
  0xb7   :  { %5136 = vmatpush2.bf16.msra.mxu0 %v7527_v36  ;;  %v7601_v36 = vld [vmem:[%s11242_s1 + $0xdc4] ss:$16 sps:$4 sm:$0xff]  }
  0xb8   :  { %5177 = vmatpush2.bf16.msra.mxu1 %v7530_v37  ;;  %5137 = vmatprep.subr.bf16.mxu0 %v7535_v38  ;;  %v7604_v37 = vld [vmem:[%s11242_s1 + $0xfc4] ss:$16 sps:$4 sm:$0xff]   ;;  %v7599_v38 = vld [vmem:[%s11242_s1 + $0xdc0] ss:$16 sps:$4 sm:$0xff]  }
  0xb9   :  { %5178 = vmatprep.subr.bf16.mxu1 %v7538_v32  ;;  %v7602_v32 = vld [vmem:[%s11242_s1 + $0xfc0] ss:$16 sps:$4 sm:$0xff]  }
  0xbb   :  { %5138 = vmatpush2.bf16.msra.mxu0 %v7533_v40  ;;  %v7607_v40 = vld [vmem:[%s11242_s1 + $0xda4] ss:$16 sps:$4 sm:$0xff]  }
  0xbc   :  { %5179 = vmatpush2.bf16.msra.mxu1 %v7536_v44  ;;  %5139 = vmatprep.subr.bf16.mxu0 %v7541_v45  ;;  %v7610_v44 = vld [vmem:[%s11242_s1 + $0xfa4] ss:$16 sps:$4 sm:$0xff]   ;;  %v7605_v45 = vld [vmem:[%s11242_s1 + $0xda0] ss:$16 sps:$4 sm:$0xff]  }
  0xbd   :  { %5180 = vmatprep.subr.bf16.mxu1 %v7544_v46  ;;  %v7608_v46 = vld [vmem:[%s11242_s1 + $0xfa0] ss:$16 sps:$4 sm:$0xff]  }
  0xbf   :  { %5140 = vmatpush2.bf16.msra.mxu0 %v7539_v48  ;;  %v7616_v48 = vld [vmem:[%s11242_s1 + $0xf84] ss:$16 sps:$4 sm:$0xff]  }
  0xc0   :  { %5181 = vmatpush2.bf16.msra.mxu1 %v7542_v51  ;;  %5191 = vmatprep.subr.bf16.mxu0 %v7547_v52  ;;  %v7611_v51 = vld [vmem:[%s11242_s1 + $0xd80] ss:$16 sps:$4 sm:$0xff]  }
  0xc1   :  { %5232 = vmatprep.subr.bf16.mxu1 %v7550_v53  ;;  %v7614_v52 = vld [vmem:[%s11242_s1 + $0xf80] ss:$16 sps:$4 sm:$0xff]   ;;  %v7619_v53 = vld [vmem:[%s11242_s1 + $0xd64] ss:$16 sps:$4 sm:$0xff]  }
  0xc2   :  { %5142 = vmatmul.mubr.bf16.vlgmr.msra.gmra.mxu0 %v9180_v50 }
  0xc3   :  { %5183 = vmatmul.mubr.bf16.vlgmr.msra.gmra.mxu1 %v9196_v35  ;;  %5192 = vmatpush1.bf16.msra.mxu0 %v7545_v55  ;;  %v7622_v55 = vld [vmem:[%s11242_s1 + $0xf64] ss:$16 sps:$4 sm:$0xff]  }
  0xc4   :  { %5233 = vmatpush1.bf16.msra.mxu1 %v7548_v56  ;;  %5193 = vmatprep.subr.bf16.mxu0 %v7553_v57  ;;  %v7617_v56 = vld [vmem:[%s11242_s1 + $0xd60] ss:$16 sps:$4 sm:$0xff]  }
  0xc5   :  { %5234 = vmatprep.subr.bf16.mxu1 %v7556_v58  ;;  %5223 = vmatprep.mubr.bf16.mxu0 %v9192_v54  ;;  %v7620_v57 = vld [vmem:[%s11242_s1 + $0xf60] ss:$16 sps:$4 sm:$0xff]   ;;  %v7625_v58 = vld [vmem:[%s11242_s1 + $0xd44] ss:$16 sps:$4 sm:$0xff]  }
  0xc6   :  { %5264 = vmatprep.mubr.bf16.mxu1 %v9212_v59 }
  0xc7   :  { %5194 = vmatpush1.bf16.msra.mxu0 %v7551_v61  ;;  %v7628_v61 = vld [vmem:[%s11242_s1 + $0xf44] ss:$16 sps:$4 sm:$0xff]  }
  0xc8   :  { %5235 = vmatpush1.bf16.msra.mxu1 %v7554_v62  ;;  %5195 = vmatprep.subr.bf16.mxu0 %v7559_v63  ;;  %v7623_v62 = vld [vmem:[%s11242_s1 + $0xd40] ss:$16 sps:$4 sm:$0xff]  }
  0xc9   :  { %5236 = vmatprep.subr.bf16.mxu1 %v7562_v1  ;;  %v7626_v63 = vld [vmem:[%s11242_s1 + $0xf40] ss:$16 sps:$4 sm:$0xff]  }
  0xca   :  { %v9371_v1 = vld [vmem:[%s11241_s0 + $0x10] sm:$0xff] }
  0xcb   :  { %5196 = vmatpush1.bf16.msra.mxu0 %v7557_v2  ;;  %v7631_v2 = vld [vmem:[%s11242_s1 + $0xd24] ss:$16 sps:$4 sm:$0xff]  }
  0xcc   :  { %5237 = vmatpush1.bf16.msra.mxu1 %v7560_v3  ;;  %5197 = vmatprep.subr.bf16.mxu0 %v7565_v4  ;;  %v7634_v3 = vld [vmem:[%s11242_s1 + $0xf24] ss:$16 sps:$4 sm:$0xff]   ;;  %v9381_v4 = vrot.slane %v9371_v1, %v8662_v49 }
  0xcd   :  { %5238 = vmatprep.subr.bf16.mxu1 %v7568_v5  ;;  %v7629_v5 = vld [vmem:[%s11242_s1 + $0xd20] ss:$16 sps:$4 sm:$0xff]  }
  0xcf   :  { %5198 = vmatpush1.bf16.msra.mxu0 %v7563_v7  ;;  %v7632_v7 = vld [vmem:[%s11242_s1 + $0xf20] ss:$16 sps:$4 sm:$0xff]  }
  0xd0   :  { %5239 = vmatpush1.bf16.msra.mxu1 %v7566_v8  ;;  %5199 = vmatprep.subr.bf16.mxu0 %v7571_v9  ;;  %v7637_v8 = vld [vmem:[%s11242_s1 + $0xd04] ss:$16 sps:$4 sm:$0xff]  }
  0xd1   :  { %5240 = vmatprep.subr.bf16.mxu1 %v7574_v10  ;;  %v7640_v9 = vld [vmem:[%s11242_s1 + $0xf04] ss:$16 sps:$4 sm:$0xff]   ;;  %v7635_v10 = vld [vmem:[%s11242_s1 + $0xd00] ss:$16 sps:$4 sm:$0xff]  }
  0xd3   :  { %5200 = vmatpush1.bf16.msra.mxu0 %v7569_v11  ;;  %v949_v11 = vcombine.high %v9381_v4, %v9381_v4 }
  0xd4   :  { %5241 = vmatpush1.bf16.msra.mxu1 %v7572_v12  ;;  %5201 = vmatprep.subr.bf16.mxu0 %v7577_v14  ;;  %v7638_v12 = vld [vmem:[%s11242_s1 + $0xf00] ss:$16 sps:$4 sm:$0xff]  }
  0xd5   :  { %5242 = vmatprep.subr.bf16.mxu1 %v7580_v15  ;;  %v810_v14 = vld [vmem:[%s11243_s2] sm:$0xf]  ;;  %v9408_v15 = vrot.slane %v9159_v39, %v8662_v49 }
  0xd7   :  { %5202 = vmatpush1.bf16.msra.mxu0 %v7575_v16  ;;  %v814_v16 = vsub.s32 0, %v8644_v42  ;;  %v9423_v39 = vcombine.high %v9408_v15, %v9408_v15 }
  0xd8   :  { %5243 = vmatpush1.bf16.msra.mxu1 %v7578_v19  ;;  %5203 = vmatprep.subr.bf16.mxu0 %v7583_v20  ;;  %v7644_v19 = vld [vmem:[%s11242_s1 + $0x10e4] ss:$16 sps:$4 sm:$0xff]  }
  0xd9   :  { %5244 = vmatprep.subr.bf16.mxu1 %v7586_v21  ;;  %v7647_v20 = vld [vmem:[%s11242_s1 + $0x12e4] ss:$16 sps:$4 sm:$0xff]   ;;  %v818_v21 = vsub.s32 1, %v8644_v42 }
  0xdb   :  { %5204 = vmatpush1.bf16.msra.mxu0 %v7581_v22  ;;  %v9419_v22 = vrot.slane %v949_v11, %v8662_v49  ;;  %v7675_v11 = vld [vmem:[%s11242_s1 + $0x1240] ss:$16 sps:$4 sm:$0xff]  }
  0xdc   :  { %5245 = vmatpush1.bf16.msra.mxu1 %v7584_v24  ;;  %5205 = vmatprep.subr.bf16.mxu0 %v7589_v25  ;;  %v7642_v24 = vld [vmem:[%s11242_s1 + $0x10e0] ss:$16 sps:$4 sm:$0xff]  }
  0xdd   :  { %5246 = vmatprep.subr.bf16.mxu1 %v7592_v27  ;;  %v7645_v25 = vld [vmem:[%s11242_s1 + $0x12e0] ss:$16 sps:$4 sm:$0xff]   ;;  %v815_v27 = vrot.slane %v810_v14, %v814_v16 }
  0xde   :  { %v7678_v16 = vld [vmem:[%s11242_s1 + $0x1020] ss:$16 sps:$4 sm:$0xff]  }
  0xdf   :  { %5206 = vmatpush1.bf16.msra.mxu0 %v7587_v28  ;;  %v7650_v28 = vld [vmem:[%s11242_s1 + $0x10c4] ss:$16 sps:$4 sm:$0xff]  }
  0xe0   :  { %5247 = vmatpush1.bf16.msra.mxu1 %v7590_v29  ;;  %5207 = vmatprep.subr.bf16.mxu0 %v7595_v30  ;;  %v7653_v29 = vld [vmem:[%s11242_s1 + $0x12c4] ss:$16 sps:$4 sm:$0xff]   ;;  %v819_v30 = vrot.slane %v810_v14, %v818_v21 }
  0xe1   :  { %5248 = vmatprep.subr.bf16.mxu1 %v7598_v31  ;;  %v9439_v31 = vcombine.high %v9419_v22, %v9419_v22  ;;  %v7683_v14 = vld [vmem:[%s11242_s1 + $0x1224] ss:$16 sps:$4 sm:$0xff]  }
  0xe2   :  { %v7689_v21 = vld [vmem:[%s11242_s1 + $0x1204] ss:$16 sps:$4 sm:$0xff]  }
  0xe3   :  { %5208 = vmatpush2.bf16.msra.mxu0 %v7593_v33 }
  0xe4   :  { %5249 = vmatpush2.bf16.msra.mxu1 %v7596_v34  ;;  %5209 = vmatprep.subr.bf16.mxu0 %v7601_v36  ;;  %v7648_v36 = vld [vmem:[%s11242_s1 + $0x10c0] ss:$16 sps:$4 sm:$0xff]  }
  0xe5   :  { %5250 = vmatprep.subr.bf16.mxu1 %v7604_v37  ;;  %v7651_v37 = vld [vmem:[%s11242_s1 + $0x12c0] ss:$16 sps:$4 sm:$0xff]  }
  0xe7   :  { %5210 = vmatpush2.bf16.msra.mxu0 %v7599_v38 }
  0xe8   :  { %5251 = vmatpush2.bf16.msra.mxu1 %v7602_v32  ;;  %5211 = vmatprep.subr.bf16.mxu0 %v7607_v40 }
  0xe9   :  { %5252 = vmatprep.subr.bf16.mxu1 %v7610_v44  ;;  %v7656_v44 = vld [vmem:[%s11242_s1 + $0x10a4] ss:$16 sps:$4 sm:$0xff]  }
  0xeb   :  { %5212 = vmatpush2.bf16.msra.mxu0 %v7605_v45  ;;  %v7659_v45 = vld [vmem:[%s11242_s1 + $0x12a4] ss:$16 sps:$4 sm:$0xff]  }
  0xec   :  { %5253 = vmatpush2.bf16.msra.mxu1 %v7608_v46  ;;  %5213 = vmatprep.subr.bf16.mxu0 %v7613_v47 }
  0xed   :  { %5254 = vmatprep.subr.bf16.mxu1 %v7616_v48  ;;  %v7654_v48 = vld [vmem:[%s11242_s1 + $0x10a0] ss:$16 sps:$4 sm:$0xff]  }
  0xef   :  { %5214 = vmatpush2.bf16.msra.mxu0 %v7611_v51  ;;  %v7657_v51 = vld [vmem:[%s11242_s1 + $0x12a0] ss:$16 sps:$4 sm:$0xff]  }
  0xf0   :  { %5255 = vmatpush2.bf16.msra.mxu1 %v7614_v52  ;;  %5215 = vmatprep.subr.bf16.mxu0 %v7619_v53 }
  0xf1   :  { %5256 = vmatprep.subr.bf16.mxu1 %v7622_v55 }
  0xf3   :  { %5216 = vmatpush2.bf16.msra.mxu0 %v7617_v56 }
  0xf4   :  { %5257 = vmatpush2.bf16.msra.mxu1 %v7620_v57  ;;  %5217 = vmatprep.subr.bf16.mxu0 %v7625_v58  ;;  %v7662_v58 = vld [vmem:[%s11242_s1 + $0x1084] ss:$16 sps:$4 sm:$0xff]  }
  0xf5   :  { %5258 = vmatprep.subr.bf16.mxu1 %v7628_v61  ;;  %v7665_v61 = vld [vmem:[%s11242_s1 + $0x1284] ss:$16 sps:$4 sm:$0xff]  }
  0xf7   :  { %5218 = vmatpush2.bf16.msra.mxu0 %v7623_v62  ;;  %v7660_v62 = vld [vmem:[%s11242_s1 + $0x1080] ss:$16 sps:$4 sm:$0xff]  }
  0xf8   :  { %5259 = vmatpush2.bf16.msra.mxu1 %v7626_v63  ;;  %5219 = vmatprep.subr.bf16.mxu0 %v7631_v2  ;;  %v7663_v63 = vld [vmem:[%s11242_s1 + $0x1280] ss:$16 sps:$4 sm:$0xff]   ;;  %v7668_v2 = vld [vmem:[%s11242_s1 + $0x1064] ss:$16 sps:$4 sm:$0xff]  }
  0xf9   :  { %5260 = vmatprep.subr.bf16.mxu1 %v7634_v3  ;;  %v7671_v3 = vld [vmem:[%s11242_s1 + $0x1264] ss:$16 sps:$4 sm:$0xff]  }
  0xfb   :  { %5220 = vmatpush2.bf16.msra.mxu0 %v7629_v5  ;;  %v7666_v5 = vld [vmem:[%s11242_s1 + $0x1060] ss:$16 sps:$4 sm:$0xff]  }
  0xfc   :  { %5261 = vmatpush2.bf16.msra.mxu1 %v7632_v7  ;;  %5221 = vmatprep.subr.bf16.mxu0 %v7637_v8  ;;  %v7669_v7 = vld [vmem:[%s11242_s1 + $0x1260] ss:$16 sps:$4 sm:$0xff]   ;;  %v7674_v8 = vld [vmem:[%s11242_s1 + $0x1044] ss:$16 sps:$4 sm:$0xff]  }
  0xfd   :  { %5262 = vmatprep.subr.bf16.mxu1 %v7640_v9  ;;  %v7677_v9 = vld [vmem:[%s11242_s1 + $0x1244] ss:$16 sps:$4 sm:$0xff]  }
  0xff   :  { %5222 = vmatpush2.bf16.msra.mxu0 %v7635_v10  ;;  %v7672_v10 = vld [vmem:[%s11242_s1 + $0x1040] ss:$16 sps:$4 sm:$0xff]  }
 0x100   :  { %5263 = vmatpush2.bf16.msra.mxu1 %v7638_v12  ;;  %5273 = vmatprep.subr.bf16.mxu0 %v7644_v19  ;;  %v7680_v12 = vld [vmem:[%s11242_s1 + $0x1024] ss:$16 sps:$4 sm:$0xff]   ;;  %v7681_v19 = vld [vmem:[%s11242_s1 + $0x1220] ss:$16 sps:$4 sm:$0xff]  }
 0x101   :  { %5314 = vmatprep.subr.bf16.mxu1 %v7647_v20  ;;  %v7686_v20 = vld [vmem:[%s11242_s1 + $0x1004] ss:$16 sps:$4 sm:$0xff]  }
 0x102   :  { %v4979_v33 = vpop.f32.mrf.mxu0  ;;  %5224 = vmatmul.mubr.bf16.vlgmr.msra.gmra.mxu0 %v9408_v15 }
 0x103   :  { %v5020_v34 = vpop.f32.mrf.mxu1  ;;  %5265 = vmatmul.mubr.bf16.vlgmr.msra.gmra.mxu1 %v9423_v39  ;;  %v4980_v38 = vadd.f32 %v4979_v33, %v815_v27  ;;  %5274 = vmatpush1.bf16.msra.mxu0 %v7642_v24  ;;  %v7684_v24 = vld [vmem:[%s11242_s1 + $0x1000] ss:$16 sps:$4 sm:$0xff]   ;;  %v7692_v27 = vld [vmem:[%s11242_s1 + $0x11e4] ss:$16 sps:$4 sm:$0xff]  }
 0x104   :  { %5315 = vmatpush1.bf16.msra.mxu1 %v7645_v25  ;;  %v4981_v32 = vpop.f32.mrf.mxu0  ;;  %5275 = vmatprep.subr.bf16.mxu0 %v7650_v28  ;;  %v7687_v25 = vld [vmem:[%s11242_s1 + $0x1200] ss:$16 sps:$4 sm:$0xff]   ;;  %v7695_v28 = vld [vmem:[%s11242_s1 + $0x13e4] ss:$16 sps:$4 sm:$0xff]  }
 0x105   :  { %v5022_v40 = vpop.f32.mrf.mxu1  ;;  %5316 = vmatprep.subr.bf16.mxu1 %v7653_v29  ;;  %v9455_v46 = vadd.f32 %v5020_v34, %v4980_v38  ;;  %v4982_v47 = vadd.f32 %v4981_v32, %v819_v30  ;;  %5305 = vmatprep.mubr.bf16.mxu0 %v9419_v22  ;;  %v7690_v29 = vld [vmem:[%s11242_s1 + $0x11e0] ss:$16 sps:$4 sm:$0xff]   ;;  %v7698_v33 = vld [vmem:[%s11242_s1 + $0x11c4] ss:$16 sps:$4 sm:$0xff]  }
 0x106   :  { %5346 = vmatprep.mubr.bf16.mxu1 %v9439_v31  ;;  %v4983_v52 = vpop.f32.mrf.mxu0  ;;  %v7693_v30 = vld [vmem:[%s11242_s1 + $0x13e0] ss:$16 sps:$4 sm:$0xff]   ;;  %v7701_v34 = vld [vmem:[%s11242_s1 + $0x13c4] ss:$16 sps:$4 sm:$0xff]  }
 0x107   :  { %v5024_v53 = vpop.f32.mrf.mxu1  ;;  %v9465_v55 = vadd.f32 %v5022_v40, %v4982_v47  ;;  %5276 = vmatpush1.bf16.msra.mxu0 %v7648_v36  ;;  %v7696_v36 = vld [vmem:[%s11242_s1 + $0x11c0] ss:$16 sps:$4 sm:$0xff]   ;;  %v7704_v38 = vld [vmem:[%s11242_s1 + $0x11a4] ss:$16 sps:$4 sm:$0xff]  }
 0x108   :  { %5317 = vmatpush1.bf16.msra.mxu1 %v7651_v37  ;;  %v4984_v56 = vpop.f32.mrf.mxu0  ;;  %5277 = vmatprep.subr.bf16.mxu0 %v7656_v44  ;;  %v7699_v37 = vld [vmem:[%s11242_s1 + $0x13c0] ss:$16 sps:$4 sm:$0xff]   ;;  %v7707_v32 = vld [vmem:[%s11242_s1 + $0x13a4] ss:$16 sps:$4 sm:$0xff]  }
 0x109   :  { %v5025_v57 = vpop.f32.mrf.mxu1  ;;  %5318 = vmatprep.subr.bf16.mxu1 %v7659_v45  ;;  %v7702_v40 = vld [vmem:[%s11242_s1 + $0x11a0] ss:$16 sps:$4 sm:$0xff]   ;;  %v7710_v45 = vld [vmem:[%s11242_s1 + $0x1184] ss:$16 sps:$4 sm:$0xff]  }
 0x10a   :  { %v7705_v44 = vld [vmem:[%s11242_s1 + $0x13a0] ss:$16 sps:$4 sm:$0xff]   ;;  %v7713_v47 = vld [vmem:[%s11242_s1 + $0x1384] ss:$16 sps:$4 sm:$0xff]  }
 0x10b   :  { %5278 = vmatpush1.bf16.msra.mxu0 %v7654_v48  ;;  %v7708_v48 = vld [vmem:[%s11242_s1 + $0x1180] ss:$16 sps:$4 sm:$0xff]   ;;  %v7716_v52 = vld [vmem:[%s11242_s1 + $0x1164] ss:$16 sps:$4 sm:$0xff]  }
 0x10c   :  { %5319 = vmatpush1.bf16.msra.mxu1 %v7657_v51  ;;  %5279 = vmatprep.subr.bf16.mxu0 %v7662_v58  ;;  %v7711_v51 = vld [vmem:[%s11242_s1 + $0x1380] ss:$16 sps:$4 sm:$0xff]   ;;  %v7719_v53 = vld [vmem:[%s11242_s1 + $0x1364] ss:$16 sps:$4 sm:$0xff]  }
 0x10d   :  { %5320 = vmatprep.subr.bf16.mxu1 %v7665_v61  ;;  %v7714_v56 = vld [vmem:[%s11242_s1 + $0x1160] ss:$16 sps:$4 sm:$0xff]   ;;  %v7722_v58 = vld [vmem:[%s11242_s1 + $0x1144] ss:$16 sps:$4 sm:$0xff]  }
 0x10e   :  { %v7717_v57 = vld [vmem:[%s11242_s1 + $0x1360] ss:$16 sps:$4 sm:$0xff]   ;;  %v7725_v61 = vld [vmem:[%s11242_s1 + $0x1344] ss:$16 sps:$4 sm:$0xff]  }
 0x10f   :  { %5280 = vmatpush1.bf16.msra.mxu0 %v7660_v62  ;;  %v934_v62 = vcombine.high %v9371_v1, %v9371_v1  ;;  %v7731_v1 = vld [vmem:[%s11242_s1 + $0x1324] ss:$16 sps:$4 sm:$0xff]  }
 0x110   :  { %5321 = vmatpush1.bf16.msra.mxu1 %v7663_v63  ;;  %5281 = vmatprep.subr.bf16.mxu0 %v7668_v2  ;;  %v7720_v63 = vld [vmem:[%s11242_s1 + $0x1140] ss:$16 sps:$4 sm:$0xff]  }
 0x111   :  { %5322 = vmatprep.subr.bf16.mxu1 %v7671_v3  ;;  %v7723_v2 = vld [vmem:[%s11242_s1 + $0x1340] ss:$16 sps:$4 sm:$0xff]   ;;  %v7728_v3 = vld [vmem:[%s11242_s1 + $0x1124] ss:$16 sps:$4 sm:$0xff]  }
 0x113   :  { %5282 = vmatpush1.bf16.msra.mxu0 %v7666_v5  ;;  %v9608_v5 = vrot.slane %v934_v62, %v8662_v49  ;;  %v7759_v62 = vld [vmem:[%s11242_s1 + $0x1680] ss:$16 sps:$4 sm:$0xff]  }
 0x114   :  { %5323 = vmatpush1.bf16.msra.mxu1 %v7669_v7  ;;  %5283 = vmatprep.subr.bf16.mxu0 %v7674_v8  ;;  %v7726_v7 = vld [vmem:[%s11242_s1 + $0x1120] ss:$16 sps:$4 sm:$0xff]  }
 0x115   :  { %5324 = vmatprep.subr.bf16.mxu1 %v7677_v9  ;;  %v7729_v8 = vld [vmem:[%s11242_s1 + $0x1320] ss:$16 sps:$4 sm:$0xff]   ;;  %v7734_v9 = vld [vmem:[%s11242_s1 + $0x1104] ss:$16 sps:$4 sm:$0xff]  }
 0x117   :  { %5284 = vmatpush1.bf16.msra.mxu0 %v7672_v10  ;;  %v7737_v10 = vld [vmem:[%s11242_s1 + $0x1304] ss:$16 sps:$4 sm:$0xff]  }
 0x118   :  { %5325 = vmatpush1.bf16.msra.mxu1 %v7675_v11  ;;  %5285 = vmatprep.subr.bf16.mxu0 %v7680_v12  ;;  %v950_v11 = vcombine.high %v9608_v5, %v9608_v5  ;;  %v9626_v12 = vrot.slane %v9381_v4, %v8662_v49  ;;  %v7743_v4 = vld [vmem:[%s11242_s1 + $0x16e4] ss:$16 sps:$4 sm:$0xff]  }
 0x119   :  { %5326 = vmatprep.subr.bf16.mxu1 %v7683_v14  ;;  %v7732_v14 = vld [vmem:[%s11242_s1 + $0x1100] ss:$16 sps:$4 sm:$0xff]  }
 0x11b   :  { %5286 = vmatpush1.bf16.msra.mxu0 %v7678_v16  ;;  %v7735_v16 = vld [vmem:[%s11242_s1 + $0x1300] ss:$16 sps:$4 sm:$0xff]  }
 0x11c   :  { %5327 = vmatpush1.bf16.msra.mxu1 %v7681_v19  ;;  %5287 = vmatprep.subr.bf16.mxu0 %v7686_v20  ;;  %v7740_v19 = vld [vmem:[%s11242_s1 + $0x14e4] ss:$16 sps:$4 sm:$0xff]   ;;  %v7738_v20 = vld [vmem:[%s11242_s1 + $0x14e0] ss:$16 sps:$4 sm:$0xff]  }
 0x11d   :  { %5328 = vmatprep.subr.bf16.mxu1 %v7689_v21  ;;  %v7741_v21 = vld [vmem:[%s11242_s1 + $0x16e0] ss:$16 sps:$4 sm:$0xff]  }
 0x11f   :  { %5288 = vmatpush1.bf16.msra.mxu0 %v7684_v24  ;;  %v9647_v24 = vrot.slane %v950_v11, %v8662_v49  ;;  %v7776_v11 = vld [vmem:[%s11242_s1 + $0x1424] ss:$16 sps:$4 sm:$0xff]  }
 0x120   :  { %5329 = vmatpush1.bf16.msra.mxu1 %v7687_v25  ;;  %5289 = vmatprep.subr.bf16.mxu0 %v7692_v27  ;;  %v9651_v25 = vcombine.high %v9626_v12, %v9626_v12  ;;  %v7746_v27 = vld [vmem:[%s11242_s1 + $0x14c4] ss:$16 sps:$4 sm:$0xff]  }
 0x121   :  { %5330 = vmatprep.subr.bf16.mxu1 %v7695_v28  ;;  %v7749_v28 = vld [vmem:[%s11242_s1 + $0x16c4] ss:$16 sps:$4 sm:$0xff]  }
 0x123   :  { %5290 = vmatpush2.bf16.msra.mxu0 %v7690_v29  ;;  %v7744_v29 = vld [vmem:[%s11242_s1 + $0x14c0] ss:$16 sps:$4 sm:$0xff]  }
 0x124   :  { %5331 = vmatpush2.bf16.msra.mxu1 %v7693_v30  ;;  %5291 = vmatprep.subr.bf16.mxu0 %v7698_v33  ;;  %v7747_v30 = vld [vmem:[%s11242_s1 + $0x16c0] ss:$16 sps:$4 sm:$0xff]   ;;  %v9667_v33 = vcombine.high %v9647_v24, %v9647_v24 }
 0x125   :  { %5332 = vmatprep.subr.bf16.mxu1 %v7701_v34 }
 0x127   :  { %5292 = vmatpush2.bf16.msra.mxu0 %v7696_v36 }
 0x128   :  { %5333 = vmatpush2.bf16.msra.mxu1 %v7699_v37  ;;  %5293 = vmatprep.subr.bf16.mxu0 %v7704_v38 }
 0x129   :  { %5334 = vmatprep.subr.bf16.mxu1 %v7707_v32 }
 0x12b   :  { %5294 = vmatpush2.bf16.msra.mxu0 %v7702_v40  ;;  %v7752_v40 = vld [vmem:[%s11242_s1 + $0x14a4] ss:$16 sps:$4 sm:$0xff]  }
 0x12c   :  { %5335 = vmatpush2.bf16.msra.mxu1 %v7705_v44  ;;  %5295 = vmatprep.subr.bf16.mxu0 %v7710_v45  ;;  %v7755_v44 = vld [vmem:[%s11242_s1 + $0x16a4] ss:$16 sps:$4 sm:$0xff]  }
 0x12d   :  { %5336 = vmatprep.subr.bf16.mxu1 %v7713_v47 }
 0x12f   :  { %5296 = vmatpush2.bf16.msra.mxu0 %v7708_v48  ;;  %v7753_v48 = vld [vmem:[%s11242_s1 + $0x16a0] ss:$16 sps:$4 sm:$0xff]  }
 0x130   :  { %5337 = vmatpush2.bf16.msra.mxu1 %v7711_v51  ;;  %5297 = vmatprep.subr.bf16.mxu0 %v7716_v52 }
 0x131   :  { %5338 = vmatprep.subr.bf16.mxu1 %v7719_v53 }
 0x133   :  { %5298 = vmatpush2.bf16.msra.mxu0 %v7714_v56 }
 0x134   :  { %5339 = vmatpush2.bf16.msra.mxu1 %v7717_v57  ;;  %5299 = vmatprep.subr.bf16.mxu0 %v7722_v58  ;;  %v7758_v57 = vld [vmem:[%s11242_s1 + $0x1484] ss:$16 sps:$4 sm:$0xff]  }
 0x135   :  { %5340 = vmatprep.subr.bf16.mxu1 %v7725_v61  ;;  %v7761_v58 = vld [vmem:[%s11242_s1 + $0x1684] ss:$16 sps:$4 sm:$0xff]   ;;  %v7756_v61 = vld [vmem:[%s11242_s1 + $0x1480] ss:$16 sps:$4 sm:$0xff]  }
 0x137   :  { %5300 = vmatpush2.bf16.msra.mxu0 %v7720_v63  ;;  %v7764_v63 = vld [vmem:[%s11242_s1 + $0x1464] ss:$16 sps:$4 sm:$0xff]  }
 0x138   :  { %5341 = vmatpush2.bf16.msra.mxu1 %v7723_v2  ;;  %5301 = vmatprep.subr.bf16.mxu0 %v7728_v3  ;;  %v7767_v2 = vld [vmem:[%s11242_s1 + $0x1664] ss:$16 sps:$4 sm:$0xff]   ;;  %v7762_v3 = vld [vmem:[%s11242_s1 + $0x1460] ss:$16 sps:$4 sm:$0xff]  }
 0x139   :  { %5342 = vmatprep.subr.bf16.mxu1 %v7731_v1  ;;  %v7765_v1 = vld [vmem:[%s11242_s1 + $0x1660] ss:$16 sps:$4 sm:$0xff]  }
 0x13b   :  { %5302 = vmatpush2.bf16.msra.mxu0 %v7726_v7  ;;  %v7770_v7 = vld [vmem:[%s11242_s1 + $0x1444] ss:$16 sps:$4 sm:$0xff]  }
 0x13c   :  { %5343 = vmatpush2.bf16.msra.mxu1 %v7729_v8  ;;  %5303 = vmatprep.subr.bf16.mxu0 %v7734_v9  ;;  %v7773_v8 = vld [vmem:[%s11242_s1 + $0x1644] ss:$16 sps:$4 sm:$0xff]   ;;  %v7768_v9 = vld [vmem:[%s11242_s1 + $0x1440] ss:$16 sps:$4 sm:$0xff]  }
 0x13d   :  { %5344 = vmatprep.subr.bf16.mxu1 %v7737_v10  ;;  %v7771_v10 = vld [vmem:[%s11242_s1 + $0x1640] ss:$16 sps:$4 sm:$0xff]  }
 0x13f   :  { %5304 = vmatpush2.bf16.msra.mxu0 %v7732_v14  ;;  %v7779_v14 = vld [vmem:[%s11242_s1 + $0x1624] ss:$16 sps:$4 sm:$0xff]  }
 0x140   :  { %5345 = vmatpush2.bf16.msra.mxu1 %v7735_v16  ;;  %5355 = vmatprep.subr.bf16.mxu0 %v7740_v19  ;;  %v7774_v16 = vld [vmem:[%s11242_s1 + $0x1420] ss:$16 sps:$4 sm:$0xff]  }
 0x141   :  { %5396 = vmatprep.subr.bf16.mxu1 %v7743_v4  ;;  %v7777_v19 = vld [vmem:[%s11242_s1 + $0x1620] ss:$16 sps:$4 sm:$0xff]   ;;  %v7782_v4 = vld [vmem:[%s11242_s1 + $0x1404] ss:$16 sps:$4 sm:$0xff]  }
 0x142   :  { %v5061_v34 = vpop.f32.mrf.mxu0  ;;  %5306 = vmatmul.mubr.bf16.vlgmr.msra.gmra.mxu0 %v9626_v12 }
 0x143   :  { %v5102_v36 = vpop.f32.mrf.mxu1  ;;  %5347 = vmatmul.mubr.bf16.vlgmr.msra.gmra.mxu1 %v9651_v25  ;;  %v5062_v37 = vadd.f32 %v5061_v34, %v9455_v46  ;;  %5356 = vmatpush1.bf16.msra.mxu0 %v7738_v20  ;;  %v7750_v46 = vld [vmem:[%s11242_s1 + $0x14a0] ss:$16 sps:$4 sm:$0xff]   ;;  %v7785_v20 = vld [vmem:[%s11242_s1 + $0x1604] ss:$16 sps:$4 sm:$0xff]  }
 0x144   :  { %5397 = vmatpush1.bf16.msra.mxu1 %v7741_v21  ;;  %v5063_v38 = vpop.f32.mrf.mxu0  ;;  %5357 = vmatprep.subr.bf16.mxu0 %v7746_v27  ;;  %v7780_v21 = vld [vmem:[%s11242_s1 + $0x1400] ss:$16 sps:$4 sm:$0xff]  }
 0x145   :  { %v5104_v32 = vpop.f32.mrf.mxu1  ;;  %5398 = vmatprep.subr.bf16.mxu1 %v7749_v28  ;;  %v9678_v45 = vadd.f32 %v5102_v36, %v5062_v37  ;;  %v5064_v47 = vadd.f32 %v5063_v38, %v9465_v55  ;;  %5387 = vmatprep.mubr.bf16.mxu0 %v9647_v24  ;;  %v7783_v27 = vld [vmem:[%s11242_s1 + $0x1600] ss:$16 sps:$4 sm:$0xff]   ;;  %v7788_v28 = vld [vmem:[%s11242_s1 + $0x15e4] ss:$16 sps:$4 sm:$0xff]  }
 0x146   :  { %5428 = vmatprep.mubr.bf16.mxu1 %v9667_v33  ;;  %v5065_v51 = vpop.f32.mrf.mxu0  ;;  %v7789_v34 = vld [vmem:[%s11242_s1 + $0x17e0] ss:$16 sps:$4 sm:$0xff]   ;;  %v7794_v36 = vld [vmem:[%s11242_s1 + $0x15c4] ss:$16 sps:$4 sm:$0xff]  }
 0x147   :  { %v5106_v52 = vpop.f32.mrf.mxu1  ;;  %v9689_v53 = vadd.f32 %v5104_v32, %v5064_v47  ;;  %5358 = vmatpush1.bf16.msra.mxu0 %v7744_v29  ;;  %v7791_v29 = vld [vmem:[%s11242_s1 + $0x17e4] ss:$16 sps:$4 sm:$0xff]   ;;  %v7792_v38 = vld [vmem:[%s11242_s1 + $0x15c0] ss:$16 sps:$4 sm:$0xff]  }
 0x148   :  { %5399 = vmatpush1.bf16.msra.mxu1 %v7747_v30  ;;  %v5066_v56 = vpop.f32.mrf.mxu0  ;;  %5359 = vmatprep.subr.bf16.mxu0 %v7752_v40  ;;  %v7786_v30 = vld [vmem:[%s11242_s1 + $0x15e0] ss:$16 sps:$4 sm:$0xff]   ;;  %v7797_v37 = vld [vmem:[%s11242_s1 + $0x17c4] ss:$16 sps:$4 sm:$0xff]  }
 0x149   :  { %v5107_v55 = vpop.f32.mrf.mxu1  ;;  %5400 = vmatprep.subr.bf16.mxu1 %v7755_v44  ;;  %v7795_v32 = vld [vmem:[%s11242_s1 + $0x17c0] ss:$16 sps:$4 sm:$0xff]   ;;  %v7800_v40 = vld [vmem:[%s11242_s1 + $0x15a4] ss:$16 sps:$4 sm:$0xff]  }
 0x14a   :  { %v7803_v44 = vld [vmem:[%s11242_s1 + $0x17a4] ss:$16 sps:$4 sm:$0xff]   ;;  %v7798_v47 = vld [vmem:[%s11242_s1 + $0x15a0] ss:$16 sps:$4 sm:$0xff]  }
 0x14b   :  { %5360 = vmatpush1.bf16.msra.mxu0 %v7750_v46  ;;  %v7801_v46 = vld [vmem:[%s11242_s1 + $0x17a0] ss:$16 sps:$4 sm:$0xff]   ;;  %v7809_v51 = vld [vmem:[%s11242_s1 + $0x1784] ss:$16 sps:$4 sm:$0xff]  }
 0x14c   :  { %5401 = vmatpush1.bf16.msra.mxu1 %v7753_v48  ;;  %5361 = vmatprep.subr.bf16.mxu0 %v7758_v57  ;;  %v7806_v48 = vld [vmem:[%s11242_s1 + $0x1584] ss:$16 sps:$4 sm:$0xff]   ;;  %v7804_v52 = vld [vmem:[%s11242_s1 + $0x1580] ss:$16 sps:$4 sm:$0xff]  }
 0x14d   :  { %5402 = vmatprep.subr.bf16.mxu1 %v7761_v58  ;;  %v7807_v56 = vld [vmem:[%s11242_s1 + $0x1780] ss:$16 sps:$4 sm:$0xff]   ;;  %v7812_v55 = vld [vmem:[%s11242_s1 + $0x1564] ss:$16 sps:$4 sm:$0xff]  }
 0x14e   :  { %v7815_v57 = vld [vmem:[%s11242_s1 + $0x1764] ss:$16 sps:$4 sm:$0xff]   ;;  %v7810_v58 = vld [vmem:[%s11242_s1 + $0x1560] ss:$16 sps:$4 sm:$0xff]  }
 0x14f   :  { %5362 = vmatpush1.bf16.msra.mxu0 %v7756_v61  ;;  %v7813_v61 = vld [vmem:[%s11242_s1 + $0x1760] ss:$16 sps:$4 sm:$0xff]  }
 0x150   :  { %5403 = vmatpush1.bf16.msra.mxu1 %v7759_v62  ;;  %5363 = vmatprep.subr.bf16.mxu0 %v7764_v63  ;;  %v7818_v62 = vld [vmem:[%s11242_s1 + $0x1544] ss:$16 sps:$4 sm:$0xff]  }
 0x151   :  { %5404 = vmatprep.subr.bf16.mxu1 %v7767_v2  ;;  %v7821_v63 = vld [vmem:[%s11242_s1 + $0x1744] ss:$16 sps:$4 sm:$0xff]   ;;  %v7816_v2 = vld [vmem:[%s11242_s1 + $0x1540] ss:$16 sps:$4 sm:$0xff]  }
 0x153   :  { %5364 = vmatpush1.bf16.msra.mxu0 %v7762_v3  ;;  %v7819_v3 = vld [vmem:[%s11242_s1 + $0x1740] ss:$16 sps:$4 sm:$0xff]  }
 0x154   :  { %5405 = vmatpush1.bf16.msra.mxu1 %v7765_v1  ;;  %5365 = vmatprep.subr.bf16.mxu0 %v7770_v7  ;;  %v7824_v1 = vld [vmem:[%s11242_s1 + $0x1524] ss:$16 sps:$4 sm:$0xff]  }
 0x155   :  { %5406 = vmatprep.subr.bf16.mxu1 %v7773_v8  ;;  %v7827_v7 = vld [vmem:[%s11242_s1 + $0x1724] ss:$16 sps:$4 sm:$0xff]   ;;  %v7822_v8 = vld [vmem:[%s11242_s1 + $0x1520] ss:$16 sps:$4 sm:$0xff]  }
 0x157   :  { %5366 = vmatpush1.bf16.msra.mxu0 %v7768_v9  ;;  %v7825_v9 = vld [vmem:[%s11242_s1 + $0x1720] ss:$16 sps:$4 sm:$0xff]  }
 0x158   :  { %5407 = vmatpush1.bf16.msra.mxu1 %v7771_v10  ;;  %5367 = vmatprep.subr.bf16.mxu0 %v7776_v11  ;;  %v7830_v10 = vld [vmem:[%s11242_s1 + $0x1504] ss:$16 sps:$4 sm:$0xff]  }
 0x159   :  { %5408 = vmatprep.subr.bf16.mxu1 %v7779_v14  ;;  %v7833_v11 = vld [vmem:[%s11242_s1 + $0x1704] ss:$16 sps:$4 sm:$0xff]   ;;  %v9843_v14 = vrot.slane %v9608_v5, %v8662_v49  ;;  %v7840_v5 = vld [vmem:[%s11242_s1 + $0xec] ss:$16 sps:$4 sm:$0xff]  }
 0x15b   :  { %5368 = vmatpush1.bf16.msra.mxu0 %v7774_v16  ;;  %v7828_v16 = vld [vmem:[%s11242_s1 + $0x1500] ss:$16 sps:$4 sm:$0xff]  }
 0x15c   :  { %5409 = vmatpush1.bf16.msra.mxu1 %v7777_v19  ;;  %5369 = vmatprep.subr.bf16.mxu0 %v7782_v4  ;;  %v7831_v19 = vld [vmem:[%s11242_s1 + $0x1700] ss:$16 sps:$4 sm:$0xff]   ;;  %v7837_v4 = vld [vmem:[%s11242_s1 + $0x1864] ss:$16 sps:$4 sm:$0xff]  }
 0x15d   :  { %5410 = vmatprep.subr.bf16.mxu1 %v7785_v20  ;;  %v7835_v20 = vld [vmem:[%s11242_s1 + $0x1860] ss:$16 sps:$4 sm:$0xff]  }
 0x15f   :  { %5370 = vmatpush1.bf16.msra.mxu0 %v7780_v21  ;;  %v7838_v21 = vld [vmem:[%s11242_s1 + $0xe8] ss:$16 sps:$4 sm:$0xff]  }
 0x160   :  { %5411 = vmatpush1.bf16.msra.mxu1 %v7783_v27  ;;  %5371 = vmatprep.subr.bf16.mxu0 %v7788_v28  ;;  %v9865_v27 = vcombine.high %v9843_v14, %v9843_v14  ;;  %v7843_v28 = vld [vmem:[%s11242_s1 + $0x1844] ss:$16 sps:$4 sm:$0xff]  }
 0x161   :  { %5412 = vmatprep.subr.bf16.mxu1 %v7791_v29  ;;  %v7846_v29 = vld [vmem:[%s11242_s1 + $0xcc] ss:$16 sps:$4 sm:$0xff]  }
 0x163   :  { %5372 = vmatpush2.bf16.msra.mxu0 %v7786_v30  ;;  %v7841_v30 = vld [vmem:[%s11242_s1 + $0x1840] ss:$16 sps:$4 sm:$0xff]  }
 0x164   :  { %5413 = vmatpush2.bf16.msra.mxu1 %v7789_v34  ;;  %5373 = vmatprep.subr.bf16.mxu0 %v7794_v36  ;;  %v7844_v34 = vld [vmem:[%s11242_s1 + $0xc8] ss:$16 sps:$4 sm:$0xff]  }
 0x165   :  { %5414 = vmatprep.subr.bf16.mxu1 %v7797_v37 }
 0x167   :  { %5374 = vmatpush2.bf16.msra.mxu0 %v7792_v38 }
 0x168   :  { %5415 = vmatpush2.bf16.msra.mxu1 %v7795_v32  ;;  %5375 = vmatprep.subr.bf16.mxu0 %v7800_v40 }
 0x169   :  { %5416 = vmatprep.subr.bf16.mxu1 %v7803_v44  ;;  %v7849_v44 = vld [vmem:[%s11242_s1 + $0x1824] ss:$16 sps:$4 sm:$0xff]  }
 0x16b   :  { %5376 = vmatpush2.bf16.msra.mxu0 %v7798_v47  ;;  %v7852_v47 = vld [vmem:[%s11242_s1 + $0xac] ss:$16 sps:$4 sm:$0xff]  }
 0x16c   :  { %5417 = vmatpush2.bf16.msra.mxu1 %v7801_v46  ;;  %5377 = vmatprep.subr.bf16.mxu0 %v7806_v48 }
 0x16d   :  { %5418 = vmatprep.subr.bf16.mxu1 %v7809_v51  ;;  %v7850_v51 = vld [vmem:[%s11242_s1 + $0xa8] ss:$16 sps:$4 sm:$0xff]  }
 0x16f   :  { %5378 = vmatpush2.bf16.msra.mxu0 %v7804_v52  ;;  %v8495_v52 = vmov 0  }
 0x170   :  { %5419 = vmatpush2.bf16.msra.mxu1 %v7807_v56  ;;  %5379 = vmatprep.subr.bf16.mxu0 %v7812_v55 }
 0x171   :  { %5420 = vmatprep.subr.bf16.mxu1 %v7815_v57 }
 0x173   :  { %5380 = vmatpush2.bf16.msra.mxu0 %v7810_v58 }
 0x174   :  { %5421 = vmatpush2.bf16.msra.mxu1 %v7813_v61  ;;  %5381 = vmatprep.subr.bf16.mxu0 %v7818_v62  ;;  %v7855_v61 = vld [vmem:[%s11242_s1 + $0x1804] ss:$16 sps:$4 sm:$0xff]   ;;  %v7858_v62 = vld [vmem:[%s11242_s1 + $0x8c] ss:$16 sps:$4 sm:$0xff]  }
 0x175   :  { %5422 = vmatprep.subr.bf16.mxu1 %v7821_v63  ;;  %v7856_v63 = vld [vmem:[%s11242_s1 + $0x88] ss:$16 sps:$4 sm:$0xff]  }
 0x177   :  { %5382 = vmatpush2.bf16.msra.mxu0 %v7816_v2  ;;  %v6389_v2 = vld.sshfl [vmem:[%s11241_s0 + $0x18] sm:$0x1 pattern:$0x75316420] }
 0x178   :  { %5423 = vmatpush2.bf16.msra.mxu1 %v7819_v3  ;;  %5383 = vmatprep.subr.bf16.mxu0 %v7824_v1  ;;  %v7861_v3 = vld [vmem:[%s11242_s1 + $0x6c] ss:$16 sps:$4 sm:$0xff]  }
 0x179   :  { %5424 = vmatprep.subr.bf16.mxu1 %v7827_v7  ;;  %v7864_v1 = vld [vmem:[%s11242_s1 + $0x2ec] ss:$16 sps:$4 sm:$0xff]   ;;  %v7859_v7 = vld [vmem:[%s11242_s1 + $0x68] ss:$16 sps:$4 sm:$0xff]  }
 0x17b   :  { %5384 = vmatpush2.bf16.msra.mxu0 %v7822_v8  ;;  %v7862_v8 = vld [vmem:[%s11242_s1 + $0x2e8] ss:$16 sps:$4 sm:$0xff]  }
 0x17c   :  { %5425 = vmatpush2.bf16.msra.mxu1 %v7825_v9  ;;  %5385 = vmatprep.subr.bf16.mxu0 %v7830_v10  ;;  %v9929_v9 = vrot.slane %v6389_v2, %v8662_v49  ;;  %v7867_v10 = vld [vmem:[%s11242_s1 + $0x4c] ss:$16 sps:$4 sm:$0xff]   ;;  %v7865_v49 = vld [vmem:[%s11242_s1 + $0x48] ss:$16 sps:$4 sm:$0xff]  }
 0x17d   :  { %5426 = vmatprep.subr.bf16.mxu1 %v7833_v11  ;;  %v7870_v11 = vld [vmem:[%s11242_s1 + $0x2cc] ss:$16 sps:$4 sm:$0xff]  }
 0x17e   :  { %v7915_v2 = vld [vmem:[%s11242_s1 + $0x14c] ss:$16 sps:$4 sm:$0xff]  }
 0x17f   :  { %5386 = vmatpush2.bf16.msra.mxu0 %v7828_v16  ;;  %v7868_v16 = vld [vmem:[%s11242_s1 + $0x2c8] ss:$16 sps:$4 sm:$0xff]  }
 0x180   :  { %5427 = vmatpush2.bf16.msra.mxu1 %v7831_v19  ;;  %5445 = vmatprep.subr.bf16.mxu0 %v7837_v4  ;;  %v7873_v19 = vld [vmem:[%s11242_s1 + $0x2c] ss:$16 sps:$4 sm:$0xff]  }
 0x181   :  { %5478 = vmatprep.subr.bf16.mxu1 %v7840_v5  ;;  %v7876_v4 = vld [vmem:[%s11242_s1 + $0x2ac] ss:$16 sps:$4 sm:$0xff]   ;;  %v7871_v5 = vld [vmem:[%s11242_s1 + $0x28] ss:$16 sps:$4 sm:$0xff]  }
 0x182   :  { %v5143_v36 = vpop.f32.mrf.mxu0  ;;  %5388 = vmatmul.mubr.bf16.vlgmr.msra.gmra.mxu0 %v9843_v14 }
 0x183   :  { %v5184_v37 = vpop.f32.mrf.mxu1  ;;  %5429 = vmatmul.mubr.bf16.vlgmr.msra.gmra.mxu1 %v9865_v27  ;;  %v5144_v38 = vadd.f32 %v5143_v36, %v9678_v45  ;;  %5446 = vmatpush1.bf16.msra.mxu0 %v7835_v20  ;;  %v7847_v45 = vld [vmem:[%s11242_s1 + $0x1820] ss:$16 sps:$4 sm:$0xff]   ;;  %v7874_v20 = vld [vmem:[%s11242_s1 + $0x2a8] ss:$16 sps:$4 sm:$0xff]  }
 0x184   :  { %5479 = vmatpush1.bf16.msra.mxu1 %v7838_v21  ;;  %v5145_v32 = vpop.f32.mrf.mxu0  ;;  %5447 = vmatprep.subr.bf16.mxu0 %v7843_v28  ;;  %v7879_v21 = vld [vmem:[%s11242_s1 + $0xc] ss:$16 sps:$4 sm:$0xff]   ;;  %v7877_v28 = vld [vmem:[%s11242_s1 + $0x8] ss:$16 sps:$4 sm:$0xff]  }
 0x185   :  { %v5186_v40 = vpop.f32.mrf.mxu1  ;;  %5480 = vmatprep.subr.bf16.mxu1 %v7846_v29  ;;  %v9888_v46 = vadd.f32 %v5184_v37, %v5144_v38  ;;  %v5146_v48 = vadd.f32 %v5145_v32, %v9689_v53  ;;  %5469 = vmatprep.mubr.bf16.mxu0 %v8495_v52  ;;  %v7880_v29 = vld [vmem:[%s11242_s1 + $0x288] ss:$16 sps:$4 sm:$0xff]   ;;  %v7891_v38 = vld [vmem:[%s11242_s1 + $0x1cc] ss:$16 sps:$4 sm:$0xff]  }
 0x186   :  { %5510 = vmatprep.mubr.bf16.mxu1 %v8690_v60  ;;  %v5147_v56 = vpop.f32.mrf.mxu0  ;;  %v7853_v60 = vld [vmem:[%s11242_s1 + $0x1800] ss:$16 sps:$4 sm:$0xff]   ;;  %v7883_v36 = vld [vmem:[%s11242_s1 + $0x1e8] ss:$16 sps:$4 sm:$0xff]   ;;  %v7894_v32 = vld [vmem:[%s11242_s1 + $0x24c] ss:$16 sps:$4 sm:$0xff]  }
 0x187   :  { %v5188_v55 = vpop.f32.mrf.mxu1  ;;  %v9899_v57 = vadd.f32 %v5186_v40, %v5146_v48  ;;  %5448 = vmatpush1.bf16.msra.mxu0 %v7841_v30  ;;  %v7885_v30 = vld [vmem:[%s11242_s1 + $0x1ec] ss:$16 sps:$4 sm:$0xff]   ;;  %v7886_v37 = vld [vmem:[%s11242_s1 + $0x268] ss:$16 sps:$4 sm:$0xff]  }
 0x188   :  { %5481 = vmatpush1.bf16.msra.mxu1 %v7844_v34  ;;  %v5148_v53 = vpop.f32.mrf.mxu0  ;;  %5449 = vmatprep.subr.bf16.mxu0 %v7849_v44  ;;  %v7888_v34 = vld [vmem:[%s11242_s1 + $0x26c] ss:$16 sps:$4 sm:$0xff]   ;;  %v7889_v40 = vld [vmem:[%s11242_s1 + $0x1c8] ss:$16 sps:$4 sm:$0xff]  }
 0x189   :  { %v5189_v58 = vpop.f32.mrf.mxu1  ;;  %5482 = vmatprep.subr.bf16.mxu1 %v7852_v47  ;;  %v7892_v44 = vld [vmem:[%s11242_s1 + $0x248] ss:$16 sps:$4 sm:$0xff]   ;;  %v7897_v47 = vld [vmem:[%s11242_s1 + $0x1ac] ss:$16 sps:$4 sm:$0xff]  }
 0x18a   :  { %v7900_v48 = vld [vmem:[%s11242_s1 + $0x22c] ss:$16 sps:$4 sm:$0xff]   ;;  %v7901_v53 = vld [vmem:[%s11242_s1 + $0x188] ss:$16 sps:$4 sm:$0xff]  }
 0x18b   :  { %5450 = vmatpush1.bf16.msra.mxu0 %v7847_v45  ;;  %v7895_v45 = vld [vmem:[%s11242_s1 + $0x1a8] ss:$16 sps:$4 sm:$0xff]   ;;  %v7903_v56 = vld [vmem:[%s11242_s1 + $0x18c] ss:$16 sps:$4 sm:$0xff]  }
 0x18c   :  { %5483 = vmatpush1.bf16.msra.mxu1 %v7850_v51  ;;  %5451 = vmatprep.subr.bf16.mxu0 %v7855_v61  ;;  %v7898_v51 = vld [vmem:[%s11242_s1 + $0x228] ss:$16 sps:$4 sm:$0xff]   ;;  %v7906_v55 = vld [vmem:[%s11242_s1 + $0x20c] ss:$16 sps:$4 sm:$0xff]  }
 0x18d   :  { %5484 = vmatprep.subr.bf16.mxu1 %v7858_v62  ;;  %v7904_v58 = vld [vmem:[%s11242_s1 + $0x208] ss:$16 sps:$4 sm:$0xff]   ;;  %v7909_v61 = vld [vmem:[%s11242_s1 + $0x16c] ss:$16 sps:$4 sm:$0xff]  }
 0x18e   :  { %v7912_v62 = vld [vmem:[%s11242_s1 + $0x3ec] ss:$16 sps:$4 sm:$0xff]  }
 0x18f   :  { %5452 = vmatpush1.bf16.msra.mxu0 %v7853_v60  ;;  %v7907_v60 = vld [vmem:[%s11242_s1 + $0x168] ss:$16 sps:$4 sm:$0xff]  }
 0x190   :  { %5485 = vmatpush1.bf16.msra.mxu1 %v7856_v63  ;;  %5519 = vmatprep.subr.bf16.mxu0 %v7864_v1  ;;  %v7910_v63 = vld [vmem:[%s11242_s1 + $0x3e8] ss:$16 sps:$4 sm:$0xff]  }
 0x191   :  { %5486 = vmatprep.subr.bf16.mxu1 %v7861_v3  ;;  %v7918_v3 = vld [vmem:[%s11242_s1 + $0x3cc] ss:$16 sps:$4 sm:$0xff]   ;;  %v7913_v1 = vld [vmem:[%s11242_s1 + $0x148] ss:$16 sps:$4 sm:$0xff]  }
 0x192   :  { %7174 = vmatmul.mubr.msk.bf16.vlgmr.msra.gmra.mxu0 %vm4941_vm0, %v9929_v9 }
 0x193   :  { %5520 = vmatpush1.bf16.msra.mxu0 %v7862_v8  ;;  %5551 = vmatprep.mubr.bf16.mxu0 %v8703_v0  ;;  %v7882_v0 = vld [vmem:[%s11242_s1 + $0x28c] ss:$16 sps:$4 sm:$0xff]  }
 0x194   :  { %5487 = vmatpush1.bf16.msra.mxu1 %v7859_v7  ;;  %5521 = vmatprep.subr.bf16.mxu0 %v7870_v11  ;;  %v7916_v7 = vld [vmem:[%s11242_s1 + $0x3c8] ss:$16 sps:$4 sm:$0xff]   ;;  %v7921_v8 = vld [vmem:[%s11242_s1 + $0x12c] ss:$16 sps:$4 sm:$0xff]  }
 0x195   :  { %5488 = vmatprep.subr.bf16.mxu1 %v7867_v10  ;;  %v7924_v10 = vld [vmem:[%s11242_s1 + $0x3ac] ss:$16 sps:$4 sm:$0xff]   ;;  %v7919_v11 = vld [vmem:[%s11242_s1 + $0x128] ss:$16 sps:$4 sm:$0xff]  }
 0x197   :  { %5522 = vmatpush1.bf16.msra.mxu0 %v7868_v16  ;;  %v7927_v16 = vld [vmem:[%s11242_s1 + $0x10c] ss:$16 sps:$4 sm:$0xff]  }
 0x198   :  { %5489 = vmatpush1.bf16.msra.mxu1 %v7865_v49  ;;  %5523 = vmatprep.subr.bf16.mxu0 %v7876_v4  ;;  %v7922_v49 = vld [vmem:[%s11242_s1 + $0x3a8] ss:$16 sps:$4 sm:$0xff]  }
 0x199   :  { %5490 = vmatprep.subr.bf16.mxu1 %v7873_v19  ;;  %v7930_v19 = vld [vmem:[%s11242_s1 + $0x38c] ss:$16 sps:$4 sm:$0xff]   ;;  %v7925_v4 = vld [vmem:[%s11242_s1 + $0x108] ss:$16 sps:$4 sm:$0xff]  }
 0x19b   :  { %5524 = vmatpush1.bf16.msra.mxu0 %v7874_v20  ;;  %v7933_v20 = vld [vmem:[%s11242_s1 + $0x36c] ss:$16 sps:$4 sm:$0xff]  }
 0x19c   :  { %5491 = vmatpush1.bf16.msra.mxu1 %v7871_v5  ;;  %5525 = vmatprep.subr.bf16.mxu0 %v7882_v0  ;;  %v7928_v5 = vld [vmem:[%s11242_s1 + $0x388] ss:$16 sps:$4 sm:$0xff]  }
 0x19d   :  { %5492 = vmatprep.subr.bf16.mxu1 %v7879_v21  ;;  %v7936_v21 = vld [vmem:[%s11242_s1 + $0x4ec] ss:$16 sps:$4 sm:$0xff]   ;;  %v7931_v0 = vld [vmem:[%s11242_s1 + $0x368] ss:$16 sps:$4 sm:$0xff]  }
 0x19f   :  { %5526 = vmatpush1.bf16.msra.mxu0 %v7880_v29  ;;  %v7939_v29 = vld [vmem:[%s11242_s1 + $0x34c] ss:$16 sps:$4 sm:$0xff]  }
 0x1a0   :  { %5493 = vmatpush1.bf16.msra.mxu1 %v7877_v28  ;;  %5527 = vmatprep.subr.bf16.mxu0 %v7888_v34  ;;  %v7934_v28 = vld [vmem:[%s11242_s1 + $0x4e8] ss:$16 sps:$4 sm:$0xff]  }
 0x1a1   :  { %5494 = vmatprep.subr.bf16.mxu1 %v7885_v30  ;;  %v7942_v30 = vld [vmem:[%s11242_s1 + $0x4cc] ss:$16 sps:$4 sm:$0xff]   ;;  %v7937_v34 = vld [vmem:[%s11242_s1 + $0x348] ss:$16 sps:$4 sm:$0xff]  }
 0x1a3   :  { %5528 = vmatpush1.bf16.msra.mxu0 %v7886_v37 }
 0x1a4   :  { %5495 = vmatpush2.bf16.msra.mxu1 %v7883_v36  ;;  %5529 = vmatprep.subr.bf16.mxu0 %v7894_v32  ;;  %v7940_v36 = vld [vmem:[%s11242_s1 + $0x4c8] ss:$16 sps:$4 sm:$0xff]  }
 0x1a5   :  { %5496 = vmatprep.subr.bf16.mxu1 %v7891_v38 }
 0x1a7   :  { %5530 = vmatpush1.bf16.msra.mxu0 %v7892_v44 }
 0x1a8   :  { %5497 = vmatpush2.bf16.msra.mxu1 %v7889_v40  ;;  %5531 = vmatprep.subr.bf16.mxu0 %v7900_v48  ;;  %v7948_v48 = vld [vmem:[%s11242_s1 + $0x4ac] ss:$16 sps:$4 sm:$0xff]  }
 0x1a9   :  { %5498 = vmatprep.subr.bf16.mxu1 %v7897_v47  ;;  %v7945_v47 = vld [vmem:[%s11242_s1 + $0x32c] ss:$16 sps:$4 sm:$0xff]  }
 0x1ab   :  { %5532 = vmatpush1.bf16.msra.mxu0 %v7898_v51  ;;  %v7946_v51 = vld [vmem:[%s11242_s1 + $0x4a8] ss:$16 sps:$4 sm:$0xff]  }
 0x1ac   :  { %5499 = vmatpush2.bf16.msra.mxu1 %v7895_v45  ;;  %5533 = vmatprep.subr.bf16.mxu0 %v7906_v55 }
 0x1ad   :  { %5500 = vmatprep.subr.bf16.mxu1 %v7903_v56 }
 0x1af   :  { %5534 = vmatpush1.bf16.msra.mxu0 %v7904_v58 }
 0x1b0   :  { %5501 = vmatpush2.bf16.msra.mxu1 %v7901_v53  ;;  %5535 = vmatprep.subr.bf16.mxu0 %v7912_v62  ;;  %v7954_v62 = vld [vmem:[%s11242_s1 + $0x48c] ss:$16 sps:$4 sm:$0xff]  }
 0x1b1   :  { %5502 = vmatprep.subr.bf16.mxu1 %v7909_v61 }
 0x1b3   :  { %5536 = vmatpush2.bf16.msra.mxu0 %v7910_v63  ;;  %v7957_v63 = vld [vmem:[%s11242_s1 + $0x46c] ss:$16 sps:$4 sm:$0xff]  }
 0x1b4   :  { %5503 = vmatpush2.bf16.msra.mxu1 %v7907_v60  ;;  %5537 = vmatprep.subr.bf16.mxu0 %v7918_v3  ;;  %v7952_v60 = vld [vmem:[%s11242_s1 + $0x488] ss:$16 sps:$4 sm:$0xff]  }
 0x1b5   :  { %5504 = vmatprep.subr.bf16.mxu1 %v7915_v2  ;;  %v7960_v2 = vld [vmem:[%s11242_s1 + $0x6ec] ss:$16 sps:$4 sm:$0xff]   ;;  %v7955_v3 = vld [vmem:[%s11242_s1 + $0x468] ss:$16 sps:$4 sm:$0xff]  }
 0x1b7   :  { %5538 = vmatpush2.bf16.msra.mxu0 %v7916_v7  ;;  %v7963_v7 = vld [vmem:[%s11242_s1 + $0x44c] ss:$16 sps:$4 sm:$0xff]  }
 0x1b8   :  { %5505 = vmatpush2.bf16.msra.mxu1 %v7913_v1  ;;  %5539 = vmatprep.subr.bf16.mxu0 %v7924_v10  ;;  %v7958_v1 = vld [vmem:[%s11242_s1 + $0x6e8] ss:$16 sps:$4 sm:$0xff]  }
 0x1b9   :  { %5506 = vmatprep.subr.bf16.mxu1 %v7921_v8  ;;  %v7966_v8 = vld [vmem:[%s11242_s1 + $0x6cc] ss:$16 sps:$4 sm:$0xff]   ;;  %v7961_v10 = vld [vmem:[%s11242_s1 + $0x448] ss:$16 sps:$4 sm:$0xff]  }
 0x1bb   :  { %5540 = vmatpush2.bf16.msra.mxu0 %v7922_v49  ;;  %v7969_v49 = vld [vmem:[%s11242_s1 + $0x42c] ss:$16 sps:$4 sm:$0xff]  }
 0x1bc   :  { %5507 = vmatpush2.bf16.msra.mxu1 %v7919_v11  ;;  %5541 = vmatprep.subr.bf16.mxu0 %v7930_v19  ;;  %v7964_v11 = vld [vmem:[%s11242_s1 + $0x6c8] ss:$16 sps:$4 sm:$0xff]  }
 0x1bd   :  { %5508 = vmatprep.subr.bf16.mxu1 %v7927_v16  ;;  %v7972_v16 = vld [vmem:[%s11242_s1 + $0x6ac] ss:$16 sps:$4 sm:$0xff]   ;;  %v7967_v19 = vld [vmem:[%s11242_s1 + $0x428] ss:$16 sps:$4 sm:$0xff]  }
 0x1bf   :  { %5542 = vmatpush2.bf16.msra.mxu0 %v7928_v5  ;;  %v7978_v5 = vld [vmem:[%s11242_s1 + $0x68c] ss:$16 sps:$4 sm:$0xff]  }
 0x1c0   :  { %5509 = vmatpush2.bf16.msra.mxu1 %v7925_v4  ;;  %5543 = vmatprep.subr.bf16.mxu0 %v7933_v20  ;;  %v7975_v4 = vld [vmem:[%s11242_s1 + $0x40c] ss:$16 sps:$4 sm:$0xff]   ;;  %v7973_v20 = vld [vmem:[%s11242_s1 + $0x408] ss:$16 sps:$4 sm:$0xff]  }
 0x1c1   :  { %5560 = vmatprep.subr.bf16.mxu1 %v7936_v21  ;;  %v7981_v21 = vld [vmem:[%s11242_s1 + $0x5ec] ss:$16 sps:$4 sm:$0xff]  }
 0x1c2   :  { %v5225_v37 = vpop.f32.mrf.mxu0 }
 0x1c3   :  { %v5266_v38 = vpop.f32.mrf.mxu1  ;;  %5511 = vmatmul.mubr.bf16.vlgmr.msra.gmra.mxu1 %v8740_v13  ;;  %v5226_v32 = vadd.f32 %v5225_v37, %v9888_v46  ;;  %5544 = vmatpush2.bf16.msra.mxu0 %v7931_v0  ;;  %v7943_v46 = vld [vmem:[%s11242_s1 + $0x328] ss:$16 sps:$4 sm:$0xff]   ;;  %v7984_v0 = vld [vmem:[%s11242_s1 + $0x66c] ss:$16 sps:$4 sm:$0xff]  }
 0x1c4   :  { %5561 = vmatpush1.bf16.msra.mxu1 %v7934_v28  ;;  %v5227_v40 = vpop.f32.mrf.mxu0  ;;  %5545 = vmatprep.subr.bf16.mxu0 %v7939_v29  ;;  %v7979_v28 = vld [vmem:[%s11242_s1 + $0x5e8] ss:$16 sps:$4 sm:$0xff]  }
 0x1c5   :  { %v5268_v44 = vpop.f32.mrf.mxu1  ;;  %5562 = vmatprep.subr.bf16.mxu1 %v7942_v30  ;;  %v10098_v45 = vadd.f32 %v5266_v38, %v5226_v32  ;;  %v5228_v13 = vadd.f32 %v5227_v40, %v9899_v57  ;;  %5592 = vmatprep.mubr.bf16.mxu1 %v8752_v17  ;;  %v7951_v57 = vld [vmem:[%s11242_s1 + $0x30c] ss:$16 sps:$4 sm:$0xff]   ;;  %v7949_v17 = vld [vmem:[%s11242_s1 + $0x308] ss:$16 sps:$4 sm:$0xff]  }
 0x1c6   :  { %v5229_v56 = vpop.f32.mrf.mxu0  ;;  %v7982_v29 = vld [vmem:[%s11242_s1 + $0x668] ss:$16 sps:$4 sm:$0xff]   ;;  %v7987_v30 = vld [vmem:[%s11242_s1 + $0x5cc] ss:$16 sps:$4 sm:$0xff]  }
 0x1c7   :  { %v5270_v55 = vpop.f32.mrf.mxu1  ;;  %v10108_v53 = vadd.f32 %v5268_v44, %v5228_v13  ;;  %5546 = vmatpush2.bf16.msra.mxu0 %v7937_v34  ;;  %v7990_v34 = vld [vmem:[%s11242_s1 + $0x64c] ss:$16 sps:$4 sm:$0xff]   ;;  %v7988_v37 = vld [vmem:[%s11242_s1 + $0x648] ss:$16 sps:$4 sm:$0xff]  }
 0x1c8   :  { %5563 = vmatpush1.bf16.msra.mxu1 %v7940_v36  ;;  %v5230_v58 = vpop.f32.mrf.mxu0  ;;  %5547 = vmatprep.subr.bf16.mxu0 %v7945_v47  ;;  %v7985_v36 = vld [vmem:[%s11242_s1 + $0x5c8] ss:$16 sps:$4 sm:$0xff]   ;;  %v7993_v38 = vld [vmem:[%s11242_s1 + $0x5ac] ss:$16 sps:$4 sm:$0xff]  }
 0x1c9   :  { %v5271_v61 = vpop.f32.mrf.mxu1  ;;  %5564 = vmatprep.subr.bf16.mxu1 %v7948_v48  ;;  %v7996_v32 = vld [vmem:[%s11242_s1 + $0x62c] ss:$16 sps:$4 sm:$0xff]   ;;  %v7991_v40 = vld [vmem:[%s11242_s1 + $0x5a8] ss:$16 sps:$4 sm:$0xff]  }
 0x1ca   :  { %v7994_v44 = vld [vmem:[%s11242_s1 + $0x628] ss:$16 sps:$4 sm:$0xff]   ;;  %v7999_v47 = vld [vmem:[%s11242_s1 + $0x58c] ss:$16 sps:$4 sm:$0xff]  }
 0x1cb   :  { %5548 = vmatpush2.bf16.msra.mxu0 %v7943_v46  ;;  %v8002_v48 = vld [vmem:[%s11242_s1 + $0x60c] ss:$16 sps:$4 sm:$0xff]  }
 0x1cc   :  { %5565 = vmatpush1.bf16.msra.mxu1 %v7946_v51  ;;  %5549 = vmatprep.subr.bf16.mxu0 %v7951_v57 }
 0x1cd   :  { %5566 = vmatprep.subr.bf16.mxu1 %v7954_v62 }
 0x1cf   :  { %5550 = vmatpush2.bf16.msra.mxu0 %v7949_v17 }
 0x1d0   :  { %5567 = vmatpush1.bf16.msra.mxu1 %v7952_v60  ;;  %5601 = vmatprep.subr.bf16.mxu0 %v7960_v2 }
 0x1d1   :  { %5568 = vmatprep.subr.bf16.mxu1 %v7957_v63 }
 0x1d2   :  { %5552 = vmatmul.mubr.bf16.vlgmr.msra.gmra.mxu0 %v8756_v18  ;;  %v7970_v18 = vld [vmem:[%s11242_s1 + $0x6a8] ss:$16 sps:$4 sm:$0xff]  }
 0x1d3   :  { %5602 = vmatpush1.bf16.msra.mxu0 %v7958_v1  ;;  %5633 = vmatprep.mubr.bf16.mxu0 %v8772_v23  ;;  %v7976_v23 = vld [vmem:[%s11242_s1 + $0x688] ss:$16 sps:$4 sm:$0xff]  }
 0x1d4   :  { %5569 = vmatpush1.bf16.msra.mxu1 %v7955_v3  ;;  %5603 = vmatprep.subr.bf16.mxu0 %v7966_v8 }
 0x1d5   :  { %5570 = vmatprep.subr.bf16.mxu1 %v7963_v7 }
 0x1d7   :  { %5604 = vmatpush1.bf16.msra.mxu0 %v7964_v11 }
 0x1d8   :  { %5571 = vmatpush1.bf16.msra.mxu1 %v7961_v10  ;;  %5605 = vmatprep.subr.bf16.mxu0 %v7972_v16 }
 0x1d9   :  { %5572 = vmatprep.subr.bf16.mxu1 %v7969_v49 }
 0x1db   :  { %5606 = vmatpush1.bf16.msra.mxu0 %v7970_v18 }
 0x1dc   :  { %5573 = vmatpush1.bf16.msra.mxu1 %v7967_v19  ;;  %5607 = vmatprep.subr.bf16.mxu0 %v7978_v5 }
 0x1dd   :  { %5574 = vmatprep.subr.bf16.mxu1 %v7975_v4 }
 0x1df   :  { %5608 = vmatpush1.bf16.msra.mxu0 %v7976_v23 }
 0x1e0   :  { %5575 = vmatpush1.bf16.msra.mxu1 %v7973_v20  ;;  %5609 = vmatprep.subr.bf16.mxu0 %v7984_v0 }
 0x1e1   :  { %5576 = vmatprep.subr.bf16.mxu1 %v7981_v21 }
 0x1e3   :  { %5610 = vmatpush1.bf16.msra.mxu0 %v7982_v29 }
 0x1e4   :  { %5577 = vmatpush2.bf16.msra.mxu1 %v7979_v28  ;;  %5611 = vmatprep.subr.bf16.mxu0 %v7990_v34 }
 0x1e5   :  { %5578 = vmatprep.subr.bf16.mxu1 %v7987_v30 }
 0x1e7   :  { %5612 = vmatpush1.bf16.msra.mxu0 %v7988_v37 }
 0x1e8   :  { %5579 = vmatpush2.bf16.msra.mxu1 %v7985_v36  ;;  %5613 = vmatprep.subr.bf16.mxu0 %v7996_v32 }
 0x1e9   :  { %5580 = vmatprep.subr.bf16.mxu1 %v7993_v38 }
 0x1ea   :  { %10 = vsyncpa [#allocation3], 0  ;;  %v7997_v13 = vld [vmem:[%s11242_s1 + $0x588] ss:$16 sps:$4 sm:$0xff]   ;;  %v8005_v51 = vld [vmem:[%s11242_s1 + $0x56c] ss:$16 sps:$4 sm:$0xff]  }
 0x1eb   :  { %5614 = vmatpush1.bf16.msra.mxu0 %v7994_v44  ;;  %v8000_v46 = vld [vmem:[%s11242_s1 + $0x608] ss:$16 sps:$4 sm:$0xff]   ;;  %v8008_v56 = vld [vmem:[%s11242_s1 + $0x7ec] ss:$16 sps:$4 sm:$0xff]   ;;  %vm6362_vm1 = vcmask 41984  }
 0x1ec   :  { %5581 = vmatpush2.bf16.msra.mxu1 %v7991_v40  ;;  %5615 = vmatprep.subr.bf16.mxu0 %v8002_v48  ;;  %v8003_v55 = vld [vmem:[%s11242_s1 + $0x568] ss:$16 sps:$4 sm:$0xff]   ;;  %v8011_v61 = vld [vmem:[%s11242_s1 + $0x54c] ss:$16 sps:$4 sm:$0xff]  }
 0x1ed   :  { %5582 = vmatprep.subr.bf16.mxu1 %v7999_v47  ;;  %v8006_v58 = vld [vmem:[%s11242_s1 + $0x7e8] ss:$16 sps:$4 sm:$0xff]   ;;  %v8014_v57 = vld [vmem:[%s11242_s1 + $0x7cc] ss:$16 sps:$4 sm:$0xff]  }
 0x1ee   :  { %v8009_v62 = vld [vmem:[%s11242_s1 + $0x548] ss:$16 sps:$4 sm:$0xff]   ;;  %v8017_v60 = vld [vmem:[%s11242_s1 + $0x52c] ss:$16 sps:$4 sm:$0xff]  }
 0x1ef   :  { %5616 = vmatpush1.bf16.msra.mxu0 %v8000_v46  ;;  %v8012_v17 = vld [vmem:[%s11242_s1 + $0x7c8] ss:$16 sps:$4 sm:$0xff]   ;;  %v8020_v63 = vld [vmem:[%s11242_s1 + $0x7ac] ss:$16 sps:$4 sm:$0xff]  }
 0x1f0   :  { %5583 = vmatpush2.bf16.msra.mxu1 %v7997_v13  ;;  %5617 = vmatprep.subr.bf16.mxu0 %v8008_v56  ;;  %v8015_v2 = vld [vmem:[%s11242_s1 + $0x528] ss:$16 sps:$4 sm:$0xff]   ;;  %v8023_v1 = vld [vmem:[%s11242_s1 + $0x50c] ss:$16 sps:$4 sm:$0xff]  }
 0x1f1   :  { %5584 = vmatprep.subr.bf16.mxu1 %v8005_v51  ;;  %v8018_v3 = vld [vmem:[%s11242_s1 + $0x7a8] ss:$16 sps:$4 sm:$0xff]   ;;  %v8026_v7 = vld [vmem:[%s11242_s1 + $0x78c] ss:$16 sps:$4 sm:$0xff]  }
 0x1f2   :  { %v8021_v8 = vld [vmem:[%s11242_s1 + $0x508] ss:$16 sps:$4 sm:$0xff]   ;;  %v8029_v11 = vld [vmem:[%s11242_s1 + $0x76c] ss:$16 sps:$4 sm:$0xff]  }
 0x1f3   :  { %5618 = vmatpush2.bf16.msra.mxu0 %v8006_v58  ;;  %v8024_v10 = vld [vmem:[%s11242_s1 + $0x788] ss:$16 sps:$4 sm:$0xff]   ;;  %v8032_v49 = vld [vmem:[%s11242_s1 + $0x8ec] ss:$16 sps:$4 sm:$0xff]  }
 0x1f4   :  { %5585 = vmatpush2.bf16.msra.mxu1 %v8003_v55  ;;  %5619 = vmatprep.subr.bf16.mxu0 %v8014_v57  ;;  %v8027_v16 = vld [vmem:[%s11242_s1 + $0x768] ss:$16 sps:$4 sm:$0xff]   ;;  %v8035_v18 = vld [vmem:[%s11242_s1 + $0x74c] ss:$16 sps:$4 sm:$0xff]  }
 0x1f5   :  { %5586 = vmatprep.subr.bf16.mxu1 %v8011_v61  ;;  %v8030_v19 = vld [vmem:[%s11242_s1 + $0x8e8] ss:$16 sps:$4 sm:$0xff]   ;;  %v8038_v4 = vld [vmem:[%s11242_s1 + $0x8cc] ss:$16 sps:$4 sm:$0xff]  }
 0x1f6   :  { %v8033_v21 = vld [vmem:[%s11242_s1 + $0x748] ss:$16 sps:$4 sm:$0xff]   ;;  %v8053_v46 = vld [vmem:[%s11242_s1 + $0x86c] ss:$16 sps:$4 sm:$0xff]  }
 0x1f7   :  { %5620 = vmatpush2.bf16.msra.mxu0 %v8012_v17  ;;  %v8036_v0 = vld [vmem:[%s11242_s1 + $0x8c8] ss:$16 sps:$4 sm:$0xff]   ;;  %v8056_v51 = vld [vmem:[%s11242_s1 + $0xaec] ss:$16 sps:$4 sm:$0xff]  }
 0x1f8   :  { %5587 = vmatpush2.bf16.msra.mxu1 %v8009_v62  ;;  %5621 = vmatprep.subr.bf16.mxu0 %v8020_v63  ;;  %v8039_v32 = vld [vmem:[%s11242_s1 + $0x728] ss:$16 sps:$4 sm:$0xff]   ;;  %v8059_v58 = vld [vmem:[%s11242_s1 + $0x84c] ss:$16 sps:$4 sm:$0xff]  }
 0x1f9   :  { %5588 = vmatprep.subr.bf16.mxu1 %v8017_v60  ;;  %v8042_v40 = vld [vmem:[%s11242_s1 + $0x8a8] ss:$16 sps:$4 sm:$0xff]   ;;  %v8062_v61 = vld [vmem:[%s11242_s1 + $0xacc] ss:$16 sps:$4 sm:$0xff]  }
 0x1fa   :  { %v8045_v48 = vld [vmem:[%s11242_s1 + $0x708] ss:$16 sps:$4 sm:$0xff]   ;;  %v8065_v17 = vld [vmem:[%s11242_s1 + $0x82c] ss:$16 sps:$4 sm:$0xff]  }
 0x1fb   :  { %5622 = vmatpush2.bf16.msra.mxu0 %v8018_v3  ;;  %v8048_v13 = vld [vmem:[%s11242_s1 + $0x888] ss:$16 sps:$4 sm:$0xff]  }
 0x1fc   :  { %5589 = vmatpush2.bf16.msra.mxu1 %v8015_v2  ;;  %5623 = vmatprep.subr.bf16.mxu0 %v8026_v7  ;;  %v8051_v56 = vld [vmem:[%s11242_s1 + $0x868] ss:$16 sps:$4 sm:$0xff]   ;;  %v8071_v2 = vld [vmem:[%s11242_s1 + $0x80c] ss:$16 sps:$4 sm:$0xff]  }
 0x1fd   :  { %5590 = vmatprep.subr.bf16.mxu1 %v8023_v1  ;;  %v8054_v55 = vld [vmem:[%s11242_s1 + $0xae8] ss:$16 sps:$4 sm:$0xff]   ;;  %v8077_v7 = vld [vmem:[%s11242_s1 + $0x9ec] ss:$16 sps:$4 sm:$0xff]  }
 0x1fe   :  { %v8057_v57 = vld [vmem:[%s11242_s1 + $0x848] ss:$16 sps:$4 sm:$0xff]  }
 0x1ff   :  { %5624 = vmatpush2.bf16.msra.mxu0 %v8024_v10  ;;  %v8060_v62 = vld [vmem:[%s11242_s1 + $0xac8] ss:$16 sps:$4 sm:$0xff]  }
 0x200   :  { %5591 = vmatpush2.bf16.msra.mxu1 %v8021_v8  ;;  %5625 = vmatprep.subr.bf16.mxu0 %v8029_v11  ;;  %v8063_v60 = vld [vmem:[%s11242_s1 + $0x828] ss:$16 sps:$4 sm:$0xff]   ;;  %v8080_v8 = vld [vmem:[%s11242_s1 + $0xa6c] ss:$16 sps:$4 sm:$0xff]  }
 0x201   :  { %5642 = vmatprep.subr.bf16.mxu1 %v8032_v49  ;;  %v8066_v63 = vld [vmem:[%s11242_s1 + $0xaa8] ss:$16 sps:$4 sm:$0xff]   ;;  %v8083_v49 = vld [vmem:[%s11242_s1 + $0x9cc] ss:$16 sps:$4 sm:$0xff]  }
 0x202   :  { %v5307_v5 = vpop.f32.mrf.mxu0  ;;  %v8069_v3 = vld [vmem:[%s11242_s1 + $0x808] ss:$16 sps:$4 sm:$0xff]  }
 0x203   :  { %v5348_v20 = vpop.f32.mrf.mxu1  ;;  %5593 = vmatmul.mubr.bf16.vlgmr.msra.gmra.mxu1 %v8951_v26  ;;  %v5308_v23 = vadd.f32 %v5307_v5, %v10098_v45  ;;  %5626 = vmatpush2.bf16.msra.mxu0 %v8027_v16  ;;  %v8041_v26 = vld [vmem:[%s11242_s1 + $0x72c] ss:$16 sps:$4 sm:$0xff]   ;;  %v8072_v1 = vld [vmem:[%s11242_s1 + $0xa88] ss:$16 sps:$4 sm:$0xff]  }
 0x204   :  { %5643 = vmatpush1.bf16.msra.mxu1 %v8030_v19  ;;  %v5309_v28 = vpop.f32.mrf.mxu0  ;;  %5627 = vmatprep.subr.bf16.mxu0 %v8035_v18  ;;  %v8044_v45 = vld [vmem:[%s11242_s1 + $0x8ac] ss:$16 sps:$4 sm:$0xff]   ;;  %v8075_v10 = vld [vmem:[%s11242_s1 + $0x9e8] ss:$16 sps:$4 sm:$0xff]  }
 0x205   :  { %v5350_v29 = vpop.f32.mrf.mxu1  ;;  %5644 = vmatprep.subr.bf16.mxu1 %v8038_v4  ;;  %v10300_v30 = vadd.f32 %v5348_v20, %v5308_v23  ;;  %v5310_v34 = vadd.f32 %v5309_v28, %v10108_v53  ;;  %5674 = vmatprep.mubr.bf16.mxu1 %v9004_v41  ;;  %v8047_v41 = vld [vmem:[%s11242_s1 + $0x70c] ss:$16 sps:$4 sm:$0xff]   ;;  %v8078_v11 = vld [vmem:[%s11242_s1 + $0xa68] ss:$16 sps:$4 sm:$0xff]  }
 0x206   :  { %v5311_v36 = vpop.f32.mrf.mxu0  ;;  %v8050_v53 = vld [vmem:[%s11242_s1 + $0x88c] ss:$16 sps:$4 sm:$0xff]   ;;  %v8081_v19 = vld [vmem:[%s11242_s1 + $0x9c8] ss:$16 sps:$4 sm:$0xff]  }
 0x207   :  { %v5352_v37 = vpop.f32.mrf.mxu1  ;;  %v10304_v38 = vadd.f32 %v5350_v29, %v5310_v34  ;;  %5628 = vmatpush2.bf16.msra.mxu0 %v8033_v21  ;;  %v8086_v16 = vld [vmem:[%s11242_s1 + $0xa4c] ss:$16 sps:$4 sm:$0xff]   ;;  %v8084_v18 = vld [vmem:[%s11242_s1 + $0xa48] ss:$16 sps:$4 sm:$0xff]  }
 0x208   :  { %5645 = vmatpush1.bf16.msra.mxu1 %v8036_v0  ;;  %v5312_v44 = vpop.f32.mrf.mxu0  ;;  %5629 = vmatprep.subr.bf16.mxu0 %v8041_v26  ;;  %v8089_v4 = vld [vmem:[%s11242_s1 + $0x9ac] ss:$16 sps:$4 sm:$0xff]   ;;  %v8087_v20 = vld [vmem:[%s11242_s1 + $0x9a8] ss:$16 sps:$4 sm:$0xff]  }
 0x209   :  { %v5353_v47 = vpop.f32.mrf.mxu1  ;;  %5646 = vmatprep.subr.bf16.mxu1 %v8044_v45  ;;  %v8092_v5 = vld [vmem:[%s11242_s1 + $0xa2c] ss:$16 sps:$4 sm:$0xff]   ;;  %v8090_v23 = vld [vmem:[%s11242_s1 + $0xa28] ss:$16 sps:$4 sm:$0xff]  }
 0x20a   :  { %v8095_v21 = vld [vmem:[%s11242_s1 + $0x98c] ss:$16 sps:$4 sm:$0xff]   ;;  %v8093_v28 = vld [vmem:[%s11242_s1 + $0x988] ss:$16 sps:$4 sm:$0xff]  }
 0x20b   :  { %5630 = vmatpush2.bf16.msra.mxu0 %v8039_v32  ;;  %v8098_v0 = vld [vmem:[%s11242_s1 + $0xa0c] ss:$16 sps:$4 sm:$0xff]   ;;  %v8096_v29 = vld [vmem:[%s11242_s1 + $0xa08] ss:$16 sps:$4 sm:$0xff]  }
 0x20c   :  { %5647 = vmatpush1.bf16.msra.mxu1 %v8042_v40  ;;  %5631 = vmatprep.subr.bf16.mxu0 %v8047_v41  ;;  %v8101_v26 = vld [vmem:[%s11242_s1 + $0x96c] ss:$16 sps:$4 sm:$0xff]   ;;  %v8099_v34 = vld [vmem:[%s11242_s1 + $0x968] ss:$16 sps:$4 sm:$0xff]  }
 0x20d   :  { %5648 = vmatprep.subr.bf16.mxu1 %v8050_v53  ;;  %v8104_v45 = vld [vmem:[%s11242_s1 + $0xbec] ss:$16 sps:$4 sm:$0xff]   ;;  %v8102_v36 = vld [vmem:[%s11242_s1 + $0xbe8] ss:$16 sps:$4 sm:$0xff]  }
 0x20e   :  { %v8107_v37 = vld [vmem:[%s11242_s1 + $0x94c] ss:$16 sps:$4 sm:$0xff]   ;;  %v8105_v40 = vld [vmem:[%s11242_s1 + $0x948] ss:$16 sps:$4 sm:$0xff]  }
 0x20f   :  { %5632 = vmatpush2.bf16.msra.mxu0 %v8045_v48  ;;  %v8110_v32 = vld [vmem:[%s11242_s1 + $0xbcc] ss:$16 sps:$4 sm:$0xff]   ;;  %v8108_v44 = vld [vmem:[%s11242_s1 + $0xbc8] ss:$16 sps:$4 sm:$0xff]  }
 0x210   :  { %5649 = vmatpush1.bf16.msra.mxu1 %v8048_v13  ;;  %5683 = vmatprep.subr.bf16.mxu0 %v8056_v51  ;;  %v8113_v47 = vld [vmem:[%s11242_s1 + $0x92c] ss:$16 sps:$4 sm:$0xff]   ;;  %v8111_v53 = vld [vmem:[%s11242_s1 + $0x928] ss:$16 sps:$4 sm:$0xff]  }
 0x211   :  { %5650 = vmatprep.subr.bf16.mxu1 %v8053_v46  ;;  %v8116_v41 = vld [vmem:[%s11242_s1 + $0xbac] ss:$16 sps:$4 sm:$0xff]   ;;  %v8114_v48 = vld [vmem:[%s11242_s1 + $0xba8] ss:$16 sps:$4 sm:$0xff]  }
 0x212   :  { %5634 = vmatmul.mubr.bf16.vlgmr.msra.gmra.mxu0 %v8964_v6  ;;  %v8068_v6 = vld [vmem:[%s11242_s1 + $0xaac] ss:$16 sps:$4 sm:$0xff]   ;;  %v8117_v51 = vld [vmem:[%s11242_s1 + $0x908] ss:$16 sps:$4 sm:$0xff]  }
 0x213   :  { %5684 = vmatpush1.bf16.msra.mxu0 %v8054_v55  ;;  %5715 = vmatprep.mubr.bf16.mxu0 %v9009_v43  ;;  %v8074_v43 = vld [vmem:[%s11242_s1 + $0xa8c] ss:$16 sps:$4 sm:$0xff]  }
 0x214   :  { %5651 = vmatpush1.bf16.msra.mxu1 %v8051_v56  ;;  %5685 = vmatprep.subr.bf16.mxu0 %v8062_v61  ;;  %v8119_v13 = vld [vmem:[%s11242_s1 + $0x90c] ss:$16 sps:$4 sm:$0xff]   ;;  %v8120_v56 = vld [vmem:[%s11242_s1 + $0xb88] ss:$16 sps:$4 sm:$0xff]  }
 0x215   :  { %5652 = vmatprep.subr.bf16.mxu1 %v8059_v58  ;;  %v8122_v46 = vld [vmem:[%s11242_s1 + $0xb8c] ss:$16 sps:$4 sm:$0xff]   ;;  %v8123_v61 = vld [vmem:[%s11242_s1 + $0xb68] ss:$16 sps:$4 sm:$0xff]  }
 0x216   :  { %v8125_v55 = vld [vmem:[%s11242_s1 + $0xb6c] ss:$16 sps:$4 sm:$0xff]  }
 0x217   :  { %5686 = vmatpush1.bf16.msra.mxu0 %v8060_v62  ;;  %v8128_v58 = vld [vmem:[%s11242_s1 + $0xcec] ss:$16 sps:$4 sm:$0xff]  }
 0x218   :  { %5653 = vmatpush1.bf16.msra.mxu1 %v8057_v57  ;;  %5687 = vmatprep.subr.bf16.mxu0 %v8068_v6  ;;  %v8126_v57 = vld [vmem:[%s11242_s1 + $0xce8] ss:$16 sps:$4 sm:$0xff]   ;;  %v8131_v62 = vld [vmem:[%s11242_s1 + $0xb4c] ss:$16 sps:$4 sm:$0xff]  }
 0x219   :  { %5654 = vmatprep.subr.bf16.mxu1 %v8065_v17  ;;  %v8134_v17 = vld [vmem:[%s11242_s1 + $0xccc] ss:$16 sps:$4 sm:$0xff]  }
 0x21b   :  { %5688 = vmatpush1.bf16.msra.mxu0 %v8066_v63 }
 0x21c   :  { %5655 = vmatpush1.bf16.msra.mxu1 %v8063_v60  ;;  %5689 = vmatprep.subr.bf16.mxu0 %v8074_v43  ;;  %v8132_v43 = vld [vmem:[%s11242_s1 + $0xcc8] ss:$16 sps:$4 sm:$0xff]  }
 0x21d   :  { %5656 = vmatprep.subr.bf16.mxu1 %v8071_v2  ;;  %v8129_v2 = vld [vmem:[%s11242_s1 + $0xb48] ss:$16 sps:$4 sm:$0xff]  }
 0x21f   :  { %5690 = vmatpush1.bf16.msra.mxu0 %v8072_v1 }
 0x220   :  { %5657 = vmatpush1.bf16.msra.mxu1 %v8069_v3  ;;  %5691 = vmatprep.subr.bf16.mxu0 %v8080_v8 }
 0x221   :  { %5658 = vmatprep.subr.bf16.mxu1 %v8077_v7 }
 0x223   :  { %5692 = vmatpush1.bf16.msra.mxu0 %v8078_v11 }
 0x224   :  { %5659 = vmatpush2.bf16.msra.mxu1 %v8075_v10  ;;  %5693 = vmatprep.subr.bf16.mxu0 %v8086_v16  ;;  %v8135_v16 = vld [vmem:[%s11242_s1 + $0xb28] ss:$16 sps:$4 sm:$0xff]  }
 0x225   :  { %5660 = vmatprep.subr.bf16.mxu1 %v8083_v49 }
 0x227   :  { %5694 = vmatpush1.bf16.msra.mxu0 %v8084_v18 }
 0x228   :  { %5661 = vmatpush2.bf16.msra.mxu1 %v8081_v19  ;;  %5695 = vmatprep.subr.bf16.mxu0 %v8092_v5  ;;  %v8138_v19 = vld [vmem:[%s11242_s1 + $0xca8] ss:$16 sps:$4 sm:$0xff]  }
 0x229   :  { %5662 = vmatprep.subr.bf16.mxu1 %v8089_v4  ;;  %v8141_v5 = vld [vmem:[%s11242_s1 + $0xb08] ss:$16 sps:$4 sm:$0xff]  }
 0x22b   :  { %5696 = vmatpush1.bf16.msra.mxu0 %v8090_v23  ;;  %v8149_v23 = vld [vmem:[%s11242_s1 + $0xc6c] ss:$16 sps:$4 sm:$0xff]  }
 0x22c   :  { %5663 = vmatpush2.bf16.msra.mxu1 %v8087_v20  ;;  %5697 = vmatprep.subr.bf16.mxu0 %v8098_v0  ;;  %v8144_v20 = vld [vmem:[%s11242_s1 + $0xc88] ss:$16 sps:$4 sm:$0xff]  }
 0x22d   :  { %5664 = vmatprep.subr.bf16.mxu1 %v8095_v21  ;;  %v8152_v21 = vld [vmem:[%s11242_s1 + $0xeec] ss:$16 sps:$4 sm:$0xff]   ;;  %v8147_v0 = vld [vmem:[%s11242_s1 + $0xc68] ss:$16 sps:$4 sm:$0xff]  }
 0x22f   :  { %5698 = vmatpush1.bf16.msra.mxu0 %v8096_v29  ;;  %v8155_v29 = vld [vmem:[%s11242_s1 + $0xc4c] ss:$16 sps:$4 sm:$0xff]  }
 0x230   :  { %5665 = vmatpush2.bf16.msra.mxu1 %v8093_v28  ;;  %5699 = vmatprep.subr.bf16.mxu0 %v8104_v45  ;;  %v8150_v28 = vld [vmem:[%s11242_s1 + $0xee8] ss:$16 sps:$4 sm:$0xff]  }
 0x231   :  { %5666 = vmatprep.subr.bf16.mxu1 %v8101_v26  ;;  %v8158_v26 = vld [vmem:[%s11242_s1 + $0xecc] ss:$16 sps:$4 sm:$0xff]  }
 0x233   :  { %5700 = vmatpush2.bf16.msra.mxu0 %v8102_v36  ;;  %v8153_v36 = vld [vmem:[%s11242_s1 + $0xc48] ss:$16 sps:$4 sm:$0xff]  }
 0x234   :  { %5667 = vmatpush2.bf16.msra.mxu1 %v8099_v34  ;;  %5701 = vmatprep.subr.bf16.mxu0 %v8110_v32 }
 0x235   :  { %5668 = vmatprep.subr.bf16.mxu1 %v8107_v37  ;;  %v8156_v37 = vld [vmem:[%s11242_s1 + $0xec8] ss:$16 sps:$4 sm:$0xff]  }
 0x237   :  { %5702 = vmatpush2.bf16.msra.mxu0 %v8108_v44 }
 0x238   :  { %5669 = vmatpush2.bf16.msra.mxu1 %v8105_v40  ;;  %5703 = vmatprep.subr.bf16.mxu0 %v8116_v41  ;;  %v8161_v40 = vld [vmem:[%s11242_s1 + $0xc2c] ss:$16 sps:$4 sm:$0xff]   ;;  %v8159_v41 = vld [vmem:[%s11242_s1 + $0xc28] ss:$16 sps:$4 sm:$0xff]  }
 0x239   :  { %5670 = vmatprep.subr.bf16.mxu1 %v8113_v47 }
 0x23b   :  { %5704 = vmatpush2.bf16.msra.mxu0 %v8114_v48 }
 0x23c   :  { %5671 = vmatpush2.bf16.msra.mxu1 %v8111_v53  ;;  %5705 = vmatprep.subr.bf16.mxu0 %v8122_v46  ;;  %v8162_v53 = vld [vmem:[%s11242_s1 + $0xea8] ss:$16 sps:$4 sm:$0xff]  }
 0x23d   :  { %5672 = vmatprep.subr.bf16.mxu1 %v8119_v13  ;;  %v8167_v13 = vld [vmem:[%s11242_s1 + $0xc0c] ss:$16 sps:$4 sm:$0xff]   ;;  %v8165_v46 = vld [vmem:[%s11242_s1 + $0xc08] ss:$16 sps:$4 sm:$0xff]  }
 0x23f   :  { %5706 = vmatpush2.bf16.msra.mxu0 %v8120_v56  ;;  %v8173_v56 = vld [vmem:[%s11242_s1 + $0xdec] ss:$16 sps:$4 sm:$0xff]  }
 0x240   :  { %5673 = vmatpush2.bf16.msra.mxu1 %v8117_v51  ;;  %5707 = vmatprep.subr.bf16.mxu0 %v8125_v55  ;;  %v8168_v51 = vld [vmem:[%s11242_s1 + $0xe88] ss:$16 sps:$4 sm:$0xff]   ;;  %v8176_v55 = vld [vmem:[%s11242_s1 + $0xe6c] ss:$16 sps:$4 sm:$0xff]  }
 0x241   :  { %5724 = vmatprep.subr.bf16.mxu1 %v8128_v58  ;;  %v8171_v58 = vld [vmem:[%s11242_s1 + $0xde8] ss:$16 sps:$4 sm:$0xff]  }
 0x242   :  { %v5389_v6 = vpop.f32.mrf.mxu0 }
 0x243   :  { %v5430_v60 = vpop.f32.mrf.mxu1  ;;  %5675 = vmatmul.mubr.bf16.vlgmr.msra.gmra.mxu1 %v9180_v50  ;;  %v5390_v63 = vadd.f32 %v5389_v6, %v10300_v30  ;;  %5708 = vmatpush2.bf16.msra.mxu0 %v8123_v61  ;;  %v8137_v50 = vld [vmem:[%s11242_s1 + $0xb2c] ss:$16 sps:$4 sm:$0xff]   ;;  %v8174_v61 = vld [vmem:[%s11242_s1 + $0xe68] ss:$16 sps:$4 sm:$0xff]  }
 0x244   :  { %5725 = vmatpush1.bf16.msra.mxu1 %v8126_v57  ;;  %v5391_v3 = vpop.f32.mrf.mxu0  ;;  %5709 = vmatprep.subr.bf16.mxu0 %v8131_v62  ;;  %v8140_v30 = vld [vmem:[%s11242_s1 + $0xcac] ss:$16 sps:$4 sm:$0xff]   ;;  %v8180_v6 = vld [vmem:[%s11242_s1 + $0xe48] ss:$16 sps:$4 sm:$0xff]  }
 0x245   :  { %v5432_v1 = vpop.f32.mrf.mxu1  ;;  %5726 = vmatprep.subr.bf16.mxu1 %v8134_v17  ;;  %v5431_v7 = vadd.f32 %v5430_v60, %v5390_v63  ;;  %v5392_v8 = vadd.f32 %v5391_v3, %v10304_v38  ;;  %5756 = vmatprep.mubr.bf16.mxu1 %v9192_v54  ;;  %v8143_v54 = vld [vmem:[%s11242_s1 + $0xb0c] ss:$16 sps:$4 sm:$0xff]   ;;  %v8177_v17 = vld [vmem:[%s11242_s1 + $0xdc8] ss:$16 sps:$4 sm:$0xff]  }
 0x246   :  { %v5393_v10 = vpop.f32.mrf.mxu0  ;;  %v8146_v38 = vld [vmem:[%s11242_s1 + $0xc8c] ss:$16 sps:$4 sm:$0xff]  }
 0x247   :  { %v5434_v11 = vpop.f32.mrf.mxu1  ;;  %v5433_v49 = vadd.f32 %v5432_v1, %v5392_v8  ;;  %5710 = vmatpush2.bf16.msra.mxu0 %v8129_v2  ;;  %v8179_v57 = vld [vmem:[%s11242_s1 + $0xdcc] ss:$16 sps:$4 sm:$0xff]   ;;  %v8183_v2 = vld [vmem:[%s11242_s1 + $0xda8] ss:$16 sps:$4 sm:$0xff]  }
 0x248   :  { %5727 = vmatpush1.bf16.msra.mxu1 %v8132_v43  ;;  %v5394_v18 = vpop.f32.mrf.mxu0  ;;  %5711 = vmatprep.subr.bf16.mxu0 %v8137_v50  ;;  %v8182_v62 = vld [vmem:[%s11242_s1 + $0xe4c] ss:$16 sps:$4 sm:$0xff]   ;;  %v8186_v43 = vld [vmem:[%s11242_s1 + $0xe28] ss:$16 sps:$4 sm:$0xff]  }
 0x249   :  { %v5435_v4 = vpop.f32.mrf.mxu1  ;;  %5728 = vmatprep.subr.bf16.mxu1 %v8140_v30  ;;  %v8185_v60 = vld [vmem:[%s11242_s1 + $0xdac] ss:$16 sps:$4 sm:$0xff]   ;;  %v8189_v50 = vld [vmem:[%s11242_s1 + $0xd88] ss:$16 sps:$4 sm:$0xff]  }
 0x24a   :  { %v8188_v63 = vld [vmem:[%s11242_s1 + $0xe2c] ss:$16 sps:$4 sm:$0xff]   ;;  %v8192_v30 = vld [vmem:[%s11242_s1 + $0xe08] ss:$16 sps:$4 sm:$0xff]  }
 0x24b   :  { %5712 = vmatpush2.bf16.msra.mxu0 %v8135_v16  ;;  %v8191_v3 = vld [vmem:[%s11242_s1 + $0xd8c] ss:$16 sps:$4 sm:$0xff]   ;;  %v8195_v10 = vld [vmem:[%s11242_s1 + $0xd68] ss:$16 sps:$4 sm:$0xff]  }
 0x24c   :  { %5729 = vmatpush1.bf16.msra.mxu1 %v8138_v19  ;;  %5713 = vmatprep.subr.bf16.mxu0 %v8143_v54  ;;  %v8194_v1 = vld [vmem:[%s11242_s1 + $0xe0c] ss:$16 sps:$4 sm:$0xff]   ;;  %v8198_v11 = vld [vmem:[%s11242_s1 + $0xfe8] ss:$16 sps:$4 sm:$0xff]  }
 0x24d   :  { %5730 = vmatprep.subr.bf16.mxu1 %v8146_v38  ;;  %v8200_v8 = vld [vmem:[%s11242_s1 + $0xfec] ss:$16 sps:$4 sm:$0xff]   ;;  %v8201_v19 = vld [vmem:[%s11242_s1 + $0xd48] ss:$16 sps:$4 sm:$0xff]  }
 0x24e   :  { %v8206_v16 = vld [vmem:[%s11242_s1 + $0xfcc] ss:$16 sps:$4 sm:$0xff]   ;;  %v8204_v18 = vld [vmem:[%s11242_s1 + $0xfc8] ss:$16 sps:$4 sm:$0xff]  }
 0x24f   :  { %5714 = vmatpush2.bf16.msra.mxu0 %v8141_v5  ;;  %v8209_v4 = vld [vmem:[%s11242_s1 + $0xd2c] ss:$16 sps:$4 sm:$0xff]   ;;  %v8207_v38 = vld [vmem:[%s11242_s1 + $0xd28] ss:$16 sps:$4 sm:$0xff]  }
 0x250   :  { %5731 = vmatpush1.bf16.msra.mxu1 %v8144_v20  ;;  %5765 = vmatprep.subr.bf16.mxu0 %v8152_v21  ;;  %v8212_v54 = vld [vmem:[%s11242_s1 + $0xfac] ss:$16 sps:$4 sm:$0xff]   ;;  %v8210_v5 = vld [vmem:[%s11242_s1 + $0xfa8] ss:$16 sps:$4 sm:$0xff]  }
 0x251   :  { %5732 = vmatprep.subr.bf16.mxu1 %v8149_v23  ;;  %v8215_v20 = vld [vmem:[%s11242_s1 + $0xd0c] ss:$16 sps:$4 sm:$0xff]   ;;  %v8213_v21 = vld [vmem:[%s11242_s1 + $0xd08] ss:$16 sps:$4 sm:$0xff]  }
 0x252   :  { %v5471_v45 = vpop.f32.mrf.mxu0  ;;  %5716 = vmatmul.mubr.bf16.vlgmr.msra.gmra.mxu0 %v9196_v35  ;;  %v8164_v35 = vld [vmem:[%s11242_s1 + $0xeac] ss:$16 sps:$4 sm:$0xff]  }
 0x253   :  { %v10541_v34 = vadd.f32 %v5471_v45, %v5431_v7  ;;  %5766 = vmatpush1.bf16.msra.mxu0 %v8150_v28  ;;  %5797 = vmatprep.mubr.bf16.mxu0 %v9212_v59  ;;  %v8170_v59 = vld [vmem:[%s11242_s1 + $0xe8c] ss:$16 sps:$4 sm:$0xff]   ;;  %v8222_v45 = vld [vmem:[%s11242_s1 + $0x10e8] ss:$16 sps:$4 sm:$0xff]  }
 0x254   :  { %5733 = vmatpush1.bf16.msra.mxu1 %v8147_v0  ;;  %v5473_v32 = vpop.f32.mrf.mxu0  ;;  %5767 = vmatprep.subr.bf16.mxu0 %v8158_v26  ;;  %v8197_v7 = vld [vmem:[%s11242_s1 + $0xd6c] ss:$16 sps:$4 sm:$0xff]   ;;  %v8216_v0 = vld [vmem:[%s11242_s1 + $0xf88] ss:$16 sps:$4 sm:$0xff]  }
 0x255   :  { %5734 = vmatprep.subr.bf16.mxu1 %v8155_v29  ;;  %v10555_v44 = vadd.f32 %v5473_v32, %v5433_v49  ;;  %v8203_v49 = vld [vmem:[%s11242_s1 + $0xd4c] ss:$16 sps:$4 sm:$0xff]   ;;  %v8219_v26 = vld [vmem:[%s11242_s1 + $0xf68] ss:$16 sps:$4 sm:$0xff]  }
 0x256   :  { %v5475_v47 = vpop.f32.mrf.mxu0  ;;  %v8218_v23 = vld [vmem:[%s11242_s1 + $0xf8c] ss:$16 sps:$4 sm:$0xff]  }
 0x257   :  { %5768 = vmatpush1.bf16.msra.mxu0 %v8156_v37  ;;  %v8221_v28 = vld [vmem:[%s11242_s1 + $0xf6c] ss:$16 sps:$4 sm:$0xff]  }
 0x258   :  { %5735 = vmatpush1.bf16.msra.mxu1 %v8153_v36  ;;  %v5476_v48 = vpop.f32.mrf.mxu0  ;;  %5769 = vmatprep.subr.bf16.mxu0 %v8164_v35  ;;  %v8224_v29 = vld [vmem:[%s11242_s1 + $0x10ec] ss:$16 sps:$4 sm:$0xff]   ;;  %v8228_v35 = vld [vmem:[%s11242_s1 + $0x10c8] ss:$16 sps:$4 sm:$0xff]  }
 0x259   :  { %5736 = vmatprep.subr.bf16.mxu1 %v8161_v40  ;;  %v8227_v36 = vld [vmem:[%s11242_s1 + $0xf4c] ss:$16 sps:$4 sm:$0xff]   ;;  %v8225_v40 = vld [vmem:[%s11242_s1 + $0xf48] ss:$16 sps:$4 sm:$0xff]  }
 0x25a   :  { %v8230_v37 = vld [vmem:[%s11242_s1 + $0x10cc] ss:$16 sps:$4 sm:$0xff]   ;;  %v8231_v48 = vld [vmem:[%s11242_s1 + $0xf28] ss:$16 sps:$4 sm:$0xff]  }
 0x25b   :  { %5770 = vmatpush1.bf16.msra.mxu0 %v8162_v53 }
 0x25c   :  { %5737 = vmatpush1.bf16.msra.mxu1 %v8159_v41  ;;  %5771 = vmatprep.subr.bf16.mxu0 %v8170_v59  ;;  %v8233_v41 = vld [vmem:[%s11242_s1 + $0xf2c] ss:$16 sps:$4 sm:$0xff]  }
 0x25d   :  { %5738 = vmatprep.subr.bf16.mxu1 %v8167_v13  ;;  %v8234_v13 = vld [vmem:[%s11242_s1 + $0x10a8] ss:$16 sps:$4 sm:$0xff]  }
 0x25f   :  { %5772 = vmatpush1.bf16.msra.mxu0 %v8168_v51  ;;  %v822_v51 = vsub.s32 2, %v8644_v42 }
 0x260   :  { %5739 = vmatpush1.bf16.msra.mxu1 %v8165_v46  ;;  %5773 = vmatprep.subr.bf16.mxu0 %v8176_v55  ;;  %v8239_v46 = vld [vmem:[%s11242_s1 + $0xf0c] ss:$16 sps:$4 sm:$0xff]   ;;  %v8237_v55 = vld [vmem:[%s11242_s1 + $0xf08] ss:$16 sps:$4 sm:$0xff]  }
 0x261   :  { %5740 = vmatprep.subr.bf16.mxu1 %v8173_v56  ;;  %v826_v56 = vsub.s32 3, %v8644_v42  ;;  %v8248_v42 = vld [vmem:[%s11242_s1 + $0x12ec] ss:$16 sps:$4 sm:$0xff]  }
 0x263   :  { %5774 = vmatpush1.bf16.msra.mxu0 %v8174_v61  ;;  %v8245_v61 = vld [vmem:[%s11242_s1 + $0x106c] ss:$16 sps:$4 sm:$0xff]  }
 0x264   :  { %5741 = vmatpush2.bf16.msra.mxu1 %v8171_v58  ;;  %5775 = vmatprep.subr.bf16.mxu0 %v8182_v62  ;;  %v8240_v58 = vld [vmem:[%s11242_s1 + $0x1088] ss:$16 sps:$4 sm:$0xff]  }
 0x265   :  { %5742 = vmatprep.subr.bf16.mxu1 %v8179_v57  ;;  %v8471_v57 = vld [vmem:[%s11243_s2] sm:$0xf] }
 0x266   :  { %v823_v62 = vrot.slane %v8471_v57, %v822_v51  ;;  %v8300_v51 = vld [vmem:[%s11242_s1 + $0x13c8] ss:$16 sps:$4 sm:$0xff]  }
 0x267   :  { %5776 = vmatpush1.bf16.msra.mxu0 %v8180_v6  ;;  %v8243_v6 = vld [vmem:[%s11242_s1 + $0x1068] ss:$16 sps:$4 sm:$0xff]  }
 0x268   :  { %5743 = vmatpush2.bf16.msra.mxu1 %v8177_v17  ;;  %5777 = vmatprep.subr.bf16.mxu0 %v8188_v63  ;;  %v827_v17 = vrot.slane %v8471_v57, %v826_v56  ;;  %v8251_v63 = vld [vmem:[%s11242_s1 + $0x104c] ss:$16 sps:$4 sm:$0xff]  }
 0x269   :  { %5744 = vmatprep.subr.bf16.mxu1 %v8185_v60  ;;  %v8246_v60 = vld [vmem:[%s11242_s1 + $0x12e8] ss:$16 sps:$4 sm:$0xff]   ;;  %v8305_v56 = vld [vmem:[%s11242_s1 + $0x112c] ss:$16 sps:$4 sm:$0xff]  }
 0x26a   :  { %v8314_v57 = vld [vmem:[%s11242_s1 + $0x138c] ss:$16 sps:$4 sm:$0xff]  }
 0x26b   :  { %5778 = vmatpush1.bf16.msra.mxu0 %v8186_v43 }
 0x26c   :  { %5745 = vmatpush2.bf16.msra.mxu1 %v8183_v2  ;;  %5779 = vmatprep.subr.bf16.mxu0 %v8194_v1  ;;  %v8254_v2 = vld [vmem:[%s11242_s1 + $0x12cc] ss:$16 sps:$4 sm:$0xff]  }
 0x26d   :  { %5746 = vmatprep.subr.bf16.mxu1 %v8191_v3 }
 0x26f   :  { %5780 = vmatpush1.bf16.msra.mxu0 %v8192_v30  ;;  %v8249_v30 = vld [vmem:[%s11242_s1 + $0x1048] ss:$16 sps:$4 sm:$0xff]  }
 0x270   :  { %5747 = vmatpush2.bf16.msra.mxu1 %v8189_v50  ;;  %5781 = vmatprep.subr.bf16.mxu0 %v8200_v8 }
 0x271   :  { %5748 = vmatprep.subr.bf16.mxu1 %v8197_v7  ;;  %v8252_v7 = vld [vmem:[%s11242_s1 + $0x12c8] ss:$16 sps:$4 sm:$0xff]  }
 0x273   :  { %5782 = vmatpush2.bf16.msra.mxu0 %v8198_v11 }
 0x274   :  { %5749 = vmatpush2.bf16.msra.mxu1 %v8195_v10  ;;  %5783 = vmatprep.subr.bf16.mxu0 %v8206_v16  ;;  %v8260_v10 = vld [vmem:[%s11242_s1 + $0x12ac] ss:$16 sps:$4 sm:$0xff]   ;;  %v8255_v16 = vld [vmem:[%s11242_s1 + $0x1028] ss:$16 sps:$4 sm:$0xff]  }
 0x275   :  { %5750 = vmatprep.subr.bf16.mxu1 %v8203_v49 }
 0x277   :  { %5784 = vmatpush2.bf16.msra.mxu0 %v8204_v18 }
 0x278   :  { %5751 = vmatpush2.bf16.msra.mxu1 %v8201_v19  ;;  %5785 = vmatprep.subr.bf16.mxu0 %v8212_v54  ;;  %v8258_v19 = vld [vmem:[%s11242_s1 + $0x12a8] ss:$16 sps:$4 sm:$0xff]  }
 0x279   :  { %5752 = vmatprep.subr.bf16.mxu1 %v8209_v4  ;;  %v8263_v4 = vld [vmem:[%s11242_s1 + $0x100c] ss:$16 sps:$4 sm:$0xff]   ;;  %v8261_v54 = vld [vmem:[%s11242_s1 + $0x1008] ss:$16 sps:$4 sm:$0xff]  }
 0x27b   :  { %5786 = vmatpush2.bf16.msra.mxu0 %v8210_v5  ;;  %v8269_v5 = vld [vmem:[%s11242_s1 + $0x11ec] ss:$16 sps:$4 sm:$0xff]  }
 0x27c   :  { %5753 = vmatpush2.bf16.msra.mxu1 %v8207_v38  ;;  %5787 = vmatprep.subr.bf16.mxu0 %v8218_v23  ;;  %v8264_v38 = vld [vmem:[%s11242_s1 + $0x1288] ss:$16 sps:$4 sm:$0xff]  }
 0x27d   :  { %5754 = vmatprep.subr.bf16.mxu1 %v8215_v20  ;;  %v8272_v20 = vld [vmem:[%s11242_s1 + $0x126c] ss:$16 sps:$4 sm:$0xff]   ;;  %v8267_v23 = vld [vmem:[%s11242_s1 + $0x11e8] ss:$16 sps:$4 sm:$0xff]  }
 0x27f   :  { %5788 = vmatpush2.bf16.msra.mxu0 %v8216_v0  ;;  %v8275_v0 = vld [vmem:[%s11242_s1 + $0x11cc] ss:$16 sps:$4 sm:$0xff]  }
 0x280   :  { %5755 = vmatpush2.bf16.msra.mxu1 %v8213_v21  ;;  %5789 = vmatprep.subr.bf16.mxu0 %v8221_v28  ;;  %v8270_v21 = vld [vmem:[%s11242_s1 + $0x1268] ss:$16 sps:$4 sm:$0xff]   ;;  %v8278_v28 = vld [vmem:[%s11242_s1 + $0x124c] ss:$16 sps:$4 sm:$0xff]  }
 0x281   :  { %5806 = vmatprep.subr.bf16.mxu1 %v8224_v29  ;;  %v8273_v29 = vld [vmem:[%s11242_s1 + $0x11c8] ss:$16 sps:$4 sm:$0xff]  }
 0x283   :  { %v5512_v32 = vpop.f32.mrf.mxu1  ;;  %5757 = vmatmul.mubr.bf16.vlgmr.msra.gmra.mxu1 %v9408_v15  ;;  %5790 = vmatpush2.bf16.msra.mxu0 %v8219_v26  ;;  %v8236_v15 = vld [vmem:[%s11242_s1 + $0x10ac] ss:$16 sps:$4 sm:$0xff]   ;;  %v8276_v26 = vld [vmem:[%s11242_s1 + $0x1248] ss:$16 sps:$4 sm:$0xff]  }
 0x284   :  { %5807 = vmatpush1.bf16.msra.mxu1 %v8222_v45  ;;  %5791 = vmatprep.subr.bf16.mxu0 %v8227_v36  ;;  %v5513_v43 = vadd.f32 %v5512_v32, %v823_v62  ;;  %v8281_v45 = vld [vmem:[%s11242_s1 + $0x11ac] ss:$16 sps:$4 sm:$0xff]   ;;  %v8282_v32 = vld [vmem:[%s11242_s1 + $0x1228] ss:$16 sps:$4 sm:$0xff]  }
 0x285   :  { %v5514_v47 = vpop.f32.mrf.mxu1  ;;  %5808 = vmatprep.subr.bf16.mxu1 %v8230_v37  ;;  %5838 = vmatprep.mubr.bf16.mxu1 %v9419_v22  ;;  %v8242_v22 = vld [vmem:[%s11242_s1 + $0x108c] ss:$16 sps:$4 sm:$0xff]   ;;  %v8279_v37 = vld [vmem:[%s11242_s1 + $0x11a8] ss:$16 sps:$4 sm:$0xff]  }
 0x286   :  { %v5515_v1 = vadd.f32 %v5514_v47, %v827_v17  ;;  %v8284_v36 = vld [vmem:[%s11242_s1 + $0x122c] ss:$16 sps:$4 sm:$0xff]   ;;  %v8285_v47 = vld [vmem:[%s11242_s1 + $0x1188] ss:$16 sps:$4 sm:$0xff]  }
 0x287   :  { %v5516_v53 = vpop.f32.mrf.mxu1  ;;  %5792 = vmatpush2.bf16.msra.mxu0 %v8225_v40  ;;  %v8287_v40 = vld [vmem:[%s11242_s1 + $0x118c] ss:$16 sps:$4 sm:$0xff]   ;;  %v8309_v62 = vld [vmem:[%s11242_s1 + $0x1108] ss:$16 sps:$4 sm:$0xff]  }
 0x288   :  { %5809 = vmatpush1.bf16.msra.mxu1 %v8228_v35  ;;  %5793 = vmatprep.subr.bf16.mxu0 %v8233_v41  ;;  %v8290_v35 = vld [vmem:[%s11242_s1 + $0x120c] ss:$16 sps:$4 sm:$0xff]   ;;  %v8288_v41 = vld [vmem:[%s11242_s1 + $0x1208] ss:$16 sps:$4 sm:$0xff]  }
 0x289   :  { %v5517_v59 = vpop.f32.mrf.mxu1  ;;  %5810 = vmatprep.subr.bf16.mxu1 %v8236_v15  ;;  %v8293_v15 = vld [vmem:[%s11242_s1 + $0x116c] ss:$16 sps:$4 sm:$0xff]   ;;  %v8312_v17 = vld [vmem:[%s11242_s1 + $0x1388] ss:$16 sps:$4 sm:$0xff]  }
 0x28a   :  { %v8296_v53 = vld [vmem:[%s11242_s1 + $0x13ec] ss:$16 sps:$4 sm:$0xff]  }
 0x28b   :  { %5794 = vmatpush2.bf16.msra.mxu0 %v8231_v48  ;;  %v8291_v48 = vld [vmem:[%s11242_s1 + $0x1168] ss:$16 sps:$4 sm:$0xff]   ;;  %v8299_v59 = vld [vmem:[%s11242_s1 + $0x114c] ss:$16 sps:$4 sm:$0xff]  }
 0x28c   :  { %5811 = vmatpush1.bf16.msra.mxu1 %v8234_v13  ;;  %5795 = vmatprep.subr.bf16.mxu0 %v8239_v46  ;;  %v8294_v13 = vld [vmem:[%s11242_s1 + $0x13e8] ss:$16 sps:$4 sm:$0xff]   ;;  %v8302_v46 = vld [vmem:[%s11242_s1 + $0x13cc] ss:$16 sps:$4 sm:$0xff]  }
 0x28d   :  { %5812 = vmatprep.subr.bf16.mxu1 %v8242_v22  ;;  %v8297_v22 = vld [vmem:[%s11242_s1 + $0x1148] ss:$16 sps:$4 sm:$0xff]  }
 0x28f   :  { %5796 = vmatpush2.bf16.msra.mxu0 %v8237_v55  ;;  %v8308_v55 = vld [vmem:[%s11242_s1 + $0x13ac] ss:$16 sps:$4 sm:$0xff]  }
 0x290   :  { %5813 = vmatpush1.bf16.msra.mxu1 %v8240_v58  ;;  %5847 = vmatprep.subr.bf16.mxu0 %v8248_v42  ;;  %v8303_v58 = vld [vmem:[%s11242_s1 + $0x1128] ss:$16 sps:$4 sm:$0xff]   ;;  %v8311_v42 = vld [vmem:[%s11242_s1 + $0x110c] ss:$16 sps:$4 sm:$0xff]  }
 0x291   :  { %5814 = vmatprep.subr.bf16.mxu1 %v8245_v61  ;;  %v8306_v61 = vld [vmem:[%s11242_s1 + $0x13a8] ss:$16 sps:$4 sm:$0xff]  }
 0x292   :  { %v5553_v3 = vpop.f32.mrf.mxu0  ;;  %5798 = vmatmul.mubr.bf16.vlgmr.msra.gmra.mxu0 %v9423_v39  ;;  %v8257_v39 = vld [vmem:[%s11242_s1 + $0x102c] ss:$16 sps:$4 sm:$0xff]  }
 0x293   :  { %v10746_v50 = vadd.f32 %v5553_v3, %v5513_v43  ;;  %5848 = vmatpush1.bf16.msra.mxu0 %v8246_v60  ;;  %5879 = vmatprep.mubr.bf16.mxu0 %v9439_v31  ;;  %v8266_v31 = vld [vmem:[%s11242_s1 + $0x128c] ss:$16 sps:$4 sm:$0xff]  }
 0x294   :  { %5815 = vmatpush1.bf16.msra.mxu1 %v8243_v6  ;;  %v5555_v8 = vpop.f32.mrf.mxu0  ;;  %5849 = vmatprep.subr.bf16.mxu0 %v8254_v2  ;;  %v8317_v6 = vld [vmem:[%s11242_s1 + $0x136c] ss:$16 sps:$4 sm:$0xff]   ;;  %v8318_v2 = vld [vmem:[%s11242_s1 + $0x14e8] ss:$16 sps:$4 sm:$0xff]  }
 0x295   :  { %5816 = vmatprep.subr.bf16.mxu1 %v8251_v63  ;;  %v10760_v11 = vadd.f32 %v5555_v8, %v5515_v1  ;;  %v8320_v60 = vld [vmem:[%s11242_s1 + $0x14ec] ss:$16 sps:$4 sm:$0xff]   ;;  %v8315_v63 = vld [vmem:[%s11242_s1 + $0x1368] ss:$16 sps:$4 sm:$0xff]  }
 0x296   :  { %v5557_v49 = vpop.f32.mrf.mxu0  ;;  %v8323_v43 = vld [vmem:[%s11242_s1 + $0x134c] ss:$16 sps:$4 sm:$0xff]   ;;  %v8324_v8 = vld [vmem:[%s11242_s1 + $0x14c8] ss:$16 sps:$4 sm:$0xff]  }
 0x297   :  { %5850 = vmatpush1.bf16.msra.mxu0 %v8252_v7  ;;  %v8326_v3 = vld [vmem:[%s11242_s1 + $0x14cc] ss:$16 sps:$4 sm:$0xff]   ;;  %v8321_v7 = vld [vmem:[%s11242_s1 + $0x1348] ss:$16 sps:$4 sm:$0xff]  }
 0x298   :  { %5817 = vmatpush1.bf16.msra.mxu1 %v8249_v30  ;;  %v5558_v18 = vpop.f32.mrf.mxu0  ;;  %5851 = vmatprep.subr.bf16.mxu0 %v8260_v10  ;;  %v8329_v10 = vld [vmem:[%s11242_s1 + $0x132c] ss:$16 sps:$4 sm:$0xff]  }
 0x299   :  { %5818 = vmatprep.subr.bf16.mxu1 %v8257_v39 }
 0x29b   :  { %5852 = vmatpush1.bf16.msra.mxu0 %v8258_v19  ;;  %v8330_v19 = vld [vmem:[%s11242_s1 + $0x14a8] ss:$16 sps:$4 sm:$0xff]  }
 0x29c   :  { %5819 = vmatpush1.bf16.msra.mxu1 %v8255_v16  ;;  %5853 = vmatprep.subr.bf16.mxu0 %v8266_v31  ;;  %v8327_v16 = vld [vmem:[%s11242_s1 + $0x1328] ss:$16 sps:$4 sm:$0xff]  }
 0x29d   :  { %5820 = vmatprep.subr.bf16.mxu1 %v8263_v4  ;;  %v8333_v4 = vld [vmem:[%s11242_s1 + $0x1308] ss:$16 sps:$4 sm:$0xff]  }
 0x29e   :  { %v8336_v31 = vld [vmem:[%s11242_s1 + $0x1488] ss:$16 sps:$4 sm:$0xff]  }
 0x29f   :  { %5854 = vmatpush1.bf16.msra.mxu0 %v8264_v38  ;;  %v8344_v38 = vld [vmem:[%s11242_s1 + $0x16ec] ss:$16 sps:$4 sm:$0xff]  }
 0x2a0   :  { %5821 = vmatpush1.bf16.msra.mxu1 %v8261_v54  ;;  %5855 = vmatprep.subr.bf16.mxu0 %v8272_v20  ;;  %v8341_v54 = vld [vmem:[%s11242_s1 + $0x146c] ss:$16 sps:$4 sm:$0xff]   ;;  %v8342_v20 = vld [vmem:[%s11242_s1 + $0x16e8] ss:$16 sps:$4 sm:$0xff]  }
 0x2a1   :  { %5822 = vmatprep.subr.bf16.mxu1 %v8269_v5  ;;  %v8339_v5 = vld [vmem:[%s11242_s1 + $0x1468] ss:$16 sps:$4 sm:$0xff]  }
 0x2a3   :  { %5856 = vmatpush1.bf16.msra.mxu0 %v8270_v21  ;;  %v8350_v21 = vld [vmem:[%s11242_s1 + $0x16cc] ss:$16 sps:$4 sm:$0xff]  }
 0x2a4   :  { %5823 = vmatpush2.bf16.msra.mxu1 %v8267_v23  ;;  %5857 = vmatprep.subr.bf16.mxu0 %v8278_v28  ;;  %v8347_v23 = vld [vmem:[%s11242_s1 + $0x144c] ss:$16 sps:$4 sm:$0xff]  }
 0x2a5   :  { %5824 = vmatprep.subr.bf16.mxu1 %v8275_v0 }
 0x2a7   :  { %5858 = vmatpush1.bf16.msra.mxu0 %v8276_v26  ;;  %v8348_v26 = vld [vmem:[%s11242_s1 + $0x16c8] ss:$16 sps:$4 sm:$0xff]  }
 0x2a8   :  { %5825 = vmatpush2.bf16.msra.mxu1 %v8273_v29  ;;  %5859 = vmatprep.subr.bf16.mxu0 %v8284_v36  ;;  %v8345_v29 = vld [vmem:[%s11242_s1 + $0x1448] ss:$16 sps:$4 sm:$0xff]   ;;  %v8353_v36 = vld [vmem:[%s11242_s1 + $0x142c] ss:$16 sps:$4 sm:$0xff]  }
 0x2a9   :  { %5826 = vmatprep.subr.bf16.mxu1 %v8281_v45 }
 0x2ab   :  { %5860 = vmatpush1.bf16.msra.mxu0 %v8282_v32 }
 0x2ac   :  { %5827 = vmatpush2.bf16.msra.mxu1 %v8279_v37  ;;  %5861 = vmatprep.subr.bf16.mxu0 %v8290_v35  ;;  %v8354_v35 = vld [vmem:[%s11242_s1 + $0x16a8] ss:$16 sps:$4 sm:$0xff]  }
 0x2ad   :  { %5828 = vmatprep.subr.bf16.mxu1 %v8287_v40  ;;  %v8351_v40 = vld [vmem:[%s11242_s1 + $0x1428] ss:$16 sps:$4 sm:$0xff]  }
 0x2af   :  { %5862 = vmatpush1.bf16.msra.mxu0 %v8288_v41  ;;  %v8359_v41 = vld [vmem:[%s11242_s1 + $0x140c] ss:$16 sps:$4 sm:$0xff]  }
 0x2b0   :  { %5829 = vmatpush2.bf16.msra.mxu1 %v8285_v47  ;;  %5863 = vmatprep.subr.bf16.mxu0 %v8296_v53  ;;  %v8360_v53 = vld [vmem:[%s11242_s1 + $0x1688] ss:$16 sps:$4 sm:$0xff]  }
 0x2b1   :  { %5830 = vmatprep.subr.bf16.mxu1 %v8293_v15  ;;  %v8357_v15 = vld [vmem:[%s11242_s1 + $0x1408] ss:$16 sps:$4 sm:$0xff]  }
 0x2b3   :  { %5864 = vmatpush2.bf16.msra.mxu0 %v8294_v13  ;;  %v8368_v13 = vld [vmem:[%s11242_s1 + $0x166c] ss:$16 sps:$4 sm:$0xff]  }
 0x2b4   :  { %5831 = vmatpush2.bf16.msra.mxu1 %v8291_v48  ;;  %5865 = vmatprep.subr.bf16.mxu0 %v8302_v46  ;;  %v8365_v48 = vld [vmem:[%s11242_s1 + $0x15ec] ss:$16 sps:$4 sm:$0xff]   ;;  %v8366_v46 = vld [vmem:[%s11242_s1 + $0x1668] ss:$16 sps:$4 sm:$0xff]  }
 0x2b5   :  { %5832 = vmatprep.subr.bf16.mxu1 %v8299_v59  ;;  %v8363_v59 = vld [vmem:[%s11242_s1 + $0x15e8] ss:$16 sps:$4 sm:$0xff]  }
 0x2b7   :  { %5866 = vmatpush2.bf16.msra.mxu0 %v8300_v51  ;;  %v8374_v51 = vld [vmem:[%s11242_s1 + $0x164c] ss:$16 sps:$4 sm:$0xff]  }
 0x2b8   :  { %5833 = vmatpush2.bf16.msra.mxu1 %v8297_v22  ;;  %5867 = vmatprep.subr.bf16.mxu0 %v8308_v55  ;;  %v8371_v22 = vld [vmem:[%s11242_s1 + $0x15cc] ss:$16 sps:$4 sm:$0xff]   ;;  %v8372_v55 = vld [vmem:[%s11242_s1 + $0x1648] ss:$16 sps:$4 sm:$0xff]  }
 0x2b9   :  { %5834 = vmatprep.subr.bf16.mxu1 %v8305_v56  ;;  %v8369_v56 = vld [vmem:[%s11242_s1 + $0x15c8] ss:$16 sps:$4 sm:$0xff]  }
 0x2bb   :  { %5868 = vmatpush2.bf16.msra.mxu0 %v8306_v61  ;;  %v8380_v61 = vld [vmem:[%s11242_s1 + $0x162c] ss:$16 sps:$4 sm:$0xff]  }
 0x2bc   :  { %5835 = vmatpush2.bf16.msra.mxu1 %v8303_v58  ;;  %5869 = vmatprep.subr.bf16.mxu0 %v8314_v57  ;;  %v8377_v58 = vld [vmem:[%s11242_s1 + $0x15ac] ss:$16 sps:$4 sm:$0xff]   ;;  %v8378_v57 = vld [vmem:[%s11242_s1 + $0x1628] ss:$16 sps:$4 sm:$0xff]  }
 0x2bd   :  { %5836 = vmatprep.subr.bf16.mxu1 %v8311_v42  ;;  %v8375_v42 = vld [vmem:[%s11242_s1 + $0x15a8] ss:$16 sps:$4 sm:$0xff]  }
 0x2bf   :  { %5870 = vmatpush2.bf16.msra.mxu0 %v8312_v17  ;;  %v8386_v17 = vld [vmem:[%s11242_s1 + $0x160c] ss:$16 sps:$4 sm:$0xff]  }
 0x2c0   :  { %5837 = vmatpush2.bf16.msra.mxu1 %v8309_v62  ;;  %5871 = vmatprep.subr.bf16.mxu0 %v8317_v6  ;;  %v8383_v62 = vld [vmem:[%s11242_s1 + $0x158c] ss:$16 sps:$4 sm:$0xff]   ;;  %v8381_v6 = vld [vmem:[%s11242_s1 + $0x1588] ss:$16 sps:$4 sm:$0xff]  }
 0x2c1   :  { %5888 = vmatprep.subr.bf16.mxu1 %v8320_v60  ;;  %v8384_v60 = vld [vmem:[%s11242_s1 + $0x1608] ss:$16 sps:$4 sm:$0xff]  }
 0x2c3   :  { %v5594_v1 = vpop.f32.mrf.mxu1  ;;  %5839 = vmatmul.mubr.bf16.vlgmr.msra.gmra.mxu1 %v9626_v12  ;;  %5872 = vmatpush2.bf16.msra.mxu0 %v8315_v63  ;;  %v8332_v12 = vld [vmem:[%s11242_s1 + $0x14ac] ss:$16 sps:$4 sm:$0xff]  }
 0x2c4   :  { %v5595_v30 = vadd.f32 %v5594_v1, %v10746_v50  ;;  %5889 = vmatpush1.bf16.msra.mxu1 %v8318_v2  ;;  %5873 = vmatprep.subr.bf16.mxu0 %v8323_v43  ;;  %v8389_v63 = vld [vmem:[%s11242_s1 + $0x156c] ss:$16 sps:$4 sm:$0xff]   ;;  %v8387_v43 = vld [vmem:[%s11242_s1 + $0x1568] ss:$16 sps:$4 sm:$0xff]  }
 0x2c5   :  { %v5596_v39 = vpop.f32.mrf.mxu1  ;;  %5890 = vmatprep.subr.bf16.mxu1 %v8326_v3  ;;  %5920 = vmatprep.mubr.bf16.mxu1 %v9647_v24  ;;  %v8338_v24 = vld [vmem:[%s11242_s1 + $0x148c] ss:$16 sps:$4 sm:$0xff]   ;;  %v8390_v3 = vld [vmem:[%s11242_s1 + $0x17e8] ss:$16 sps:$4 sm:$0xff]  }
 0x2c6   :  { %v5597_v50 = vadd.f32 %v5596_v39, %v10760_v11  ;;  %v8335_v11 = vld [vmem:[%s11242_s1 + $0x130c] ss:$16 sps:$4 sm:$0xff]  }
 0x2c7   :  { %v5598_v49 = vpop.f32.mrf.mxu1  ;;  %5874 = vmatpush2.bf16.msra.mxu0 %v8321_v7  ;;  %v8392_v2 = vld [vmem:[%s11242_s1 + $0x17ec] ss:$16 sps:$4 sm:$0xff]   ;;  %v8393_v7 = vld [vmem:[%s11242_s1 + $0x1548] ss:$16 sps:$4 sm:$0xff]  }
 0x2c8   :  { %5891 = vmatpush1.bf16.msra.mxu1 %v8324_v8  ;;  %5875 = vmatprep.subr.bf16.mxu0 %v8329_v10  ;;  %v8395_v1 = vld [vmem:[%s11242_s1 + $0x154c] ss:$16 sps:$4 sm:$0xff]   ;;  %v8396_v8 = vld [vmem:[%s11242_s1 + $0x17c8] ss:$16 sps:$4 sm:$0xff]  }
 0x2c9   :  { %v5599_v18 = vpop.f32.mrf.mxu1  ;;  %5892 = vmatprep.subr.bf16.mxu1 %v8332_v12  ;;  %v8401_v39 = vld [vmem:[%s11242_s1 + $0x152c] ss:$16 sps:$4 sm:$0xff]   ;;  %v8399_v12 = vld [vmem:[%s11242_s1 + $0x1528] ss:$16 sps:$4 sm:$0xff]  }
 0x2ca   :  { %v8404_v10 = vld [vmem:[%s11242_s1 + $0x17ac] ss:$16 sps:$4 sm:$0xff]   ;;  %v8408_v18 = vld [vmem:[%s11242_s1 + $0x1788] ss:$16 sps:$4 sm:$0xff]  }
 0x2cb   :  { %5876 = vmatpush2.bf16.msra.mxu0 %v8327_v16  ;;  %v8407_v49 = vld [vmem:[%s11242_s1 + $0x150c] ss:$16 sps:$4 sm:$0xff]  }
 0x2cc   :  { %5893 = vmatpush1.bf16.msra.mxu1 %v8330_v19  ;;  %5877 = vmatprep.subr.bf16.mxu0 %v8335_v11  ;;  %v8410_v16 = vld [vmem:[%s11242_s1 + $0x178c] ss:$16 sps:$4 sm:$0xff]   ;;  %v8405_v19 = vld [vmem:[%s11242_s1 + $0x1508] ss:$16 sps:$4 sm:$0xff]  }
 0x2cd   :  { %5894 = vmatprep.subr.bf16.mxu1 %v8338_v24  ;;  %v8413_v11 = vld [vmem:[%s11242_s1 + $0x176c] ss:$16 sps:$4 sm:$0xff]  }
 0x2ce   :  { %v8416_v24 = vld [vmem:[%s11242_s1 + $0x186c] ss:$16 sps:$4 sm:$0xff]  }
 0x2cf   :  { %5878 = vmatpush2.bf16.msra.mxu0 %v8333_v4  ;;  %v8411_v4 = vld [vmem:[%s11242_s1 + $0x1768] ss:$16 sps:$4 sm:$0xff]  }
 0x2d0   :  { %5895 = vmatpush1.bf16.msra.mxu1 %v8336_v31  ;;  %5929 = vmatprep.subr.bf16.mxu0 %v8344_v38  ;;  %v8414_v31 = vld [vmem:[%s11242_s1 + $0x1868] ss:$16 sps:$4 sm:$0xff]   ;;  %v8422_v38 = vld [vmem:[%s11242_s1 + $0x184c] ss:$16 sps:$4 sm:$0xff]  }
 0x2d1   :  { %5896 = vmatprep.subr.bf16.mxu1 %v8341_v54  ;;  %v8419_v54 = vld [vmem:[%s11242_s1 + $0x174c] ss:$16 sps:$4 sm:$0xff]  }
 0x2d2   :  { %v5635_v0 = vpop.f32.mrf.mxu0  ;;  %5880 = vmatmul.mubr.bf16.vlgmr.msra.gmra.mxu0 %v9651_v25  ;;  %v8356_v25 = vld [vmem:[%s11242_s1 + $0x16ac] ss:$16 sps:$4 sm:$0xff]  }
 0x2d3   :  { %v10948_v28 = vadd.f32 %v5635_v0, %v5595_v30  ;;  %5930 = vmatpush1.bf16.msra.mxu0 %v8342_v20  ;;  %5961 = vmatprep.mubr.bf16.mxu0 %v9667_v33  ;;  %v8362_v33 = vld [vmem:[%s11242_s1 + $0x168c] ss:$16 sps:$4 sm:$0xff]  }
 0x2d4   :  { %5897 = vmatpush1.bf16.msra.mxu1 %v8339_v5  ;;  %v5637_v45 = vpop.f32.mrf.mxu0  ;;  %5931 = vmatprep.subr.bf16.mxu0 %v8350_v21  ;;  %v8398_v30 = vld [vmem:[%s11242_s1 + $0x17cc] ss:$16 sps:$4 sm:$0xff]   ;;  %v8420_v21 = vld [vmem:[%s11242_s1 + $0x1848] ss:$16 sps:$4 sm:$0xff]  }
 0x2d5   :  { %5898 = vmatprep.subr.bf16.mxu1 %v8347_v23  ;;  %v10962_v37 = vadd.f32 %v5637_v45, %v5597_v50  ;;  %v8402_v50 = vld [vmem:[%s11242_s1 + $0x17a8] ss:$16 sps:$4 sm:$0xff]  }
 0x2d6   :  { %v5639_v32 = vpop.f32.mrf.mxu0  ;;  %v8417_v23 = vld [vmem:[%s11242_s1 + $0x1748] ss:$16 sps:$4 sm:$0xff]  }
 0x2d7   :  { %5932 = vmatpush1.bf16.msra.mxu0 %v8348_v26  ;;  %v8423_v45 = vld [vmem:[%s11242_s1 + $0x1728] ss:$16 sps:$4 sm:$0xff]  }
 0x2d8   :  { %5899 = vmatpush1.bf16.msra.mxu1 %v8345_v29  ;;  %v5640_v47 = vpop.f32.mrf.mxu0  ;;  %5933 = vmatprep.subr.bf16.mxu0 %v8356_v25  ;;  %v8425_v29 = vld [vmem:[%s11242_s1 + $0x172c] ss:$16 sps:$4 sm:$0xff]   ;;  %v8429_v32 = vld [vmem:[%s11242_s1 + $0x1708] ss:$16 sps:$4 sm:$0xff]  }
 0x2d9   :  { %5900 = vmatprep.subr.bf16.mxu1 %v8353_v36  ;;  %v8426_v36 = vld [vmem:[%s11242_s1 + $0x1828] ss:$16 sps:$4 sm:$0xff]   ;;  %v6012_v47 = vmax.f32 %v10555_v44, 0.0  ;;  %v8438_v44 = vld [vmem:[%s11244_s3 + $0x30] sm:$0xff]  }
 0x2db   :  { %5934 = vmatpush1.bf16.msra.mxu0 %v8354_v35  ;;  %v8435_v35 = vld [vmem:[%s11244_s3 + $0x78] sm:$0xff]  }
 0x2dc   :  { %5901 = vmatpush1.bf16.msra.mxu1 %v8351_v40  ;;  %5935 = vmatprep.subr.bf16.mxu0 %v8362_v33  ;;  %v8432_v40 = vld [vmem:[%s11242_s1 + $0x1808] ss:$16 sps:$4 sm:$0xff]   ;;  %v8437_v33 = vld [vmem:[%s11244_s3 + $0x70] sm:$0xff]  }
 0x2dd   :  { %5902 = vmatprep.subr.bf16.mxu1 %v8359_v41  ;;  %v8436_v41 = vld [vmem:[%s11244_s3 + $0x38] sm:$0xff]  }
 0x2df   :  { %5936 = vmatpush1.bf16.msra.mxu0 %v8360_v53 }
 0x2e0   :  { %5903 = vmatpush1.bf16.msra.mxu1 %v8357_v15  ;;  %5937 = vmatprep.subr.bf16.mxu0 %v8368_v13  ;;  %v6016_v15 = vpack.c.bf16 %v6012_v47, %v6012_v47 }
 0x2e1   :  { %5904 = vmatprep.subr.bf16.mxu1 %v8365_v48 }
 0x2e3   :  { %5938 = vmatpush1.bf16.msra.mxu0 %v8366_v46 }
 0x2e4   :  { %5905 = vmatpush2.bf16.msra.mxu1 %v8363_v59  ;;  %5939 = vmatprep.subr.bf16.mxu0 %v8374_v51  ;;  %v8439_v59 = vld [vmem:[%s11244_s3 + $0x68] sm:$0xff]   ;;  %v8441_v51 = vld [vmem:[%s11244_s3 + $0x60] sm:$0xff]  }
 0x2e5   :  { %5906 = vmatprep.subr.bf16.mxu1 %v8371_v22 }
 0x2e7   :  { %5940 = vmatpush1.bf16.msra.mxu0 %v8372_v55  ;;  %v8452_v55 = vld [vmem:[%s11244_s3 + $0xb8] sm:$0xff]  }
 0x2e8   :  { %5907 = vmatpush2.bf16.msra.mxu1 %v8369_v56  ;;  %5941 = vmatprep.subr.bf16.mxu0 %v8380_v61  ;;  %v8451_v56 = vld [vmem:[%s11244_s3 + $0xf8] sm:$0xff]  }
 0x2e9   :  { %5908 = vmatprep.subr.bf16.mxu1 %v8377_v58  ;;  %v8442_v58 = vld [vmem:[%s11244_s3 + $0x20] sm:$0xff]   ;;  %v8443_v61 = vld [vmem:[%s11244_s3 + $0x58] sm:$0xff]  }
 0x2eb   :  { %5942 = vmatpush1.bf16.msra.mxu0 %v8378_v57  ;;  %v8445_v57 = vld [vmem:[%s11244_s3 + $0x50] sm:$0xff]  }
 0x2ec   :  { %5909 = vmatpush2.bf16.msra.mxu1 %v8375_v42  ;;  %5943 = vmatprep.subr.bf16.mxu0 %v8386_v17  ;;  %v8444_v42 = vld [vmem:[%s11244_s3 + $0x18] sm:$0xff]   ;;  %v8447_v17 = vld [vmem:[%s11244_s3 + $0x48] sm:$0xff]  }
 0x2ed   :  { %5910 = vmatprep.subr.bf16.mxu1 %v8383_v62  ;;  %v8446_v62 = vld [vmem:[%s11244_s3 + $0x10] sm:$0xff]  }
 0x2ef   :  { %5944 = vmatpush1.bf16.msra.mxu0 %v8384_v60  ;;  %v8449_v60 = vld [vmem:[%s11244_s3 + $0x40] sm:$0xff]  }
 0x2f0   :  { %5911 = vmatpush2.bf16.msra.mxu1 %v8381_v6  ;;  %5945 = vmatprep.subr.bf16.mxu0 %v8392_v2  ;;  %v8448_v6 = vld [vmem:[%s11244_s3 + $0x8] sm:$0xff]   ;;  %v6011_v2 = vmax.f32 %v10541_v34, 0.0 }
 0x2f1   :  { %5912 = vmatprep.subr.bf16.mxu1 %v8389_v63  ;;  %v8450_v63 = vld [vmem:[%s11244_s3] sm:$0xff]   ;;  %v8455_v34 = vld [vmem:[%s11244_s3 + $0xe8] sm:$0xff]  }
 0x2f3   :  { %5946 = vmatpush2.bf16.msra.mxu0 %v8390_v3  ;;  %v8453_v3 = vld [vmem:[%s11244_s3 + $0xf0] sm:$0xff]  }
 0x2f4   :  { %5913 = vmatpush2.bf16.msra.mxu1 %v8387_v43  ;;  %5947 = vmatprep.subr.bf16.mxu0 %v8398_v30  ;;  %v6015_v43 = vpack.c.bf16 %v6011_v2, %v6011_v2 }
 0x2f5   :  { %5914 = vmatprep.subr.bf16.mxu1 %v8395_v1  ;;  %v8454_v1 = vld [vmem:[%s11244_s3 + $0xb0] sm:$0xff]  }
 0x2f7   :  { %5948 = vmatpush2.bf16.msra.mxu0 %v8396_v8 }
 0x2f8   :  { %5915 = vmatpush2.bf16.msra.mxu1 %v8393_v7  ;;  %5949 = vmatprep.subr.bf16.mxu0 %v8404_v10  ;;  %v8456_v10 = vld [vmem:[%s11244_s3 + $0xa8] sm:$0xff]  }
 0x2f9   :  { %5916 = vmatprep.subr.bf16.mxu1 %v8401_v39 }
 0x2fb   :  { %5950 = vmatpush2.bf16.msra.mxu0 %v8402_v50 }
 0x2fc   :  { %5917 = vmatpush2.bf16.msra.mxu1 %v8399_v12  ;;  %5951 = vmatprep.subr.bf16.mxu0 %v8410_v16  ;;  %v8458_v16 = vld [vmem:[%s11244_s3 + $0xa0] sm:$0xff]  }
 0x2fd   :  { %5918 = vmatprep.subr.bf16.mxu1 %v8407_v49  ;;  %v8457_v49 = vld [vmem:[%s11244_s3 + $0xe0] sm:$0xff]  }
 0x2ff   :  { %5952 = vmatpush2.bf16.msra.mxu0 %v8408_v18  ;;  %v8460_v18 = vld [vmem:[%s11244_s3 + $0x98] sm:$0xff]  }
 0x300   :  { %5919 = vmatpush2.bf16.msra.mxu1 %v8405_v19  ;;  %5953 = vmatprep.subr.bf16.mxu0 %v8413_v11  ;;  %v8459_v19 = vld [vmem:[%s11244_s3 + $0xd8] sm:$0xff]   ;;  %v8461_v11 = vld [vmem:[%s11244_s3 + $0xd0] sm:$0xff]  }
 0x301   :  { %5978 = vmatprep.subr.bf16.mxu1 %v8416_v24  ;;  %v8462_v24 = vld [vmem:[%s11244_s3 + $0x90] sm:$0xff]  }
 0x303   :  { %v5676_v5 = vpop.f32.mrf.mxu1  ;;  %5921 = vmatmul.mubr.bf16.vlgmr.msra.gmra.mxu1 %v9843_v14  ;;  %5954 = vmatpush2.bf16.msra.mxu0 %v8411_v4  ;;  %v8428_v14 = vld [vmem:[%s11242_s1 + $0x182c] ss:$16 sps:$4 sm:$0xff]  }
 0x304   :  { %v5677_v20 = vadd.f32 %v5676_v5, %v10948_v28  ;;  %5979 = vmatpush1.bf16.msra.mxu1 %v8414_v31  ;;  %5955 = vmatprep.subr.bf16.mxu0 %v8419_v54 }
 0x305   :  { %v5678_v0 = vpop.f32.mrf.mxu1  ;;  %5980 = vmatprep.subr.bf16.mxu1 %v8422_v38  ;;  %6002 = vmatprep.mubr.bf16.mxu1 %v8495_v52  ;;  %v8434_v52 = vld [vmem:[%s11242_s1 + $0x180c] ss:$16 sps:$4 sm:$0xff]  }
 0x306   :  { %v5679_v28 = vadd.f32 %v5678_v0, %v10962_v37  ;;  %v8431_v37 = vld [vmem:[%s11242_s1 + $0x170c] ss:$16 sps:$4 sm:$0xff]   ;;  %v8465_v0 = vld [vmem:[%s11244_s3 + $0xc0] sm:$0xff]  }
 0x307   :  { %v5680_v26 = vpop.f32.mrf.mxu1  ;;  %5956 = vmatpush2.bf16.msra.mxu0 %v8417_v23  ;;  %v8463_v38 = vld [vmem:[%s11244_s3 + $0xc8] sm:$0xff]  }
 0x308   :  { %5981 = vmatpush1.bf16.msra.mxu1 %v8420_v21  ;;  %5957 = vmatprep.subr.bf16.mxu0 %v8425_v29  ;;  %v8466_v29 = vld [vmem:[%s11244_s3 + $0x80] sm:$0xff]  }
 0x309   :  { %v5681_v25 = vpop.f32.mrf.mxu1  ;;  %5982 = vmatprep.subr.bf16.mxu1 %v8428_v14 }
 0x30b   :  { %5958 = vmatpush2.bf16.msra.mxu0 %v8423_v45 }
 0x30c   :  { %5983 = vmatpush1.bf16.msra.mxu1 %v8426_v36  ;;  %5959 = vmatprep.subr.bf16.mxu0 %v8431_v37 }
 0x30d   :  { %5984 = vmatprep.subr.bf16.mxu1 %v8434_v52 }
 0x30f   :  { %5960 = vmatpush2.bf16.msra.mxu0 %v8429_v32 }
 0x310   :  { %5985 = vmatpush1.bf16.msra.mxu1 %v8432_v40  ;;  %7209 = vmatprep.subr.bf16.mxu0 %v8435_v35 }
 0x311   :  { %7231 = vmatprep.subr.bf16.mxu1 %v8451_v56 }
 0x312   :  { %v5717_v53 = vpop.f32.mrf.mxu0  ;;  %5962 = vmatmul.mubr.bf16.vlgmr.msra.gmra.mxu0 %v9865_v27  ;;  %v8440_v27 = vld [vmem:[%s11244_s3 + $0x28] sm:$0xff]  }
 0x313   :  { %7175 = vmatmul.mubr.msk.bf16.vlgmr.msra.gmra.mxu1 %vm4941_vm0, %v9929_v9  ;;  %v5718_v48 = vadd.f32 %v5717_v53, %v5677_v20  ;;  %7210 = vmatpush3.bf16.msra.mxu0 %v8436_v41  ;;  %v8464_v20 = vld [vmem:[%s11244_s3 + $0x88] sm:$0xff]  }
 0x314   :  { %6314 = vmatprep.mubr.bf16.mxu0 %v6016_v15  ;;  %v5719_v13 = vpop.f32.mrf.mxu0  ;;  %7211 = vmatprep.subr.bf16.mxu0 %v8437_v33 }
 0x315   :  { %v5720_v46 = vadd.f32 %v5719_v13, %v5679_v28  ;;  %7232 = vmatpush3.bf16.msra.mxu1 %v8452_v55 }
 0x316   :  { %v5721_v22 = vpop.f32.mrf.mxu0  ;;  %7233 = vmatprep.subr.bf16.mxu1 %v8453_v3 }
 0x317   :  { %7212 = vmatpush3.bf16.msra.mxu0 %v8438_v44 }
 0x318   :  { %v5722_v9 = vpop.f32.mrf.mxu0  ;;  %7213 = vmatprep.subr.bf16.mxu0 %v8439_v59 }
 0x319   :  { %7234 = vmatpush3.bf16.msra.mxu1 %v8454_v1  ;;  %v7176_v1 = vld [vmem:[%s11245_s4] ss:$0 sm:$0xff]  ;;  %s8496_s4 = smov [#allocation2]  }
 0x31a   :  { %7235 = vmatprep.subr.bf16.mxu1 %v8455_v34  ;;  %s6381_s16 = sshll.u32 %s8496_s4, 4  ;;  %s6382_s16 = int_to_ptr.vmem [resolvable:$true] %s6381_s16 }
 0x31b   :  { %7214 = vmatpush3.bf16.msra.mxu0 %v8440_v27  ;;  %s8472_s17 = scalar_lea.vmem %s6382_s16, 32  ;;  %p8477_p1 = scmp.lt.s32.totalorder %s6382_s16, %s6382_s16 }
 0x31c   :  { %7215 = vmatprep.subr.bf16.mxu0 %v8441_v51  ;;  %p8473_p0 = scmp.ne.s32.totalorder %s6382_s16, %s8472_s17  ;;  %p8478_p2 = scmp.lt.s32.totalorder %s8472_s17, %s8472_s17 }
 0x31d   :  { %7236 = vmatpush3.bf16.msra.mxu1 %v8456_v10 }
 0x31e   :  { %7237 = vmatprep.subr.bf16.mxu1 %v8457_v49  ;;  %p8479_p3 = por %p8478_p2, %p8477_p1 }
 0x31f   :  { %7216 = vmatpush3.bf16.msra.mxu0 %v8442_v58 }
 0x320   :  { %7217 = vmatprep.subr.bf16.mxu0 %v8443_v61  ;;  %p8480_p4 = pnand %p8479_p3, %p8473_p0 }
 0x321   :  { %7238 = vmatpush3.bf16.msra.mxu1 %v8458_v16 }
 0x322   :  { %7239 = vmatprep.subr.bf16.mxu1 %v8459_v19 }
 0x323   :  { %7218 = vmatpush3.bf16.msra.mxu0 %v8444_v42 }
 0x324   :  { %7219 = vmatprep.subr.bf16.mxu0 %v8445_v57 }
 0x325   :  { %7240 = vmatpush3.bf16.msra.mxu1 %v8460_v18 }
 0x326   :  { %7241 = vmatprep.subr.bf16.mxu1 %v8461_v11 }
 0x327   :  { %7220 = vmatpush3.bf16.msra.mxu0 %v8446_v62 }
 0x328   :  { %7221 = vmatprep.subr.bf16.mxu0 %v8447_v17 }
 0x329   :  { %7242 = vmatpush3.bf16.msra.mxu1 %v8462_v24 }
 0x32a   :  { %7243 = vmatprep.subr.bf16.mxu1 %v8463_v38 }
 0x32b   :  { %7222 = vmatpush3.bf16.msra.mxu0 %v8448_v6 }
 0x32c   :  { %7223 = vmatprep.subr.bf16.mxu0 %v8449_v60 }
 0x32d   :  { %7244 = vmatpush3.bf16.msra.mxu1 %v8464_v20 }
 0x32e   :  { %7245 = vmatprep.subr.bf16.mxu1 %v8465_v0 }
 0x32f   :  { %7224 = vmatpush3.bf16.msra.mxu0 %v8450_v63 }
 0x331   :  { %7246 = vmatpush3.bf16.msra.mxu1 %v8466_v29 }
 0x332   :  { %6315 = vmatmul.mubr.bf16.vlgmr.msra.gmra.mxu0 %v6015_v43 }
 0x343   :  { %v5758_v30 = vpop.f32.mrf.mxu1 }
 0x344   :  { %v5759_v7 = vadd.f32 %v5758_v30, %v5718_v48 }
 0x345   :  { %v5760_v8 = vpop.f32.mrf.mxu1 }
 0x346   :  { %v5761_v39 = vadd.f32 %v5760_v8, %v5720_v46 }
 0x347   :  { %v5762_v12 = vpop.f32.mrf.mxu1 }
 0x349   :  { %v5763_v50 = vpop.f32.mrf.mxu1 }
 0x352   :  { %v5799_v4 = vpop.f32.mrf.mxu0 }
 0x353   :  { %v5800_v31 = vadd.f32 %v5799_v4, %v5759_v7 }
 0x354   :  { %v5801_v54 = vpop.f32.mrf.mxu0 }
 0x355   :  { %v5802_v5 = vadd.f32 %v5801_v54, %v5761_v39 }
 0x356   :  { %v5803_v23 = vpop.f32.mrf.mxu0 }
 0x358   :  { %v5804_v21 = vpop.f32.mrf.mxu0 }
 0x383   :  { %v5840_v14 = vpop.f32.mrf.mxu1 }
 0x384   :  { %v5841_v28 = vadd.f32 %v5840_v14, %v5800_v31 }
 0x385   :  { %v5842_v26 = vpop.f32.mrf.mxu1 }
 0x386   :  { %v5843_v45 = vadd.f32 %v5842_v26, %v5802_v5 }
 0x387   :  { %v5844_v36 = vpop.f32.mrf.mxu1 }
 0x389   :  { %v5845_v25 = vpop.f32.mrf.mxu1 }
 0x392   :  { %v5881_v37 = vpop.f32.mrf.mxu0 }
 0x393   :  { %v5882_v15 = vadd.f32 %v5881_v37, %v5841_v28 }
 0x394   :  { %v5883_v52 = vpop.f32.mrf.mxu0 }
 0x395   :  { %v5884_v53 = vadd.f32 %v5883_v52, %v5843_v45 }
 0x396   :  { %v5885_v32 = vpop.f32.mrf.mxu0 }
 0x398   :  { %v5886_v40 = vpop.f32.mrf.mxu0 }
 0x3c3   :  { %v5922_v35 = vpop.f32.mrf.mxu1 }
 0x3c4   :  { %v5923_v48 = vadd.f32 %v5922_v35, %v5882_v15 }
 0x3c5   :  { %v5924_v47 = vpop.f32.mrf.mxu1 }
 0x3c6   :  { %v5925_v59 = vadd.f32 %v5924_v47, %v5884_v53 }
 0x3c7   :  { %v5926_v41 = vpop.f32.mrf.mxu1 }
 0x3c9   :  { %v5927_v33 = vpop.f32.mrf.mxu1 }
 0x3d2   :  { %v5963_v44 = vpop.f32.mrf.mxu0 }
 0x3d3   :  { %v6004_v13 = vpop.f32.mrf.mxu1  ;;  %v5964_v46 = vadd.f32 %v5963_v44, %v5923_v48 }
 0x3d4   :  { %v5965_v22 = vpop.f32.mrf.mxu0 }
 0x3d5   :  { %v6006_v27 = vpop.f32.mrf.mxu1  ;;  %v6005_v9 = vadd.f32 %v6004_v13, %v5964_v46  ;;  %v5966_v51 = vadd.f32 %v5965_v22, %v5925_v59 }
 0x3d6   :  { %v5967_v56 = vpop.f32.mrf.mxu0 }
 0x3d7   :  { %v6008_v55 = vpop.f32.mrf.mxu1  ;;  %v6007_v58 = vadd.f32 %v6006_v27, %v5966_v51  ;;  %v6013_v61 = vmax.f32 %v6005_v9, 0.0 }
 0x3d8   :  { %v5968_v42 = vpop.f32.mrf.mxu0 }
 0x3d9   :  { %v6009_v57 = vpop.f32.mrf.mxu1  ;;  %v6014_v62 = vmax.f32 %v6007_v58, 0.0  ;;  %v6017_v6 = vpack.c.bf16 %v6013_v61, %v6013_v61 }
 0x3db   :  { %v6018_v17 = vpack.c.bf16 %v6014_v62, %v6014_v62 }
 0x3dd   :  { %6354 = vmatprep.mubr.bf16.mxu1 %v6018_v17 }
 0x3de   :  { %6355 = vmatmul.mubr.bf16.vlgmr.msra.gmra.mxu1 %v6017_v6 }
 0x3f2   :  { %v7225_v60 = vpop.f32.mrf.mxu0 }
 0x3f4   :  { %v7226_v63 = vpop.f32.mrf.mxu0 }
 0x3f5   :  { %v7227_v2 = vadd.f32 %v7226_v63, %v7225_v60 }
 0x3f6   :  { %v7228_v43 = vpop.f32.mrf.mxu0 }
 0x3f7   :  { %v6317_v8 = vadd.f32 %v7227_v2, %v7176_v1 }
 0x3f8   :  { %v7229_v3 = vpop.f32.mrf.mxu0 }
 0x49e   :  { %v7247_v30 = vpop.f32.mrf.mxu1 }
 0x4a0   :  { %v7248_v7 = vpop.f32.mrf.mxu1 }
 0x4a1   :  { %v7249_v34 = vadd.f32 %v7248_v7, %v7247_v30 }
 0x4a2   :  { %v7250_v39 = vpop.f32.mrf.mxu1 }
 0x4a3   :  { %v6357_v10 = vadd.f32 %v7249_v34, %v6317_v8 }
 0x4a4   :  { %v7251_v12 = vpop.f32.mrf.mxu1 }
 0x4a5   :  { %v6363_v50 = vsel %vm6362_vm1, %v6357_v10, -inf }
 0x4a6   :  { %6364 = vmax.xlane.f32.xlu0 %v6363_v50 }
 0x52f   :  { %v6365_v49 = vpop.xlane.xlu0 %6364 }
 0x530   :  { %v6366_v16 = vsub.f32 %v6357_v10, %v6365_v49 }
 0x532   :  { %v6367_v19 = vmul.f32 1.442695, %v6366_v16 }
 0x534   :  { %8467 = vpow2.f32 %v6367_v19 }
 0x541   :  { %v8468_v18 = vpop.eup %8467 }
 0x542   :  { %v6369_v11 = vsel %vm6362_vm1, %v8468_v18, 0.0 }
 0x543   :  { %6370 = vadd.xlane.f32.xlu0 %v6369_v11 }
 0x5cc   :  { %v6371_v24 = vpop.xlane.xlu0 %6370 }
 0x5cd   :  { %8469 = vrcp.f32 %v6371_v24 }
 0x5da   :  { %v8470_v4 = vpop.eup %8469 }
 0x5db   :  { %v6373_v31 = vmul.f32 %v8470_v4, %v8468_v18 }
 0x5dd   :  { %6374 = vst.msk [vmem:[#allocation2] sm:$0x3] %vm6362_vm1, %v6373_v31 }
 0x5de   :  { %8483 = shalt.err (!%p8480_p4)
}
 0x5df   :  { %6384 = dma.vmem_to_hbm [thread:$0]  %s6382_s16, 32, %s11246_s5, [#allocation3]  }
 0x5e0   :  { %8492 = dma.done.wait [#allocation3], 32  }
 0x5e1   :  { %8493 = vsyncadd [#allocation3], 4294967264 }
 0x5e2   :  { %6388 = vsyncpa [#allocation3], 1 }

</bundles_post_ra>
